<compile_context>
chip_gen: v7x
topology: tpu7x:2x2x1
jax: 0.10.0
libtpu: 0.0.40
codegen_flags: <defaults>
</compile_context>

<pallas_src>
import numpy as np
import jax
import jax.numpy as jnp
from jax.experimental import pallas as pl
from jax.experimental.pallas import tpu as pltpu

D_K = 64
D_V = 64
N_HEADS = 8
D_EMB = 512
LN_EPS = 1e-5
MASK_FILL = -1000000000.0


def _mha_kernel(q_ref, k_ref, v_ref, mask_ref,
                wq_ref, bq_ref, wk_ref, bk_ref, wv_ref, bv_ref,
                wo_ref, bo_ref, gamma_ref, beta_ref,
                out_ref, attn_ref):
    BB, L, D = q_ref.shape
    M = BB * L
    H = N_HEADS

    # Raw inputs.  Q stays f32 (residual); K/V/mask arrive bf16 from the wrapper.
    x_q = q_ref[...].reshape(M, D)
    x_k = k_ref[...].reshape(M, D)
    x_v = v_ref[...].reshape(M, D)

    # QKV projections: bf16 MXU operands, f32 accumulation.  1/sqrt(d_k) is
    # folded into wq/bq by the wrapper, so no per-score scaling below.
    q = jnp.dot(x_q.astype(jnp.bfloat16), wq_ref[...],
                preferred_element_type=jnp.float32) + bq_ref[...]
    k = jnp.dot(x_k, wk_ref[...], preferred_element_type=jnp.float32) + bk_ref[...]
    v = jnp.dot(x_v, wv_ref[...], preferred_element_type=jnp.float32) + bv_ref[...]

    def split_heads(x, d):
        # [M, H*d] -> [(BB*H), L, d] bf16.  Static lane slices + a major-axis
        # concat (both well supported by Mosaic); everything downstream is
        # head-batched.
        xb = x.astype(jnp.bfloat16)
        parts = [xb[:, h * d:(h + 1) * d].reshape(BB, 1, L, d) for h in range(H)]
        return jnp.concatenate(parts, axis=1).reshape(BB * H, L, d)

    qh = split_heads(q, D_K)
    kh = split_heads(k, D_K)
    vh = split_heads(v, D_V)

    # Head-batched scores (no explicit K transpose), one mask add, one softmax.
    scores = jnp.einsum("bqd,bkd->bqk", qh, kh,
                        preferred_element_type=jnp.float32).reshape(BB, H, L, L)
    scores = scores + mask_ref[...].astype(jnp.float32)[:, None, :, :]

    m = jnp.max(scores, axis=-1, keepdims=True)
    e = jnp.exp(scores - m)
    # EUP reciprocal instead of a VALU divide.
    w = e * pl.reciprocal(jnp.sum(e, axis=-1, keepdims=True), approx=True)

    # Single full-block store of the attention weights (bf16 by default).
    attn_ref[...] = w.astype(attn_ref.dtype)

    # Head-batched context, merged back to [M, H*d_v] for the output matmul.
    ctx = jnp.einsum("bqk,bkd->bqd",
                     w.reshape(BB * H, L, L).astype(jnp.bfloat16), vh,
                     preferred_element_type=jnp.float32)      # [(BB*H), L, d_v]
    ctx = ctx.reshape(BB, H, L, D_V)
    context = jnp.concatenate([ctx[:, h].reshape(M, D_V) for h in range(H)],
                              axis=-1).astype(jnp.bfloat16)    # [M, H*d_v]

    # Output projection + residual + LayerNorm.
    out = jnp.dot(context, wo_ref[...],
                  preferred_element_type=jnp.float32) + bo_ref[...]
    out = out + x_q

    mean = jnp.mean(out, axis=-1, keepdims=True)
    var = jnp.mean((out - mean) ** 2, axis=-1, keepdims=True)
    y = (out - mean) * jax.lax.rsqrt(var + LN_EPS) * gamma_ref[...] + beta_ref[...]
    out_ref[...] = y.reshape(BB, L, D).astype(out_ref.dtype)


def multi_head_attention(Q, K, V, attn_mask, params, attn_dtype=jnp.bfloat16):
    """Q, K, V: [B, L, D_EMB] float32.  attn_mask: [B, Lq, Lk] bool (True == masked)."""
    B, L, D = Q.shape
    assert D == D_EMB

    # ---------------- per-generation tiling heuristics ----------------------
    kind = ""
    try:
        kind = jax.devices()[0].device_kind.lower()
    except Exception:
        pass
    is_v7x = "v7" in kind                     # 2 TensorCores, 64 MiB VMEM
    vmem_limit = (48 << 20) if is_v7x else (96 << 20)

    attn_bytes = np.dtype(attn_dtype).itemsize
    row_target = 256                          # rows per step to fill the 256-wide MXU

    bb = max(1, min(B, max(1, row_target // max(L, 1))))
    if is_v7x and B >= 2:
        bb = max(1, min(bb, B // 2))          # keep >=2 grid steps only where 2 TCs exist

    def step_bytes(bb_):
        per = (bb_ * L * D_EMB * 4            # Q (f32)
               + 2 * bb_ * L * D_EMB * 2      # K, V (bf16)
               + bb_ * L * L * 2              # additive mask (bf16)
               + bb_ * L * D_EMB * 4          # output (f32)
               + bb_ * N_HEADS * L * L * attn_bytes)   # attention weights
        return 2 * per                        # double-buffered pipeline

    budget = int(0.75 * vmem_limit)
    while bb > 1 and step_bytes(bb) > budget:
        bb -= 1
    while B % bb:
        bb -= 1
    n_steps = B // bb
    # TODO(synk): for L >~ 512 add a second grid axis tiling the query length so
    # the [bb, H, L, L] attention block stays within VMEM (esp. v7x's 64 MiB).

    # ---------------- weight / input preparation ----------------------------
    scale = 1.0 / float(np.sqrt(D_K))
    wq = (params["wq"] * scale).astype(jnp.bfloat16)   # fold 1/sqrt(d_k) into W_Q
    bq = (params["bq"] * scale).astype(jnp.float32)    # ... and into b_Q
    wk = params["wk"].astype(jnp.bfloat16)
    wv = params["wv"].astype(jnp.bfloat16)
    wo = params["wo"].astype(jnp.bfloat16)
    # TODO(synk): a fused [512, 1536] QKV matmul is only valid when Q is K is V
    # (self-attention); this module's signature allows distinct Q/K/V, so the
    # three projections stay separate.

    Kb = K.astype(jnp.bfloat16)
    Vb = V.astype(jnp.bfloat16)
    mask_add = jnp.where(attn_mask, MASK_FILL, 0.0).astype(jnp.bfloat16)

    blk3 = lambda i: (i, 0, 0)
    rep2 = lambda i: (0, 0)

    def build(weight_mode):
        def wspec(shape):
            if weight_mode is None:
                return pl.BlockSpec(shape, rep2)
            return pl.BlockSpec(shape, rep2, pipeline_mode=weight_mode)

        in_specs = [
            pl.BlockSpec((bb, L, D_EMB), blk3),            # Q (f32)
            pl.BlockSpec((bb, L, D_EMB), blk3),            # K (bf16)
            pl.BlockSpec((bb, L, D_EMB), blk3),            # V (bf16)
            pl.BlockSpec((bb, L, L), blk3),                # additive mask (bf16)
            wspec((D_EMB, N_HEADS * D_K)),                 # W_Q (bf16, scaled)
            wspec((1, N_HEADS * D_K)),                     # b_Q (f32, scaled)
            wspec((D_EMB, N_HEADS * D_K)),                 # W_K (bf16)
            wspec((1, N_HEADS * D_K)),                     # b_K
            wspec((D_EMB, N_HEADS * D_V)),                 # W_V (bf16)
            wspec((1, N_HEADS * D_V)),                     # b_V
            wspec((N_HEADS * D_V, D_EMB)),                 # W_O (bf16)
            wspec((1, D_EMB)),                             # b_O
            wspec((1, D_EMB)),                             # gamma
            wspec((1, D_EMB)),                             # beta
        ]
        return pl.pallas_call(
            _mha_kernel,
            out_shape=(
                jax.ShapeDtypeStruct((B, L, D_EMB), jnp.float32),
                jax.ShapeDtypeStruct((B, N_HEADS, L, L), attn_dtype),
            ),
            grid_spec=pltpu.PrefetchScalarGridSpec(
                num_scalar_prefetch=0,
                grid=(n_steps,),
                in_specs=in_specs,
                out_specs=[
                    pl.BlockSpec((bb, L, D_EMB), blk3),
                    pl.BlockSpec((bb, N_HEADS, L, L), lambda i: (i, 0, 0, 0)),
                ],
            ),
            compiler_params=pltpu.CompilerParams(
                dimension_semantics=("parallel",),
                vmem_limit_bytes=vmem_limit,
            ),
        )

    args = (Q, Kb, Vb, mask_add, wq, bq, wk, params["bk"], wv, params["bv"],
            wo, params["bo"], params["gamma"], params["beta"])

    # Grid-invariant weights only need a single VMEM buffer (pl.Buffered(1));
    # fall back to default double buffering if this JAX build rejects it.
    last_err = None
    for use_buffered in (True, False):
        try:
            mode = pl.Buffered(buffer_count=1) if use_buffered else None
            return build(mode)(*args)
        except Exception as e:  # pragma: no cover - fallback path
            last_err = e
    raise last_err


def _reference(Q, K, V, attn_mask, params):
    """Plain-JAX f32 reference mirroring the PyTorch forward."""
    B, L, _ = Q.shape
    q = (Q @ params["wq"] + params["bq"]).reshape(B, L, N_HEADS, D_K).transpose(0, 2, 1, 3)
    k = (K @ params["wk"] + params["bk"]).reshape(B, L, N_HEADS, D_K).transpose(0, 2, 1, 3)
    v = (V @ params["wv"] + params["bv"]).reshape(B, L, N_HEADS, D_V).transpose(0, 2, 1, 3)
    scores = jnp.einsum("bhqd,bhkd->bhqk", q, k) / np.sqrt(D_K)
    scores = jnp.where(attn_mask[:, None, :, :], MASK_FILL, scores)
    weights = jax.nn.softmax(scores, axis=-1)
    ctx = jnp.einsum("bhqk,bhkd->bhqd", weights, v)
    ctx = ctx.transpose(0, 2, 1, 3).reshape(B, L, N_HEADS * D_V)
    out = ctx @ params["wo"] + params["bo"] + Q
    mean = jnp.mean(out, axis=-1, keepdims=True)
    var = jnp.mean((out - mean) ** 2, axis=-1, keepdims=True)
    out = (out - mean) * jax.lax.rsqrt(var + LN_EPS) * params["gamma"] + params["beta"]
    return out, weights


if __name__ == "__main__":
    B, L = 3, 8          # batch_size=3 in the original module
    key = jax.random.PRNGKey(0)
    keys = jax.random.split(key, 12)

    params = {
        "wq": jax.random.normal(keys[0], (D_EMB, N_HEADS * D_K), jnp.float32) * 0.02,
        "bq": jax.random.normal(keys[1], (1, N_HEADS * D_K), jnp.float32) * 0.02,
        "wk": jax.random.normal(keys[2], (D_EMB, N_HEADS * D_K), jnp.float32) * 0.02,
        "bk": jax.random.normal(keys[3], (1, N_HEADS * D_K), jnp.float32) * 0.02,
        "wv": jax.random.normal(keys[4], (D_EMB, N_HEADS * D_V), jnp.float32) * 0.02,
        "bv": jax.random.normal(keys[5], (1, N_HEADS * D_V), jnp.float32) * 0.02,
        "wo": jax.random.normal(keys[6], (N_HEADS * D_V, D_EMB), jnp.float32) * 0.02,
        "bo": jax.random.normal(keys[7], (1, D_EMB), jnp.float32) * 0.02,
        "gamma": jnp.ones((1, D_EMB), jnp.float32),
        "beta": jnp.zeros((1, D_EMB), jnp.float32),
    }

    Q = jax.random.normal(keys[8], (B, L, D_EMB), jnp.float32)
    K = jax.random.normal(keys[9], (B, L, D_EMB), jnp.float32)
    V = jax.random.normal(keys[10], (B, L, D_EMB), jnp.float32)
    # causal mask (True == masked), shape [B, Lq, Lk] like the PyTorch attn_mask
    attn_mask = jnp.broadcast_to(
        jnp.triu(jnp.ones((L, L), jnp.bool_), k=1)[None, :, :], (B, L, L))

    out, attn = multi_head_attention(Q, K, V, attn_mask, params)
    out = jax.block_until_ready(out)
    attn = jax.block_until_ready(attn)

    ref_out, ref_attn = _reference(Q, K, V, attn_mask, params)
    # Tolerances account for bf16 MXU operands / bf16 attn output / approx
    # reciprocal in the kernel versus the pure-f32 reference.
    np.testing.assert_allclose(np.asarray(out), np.asarray(ref_out),
                               rtol=2e-2, atol=2e-2)
    np.testing.assert_allclose(np.asarray(attn.astype(jnp.float32)),
                               np.asarray(ref_attn), rtol=3e-2, atol=1.5e-2)

    print("KERNEL_OK")
</pallas_src>

<mosaic_0001>
module attributes {stable_mosaic.version = 11 : i64} {
  func.func @_mha_kernel(%arg0: i32, %arg1: memref<3x8x512xf32, #tpu.memory_space<vmem>>, %arg2: memref<3x8x512xbf16, #tpu.memory_space<vmem>>, %arg3: memref<3x8x512xbf16, #tpu.memory_space<vmem>>, %arg4: memref<3x8x8xbf16, #tpu.memory_space<vmem>>, %arg5: memref<512x512xbf16, #tpu.memory_space<vmem>>, %arg6: memref<1x512xf32, #tpu.memory_space<vmem>>, %arg7: memref<512x512xbf16, #tpu.memory_space<vmem>>, %arg8: memref<1x512xf32, #tpu.memory_space<vmem>>, %arg9: memref<512x512xbf16, #tpu.memory_space<vmem>>, %arg10: memref<1x512xf32, #tpu.memory_space<vmem>>, %arg11: memref<512x512xbf16, #tpu.memory_space<vmem>>, %arg12: memref<1x512xf32, #tpu.memory_space<vmem>>, %arg13: memref<1x512xf32, #tpu.memory_space<vmem>>, %arg14: memref<1x512xf32, #tpu.memory_space<vmem>>, %arg15: memref<3x8x512xf32, #tpu.memory_space<vmem>>, %arg16: memref<3x8x8x8xbf16, #tpu.memory_space<vmem>>) attributes {dimension_semantics = [#tpu.dimension_semantics<parallel>], iteration_bounds = array<i64: 1>, scalar_prefetch = 0 : i64, scratch_operands = 0 : i64, tpu.core_type = #tpu.core_type<tc>, window_params = [{transform_indices = @transform_0, window_bounds = array<i64: 3, 8, 512>}, {transform_indices = @transform_1, window_bounds = array<i64: 3, 8, 512>}, {transform_indices = @transform_2, window_bounds = array<i64: 3, 8, 512>}, {transform_indices = @transform_3, window_bounds = array<i64: 3, 8, 8>}, {pipeline_mode = #tpu.pipeline_mode<synchronous>, transform_indices = @transform_4, window_bounds = array<i64: 512, 512>}, {pipeline_mode = #tpu.pipeline_mode<synchronous>, transform_indices = @transform_5, window_bounds = array<i64: 1, 512>}, {pipeline_mode = #tpu.pipeline_mode<synchronous>, transform_indices = @transform_6, window_bounds = array<i64: 512, 512>}, {pipeline_mode = #tpu.pipeline_mode<synchronous>, transform_indices = @transform_7, window_bounds = array<i64: 1, 512>}, {pipeline_mode = #tpu.pipeline_mode<synchronous>, transform_indices = @transform_8, window_bounds = array<i64: 512, 512>}, {pipeline_mode = #tpu.pipeline_mode<synchronous>, transform_indices = @transform_9, window_bounds = array<i64: 1, 512>}, {pipeline_mode = #tpu.pipeline_mode<synchronous>, transform_indices = @transform_10, window_bounds = array<i64: 512, 512>}, {pipeline_mode = #tpu.pipeline_mode<synchronous>, transform_indices = @transform_11, window_bounds = array<i64: 1, 512>}, {pipeline_mode = #tpu.pipeline_mode<synchronous>, transform_indices = @transform_12, window_bounds = array<i64: 1, 512>}, {pipeline_mode = #tpu.pipeline_mode<synchronous>, transform_indices = @transform_13, window_bounds = array<i64: 1, 512>}, {transform_indices = @transform_14, window_bounds = array<i64: 3, 8, 512>}, {transform_indices = @transform_15, window_bounds = array<i64: 3, 8, 8, 8>}]} {
    %c0 = arith.constant 0 : index
    %c0_0 = arith.constant 0 : index
    %c0_1 = arith.constant 0 : index
    %0 = vector.load %arg1[%c0, %c0_0, %c0_1] : memref<3x8x512xf32, #tpu.memory_space<vmem>>, vector<3x8x512xf32>
    %1 = vector.shape_cast %0 : vector<3x8x512xf32> to vector<24x512xf32>
    %c0_2 = arith.constant 0 : index
    %c0_3 = arith.constant 0 : index
    %c0_4 = arith.constant 0 : index
    %2 = vector.load %arg2[%c0_2, %c0_3, %c0_4] : memref<3x8x512xbf16, #tpu.memory_space<vmem>>, vector<3x8x512xbf16>
    %3 = vector.shape_cast %2 : vector<3x8x512xbf16> to vector<24x512xbf16>
    %c0_5 = arith.constant 0 : index
    %c0_6 = arith.constant 0 : index
    %c0_7 = arith.constant 0 : index
    %4 = vector.load %arg3[%c0_5, %c0_6, %c0_7] : memref<3x8x512xbf16, #tpu.memory_space<vmem>>, vector<3x8x512xbf16>
    %5 = vector.shape_cast %4 : vector<3x8x512xbf16> to vector<24x512xbf16>
    %6 = arith.truncf %1 : vector<24x512xf32> to vector<24x512xbf16>
    %c0_8 = arith.constant 0 : index
    %c0_9 = arith.constant 0 : index
    %7 = vector.load %arg5[%c0_8, %c0_9] : memref<512x512xbf16, #tpu.memory_space<vmem>>, vector<512x512xbf16>
    %cst = arith.constant dense<0.000000e+00> : vector<24x512xf32>
    %8 = tpu.matmul %6, %7, %cst {dimension_numbers = #tpu.dot_dimension_numbers<[1], [0], [0], [1], [0, 0, 1, 1], [], []>} : vector<24x512xbf16>, vector<512x512xbf16>, vector<24x512xf32> -> vector<24x512xf32>
    %c0_10 = arith.constant 0 : index
    %c0_11 = arith.constant 0 : index
    %9 = vector.load %arg6[%c0_10, %c0_11] : memref<1x512xf32, #tpu.memory_space<vmem>>, vector<1x512xf32>
    %10 = vector.broadcast %9 : vector<1x512xf32> to vector<24x512xf32>
    %11 = arith.addf %8, %10 : vector<24x512xf32>
    %c0_12 = arith.constant 0 : index
    %c0_13 = arith.constant 0 : index
    %12 = vector.load %arg7[%c0_12, %c0_13] : memref<512x512xbf16, #tpu.memory_space<vmem>>, vector<512x512xbf16>
    %cst_14 = arith.constant dense<0.000000e+00> : vector<24x512xf32>
    %13 = tpu.matmul %3, %12, %cst_14 {dimension_numbers = #tpu.dot_dimension_numbers<[1], [0], [0], [1], [0, 0, 1, 1], [], []>} : vector<24x512xbf16>, vector<512x512xbf16>, vector<24x512xf32> -> vector<24x512xf32>
    %c0_15 = arith.constant 0 : index
    %c0_16 = arith.constant 0 : index
    %14 = vector.load %arg8[%c0_15, %c0_16] : memref<1x512xf32, #tpu.memory_space<vmem>>, vector<1x512xf32>
    %15 = vector.broadcast %14 : vector<1x512xf32> to vector<24x512xf32>
    %16 = arith.addf %13, %15 : vector<24x512xf32>
    %c0_17 = arith.constant 0 : index
    %c0_18 = arith.constant 0 : index
    %17 = vector.load %arg9[%c0_17, %c0_18] : memref<512x512xbf16, #tpu.memory_space<vmem>>, vector<512x512xbf16>
    %cst_19 = arith.constant dense<0.000000e+00> : vector<24x512xf32>
    %18 = tpu.matmul %5, %17, %cst_19 {dimension_numbers = #tpu.dot_dimension_numbers<[1], [0], [0], [1], [0, 0, 1, 1], [], []>} : vector<24x512xbf16>, vector<512x512xbf16>, vector<24x512xf32> -> vector<24x512xf32>
    %c0_20 = arith.constant 0 : index
    %c0_21 = arith.constant 0 : index
    %19 = vector.load %arg10[%c0_20, %c0_21] : memref<1x512xf32, #tpu.memory_space<vmem>>, vector<1x512xf32>
    %20 = vector.broadcast %19 : vector<1x512xf32> to vector<24x512xf32>
    %21 = arith.addf %18, %20 : vector<24x512xf32>
    %22 = arith.truncf %11 : vector<24x512xf32> to vector<24x512xbf16>
    %23 = vector.extract_strided_slice %22 {offsets = [0, 0], sizes = [24, 64], strides = [1, 1]} : vector<24x512xbf16> to vector<24x64xbf16>
    %24 = vector.shape_cast %23 : vector<24x64xbf16> to vector<3x1x8x64xbf16>
    %25 = vector.extract_strided_slice %22 {offsets = [0, 64], sizes = [24, 64], strides = [1, 1]} : vector<24x512xbf16> to vector<24x64xbf16>
    %26 = vector.shape_cast %25 : vector<24x64xbf16> to vector<3x1x8x64xbf16>
    %27 = vector.extract_strided_slice %22 {offsets = [0, 128], sizes = [24, 64], strides = [1, 1]} : vector<24x512xbf16> to vector<24x64xbf16>
    %28 = vector.shape_cast %27 : vector<24x64xbf16> to vector<3x1x8x64xbf16>
    %29 = vector.extract_strided_slice %22 {offsets = [0, 192], sizes = [24, 64], strides = [1, 1]} : vector<24x512xbf16> to vector<24x64xbf16>
    %30 = vector.shape_cast %29 : vector<24x64xbf16> to vector<3x1x8x64xbf16>
    %31 = vector.extract_strided_slice %22 {offsets = [0, 256], sizes = [24, 64], strides = [1, 1]} : vector<24x512xbf16> to vector<24x64xbf16>
    %32 = vector.shape_cast %31 : vector<24x64xbf16> to vector<3x1x8x64xbf16>
    %33 = vector.extract_strided_slice %22 {offsets = [0, 320], sizes = [24, 64], strides = [1, 1]} : vector<24x512xbf16> to vector<24x64xbf16>
    %34 = vector.shape_cast %33 : vector<24x64xbf16> to vector<3x1x8x64xbf16>
    %35 = vector.extract_strided_slice %22 {offsets = [0, 384], sizes = [24, 64], strides = [1, 1]} : vector<24x512xbf16> to vector<24x64xbf16>
    %36 = vector.shape_cast %35 : vector<24x64xbf16> to vector<3x1x8x64xbf16>
    %37 = vector.extract_strided_slice %22 {offsets = [0, 448], sizes = [24, 64], strides = [1, 1]} : vector<24x512xbf16> to vector<24x64xbf16>
    %38 = vector.shape_cast %37 : vector<24x64xbf16> to vector<3x1x8x64xbf16>
    %39 = tpu.concatenate %24, %26, %28, %30, %32, %34, %36, %38 in 1 : vector<3x1x8x64xbf16>, vector<3x1x8x64xbf16>, vector<3x1x8x64xbf16>, vector<3x1x8x64xbf16>, vector<3x1x8x64xbf16>, vector<3x1x8x64xbf16>, vector<3x1x8x64xbf16>, vector<3x1x8x64xbf16> -> vector<3x8x8x64xbf16>
    %40 = vector.shape_cast %39 : vector<3x8x8x64xbf16> to vector<24x8x64xbf16>
    %41 = arith.truncf %16 : vector<24x512xf32> to vector<24x512xbf16>
    %42 = vector.extract_strided_slice %41 {offsets = [0, 0], sizes = [24, 64], strides = [1, 1]} : vector<24x512xbf16> to vector<24x64xbf16>
    %43 = vector.shape_cast %42 : vector<24x64xbf16> to vector<3x1x8x64xbf16>
    %44 = vector.extract_strided_slice %41 {offsets = [0, 64], sizes = [24, 64], strides = [1, 1]} : vector<24x512xbf16> to vector<24x64xbf16>
    %45 = vector.shape_cast %44 : vector<24x64xbf16> to vector<3x1x8x64xbf16>
    %46 = vector.extract_strided_slice %41 {offsets = [0, 128], sizes = [24, 64], strides = [1, 1]} : vector<24x512xbf16> to vector<24x64xbf16>
    %47 = vector.shape_cast %46 : vector<24x64xbf16> to vector<3x1x8x64xbf16>
    %48 = vector.extract_strided_slice %41 {offsets = [0, 192], sizes = [24, 64], strides = [1, 1]} : vector<24x512xbf16> to vector<24x64xbf16>
    %49 = vector.shape_cast %48 : vector<24x64xbf16> to vector<3x1x8x64xbf16>
    %50 = vector.extract_strided_slice %41 {offsets = [0, 256], sizes = [24, 64], strides = [1, 1]} : vector<24x512xbf16> to vector<24x64xbf16>
    %51 = vector.shape_cast %50 : vector<24x64xbf16> to vector<3x1x8x64xbf16>
    %52 = vector.extract_strided_slice %41 {offsets = [0, 320], sizes = [24, 64], strides = [1, 1]} : vector<24x512xbf16> to vector<24x64xbf16>
    %53 = vector.shape_cast %52 : vector<24x64xbf16> to vector<3x1x8x64xbf16>
    %54 = vector.extract_strided_slice %41 {offsets = [0, 384], sizes = [24, 64], strides = [1, 1]} : vector<24x512xbf16> to vector<24x64xbf16>
    %55 = vector.shape_cast %54 : vector<24x64xbf16> to vector<3x1x8x64xbf16>
    %56 = vector.extract_strided_slice %41 {offsets = [0, 448], sizes = [24, 64], strides = [1, 1]} : vector<24x512xbf16> to vector<24x64xbf16>
    %57 = vector.shape_cast %56 : vector<24x64xbf16> to vector<3x1x8x64xbf16>
    %58 = tpu.concatenate %43, %45, %47, %49, %51, %53, %55, %57 in 1 : vector<3x1x8x64xbf16>, vector<3x1x8x64xbf16>, vector<3x1x8x64xbf16>, vector<3x1x8x64xbf16>, vector<3x1x8x64xbf16>, vector<3x1x8x64xbf16>, vector<3x1x8x64xbf16>, vector<3x1x8x64xbf16> -> vector<3x8x8x64xbf16>
    %59 = vector.shape_cast %58 : vector<3x8x8x64xbf16> to vector<24x8x64xbf16>
    %60 = arith.truncf %21 : vector<24x512xf32> to vector<24x512xbf16>
    %61 = vector.extract_strided_slice %60 {offsets = [0, 0], sizes = [24, 64], strides = [1, 1]} : vector<24x512xbf16> to vector<24x64xbf16>
    %62 = vector.shape_cast %61 : vector<24x64xbf16> to vector<3x1x8x64xbf16>
    %63 = vector.extract_strided_slice %60 {offsets = [0, 64], sizes = [24, 64], strides = [1, 1]} : vector<24x512xbf16> to vector<24x64xbf16>
    %64 = vector.shape_cast %63 : vector<24x64xbf16> to vector<3x1x8x64xbf16>
    %65 = vector.extract_strided_slice %60 {offsets = [0, 128], sizes = [24, 64], strides = [1, 1]} : vector<24x512xbf16> to vector<24x64xbf16>
    %66 = vector.shape_cast %65 : vector<24x64xbf16> to vector<3x1x8x64xbf16>
    %67 = vector.extract_strided_slice %60 {offsets = [0, 192], sizes = [24, 64], strides = [1, 1]} : vector<24x512xbf16> to vector<24x64xbf16>
    %68 = vector.shape_cast %67 : vector<24x64xbf16> to vector<3x1x8x64xbf16>
    %69 = vector.extract_strided_slice %60 {offsets = [0, 256], sizes = [24, 64], strides = [1, 1]} : vector<24x512xbf16> to vector<24x64xbf16>
    %70 = vector.shape_cast %69 : vector<24x64xbf16> to vector<3x1x8x64xbf16>
    %71 = vector.extract_strided_slice %60 {offsets = [0, 320], sizes = [24, 64], strides = [1, 1]} : vector<24x512xbf16> to vector<24x64xbf16>
    %72 = vector.shape_cast %71 : vector<24x64xbf16> to vector<3x1x8x64xbf16>
    %73 = vector.extract_strided_slice %60 {offsets = [0, 384], sizes = [24, 64], strides = [1, 1]} : vector<24x512xbf16> to vector<24x64xbf16>
    %74 = vector.shape_cast %73 : vector<24x64xbf16> to vector<3x1x8x64xbf16>
    %75 = vector.extract_strided_slice %60 {offsets = [0, 448], sizes = [24, 64], strides = [1, 1]} : vector<24x512xbf16> to vector<24x64xbf16>
    %76 = vector.shape_cast %75 : vector<24x64xbf16> to vector<3x1x8x64xbf16>
    %77 = tpu.concatenate %62, %64, %66, %68, %70, %72, %74, %76 in 1 : vector<3x1x8x64xbf16>, vector<3x1x8x64xbf16>, vector<3x1x8x64xbf16>, vector<3x1x8x64xbf16>, vector<3x1x8x64xbf16>, vector<3x1x8x64xbf16>, vector<3x1x8x64xbf16>, vector<3x1x8x64xbf16> -> vector<3x8x8x64xbf16>
    %78 = vector.shape_cast %77 : vector<3x8x8x64xbf16> to vector<24x8x64xbf16>
    "tpu.trace_start"() <{level = 10 : i32, message = "bqd,bkd->bqk"}> : () -> ()
    %cst_22 = arith.constant dense<0.000000e+00> : vector<24x8x8xf32>
    %79 = tpu.matmul %40, %59, %cst_22 {dimension_numbers = #tpu.dot_dimension_numbers<[2], [2], [1], [1], [0, 0, 0, 1, 1, 1], [0], [0]>} : vector<24x8x64xbf16>, vector<24x8x64xbf16>, vector<24x8x8xf32> -> vector<24x8x8xf32>
    "tpu.trace_stop"() : () -> ()
    %80 = vector.shape_cast %79 : vector<24x8x8xf32> to vector<3x8x8x8xf32>
    %c0_23 = arith.constant 0 : index
    %c0_24 = arith.constant 0 : index
    %c0_25 = arith.constant 0 : index
    %81 = vector.load %arg4[%c0_23, %c0_24, %c0_25] : memref<3x8x8xbf16, #tpu.memory_space<vmem>>, vector<3x8x8xbf16>
    %82 = arith.extf %81 : vector<3x8x8xbf16> to vector<3x8x8xf32>
    %83 = vector.shape_cast %82 : vector<3x8x8xf32> to vector<3x1x8x8xf32>
    %84 = vector.broadcast %83 : vector<3x1x8x8xf32> to vector<3x8x8x8xf32>
    %85 = arith.addf %80, %84 : vector<3x8x8x8xf32>
    %cst_26 = arith.constant dense<0xFF800000> : vector<3x8x8xf32>
    %86 = vector.multi_reduction <maximumf>, %85, %cst_26 [3] : vector<3x8x8x8xf32> to vector<3x8x8xf32>
    %87 = vector.shape_cast %86 : vector<3x8x8xf32> to vector<3x8x8x1xf32>
    %88 = vector.broadcast %87 : vector<3x8x8x1xf32> to vector<3x8x8x8xf32>
    %89 = arith.subf %85, %88 : vector<3x8x8x8xf32>
    %90 = math.exp %89 : vector<3x8x8x8xf32>
    %cst_27 = arith.constant dense<0.000000e+00> : vector<3x8x8xf32>
    %91 = vector.multi_reduction <add>, %90, %cst_27 [3] : vector<3x8x8x8xf32> to vector<3x8x8xf32>
    %92 = vector.shape_cast %91 : vector<3x8x8xf32> to vector<3x8x8x1xf32>
    %93 = tpu.reciprocal %92 {approx = true} : vector<3x8x8x1xf32> -> vector<3x8x8x1xf32>
    %94 = vector.broadcast %93 : vector<3x8x8x1xf32> to vector<3x8x8x8xf32>
    %95 = arith.mulf %90, %94 : vector<3x8x8x8xf32>
    %96 = arith.truncf %95 : vector<3x8x8x8xf32> to vector<3x8x8x8xbf16>
    %c0_28 = arith.constant 0 : index
    %c0_29 = arith.constant 0 : index
    %c0_30 = arith.constant 0 : index
    %c0_31 = arith.constant 0 : index
    %97 = vector.load %arg16[%c0_28, %c0_29, %c0_30, %c0_31] : memref<3x8x8x8xbf16, #tpu.memory_space<vmem>>, vector<3x8x8x8xbf16>
    tpu.vector_store %arg16[%c0_28, %c0_29, %c0_30, %c0_31], %96 {strides = array<i32>} : memref<3x8x8x8xbf16, #tpu.memory_space<vmem>>, vector<3x8x8x8xbf16>,
    %98 = vector.shape_cast %95 : vector<3x8x8x8xf32> to vector<24x8x8xf32>
    %99 = arith.truncf %98 : vector<24x8x8xf32> to vector<24x8x8xbf16>
    "tpu.trace_start"() <{level = 10 : i32, message = "bqk,bkd->bqd"}> : () -> ()
    %cst_32 = arith.constant dense<0.000000e+00> : vector<24x8x64xf32>
    %100 = tpu.matmul %99, %78, %cst_32 {dimension_numbers = #tpu.dot_dimension_numbers<[2], [1], [1], [2], [0, 0, 0, 1, 1, 2], [0], [0]>} : vector<24x8x8xbf16>, vector<24x8x64xbf16>, vector<24x8x64xf32> -> vector<24x8x64xf32>
    "tpu.trace_stop"() : () -> ()
    %101 = vector.shape_cast %100 : vector<24x8x64xf32> to vector<3x8x8x64xf32>
    %102 = vector.extract_strided_slice %101 {offsets = [0, 0, 0, 0], sizes = [3, 1, 8, 64], strides = [1, 1, 1, 1]} : vector<3x8x8x64xf32> to vector<3x1x8x64xf32>
    %103 = vector.shape_cast %102 : vector<3x1x8x64xf32> to vector<3x8x64xf32>
    %104 = vector.shape_cast %103 : vector<3x8x64xf32> to vector<24x64xf32>
    %105 = vector.extract_strided_slice %101 {offsets = [0, 1, 0, 0], sizes = [3, 1, 8, 64], strides = [1, 1, 1, 1]} : vector<3x8x8x64xf32> to vector<3x1x8x64xf32>
    %106 = vector.shape_cast %105 : vector<3x1x8x64xf32> to vector<3x8x64xf32>
    %107 = vector.shape_cast %106 : vector<3x8x64xf32> to vector<24x64xf32>
    %108 = vector.extract_strided_slice %101 {offsets = [0, 2, 0, 0], sizes = [3, 1, 8, 64], strides = [1, 1, 1, 1]} : vector<3x8x8x64xf32> to vector<3x1x8x64xf32>
    %109 = vector.shape_cast %108 : vector<3x1x8x64xf32> to vector<3x8x64xf32>
    %110 = vector.shape_cast %109 : vector<3x8x64xf32> to vector<24x64xf32>
    %111 = vector.extract_strided_slice %101 {offsets = [0, 3, 0, 0], sizes = [3, 1, 8, 64], strides = [1, 1, 1, 1]} : vector<3x8x8x64xf32> to vector<3x1x8x64xf32>
    %112 = vector.shape_cast %111 : vector<3x1x8x64xf32> to vector<3x8x64xf32>
    %113 = vector.shape_cast %112 : vector<3x8x64xf32> to vector<24x64xf32>
    %114 = vector.extract_strided_slice %101 {offsets = [0, 4, 0, 0], sizes = [3, 1, 8, 64], strides = [1, 1, 1, 1]} : vector<3x8x8x64xf32> to vector<3x1x8x64xf32>
    %115 = vector.shape_cast %114 : vector<3x1x8x64xf32> to vector<3x8x64xf32>
    %116 = vector.shape_cast %115 : vector<3x8x64xf32> to vector<24x64xf32>
    %117 = vector.extract_strided_slice %101 {offsets = [0, 5, 0, 0], sizes = [3, 1, 8, 64], strides = [1, 1, 1, 1]} : vector<3x8x8x64xf32> to vector<3x1x8x64xf32>
    %118 = vector.shape_cast %117 : vector<3x1x8x64xf32> to vector<3x8x64xf32>
    %119 = vector.shape_cast %118 : vector<3x8x64xf32> to vector<24x64xf32>
    %120 = vector.extract_strided_slice %101 {offsets = [0, 6, 0, 0], sizes = [3, 1, 8, 64], strides = [1, 1, 1, 1]} : vector<3x8x8x64xf32> to vector<3x1x8x64xf32>
    %121 = vector.shape_cast %120 : vector<3x1x8x64xf32> to vector<3x8x64xf32>
    %122 = vector.shape_cast %121 : vector<3x8x64xf32> to vector<24x64xf32>
    %123 = vector.extract_strided_slice %101 {offsets = [0, 7, 0, 0], sizes = [3, 1, 8, 64], strides = [1, 1, 1, 1]} : vector<3x8x8x64xf32> to vector<3x1x8x64xf32>
    %124 = vector.shape_cast %123 : vector<3x1x8x64xf32> to vector<3x8x64xf32>
    %125 = vector.shape_cast %124 : vector<3x8x64xf32> to vector<24x64xf32>
    %126 = tpu.concatenate %104, %107, %110, %113, %116, %119, %122, %125 in 1 : vector<24x64xf32>, vector<24x64xf32>, vector<24x64xf32>, vector<24x64xf32>, vector<24x64xf32>, vector<24x64xf32>, vector<24x64xf32>, vector<24x64xf32> -> vector<24x512xf32>
    %127 = arith.truncf %126 : vector<24x512xf32> to vector<24x512xbf16>
    %c0_33 = arith.constant 0 : index
    %c0_34 = arith.constant 0 : index
    %128 = vector.load %arg11[%c0_33, %c0_34] : memref<512x512xbf16, #tpu.memory_space<vmem>>, vector<512x512xbf16>
    %cst_35 = arith.constant dense<0.000000e+00> : vector<24x512xf32>
    %129 = tpu.matmul %127, %128, %cst_35 {dimension_numbers = #tpu.dot_dimension_numbers<[1], [0], [0], [1], [0, 0, 1, 1], [], []>} : vector<24x512xbf16>, vector<512x512xbf16>, vector<24x512xf32> -> vector<24x512xf32>
    %c0_36 = arith.constant 0 : index
    %c0_37 = arith.constant 0 : index
    %130 = vector.load %arg12[%c0_36, %c0_37] : memref<1x512xf32, #tpu.memory_space<vmem>>, vector<1x512xf32>
    %131 = vector.broadcast %130 : vector<1x512xf32> to vector<24x512xf32>
    %132 = arith.addf %129, %131 : vector<24x512xf32>
    %133 = arith.addf %132, %1 : vector<24x512xf32>
    %cst_38 = arith.constant dense<0.000000e+00> : vector<24xf32>
    %134 = vector.multi_reduction <add>, %133, %cst_38 [1] : vector<24x512xf32> to vector<24xf32>
    %135 = vector.shape_cast %134 : vector<24xf32> to vector<24x1xf32>
    %cst_39 = arith.constant 5.120000e+02 : f32
    %136 = vector.broadcast %cst_39 : f32 to vector<24x1xf32>
    %137 = arith.divf %135, %136 : vector<24x1xf32>
    %138 = vector.broadcast %137 : vector<24x1xf32> to vector<24x512xf32>
    %139 = arith.subf %133, %138 : vector<24x512xf32>
    %140 = arith.mulf %139, %139 : vector<24x512xf32>
    %cst_40 = arith.constant dense<0.000000e+00> : vector<24xf32>
    %141 = vector.multi_reduction <add>, %140, %cst_40 [1] : vector<24x512xf32> to vector<24xf32>
    %142 = vector.shape_cast %141 : vector<24xf32> to vector<24x1xf32>
    %cst_41 = arith.constant 5.120000e+02 : f32
    %143 = vector.broadcast %cst_41 : f32 to vector<24x1xf32>
    %144 = arith.divf %142, %143 : vector<24x1xf32>
    %145 = vector.broadcast %137 : vector<24x1xf32> to vector<24x512xf32>
    %146 = arith.subf %133, %145 : vector<24x512xf32>
    %cst_42 = arith.constant 9.99999974E-6 : f32
    %147 = vector.broadcast %cst_42 : f32 to vector<24x1xf32>
    %148 = arith.addf %144, %147 : vector<24x1xf32>
    %149 = math.rsqrt %148 : vector<24x1xf32>
    %150 = vector.broadcast %149 : vector<24x1xf32> to vector<24x512xf32>
    %151 = arith.mulf %146, %150 : vector<24x512xf32>
    %c0_43 = arith.constant 0 : index
    %c0_44 = arith.constant 0 : index
    %152 = vector.load %arg13[%c0_43, %c0_44] : memref<1x512xf32, #tpu.memory_space<vmem>>, vector<1x512xf32>
    %153 = vector.broadcast %152 : vector<1x512xf32> to vector<24x512xf32>
    %154 = arith.mulf %151, %153 : vector<24x512xf32>
    %c0_45 = arith.constant 0 : index
    %c0_46 = arith.constant 0 : index
    %155 = vector.load %arg14[%c0_45, %c0_46] : memref<1x512xf32, #tpu.memory_space<vmem>>, vector<1x512xf32>
    %156 = vector.broadcast %155 : vector<1x512xf32> to vector<24x512xf32>
    %157 = arith.addf %154, %156 : vector<24x512xf32>
    %158 = vector.shape_cast %157 : vector<24x512xf32> to vector<3x8x512xf32>
    %c0_47 = arith.constant 0 : index
    %c0_48 = arith.constant 0 : index
    %c0_49 = arith.constant 0 : index
    %159 = vector.load %arg15[%c0_47, %c0_48, %c0_49] : memref<3x8x512xf32, #tpu.memory_space<vmem>>, vector<3x8x512xf32>
    tpu.vector_store %arg15[%c0_47, %c0_48, %c0_49], %158 {strides = array<i32>} : memref<3x8x512xf32, #tpu.memory_space<vmem>>, vector<3x8x512xf32>,
    return
  }
  func.func @transform_0(%arg0: i32) -> (i32, i32, i32) {
    %c0_i32 = arith.constant 0 : i32
    %c0_i32_0 = arith.constant 0 : i32
    %c0_i32_1 = arith.constant 0 : i32
    return %arg0, %c0_i32, %c0_i32_0 : i32, i32, i32
  }
  func.func @transform_1(%arg0: i32) -> (i32, i32, i32) {
    %c0_i32 = arith.constant 0 : i32
    %c0_i32_0 = arith.constant 0 : i32
    %c0_i32_1 = arith.constant 0 : i32
    return %arg0, %c0_i32, %c0_i32_0 : i32, i32, i32
  }
  func.func @transform_2(%arg0: i32) -> (i32, i32, i32) {
    %c0_i32 = arith.constant 0 : i32
    %c0_i32_0 = arith.constant 0 : i32
    %c0_i32_1 = arith.constant 0 : i32
    return %arg0, %c0_i32, %c0_i32_0 : i32, i32, i32
  }
  func.func @transform_3(%arg0: i32) -> (i32, i32, i32) {
    %c0_i32 = arith.constant 0 : i32
    %c0_i32_0 = arith.constant 0 : i32
    %c0_i32_1 = arith.constant 0 : i32
    return %arg0, %c0_i32, %c0_i32_0 : i32, i32, i32
  }
  func.func @transform_4(%arg0: i32) -> (i32, i32) {
    %c0_i32 = arith.constant 0 : i32
    %c0_i32_0 = arith.constant 0 : i32
    %c0_i32_1 = arith.constant 0 : i32
    return %c0_i32, %c0_i32_0 : i32, i32
  }
  func.func @transform_5(%arg0: i32) -> (i32, i32) {
    %c0_i32 = arith.constant 0 : i32
    %c0_i32_0 = arith.constant 0 : i32
    %c0_i32_1 = arith.constant 0 : i32
    return %c0_i32, %c0_i32_0 : i32, i32
  }
  func.func @transform_6(%arg0: i32) -> (i32, i32) {
    %c0_i32 = arith.constant 0 : i32
    %c0_i32_0 = arith.constant 0 : i32
    %c0_i32_1 = arith.constant 0 : i32
    return %c0_i32, %c0_i32_0 : i32, i32
  }
  func.func @transform_7(%arg0: i32) -> (i32, i32) {
    %c0_i32 = arith.constant 0 : i32
    %c0_i32_0 = arith.constant 0 : i32
    %c0_i32_1 = arith.constant 0 : i32
    return %c0_i32, %c0_i32_0 : i32, i32
  }
  func.func @transform_8(%arg0: i32) -> (i32, i32) {
    %c0_i32 = arith.constant 0 : i32
    %c0_i32_0 = arith.constant 0 : i32
    %c0_i32_1 = arith.constant 0 : i32
    return %c0_i32, %c0_i32_0 : i32, i32
  }
  func.func @transform_9(%arg0: i32) -> (i32, i32) {
    %c0_i32 = arith.constant 0 : i32
    %c0_i32_0 = arith.constant 0 : i32
    %c0_i32_1 = arith.constant 0 : i32
    return %c0_i32, %c0_i32_0 : i32, i32
  }
  func.func @transform_10(%arg0: i32) -> (i32, i32) {
    %c0_i32 = arith.constant 0 : i32
    %c0_i32_0 = arith.constant 0 : i32
    %c0_i32_1 = arith.constant 0 : i32
    return %c0_i32, %c0_i32_0 : i32, i32
  }
  func.func @transform_11(%arg0: i32) -> (i32, i32) {
    %c0_i32 = arith.constant 0 : i32
    %c0_i32_0 = arith.constant 0 : i32
    %c0_i32_1 = arith.constant 0 : i32
    return %c0_i32, %c0_i32_0 : i32, i32
  }
  func.func @transform_12(%arg0: i32) -> (i32, i32) {
    %c0_i32 = arith.constant 0 : i32
    %c0_i32_0 = arith.constant 0 : i32
    %c0_i32_1 = arith.constant 0 : i32
    return %c0_i32, %c0_i32_0 : i32, i32
  }
  func.func @transform_13(%arg0: i32) -> (i32, i32) {
    %c0_i32 = arith.constant 0 : i32
    %c0_i32_0 = arith.constant 0 : i32
    %c0_i32_1 = arith.constant 0 : i32
    return %c0_i32, %c0_i32_0 : i32, i32
  }
  func.func @transform_14(%arg0: i32) -> (i32, i32, i32) {
    %c0_i32 = arith.constant 0 : i32
    %c0_i32_0 = arith.constant 0 : i32
    %c0_i32_1 = arith.constant 0 : i32
    return %arg0, %c0_i32, %c0_i32_0 : i32, i32, i32
  }
  func.func @transform_15(%arg0: i32) -> (i32, i32, i32, i32) {
    %c0_i32 = arith.constant 0 : i32
    %c0_i32_0 = arith.constant 0 : i32
    %c0_i32_1 = arith.constant 0 : i32
    %c0_i32_2 = arith.constant 0 : i32
    return %arg0, %c0_i32, %c0_i32_0, %c0_i32_1 : i32, i32, i32, i32
  }
}

module attributes {stable_mosaic.version = 11 : i64} {
  func.func @_mha_kernel(%arg0: i32, %arg1: memref<3x8x512xf32, #tpu.memory_space<vmem>>, %arg2: memref<3x8x512xbf16, #tpu.memory_space<vmem>>, %arg3: memref<3x8x512xbf16, #tpu.memory_space<vmem>>, %arg4: memref<3x8x8xbf16, #tpu.memory_space<vmem>>, %arg5: memref<512x512xbf16, #tpu.memory_space<vmem>>, %arg6: memref<1x512xf32, #tpu.memory_space<vmem>>, %arg7: memref<512x512xbf16, #tpu.memory_space<vmem>>, %arg8: memref<1x512xf32, #tpu.memory_space<vmem>>, %arg9: memref<512x512xbf16, #tpu.memory_space<vmem>>, %arg10: memref<1x512xf32, #tpu.memory_space<vmem>>, %arg11: memref<512x512xbf16, #tpu.memory_space<vmem>>, %arg12: memref<1x512xf32, #tpu.memory_space<vmem>>, %arg13: memref<1x512xf32, #tpu.memory_space<vmem>>, %arg14: memref<1x512xf32, #tpu.memory_space<vmem>>, %arg15: memref<3x8x512xf32, #tpu.memory_space<vmem>>, %arg16: memref<3x8x8x8xbf16, #tpu.memory_space<vmem>>) attributes {dimension_semantics = [#tpu.dimension_semantics<parallel>], iteration_bounds = array<i64: 1>, scalar_prefetch = 0 : i64, scratch_operands = 0 : i64, tpu.core_type = #tpu.core_type<tc>, window_params = [{transform_indices = @transform_0, window_bounds = array<i64: 3, 8, 512>}, {transform_indices = @transform_1, window_bounds = array<i64: 3, 8, 512>}, {transform_indices = @transform_2, window_bounds = array<i64: 3, 8, 512>}, {transform_indices = @transform_3, window_bounds = array<i64: 3, 8, 8>}, {pipeline_mode = #tpu.pipeline_mode<synchronous>, transform_indices = @transform_4, window_bounds = array<i64: 512, 512>}, {pipeline_mode = #tpu.pipeline_mode<synchronous>, transform_indices = @transform_5, window_bounds = array<i64: 1, 512>}, {pipeline_mode = #tpu.pipeline_mode<synchronous>, transform_indices = @transform_6, window_bounds = array<i64: 512, 512>}, {pipeline_mode = #tpu.pipeline_mode<synchronous>, transform_indices = @transform_7, window_bounds = array<i64: 1, 512>}, {pipeline_mode = #tpu.pipeline_mode<synchronous>, transform_indices = @transform_8, window_bounds = array<i64: 512, 512>}, {pipeline_mode = #tpu.pipeline_mode<synchronous>, transform_indices = @transform_9, window_bounds = array<i64: 1, 512>}, {pipeline_mode = #tpu.pipeline_mode<synchronous>, transform_indices = @transform_10, window_bounds = array<i64: 512, 512>}, {pipeline_mode = #tpu.pipeline_mode<synchronous>, transform_indices = @transform_11, window_bounds = array<i64: 1, 512>}, {pipeline_mode = #tpu.pipeline_mode<synchronous>, transform_indices = @transform_12, window_bounds = array<i64: 1, 512>}, {pipeline_mode = #tpu.pipeline_mode<synchronous>, transform_indices = @transform_13, window_bounds = array<i64: 1, 512>}, {transform_indices = @transform_14, window_bounds = array<i64: 3, 8, 512>}, {transform_indices = @transform_15, window_bounds = array<i64: 3, 8, 8, 8>}]} {
    %c0 = arith.constant 0 : index
    %c0_0 = arith.constant 0 : index
    %c0_1 = arith.constant 0 : index
    %0 = vector.load %arg1[%c0, %c0_0, %c0_1] : memref<3x8x512xf32, #tpu.memory_space<vmem>>, vector<3x8x512xf32>
    %1 = vector.shape_cast %0 : vector<3x8x512xf32> to vector<24x512xf32>
    %c0_2 = arith.constant 0 : index
    %c0_3 = arith.constant 0 : index
    %c0_4 = arith.constant 0 : index
    %2 = vector.load %arg2[%c0_2, %c0_3, %c0_4] : memref<3x8x512xbf16, #tpu.memory_space<vmem>>, vector<3x8x512xbf16>
    %3 = vector.shape_cast %2 : vector<3x8x512xbf16> to vector<24x512xbf16>
    %c0_5 = arith.constant 0 : index
    %c0_6 = arith.constant 0 : index
    %c0_7 = arith.constant 0 : index
    %4 = vector.load %arg3[%c0_5, %c0_6, %c0_7] : memref<3x8x512xbf16, #tpu.memory_space<vmem>>, vector<3x8x512xbf16>
    %5 = vector.shape_cast %4 : vector<3x8x512xbf16> to vector<24x512xbf16>
    %6 = arith.truncf %1 : vector<24x512xf32> to vector<24x512xbf16>
    %c0_8 = arith.constant 0 : index
    %c0_9 = arith.constant 0 : index
    %7 = vector.load %arg5[%c0_8, %c0_9] : memref<512x512xbf16, #tpu.memory_space<vmem>>, vector<512x512xbf16>
    %cst = arith.constant dense<0.000000e+00> : vector<24x512xf32>
    %8 = tpu.matmul %6, %7, %cst {dimension_numbers = #tpu.dot_dimension_numbers<[1], [0], [0], [1], [0, 0, 1, 1], [], []>} : vector<24x512xbf16>, vector<512x512xbf16>, vector<24x512xf32> -> vector<24x512xf32>
    %c0_10 = arith.constant 0 : index
    %c0_11 = arith.constant 0 : index
    %9 = vector.load %arg6[%c0_10, %c0_11] : memref<1x512xf32, #tpu.memory_space<vmem>>, vector<1x512xf32>
    %10 = vector.broadcast %9 : vector<1x512xf32> to vector<24x512xf32>
    %11 = arith.addf %8, %10 : vector<24x512xf32>
    %c0_12 = arith.constant 0 : index
    %c0_13 = arith.constant 0 : index
    %12 = vector.load %arg7[%c0_12, %c0_13] : memref<512x512xbf16, #tpu.memory_space<vmem>>, vector<512x512xbf16>
    %cst_14 = arith.constant dense<0.000000e+00> : vector<24x512xf32>
    %13 = tpu.matmul %3, %12, %cst_14 {dimension_numbers = #tpu.dot_dimension_numbers<[1], [0], [0], [1], [0, 0, 1, 1], [], []>} : vector<24x512xbf16>, vector<512x512xbf16>, vector<24x512xf32> -> vector<24x512xf32>
    %c0_15 = arith.constant 0 : index
    %c0_16 = arith.constant 0 : index
    %14 = vector.load %arg8[%c0_15, %c0_16] : memref<1x512xf32, #tpu.memory_space<vmem>>, vector<1x512xf32>
    %15 = vector.broadcast %14 : vector<1x512xf32> to vector<24x512xf32>
    %16 = arith.addf %13, %15 : vector<24x512xf32>
    %c0_17 = arith.constant 0 : index
    %c0_18 = arith.constant 0 : index
    %17 = vector.load %arg9[%c0_17, %c0_18] : memref<512x512xbf16, #tpu.memory_space<vmem>>, vector<512x512xbf16>
    %cst_19 = arith.constant dense<0.000000e+00> : vector<24x512xf32>
    %18 = tpu.matmul %5, %17, %cst_19 {dimension_numbers = #tpu.dot_dimension_numbers<[1], [0], [0], [1], [0, 0, 1, 1], [], []>} : vector<24x512xbf16>, vector<512x512xbf16>, vector<24x512xf32> -> vector<24x512xf32>
    %c0_20 = arith.constant 0 : index
    %c0_21 = arith.constant 0 : index
    %19 = vector.load %arg10[%c0_20, %c0_21] : memref<1x512xf32, #tpu.memory_space<vmem>>, vector<1x512xf32>
    %20 = vector.broadcast %19 : vector<1x512xf32> to vector<24x512xf32>
    %21 = arith.addf %18, %20 : vector<24x512xf32>
    %22 = arith.truncf %11 : vector<24x512xf32> to vector<24x512xbf16>
    %23 = vector.extract_strided_slice %22 {offsets = [0, 0], sizes = [24, 64], strides = [1, 1]} : vector<24x512xbf16> to vector<24x64xbf16>
    %24 = vector.shape_cast %23 : vector<24x64xbf16> to vector<3x1x8x64xbf16>
    %25 = vector.extract_strided_slice %22 {offsets = [0, 64], sizes = [24, 64], strides = [1, 1]} : vector<24x512xbf16> to vector<24x64xbf16>
    %26 = vector.shape_cast %25 : vector<24x64xbf16> to vector<3x1x8x64xbf16>
    %27 = vector.extract_strided_slice %22 {offsets = [0, 128], sizes = [24, 64], strides = [1, 1]} : vector<24x512xbf16> to vector<24x64xbf16>
    %28 = vector.shape_cast %27 : vector<24x64xbf16> to vector<3x1x8x64xbf16>
    %29 = vector.extract_strided_slice %22 {offsets = [0, 192], sizes = [24, 64], strides = [1, 1]} : vector<24x512xbf16> to vector<24x64xbf16>
    %30 = vector.shape_cast %29 : vector<24x64xbf16> to vector<3x1x8x64xbf16>
    %31 = vector.extract_strided_slice %22 {offsets = [0, 256], sizes = [24, 64], strides = [1, 1]} : vector<24x512xbf16> to vector<24x64xbf16>
    %32 = vector.shape_cast %31 : vector<24x64xbf16> to vector<3x1x8x64xbf16>
    %33 = vector.extract_strided_slice %22 {offsets = [0, 320], sizes = [24, 64], strides = [1, 1]} : vector<24x512xbf16> to vector<24x64xbf16>
    %34 = vector.shape_cast %33 : vector<24x64xbf16> to vector<3x1x8x64xbf16>
    %35 = vector.extract_strided_slice %22 {offsets = [0, 384], sizes = [24, 64], strides = [1, 1]} : vector<24x512xbf16> to vector<24x64xbf16>
    %36 = vector.shape_cast %35 : vector<24x64xbf16> to vector<3x1x8x64xbf16>
    %37 = vector.extract_strided_slice %22 {offsets = [0, 448], sizes = [24, 64], strides = [1, 1]} : vector<24x512xbf16> to vector<24x64xbf16>
    %38 = vector.shape_cast %37 : vector<24x64xbf16> to vector<3x1x8x64xbf16>
    %39 = tpu.concatenate %24, %26, %28, %30, %32, %34, %36, %38 in 1 : vector<3x1x8x64xbf16>, vector<3x1x8x64xbf16>, vector<3x1x8x64xbf16>, vector<3x1x8x64xbf16>, vector<3x1x8x64xbf16>, vector<3x1x8x64xbf16>, vector<3x1x8x64xbf16>, vector<3x1x8x64xbf16> -> vector<3x8x8x64xbf16>
    %40 = vector.shape_cast %39 : vector<3x8x8x64xbf16> to vector<24x8x64xbf16>
    %41 = arith.truncf %16 : vector<24x512xf32> to vector<24x512xbf16>
    %42 = vector.extract_strided_slice %41 {offsets = [0, 0], sizes = [24, 64], strides = [1, 1]} : vector<24x512xbf16> to vector<24x64xbf16>
    %43 = vector.shape_cast %42 : vector<24x64xbf16> to vector<3x1x8x64xbf16>
    %44 = vector.extract_strided_slice %41 {offsets = [0, 64], sizes = [24, 64], strides = [1, 1]} : vector<24x512xbf16> to vector<24x64xbf16>
    %45 = vector.shape_cast %44 : vector<24x64xbf16> to vector<3x1x8x64xbf16>
    %46 = vector.extract_strided_slice %41 {offsets = [0, 128], sizes = [24, 64], strides = [1, 1]} : vector<24x512xbf16> to vector<24x64xbf16>
    %47 = vector.shape_cast %46 : vector<24x64xbf16> to vector<3x1x8x64xbf16>
    %48 = vector.extract_strided_slice %41 {offsets = [0, 192], sizes = [24, 64], strides = [1, 1]} : vector<24x512xbf16> to vector<24x64xbf16>
    %49 = vector.shape_cast %48 : vector<24x64xbf16> to vector<3x1x8x64xbf16>
    %50 = vector.extract_strided_slice %41 {offsets = [0, 256], sizes = [24, 64], strides = [1, 1]} : vector<24x512xbf16> to vector<24x64xbf16>
    %51 = vector.shape_cast %50 : vector<24x64xbf16> to vector<3x1x8x64xbf16>
    %52 = vector.extract_strided_slice %41 {offsets = [0, 320], sizes = [24, 64], strides = [1, 1]} : vector<24x512xbf16> to vector<24x64xbf16>
    %53 = vector.shape_cast %52 : vector<24x64xbf16> to vector<3x1x8x64xbf16>
    %54 = vector.extract_strided_slice %41 {offsets = [0, 384], sizes = [24, 64], strides = [1, 1]} : vector<24x512xbf16> to vector<24x64xbf16>
    %55 = vector.shape_cast %54 : vector<24x64xbf16> to vector<3x1x8x64xbf16>
    %56 = vector.extract_strided_slice %41 {offsets = [0, 448], sizes = [24, 64], strides = [1, 1]} : vector<24x512xbf16> to vector<24x64xbf16>
    %57 = vector.shape_cast %56 : vector<24x64xbf16> to vector<3x1x8x64xbf16>
    %58 = tpu.concatenate %43, %45, %47, %49, %51, %53, %55, %57 in 1 : vector<3x1x8x64xbf16>, vector<3x1x8x64xbf16>, vector<3x1x8x64xbf16>, vector<3x1x8x64xbf16>, vector<3x1x8x64xbf16>, vector<3x1x8x64xbf16>, vector<3x1x8x64xbf16>, vector<3x1x8x64xbf16> -> vector<3x8x8x64xbf16>
    %59 = vector.shape_cast %58 : vector<3x8x8x64xbf16> to vector<24x8x64xbf16>
    %60 = arith.truncf %21 : vector<24x512xf32> to vector<24x512xbf16>
    %61 = vector.extract_strided_slice %60 {offsets = [0, 0], sizes = [24, 64], strides = [1, 1]} : vector<24x512xbf16> to vector<24x64xbf16>
    %62 = vector.shape_cast %61 : vector<24x64xbf16> to vector<3x1x8x64xbf16>
    %63 = vector.extract_strided_slice %60 {offsets = [0, 64], sizes = [24, 64], strides = [1, 1]} : vector<24x512xbf16> to vector<24x64xbf16>
    %64 = vector.shape_cast %63 : vector<24x64xbf16> to vector<3x1x8x64xbf16>
    %65 = vector.extract_strided_slice %60 {offsets = [0, 128], sizes = [24, 64], strides = [1, 1]} : vector<24x512xbf16> to vector<24x64xbf16>
    %66 = vector.shape_cast %65 : vector<24x64xbf16> to vector<3x1x8x64xbf16>
    %67 = vector.extract_strided_slice %60 {offsets = [0, 192], sizes = [24, 64], strides = [1, 1]} : vector<24x512xbf16> to vector<24x64xbf16>
    %68 = vector.shape_cast %67 : vector<24x64xbf16> to vector<3x1x8x64xbf16>
    %69 = vector.extract_strided_slice %60 {offsets = [0, 256], sizes = [24, 64], strides = [1, 1]} : vector<24x512xbf16> to vector<24x64xbf16>
    %70 = vector.shape_cast %69 : vector<24x64xbf16> to vector<3x1x8x64xbf16>
    %71 = vector.extract_strided_slice %60 {offsets = [0, 320], sizes = [24, 64], strides = [1, 1]} : vector<24x512xbf16> to vector<24x64xbf16>
    %72 = vector.shape_cast %71 : vector<24x64xbf16> to vector<3x1x8x64xbf16>
    %73 = vector.extract_strided_slice %60 {offsets = [0, 384], sizes = [24, 64], strides = [1, 1]} : vector<24x512xbf16> to vector<24x64xbf16>
    %74 = vector.shape_cast %73 : vector<24x64xbf16> to vector<3x1x8x64xbf16>
    %75 = vector.extract_strided_slice %60 {offsets = [0, 448], sizes = [24, 64], strides = [1, 1]} : vector<24x512xbf16> to vector<24x64xbf16>
    %76 = vector.shape_cast %75 : vector<24x64xbf16> to vector<3x1x8x64xbf16>
    %77 = tpu.concatenate %62, %64, %66, %68, %70, %72, %74, %76 in 1 : vector<3x1x8x64xbf16>, vector<3x1x8x64xbf16>, vector<3x1x8x64xbf16>, vector<3x1x8x64xbf16>, vector<3x1x8x64xbf16>, vector<3x1x8x64xbf16>, vector<3x1x8x64xbf16>, vector<3x1x8x64xbf16> -> vector<3x8x8x64xbf16>
    %78 = vector.shape_cast %77 : vector<3x8x8x64xbf16> to vector<24x8x64xbf16>
    "tpu.trace_start"() <{level = 10 : i32, message = "bqd,bkd->bqk"}> : () -> ()
    %cst_22 = arith.constant dense<0.000000e+00> : vector<24x8x8xf32>
    %79 = tpu.matmul %40, %59, %cst_22 {dimension_numbers = #tpu.dot_dimension_numbers<[2], [2], [1], [1], [0, 0, 0, 1, 1, 1], [0], [0]>} : vector<24x8x64xbf16>, vector<24x8x64xbf16>, vector<24x8x8xf32> -> vector<24x8x8xf32>
    "tpu.trace_stop"() : () -> ()
    %80 = vector.shape_cast %79 : vector<24x8x8xf32> to vector<3x8x8x8xf32>
    %c0_23 = arith.constant 0 : index
    %c0_24 = arith.constant 0 : index
    %c0_25 = arith.constant 0 : index
    %81 = vector.load %arg4[%c0_23, %c0_24, %c0_25] : memref<3x8x8xbf16, #tpu.memory_space<vmem>>, vector<3x8x8xbf16>
    %82 = arith.extf %81 : vector<3x8x8xbf16> to vector<3x8x8xf32>
    %83 = vector.shape_cast %82 : vector<3x8x8xf32> to vector<3x1x8x8xf32>
    %84 = vector.broadcast %83 : vector<3x1x8x8xf32> to vector<3x8x8x8xf32>
    %85 = arith.addf %80, %84 : vector<3x8x8x8xf32>
    %cst_26 = arith.constant dense<0xFF800000> : vector<3x8x8xf32>
    %86 = vector.multi_reduction <maximumf>, %85, %cst_26 [3] : vector<3x8x8x8xf32> to vector<3x8x8xf32>
    %87 = vector.shape_cast %86 : vector<3x8x8xf32> to vector<3x8x8x1xf32>
    %88 = vector.broadcast %87 : vector<3x8x8x1xf32> to vector<3x8x8x8xf32>
    %89 = arith.subf %85, %88 : vector<3x8x8x8xf32>
    %90 = math.exp %89 : vector<3x8x8x8xf32>
    %cst_27 = arith.constant dense<0.000000e+00> : vector<3x8x8xf32>
    %91 = vector.multi_reduction <add>, %90, %cst_27 [3] : vector<3x8x8x8xf32> to vector<3x8x8xf32>
    %92 = vector.shape_cast %91 : vector<3x8x8xf32> to vector<3x8x8x1xf32>
    %93 = tpu.reciprocal %92 {approx = true} : vector<3x8x8x1xf32> -> vector<3x8x8x1xf32>
    %94 = vector.broadcast %93 : vector<3x8x8x1xf32> to vector<3x8x8x8xf32>
    %95 = arith.mulf %90, %94 : vector<3x8x8x8xf32>
    %96 = arith.truncf %95 : vector<3x8x8x8xf32> to vector<3x8x8x8xbf16>
    %c0_28 = arith.constant 0 : index
    %c0_29 = arith.constant 0 : index
    %c0_30 = arith.constant 0 : index
    %c0_31 = arith.constant 0 : index
    %97 = vector.load %arg16[%c0_28, %c0_29, %c0_30, %c0_31] : memref<3x8x8x8xbf16, #tpu.memory_space<vmem>>, vector<3x8x8x8xbf16>
    tpu.vector_store %arg16[%c0_28, %c0_29, %c0_30, %c0_31], %96 {strides = array<i32>} : memref<3x8x8x8xbf16, #tpu.memory_space<vmem>>, vector<3x8x8x8xbf16>,
    %98 = vector.shape_cast %95 : vector<3x8x8x8xf32> to vector<24x8x8xf32>
    %99 = arith.truncf %98 : vector<24x8x8xf32> to vector<24x8x8xbf16>
    "tpu.trace_start"() <{level = 10 : i32, message = "bqk,bkd->bqd"}> : () -> ()
    %cst_32 = arith.constant dense<0.000000e+00> : vector<24x8x64xf32>
    %100 = tpu.matmul %99, %78, %cst_32 {dimension_numbers = #tpu.dot_dimension_numbers<[2], [1], [1], [2], [0, 0, 0, 1, 1, 2], [0], [0]>} : vector<24x8x8xbf16>, vector<24x8x64xbf16>, vector<24x8x64xf32> -> vector<24x8x64xf32>
    "tpu.trace_stop"() : () -> ()
    %101 = vector.shape_cast %100 : vector<24x8x64xf32> to vector<3x8x8x64xf32>
    %102 = vector.extract_strided_slice %101 {offsets = [0, 0, 0, 0], sizes = [3, 1, 8, 64], strides = [1, 1, 1, 1]} : vector<3x8x8x64xf32> to vector<3x1x8x64xf32>
    %103 = vector.shape_cast %102 : vector<3x1x8x64xf32> to vector<3x8x64xf32>
    %104 = vector.shape_cast %103 : vector<3x8x64xf32> to vector<24x64xf32>
    %105 = vector.extract_strided_slice %101 {offsets = [0, 1, 0, 0], sizes = [3, 1, 8, 64], strides = [1, 1, 1, 1]} : vector<3x8x8x64xf32> to vector<3x1x8x64xf32>
    %106 = vector.shape_cast %105 : vector<3x1x8x64xf32> to vector<3x8x64xf32>
    %107 = vector.shape_cast %106 : vector<3x8x64xf32> to vector<24x64xf32>
    %108 = vector.extract_strided_slice %101 {offsets = [0, 2, 0, 0], sizes = [3, 1, 8, 64], strides = [1, 1, 1, 1]} : vector<3x8x8x64xf32> to vector<3x1x8x64xf32>
    %109 = vector.shape_cast %108 : vector<3x1x8x64xf32> to vector<3x8x64xf32>
    %110 = vector.shape_cast %109 : vector<3x8x64xf32> to vector<24x64xf32>
    %111 = vector.extract_strided_slice %101 {offsets = [0, 3, 0, 0], sizes = [3, 1, 8, 64], strides = [1, 1, 1, 1]} : vector<3x8x8x64xf32> to vector<3x1x8x64xf32>
    %112 = vector.shape_cast %111 : vector<3x1x8x64xf32> to vector<3x8x64xf32>
    %113 = vector.shape_cast %112 : vector<3x8x64xf32> to vector<24x64xf32>
    %114 = vector.extract_strided_slice %101 {offsets = [0, 4, 0, 0], sizes = [3, 1, 8, 64], strides = [1, 1, 1, 1]} : vector<3x8x8x64xf32> to vector<3x1x8x64xf32>
    %115 = vector.shape_cast %114 : vector<3x1x8x64xf32> to vector<3x8x64xf32>
    %116 = vector.shape_cast %115 : vector<3x8x64xf32> to vector<24x64xf32>
    %117 = vector.extract_strided_slice %101 {offsets = [0, 5, 0, 0], sizes = [3, 1, 8, 64], strides = [1, 1, 1, 1]} : vector<3x8x8x64xf32> to vector<3x1x8x64xf32>
    %118 = vector.shape_cast %117 : vector<3x1x8x64xf32> to vector<3x8x64xf32>
    %119 = vector.shape_cast %118 : vector<3x8x64xf32> to vector<24x64xf32>
    %120 = vector.extract_strided_slice %101 {offsets = [0, 6, 0, 0], sizes = [3, 1, 8, 64], strides = [1, 1, 1, 1]} : vector<3x8x8x64xf32> to vector<3x1x8x64xf32>
    %121 = vector.shape_cast %120 : vector<3x1x8x64xf32> to vector<3x8x64xf32>
    %122 = vector.shape_cast %121 : vector<3x8x64xf32> to vector<24x64xf32>
    %123 = vector.extract_strided_slice %101 {offsets = [0, 7, 0, 0], sizes = [3, 1, 8, 64], strides = [1, 1, 1, 1]} : vector<3x8x8x64xf32> to vector<3x1x8x64xf32>
    %124 = vector.shape_cast %123 : vector<3x1x8x64xf32> to vector<3x8x64xf32>
    %125 = vector.shape_cast %124 : vector<3x8x64xf32> to vector<24x64xf32>
    %126 = tpu.concatenate %104, %107, %110, %113, %116, %119, %122, %125 in 1 : vector<24x64xf32>, vector<24x64xf32>, vector<24x64xf32>, vector<24x64xf32>, vector<24x64xf32>, vector<24x64xf32>, vector<24x64xf32>, vector<24x64xf32> -> vector<24x512xf32>
    %127 = arith.truncf %126 : vector<24x512xf32> to vector<24x512xbf16>
    %c0_33 = arith.constant 0 : index
    %c0_34 = arith.constant 0 : index
    %128 = vector.load %arg11[%c0_33, %c0_34] : memref<512x512xbf16, #tpu.memory_space<vmem>>, vector<512x512xbf16>
    %cst_35 = arith.constant dense<0.000000e+00> : vector<24x512xf32>
    %129 = tpu.matmul %127, %128, %cst_35 {dimension_numbers = #tpu.dot_dimension_numbers<[1], [0], [0], [1], [0, 0, 1, 1], [], []>} : vector<24x512xbf16>, vector<512x512xbf16>, vector<24x512xf32> -> vector<24x512xf32>
    %c0_36 = arith.constant 0 : index
    %c0_37 = arith.constant 0 : index
    %130 = vector.load %arg12[%c0_36, %c0_37] : memref<1x512xf32, #tpu.memory_space<vmem>>, vector<1x512xf32>
    %131 = vector.broadcast %130 : vector<1x512xf32> to vector<24x512xf32>
    %132 = arith.addf %129, %131 : vector<24x512xf32>
    %133 = arith.addf %132, %1 : vector<24x512xf32>
    %cst_38 = arith.constant dense<0.000000e+00> : vector<24xf32>
    %134 = vector.multi_reduction <add>, %133, %cst_38 [1] : vector<24x512xf32> to vector<24xf32>
    %135 = vector.shape_cast %134 : vector<24xf32> to vector<24x1xf32>
    %cst_39 = arith.constant 5.120000e+02 : f32
    %136 = vector.broadcast %cst_39 : f32 to vector<24x1xf32>
    %137 = arith.divf %135, %136 : vector<24x1xf32>
    %138 = vector.broadcast %137 : vector<24x1xf32> to vector<24x512xf32>
    %139 = arith.subf %133, %138 : vector<24x512xf32>
    %140 = arith.mulf %139, %139 : vector<24x512xf32>
    %cst_40 = arith.constant dense<0.000000e+00> : vector<24xf32>
    %141 = vector.multi_reduction <add>, %140, %cst_40 [1] : vector<24x512xf32> to vector<24xf32>
    %142 = vector.shape_cast %141 : vector<24xf32> to vector<24x1xf32>
    %cst_41 = arith.constant 5.120000e+02 : f32
    %143 = vector.broadcast %cst_41 : f32 to vector<24x1xf32>
    %144 = arith.divf %142, %143 : vector<24x1xf32>
    %145 = vector.broadcast %137 : vector<24x1xf32> to vector<24x512xf32>
    %146 = arith.subf %133, %145 : vector<24x512xf32>
    %cst_42 = arith.constant 9.99999974E-6 : f32
    %147 = vector.broadcast %cst_42 : f32 to vector<24x1xf32>
    %148 = arith.addf %144, %147 : vector<24x1xf32>
    %149 = math.rsqrt %148 : vector<24x1xf32>
    %150 = vector.broadcast %149 : vector<24x1xf32> to vector<24x512xf32>
    %151 = arith.mulf %146, %150 : vector<24x512xf32>
    %c0_43 = arith.constant 0 : index
    %c0_44 = arith.constant 0 : index
    %152 = vector.load %arg13[%c0_43, %c0_44] : memref<1x512xf32, #tpu.memory_space<vmem>>, vector<1x512xf32>
    %153 = vector.broadcast %152 : vector<1x512xf32> to vector<24x512xf32>
    %154 = arith.mulf %151, %153 : vector<24x512xf32>
    %c0_45 = arith.constant 0 : index
    %c0_46 = arith.constant 0 : index
    %155 = vector.load %arg14[%c0_45, %c0_46] : memref<1x512xf32, #tpu.memory_space<vmem>>, vector<1x512xf32>
    %156 = vector.broadcast %155 : vector<1x512xf32> to vector<24x512xf32>
    %157 = arith.addf %154, %156 : vector<24x512xf32>
    %158 = vector.shape_cast %157 : vector<24x512xf32> to vector<3x8x512xf32>
    %c0_47 = arith.constant 0 : index
    %c0_48 = arith.constant 0 : index
    %c0_49 = arith.constant 0 : index
    %159 = vector.load %arg15[%c0_47, %c0_48, %c0_49] : memref<3x8x512xf32, #tpu.memory_space<vmem>>, vector<3x8x512xf32>
    tpu.vector_store %arg15[%c0_47, %c0_48, %c0_49], %158 {strides = array<i32>} : memref<3x8x512xf32, #tpu.memory_space<vmem>>, vector<3x8x512xf32>,
    return
  }
  func.func @transform_0(%arg0: i32) -> (i32, i32, i32) {
    %c0_i32 = arith.constant 0 : i32
    %c0_i32_0 = arith.constant 0 : i32
    %c0_i32_1 = arith.constant 0 : i32
    return %arg0, %c0_i32, %c0_i32_0 : i32, i32, i32
  }
  func.func @transform_1(%arg0: i32) -> (i32, i32, i32) {
    %c0_i32 = arith.constant 0 : i32
    %c0_i32_0 = arith.constant 0 : i32
    %c0_i32_1 = arith.constant 0 : i32
    return %arg0, %c0_i32, %c0_i32_0 : i32, i32, i32
  }
  func.func @transform_2(%arg0: i32) -> (i32, i32, i32) {
    %c0_i32 = arith.constant 0 : i32
    %c0_i32_0 = arith.constant 0 : i32
    %c0_i32_1 = arith.constant 0 : i32
    return %arg0, %c0_i32, %c0_i32_0 : i32, i32, i32
  }
  func.func @transform_3(%arg0: i32) -> (i32, i32, i32) {
    %c0_i32 = arith.constant 0 : i32
    %c0_i32_0 = arith.constant 0 : i32
    %c0_i32_1 = arith.constant 0 : i32
    return %arg0, %c0_i32, %c0_i32_0 : i32, i32, i32
  }
  func.func @transform_4(%arg0: i32) -> (i32, i32) {
    %c0_i32 = arith.constant 0 : i32
    %c0_i32_0 = arith.constant 0 : i32
    %c0_i32_1 = arith.constant 0 : i32
    return %c0_i32, %c0_i32_0 : i32, i32
  }
  func.func @transform_5(%arg0: i32) -> (i32, i32) {
    %c0_i32 = arith.constant 0 : i32
    %c0_i32_0 = arith.constant 0 : i32
    %c0_i32_1 = arith.constant 0 : i32
    return %c0_i32, %c0_i32_0 : i32, i32
  }
  func.func @transform_6(%arg0: i32) -> (i32, i32) {
    %c0_i32 = arith.constant 0 : i32
    %c0_i32_0 = arith.constant 0 : i32
    %c0_i32_1 = arith.constant 0 : i32
    return %c0_i32, %c0_i32_0 : i32, i32
  }
  func.func @transform_7(%arg0: i32) -> (i32, i32) {
    %c0_i32 = arith.constant 0 : i32
    %c0_i32_0 = arith.constant 0 : i32
    %c0_i32_1 = arith.constant 0 : i32
    return %c0_i32, %c0_i32_0 : i32, i32
  }
  func.func @transform_8(%arg0: i32) -> (i32, i32) {
    %c0_i32 = arith.constant 0 : i32
    %c0_i32_0 = arith.constant 0 : i32
    %c0_i32_1 = arith.constant 0 : i32
    return %c0_i32, %c0_i32_0 : i32, i32
  }
  func.func @transform_9(%arg0: i32) -> (i32, i32) {
    %c0_i32 = arith.constant 0 : i32
    %c0_i32_0 = arith.constant 0 : i32
    %c0_i32_1 = arith.constant 0 : i32
    return %c0_i32, %c0_i32_0 : i32, i32
  }
  func.func @transform_10(%arg0: i32) -> (i32, i32) {
    %c0_i32 = arith.constant 0 : i32
    %c0_i32_0 = arith.constant 0 : i32
    %c0_i32_1 = arith.constant 0 : i32
    return %c0_i32, %c0_i32_0 : i32, i32
  }
  func.func @transform_11(%arg0: i32) -> (i32, i32) {
    %c0_i32 = arith.constant 0 : i32
    %c0_i32_0 = arith.constant 0 : i32
    %c0_i32_1 = arith.constant 0 : i32
    return %c0_i32, %c0_i32_0 : i32, i32
  }
  func.func @transform_12(%arg0: i32) -> (i32, i32) {
    %c0_i32 = arith.constant 0 : i32
    %c0_i32_0 = arith.constant 0 : i32
    %c0_i32_1 = arith.constant 0 : i32
    return %c0_i32, %c0_i32_0 : i32, i32
  }
  func.func @transform_13(%arg0: i32) -> (i32, i32) {
    %c0_i32 = arith.constant 0 : i32
    %c0_i32_0 = arith.constant 0 : i32
    %c0_i32_1 = arith.constant 0 : i32
    return %c0_i32, %c0_i32_0 : i32, i32
  }
  func.func @transform_14(%arg0: i32) -> (i32, i32, i32) {
    %c0_i32 = arith.constant 0 : i32
    %c0_i32_0 = arith.constant 0 : i32
    %c0_i32_1 = arith.constant 0 : i32
    return %arg0, %c0_i32, %c0_i32_0 : i32, i32, i32
  }
  func.func @transform_15(%arg0: i32) -> (i32, i32, i32, i32) {
    %c0_i32 = arith.constant 0 : i32
    %c0_i32_0 = arith.constant 0 : i32
    %c0_i32_1 = arith.constant 0 : i32
    %c0_i32_2 = arith.constant 0 : i32
    return %arg0, %c0_i32, %c0_i32_0, %c0_i32_1 : i32, i32, i32, i32
  }
}

</mosaic_0001>

<bundles_post_ra>
// kernel: tpu_custom_call.1
= control target key start
LH: loop header
LB: loop body
LE: loop exit
PB: predicated region body
PF: predicated region fallthrough
CT: control target
= control target key end

     0   :  { %21 = vsyncpa [#allocation3], 0  ;;  %s11058_s0 = inlined_call_operand.hbm [shape: f32[3,8,512], index: 0, kind: input, shape index: {}]   ;;  %s11059_s1 = inlined_call_operand.hbm [shape: bf16[3,8,512], index: 1, kind: input, shape index: {}]   ;;  %s11060_s2 = inlined_call_operand.hbm [shape: bf16[3,8,512], index: 2, kind: input, shape index: {}]   ;;  %s11061_s3 = inlined_call_operand.hbm [shape: bf16[3,8,8], index: 3, kind: input, shape index: {}]   ;;  %s11062_s4 = inlined_call_operand.hbm [shape: bf16[512,512], index: 4, kind: input, shape index: {}]   ;;  %s11063_s5 = inlined_call_operand.hbm [shape: f32[1,512], index: 5, kind: input, shape index: {}]   ;;  %s11064_s6 = inlined_call_operand.hbm [shape: bf16[512,512], index: 6, kind: input, shape index: {}]   ;;  %s11065_s7 = inlined_call_operand.hbm [shape: f32[1,512], index: 7, kind: input, shape index: {}]   ;;  %s11066_s8 = inlined_call_operand.hbm [shape: bf16[512,512], index: 8, kind: input, shape index: {}]   ;;  %s11067_s9 = inlined_call_operand.hbm [shape: f32[1,512], index: 9, kind: input, shape index: {}]   ;;  %s11068_s10 = inlined_call_operand.hbm [shape: bf16[512,512], index: 10, kind: input, shape index: {}]   ;;  %s11069_s11 = inlined_call_operand.hbm [shape: f32[1,512], index: 11, kind: input, shape index: {}]   ;;  %s11070_s12 = inlined_call_operand.hbm [shape: f32[1,512], index: 12, kind: input, shape index: {}]   ;;  %s11071_s13 = inlined_call_operand.hbm [shape: f32[1,512], index: 13, kind: input, shape index: {}]   ;;  %s11072_s14 = inlined_call_operand.hbm [shape: f32[3,8,512], index: 14, kind: output, shape index: {0}]   ;;  %s11073_s15 = inlined_call_operand.hbm [shape: bf16[3,8,8,8], index: 15, kind: output, shape index: {1}]  }
   0x1   :  { %22 = vsyncpa [#allocation6], 0 }
   0x2   :  { %23 = vsyncpa [#allocation9], 0 }
   0x3   :  { %24 = vsyncpa [#allocation12], 0 }
   0x4   :  { %25 = vsyncpa [#allocation15], 0 }
   0x5   :  { %26 = vsyncpa [#allocation18], 0 }
   0x6   :  { %27 = vsyncpa [#allocation21], 0 }
   0x7   :  { %28 = vsyncpa [#allocation24], 0 }
   0x8   :  { %29 = vsyncpa [#allocation4], 0 }
   0x9   :  { %30 = vsyncpa [#allocation27], 0  ;;  %s9795_s18 = smov [#allocation5]   ;;  %s9423_s22 = scalar_lea.hbm %s11059_s1, 768 }
   0xa   :  { %s48_s19 = sshll.u32 %s9795_s18, 4  ;;  %p9424_p0 = scmp.ne.s32.totalorder %s11059_s1, %s9423_s22  ;;  %s49_s19 = int_to_ptr.vmem [resolvable:$true] %s48_s19 }
   0xb   :  { %p9427_p1 = scmp.lt.u32.totalorder %s9423_s22, %s11059_s1 }
   0xd   :  { %p9429_p2 = pnand %p9427_p1, %p9424_p0 }
   0xf   :  { %9432 = shalt.err (!%p9429_p2)
}
  0x10   :  { %s9433_s27 = scalar_lea.vmem %s49_s19, 768  ;;  %p9438_p4 = scmp.lt.s32.totalorder %s49_s19, %s49_s19 }
  0x11   :  { %p9434_p3 = scmp.ne.s32.totalorder %s49_s19, %s9433_s27  ;;  %p9439_p5 = scmp.lt.s32.totalorder %s9433_s27, %s9433_s27 }
  0x13   :  { %p9440_p6 = por %p9439_p5, %p9438_p4 }
  0x15   :  { %p9441_p7 = pnand %p9440_p6, %p9434_p3 }
  0x17   :  { %9444 = shalt.err (!%p9441_p7)
}
  0x18   :  { %s11074_s28 = smov 256   ;;  %s11076_s29 = smov 16  }
  0x19   :  { %54 = dma.hbm_to_vmem [thread:$0]  %s11059_s1, 768, %s49_s19, [#allocation6], %s11074_s28, %s11074_s28, %s11076_s29  }
  0x1a   :  { %s9798_s17 = smov [#allocation8]   ;;  %s9445_s22 = scalar_lea.hbm %s11061_s3, 192 }
  0x1b   :  { %s72_s18 = sshll.u32 %s9798_s17, 4  ;;  %p9446_p8 = scmp.ne.s32.totalorder %s11061_s3, %s9445_s22  ;;  %s73_s18 = int_to_ptr.vmem [resolvable:$true] %s72_s18 }
  0x1c   :  { %p9449_p9 = scmp.lt.u32.totalorder %s9445_s22, %s11061_s3 }
  0x1e   :  { %p9451_p10 = pnand %p9449_p9, %p9446_p8 }
  0x20   :  { %9454 = shalt.err (!%p9451_p10)
}
  0x21   :  { %s9455_s27 = scalar_lea.vmem %s73_s18, 192  ;;  %p9460_p12 = scmp.lt.s32.totalorder %s73_s18, %s73_s18 }
  0x22   :  { %p9456_p11 = scmp.ne.s32.totalorder %s73_s18, %s9455_s27  ;;  %p9461_p13 = scmp.lt.s32.totalorder %s9455_s27, %s9455_s27 }
  0x24   :  { %p9462_p0 = por %p9461_p13, %p9460_p12 }
  0x26   :  { %p9463_p1 = pnand %p9462_p0, %p9456_p11 }
  0x28   :  { %9466 = shalt.err (!%p9463_p1)
}
  0x29   :  { %s9799_s1 = smov 64   ;;  %s9800_s19 = smov 4  }
  0x2a   :  { %78 = dma.hbm_to_vmem [thread:$0]  %s11061_s3, 192, %s73_s18, [#allocation9], %s9799_s1, %s9799_s1, %s9800_s19  }
  0x2b   :  { %s9801_s17 = smov [#allocation11]   ;;  %s9802_s21 = smov [#allocation14]  }
  0x2c   :  { %s97_s20 = sshll.u32 %s9801_s17, 4  ;;  %s119_s22 = sshll.u32 %s9802_s21, 4  ;;  %s98_s20 = int_to_ptr.vmem [resolvable:$true] %s97_s20  ;;  %s120_s22 = int_to_ptr.vmem [resolvable:$true] %s119_s22 }
  0x2d   :  { %s9467_s25 = scalar_lea.hbm %s11063_s5, 64 }
  0x2e   :  { %p9468_p2 = scmp.ne.s32.totalorder %s11063_s5, %s9467_s25  ;;  %p9471_p3 = scmp.lt.u32.totalorder %s9467_s25, %s11063_s5 }
  0x30   :  { %p9473_p4 = pnand %p9471_p3, %p9468_p2 }
  0x32   :  { %9476 = shalt.err (!%p9473_p4)
}
  0x33   :  { %s9477_s3 = scalar_lea.vmem %s98_s20, 64  ;;  %p9482_p6 = scmp.lt.s32.totalorder %s98_s20, %s98_s20 }
  0x34   :  { %p9478_p5 = scmp.ne.s32.totalorder %s98_s20, %s9477_s3  ;;  %p9483_p7 = scmp.lt.s32.totalorder %s9477_s3, %s9477_s3 }
  0x36   :  { %p9484_p8 = por %p9483_p7, %p9482_p6 }
  0x38   :  { %p9485_p9 = pnand %p9484_p8, %p9478_p5 }
  0x3a   :  { %9488 = shalt.err (!%p9485_p9)
}
  0x3b   :  { %100 = dma.hbm_to_vmem [thread:$0]  %s11063_s5, 64, %s98_s20, [#allocation12]  }
  0x3c   :  { %s9489_s21 = scalar_lea.hbm %s11065_s7, 64 }
  0x3d   :  { %p9490_p10 = scmp.ne.s32.totalorder %s11065_s7, %s9489_s21  ;;  %p9493_p11 = scmp.lt.u32.totalorder %s9489_s21, %s11065_s7 }
  0x3f   :  { %p9495_p12 = pnand %p9493_p11, %p9490_p10 }
  0x41   :  { %9498 = shalt.err (!%p9495_p12)
}
  0x42   :  { %s9499_s25 = scalar_lea.vmem %s120_s22, 64  ;;  %p9504_p0 = scmp.lt.s32.totalorder %s120_s22, %s120_s22 }
  0x43   :  { %p9500_p13 = scmp.ne.s32.totalorder %s120_s22, %s9499_s25  ;;  %p9505_p1 = scmp.lt.s32.totalorder %s9499_s25, %s9499_s25 }
  0x45   :  { %p9506_p2 = por %p9505_p1, %p9504_p0 }
  0x47   :  { %p9507_p3 = pnand %p9506_p2, %p9500_p13 }
  0x49   :  { %9510 = shalt.err (!%p9507_p3)
}
  0x4a   :  { %122 = dma.hbm_to_vmem [thread:$0]  %s11065_s7, 64, %s120_s22, [#allocation15]  }
  0x4b   :  { %s9803_s26 = smov [#allocation17]   ;;  %s9804_s3 = smov [#allocation20]  }
  0x4c   :  { %s141_s27 = sshll.u32 %s9803_s26, 4  ;;  %s163_s18 = sshll.u32 %s9804_s3, 4  ;;  %s142_s27 = int_to_ptr.vmem [resolvable:$true] %s141_s27  ;;  %s164_s18 = int_to_ptr.vmem [resolvable:$true] %s163_s18 }
  0x4d   :  { %s9511_s17 = scalar_lea.hbm %s11067_s9, 64 }
  0x4e   :  { %p9512_p4 = scmp.ne.s32.totalorder %s11067_s9, %s9511_s17  ;;  %p9515_p5 = scmp.lt.u32.totalorder %s9511_s17, %s11067_s9 }
  0x50   :  { %p9517_p6 = pnand %p9515_p5, %p9512_p4 }
  0x52   :  { %9520 = shalt.err (!%p9517_p6)
}
  0x53   :  { %s9521_s7 = scalar_lea.vmem %s142_s27, 64  ;;  %p9526_p8 = scmp.lt.s32.totalorder %s142_s27, %s142_s27 }
  0x54   :  { %p9522_p7 = scmp.ne.s32.totalorder %s142_s27, %s9521_s7  ;;  %p9527_p9 = scmp.lt.s32.totalorder %s9521_s7, %s9521_s7 }
  0x56   :  { %p9528_p10 = por %p9527_p9, %p9526_p8 }
  0x58   :  { %p9529_p11 = pnand %p9528_p10, %p9522_p7 }
  0x5a   :  { %9532 = shalt.err (!%p9529_p11)
}
  0x5b   :  { %144 = dma.hbm_to_vmem [thread:$0]  %s11067_s9, 64, %s142_s27, [#allocation18]  }
  0x5c   :  { %s9533_s20 = scalar_lea.hbm %s11069_s11, 64 }
  0x5d   :  { %p9534_p12 = scmp.ne.s32.totalorder %s11069_s11, %s9533_s20  ;;  %p9537_p13 = scmp.lt.u32.totalorder %s9533_s20, %s11069_s11 }
  0x5f   :  { %p9539_p0 = pnand %p9537_p13, %p9534_p12 }
  0x61   :  { %9542 = shalt.err (!%p9539_p0)
}
  0x62   :  { %s9543_s17 = scalar_lea.vmem %s164_s18, 64  ;;  %p9548_p2 = scmp.lt.s32.totalorder %s164_s18, %s164_s18 }
  0x63   :  { %p9544_p1 = scmp.ne.s32.totalorder %s164_s18, %s9543_s17  ;;  %p9549_p3 = scmp.lt.s32.totalorder %s9543_s17, %s9543_s17 }
  0x65   :  { %p9550_p4 = por %p9549_p3, %p9548_p2 }
  0x67   :  { %p9551_p5 = pnand %p9550_p4, %p9544_p1 }
  0x69   :  { %9554 = shalt.err (!%p9551_p5)
}
  0x6a   :  { %166 = dma.hbm_to_vmem [thread:$0]  %s11069_s11, 64, %s164_s18, [#allocation21]  }
  0x6b   :  { %s9805_s21 = smov [#allocation2]   ;;  %s9555_s7 = scalar_lea.hbm %s11058_s0, 1536 }
  0x6c   :  { %s36_s23 = sshll.u32 %s9805_s21, 4  ;;  %p9556_p6 = scmp.ne.s32.totalorder %s11058_s0, %s9555_s7  ;;  %s37_s23 = int_to_ptr.vmem [resolvable:$true] %s36_s23 }
  0x6d   :  { %p9559_p7 = scmp.lt.u32.totalorder %s9555_s7, %s11058_s0 }
  0x6f   :  { %p9561_p8 = pnand %p9559_p7, %p9556_p6 }
  0x71   :  { %9564 = shalt.err (!%p9561_p8)
}
  0x72   :  { %s9565_s20 = scalar_lea.vmem %s37_s23, 1536  ;;  %p9570_p10 = scmp.lt.s32.totalorder %s37_s23, %s37_s23 }
  0x73   :  { %p9566_p9 = scmp.ne.s32.totalorder %s37_s23, %s9565_s20  ;;  %p9571_p11 = scmp.lt.s32.totalorder %s9565_s20, %s9565_s20 }
  0x75   :  { %p9572_p12 = por %p9571_p11, %p9570_p10 }
  0x77   :  { %p9573_p13 = pnand %p9572_p12, %p9566_p9 }
  0x79   :  { %9576 = shalt.err (!%p9573_p13)
}
  0x7a   :  { %s9806_s11 = smov 512   ;;  %s9807_s18 = smov 32  }
  0x7b   :  { %42 = dma.hbm_to_vmem [thread:$0]  %s11058_s0, 1536, %s37_s23, [#allocation3], %s9806_s11, %s9806_s11, %s9807_s18  }
  0x7c   :  { %s9808_s30 = smov [#allocation7]   ;;  %s9809_s17 = smov [#allocation10]  }
  0x7d   :  { %s60_s16 = sshll.u32 %s9808_s30, 4  ;;  %s84_s9 = sshll.u32 %s9809_s17, 4  ;;  %s61_s16 = int_to_ptr.vmem [resolvable:$true] %s60_s16  ;;  %s85_s9 = int_to_ptr.vmem [resolvable:$true] %s84_s9 }
  0x7e   :  { %s9577_s28 = scalar_lea.hbm %s11060_s2, 768 }
  0x7f   :  { %p9578_p0 = scmp.ne.s32.totalorder %s11060_s2, %s9577_s28  ;;  %p9581_p1 = scmp.lt.u32.totalorder %s9577_s28, %s11060_s2 }
  0x81   :  { %p9583_p2 = pnand %p9581_p1, %p9578_p0 }
  0x83   :  { %9586 = shalt.err (!%p9583_p2)
}
  0x84   :  { %s9587_s0 = scalar_lea.vmem %s61_s16, 768  ;;  %p9592_p4 = scmp.lt.s32.totalorder %s61_s16, %s61_s16 }
  0x85   :  { %p9588_p3 = scmp.ne.s32.totalorder %s61_s16, %s9587_s0  ;;  %p9593_p5 = scmp.lt.s32.totalorder %s9587_s0, %s9587_s0 }
  0x87   :  { %p9594_p6 = por %p9593_p5, %p9592_p4 }
  0x89   :  { %p9595_p7 = pnand %p9594_p6, %p9588_p3 }
  0x8b   :  { %9598 = shalt.err (!%p9595_p7)
}
  0x8c   :  { %s11078_s23 = smov 16   ;;  %s11079_s25 = smov 256  }
  0x8d   :  { %66 = dma.hbm_to_vmem [thread:$0]  %s11060_s2, 768, %s61_s16, [#allocation6], %s11079_s25, %s11079_s25, %s11078_s23  }
  0x8e   :  { %s9599_s30 = scalar_lea.hbm %s11062_s4, 16384 }
  0x8f   :  { %p9600_p8 = scmp.ne.s32.totalorder %s11062_s4, %s9599_s30  ;;  %p9603_p9 = scmp.lt.u32.totalorder %s9599_s30, %s11062_s4 }
  0x91   :  { %p9605_p10 = pnand %p9603_p9, %p9600_p8 }
  0x93   :  { %9608 = shalt.err (!%p9605_p10)
}
  0x94   :  { %s9609_s29 = scalar_lea.vmem %s85_s9, 16384  ;;  %p9614_p12 = scmp.lt.s32.totalorder %s85_s9, %s85_s9 }
  0x95   :  { %p9610_p11 = scmp.ne.s32.totalorder %s85_s9, %s9609_s29  ;;  %p9615_p13 = scmp.lt.s32.totalorder %s9609_s29, %s9609_s29 }
  0x97   :  { %p9616_p0 = por %p9615_p13, %p9614_p12 }
  0x99   :  { %p9617_p1 = pnand %p9616_p0, %p9610_p11 }
  0x9b   :  { %9620 = shalt.err (!%p9617_p1)
}
  0x9c   :  { %90 = dma.hbm_to_vmem [thread:$0]  %s11062_s4, 16384, %s85_s9, [#allocation9], %s11079_s25, %s11079_s25, %s11078_s23  }
  0x9d   :  { %s9810_s7 = smov [#allocation13]   ;;  %s9811_s24 = smov [#allocation16]  }
  0x9e   :  { %s106_s22 = sshll.u32 %s9810_s7, 4  ;;  %s128_s0 = sshll.u32 %s9811_s24, 4  ;;  %s107_s22 = int_to_ptr.vmem [resolvable:$true] %s106_s22  ;;  %s129_s0 = int_to_ptr.vmem [resolvable:$true] %s128_s0 }
  0x9f   :  { %s9621_s26 = scalar_lea.hbm %s11064_s6, 16384 }
  0xa0   :  { %p9622_p2 = scmp.ne.s32.totalorder %s11064_s6, %s9621_s26  ;;  %p9625_p3 = scmp.lt.u32.totalorder %s9621_s26, %s11064_s6 }
  0xa2   :  { %p9627_p4 = pnand %p9625_p3, %p9622_p2 }
  0xa4   :  { %9630 = shalt.err (!%p9627_p4)
}
  0xa5   :  { %s9631_s4 = scalar_lea.vmem %s107_s22, 16384  ;;  %p9636_p6 = scmp.lt.s32.totalorder %s107_s22, %s107_s22 }
  0xa6   :  { %p9632_p5 = scmp.ne.s32.totalorder %s107_s22, %s9631_s4  ;;  %p9637_p7 = scmp.lt.s32.totalorder %s9631_s4, %s9631_s4 }
  0xa8   :  { %p9638_p8 = por %p9637_p7, %p9636_p6 }
  0xaa   :  { %p9639_p9 = pnand %p9638_p8, %p9632_p5 }
  0xac   :  { %9642 = shalt.err (!%p9639_p9)
}
  0xad   :  { %112 = dma.hbm_to_vmem [thread:$0]  %s11064_s6, 16384, %s107_s22, [#allocation12], %s11079_s25, %s11079_s25, %s11078_s23  }
  0xae   :  { %s9643_s2 = scalar_lea.hbm %s11066_s8, 16384 }
  0xaf   :  { %p9644_p10 = scmp.ne.s32.totalorder %s11066_s8, %s9643_s2  ;;  %p9647_p11 = scmp.lt.u32.totalorder %s9643_s2, %s11066_s8 }
  0xb1   :  { %p9649_p12 = pnand %p9647_p11, %p9644_p10 }
  0xb3   :  { %9652 = shalt.err (!%p9649_p12)
}
  0xb4   :  { %s9653_s20 = scalar_lea.vmem %s129_s0, 16384  ;;  %p9658_p0 = scmp.lt.s32.totalorder %s129_s0, %s129_s0 }
  0xb5   :  { %p9654_p13 = scmp.ne.s32.totalorder %s129_s0, %s9653_s20  ;;  %p9659_p1 = scmp.lt.s32.totalorder %s9653_s20, %s9653_s20 }
  0xb7   :  { %p9660_p2 = por %p9659_p1, %p9658_p0 }
  0xb9   :  { %p9661_p3 = pnand %p9660_p2, %p9654_p13 }
  0xbb   :  { %9664 = shalt.err (!%p9661_p3)
}
  0xbc   :  { %134 = dma.hbm_to_vmem [thread:$0]  %s11066_s8, 16384, %s129_s0, [#allocation15], %s11079_s25, %s11079_s25, %s11078_s23  }
  0xbd   :  { %s9812_s26 = smov [#allocation19]   ;;  %s9813_s30 = smov [#allocation22]  }
  0xbe   :  { %s150_s3 = sshll.u32 %s9812_s26, 4  ;;  %s173_s17 = sshll.u32 %s9813_s30, 4  ;;  %s151_s3 = int_to_ptr.vmem [resolvable:$true] %s150_s3  ;;  %s174_s17 = int_to_ptr.vmem [resolvable:$true] %s173_s17 }
  0xbf   :  { %s9665_s9 = scalar_lea.hbm %s11068_s10, 16384 }
  0xc0   :  { %p9666_p4 = scmp.ne.s32.totalorder %s11068_s10, %s9665_s9  ;;  %p9669_p5 = scmp.lt.u32.totalorder %s9665_s9, %s11068_s10 }
  0xc2   :  { %p9671_p6 = pnand %p9669_p5, %p9666_p4 }
  0xc4   :  { %9674 = shalt.err (!%p9671_p6)
}
  0xc5   :  { %s9675_s8 = scalar_lea.vmem %s151_s3, 16384  ;;  %p9680_p8 = scmp.lt.s32.totalorder %s151_s3, %s151_s3 }
  0xc6   :  { %p9676_p7 = scmp.ne.s32.totalorder %s151_s3, %s9675_s8  ;;  %p9681_p9 = scmp.lt.s32.totalorder %s9675_s8, %s9675_s8 }
  0xc8   :  { %p9682_p10 = por %p9681_p9, %p9680_p8 }
  0xca   :  { %p9683_p11 = pnand %p9682_p10, %p9676_p7 }
  0xcc   :  { %9686 = shalt.err (!%p9683_p11)
}
  0xcd   :  { %156 = dma.hbm_to_vmem [thread:$0]  %s11068_s10, 16384, %s151_s3, [#allocation18], %s11079_s25, %s11079_s25, %s11078_s23  }
  0xce   :  { %s9687_s5 = scalar_lea.hbm %s11070_s12, 64 }
  0xcf   :  { %p9688_p12 = scmp.ne.s32.totalorder %s11070_s12, %s9687_s5  ;;  %p9691_p13 = scmp.lt.u32.totalorder %s9687_s5, %s11070_s12 }
  0xd1   :  { %p9693_p0 = pnand %p9691_p13, %p9688_p12 }
  0xd3   :  { %9696 = shalt.err (!%p9693_p0)
}
  0xd4   :  { %s9697_s30 = scalar_lea.vmem %s174_s17, 64  ;;  %p9702_p2 = scmp.lt.s32.totalorder %s174_s17, %s174_s17 }
  0xd5   :  { %p9698_p1 = scmp.ne.s32.totalorder %s174_s17, %s9697_s30  ;;  %p9703_p3 = scmp.lt.s32.totalorder %s9697_s30, %s9697_s30 }
  0xd7   :  { %p9704_p4 = por %p9703_p3, %p9702_p2 }
  0xd9   :  { %p9705_p5 = pnand %p9704_p4, %p9698_p1 }
  0xdb   :  { %9708 = shalt.err (!%p9705_p5)
}
  0xdc   :  { %176 = dma.hbm_to_vmem [thread:$0]  %s11070_s12, 64, %s174_s17, [#allocation21]  }
  0xdd   :  { %s9814_s25 = smov [#allocation23]   ;;  %s9709_s9 = scalar_lea.hbm %s11071_s13, 64 }
  0xde   :  { %s183_s3 = sshll.u32 %s9814_s25, 4  ;;  %p9710_p6 = scmp.ne.s32.totalorder %s11071_s13, %s9709_s9  ;;  %s184_s3 = int_to_ptr.vmem [resolvable:$true] %s183_s3 }
  0xdf   :  { %p9713_p7 = scmp.lt.u32.totalorder %s9709_s9, %s11071_s13 }
  0xe1   :  { %p9715_p8 = pnand %p9713_p7, %p9710_p6 }
  0xe3   :  { %9718 = shalt.err (!%p9715_p8)
}
  0xe4   :  { %s9719_s8 = scalar_lea.vmem %s184_s3, 64  ;;  %p9724_p10 = scmp.lt.s32.totalorder %s184_s3, %s184_s3 }
  0xe5   :  { %p9720_p9 = scmp.ne.s32.totalorder %s184_s3, %s9719_s8  ;;  %p9725_p11 = scmp.lt.s32.totalorder %s9719_s8, %s9719_s8 }
  0xe7   :  { %p9726_p12 = por %p9725_p11, %p9724_p10 }
  0xe9   :  { %p9727_p13 = pnand %p9726_p12, %p9720_p9 }
  0xeb   :  { %9730 = shalt.err (!%p9727_p13)
}
  0xec   :  { %186 = dma.hbm_to_vmem [thread:$0]  %s11071_s13, 64, %s184_s3, [#allocation24]  }
  0xed   :  { %9775 = dma.done.wait [#allocation3], 1536  }
  0xee   :  { %9776 = vsyncadd [#allocation3], 4294965760 }
  0xef   :  { %9777 = dma.done.wait [#allocation6], 1536  }
  0xf0   :  { %9778 = vsyncadd [#allocation6], 4294965760 }
  0xf1   :  { %9779 = dma.done.wait [#allocation9], 16576  }
  0xf2   :  { %9780 = vsyncadd [#allocation9], 4294950720 }
  0xf3   :  { %9781 = dma.done.wait [#allocation12], 16448  }
  0xf4   :  { %9782 = vsyncadd [#allocation12], 4294950848 }
  0xf5   :  { %9783 = dma.done.wait [#allocation15], 16448  }
  0xf6   :  { %9784 = vsyncadd [#allocation15], 4294950848 }
  0xf7   :  { %9785 = dma.done.wait [#allocation18], 16448  }
  0xf8   :  { %9786 = vsyncadd [#allocation18], 4294950848 }
  0xf9   :  { %9787 = dma.done.wait [#allocation21], 128  }
  0xfa   :  { %9788 = vsyncadd [#allocation21], 4294967168 }
  0xfb   :  { %9789 = dma.done.wait [#allocation24], 64  }
  0xfc   :  { %9790 = vsyncadd [#allocation24], 4294967232  ;;  %v8521_v0 = vld [vmem:[#allocation10 + $0x4] ss:$16 sps:$4 sm:$0xff]   ;;  %v8523_v1 = vld [vmem:[#allocation10 + $0xc] ss:$16 sps:$4 sm:$0xff]  }
  0xfd   :  { %1052 = vmatprep.subr.bf16.mxu0 %v8521_v0  ;;  %v8525_v2 = vld [vmem:[#allocation10] ss:$16 sps:$4 sm:$0xff]   ;;  %v8526_v3 = vld [vmem:[#allocation10 + $0x8] ss:$16 sps:$4 sm:$0xff]   ;;  %1154 = vmatprep.subr.bf16.mxu1 %v8523_v1  ;;  %v8527_v4 = vld [vmem:[#allocation10 + $0x24] ss:$16 sps:$4 sm:$0xff]  }
  0xfe   :  { %1053 = vmatpush1.bf16.msra.mxu0 %v8525_v2  ;;  %1155 = vmatpush1.bf16.msra.mxu1 %v8526_v3  ;;  %v8529_v5 = vld [vmem:[#allocation10 + $0x2c] ss:$16 sps:$4 sm:$0xff]   ;;  %v8531_v6 = vld [vmem:[#allocation10 + $0x20] ss:$16 sps:$4 sm:$0xff]   ;;  %v8532_v7 = vld [vmem:[#allocation10 + $0x28] ss:$16 sps:$4 sm:$0xff]  }
  0xff   :  { %1054 = vmatprep.subr.bf16.mxu0 %v8527_v4  ;;  %1156 = vmatprep.subr.bf16.mxu1 %v8529_v5  ;;  %v8533_v8 = vld [vmem:[#allocation10 + $0x44] ss:$16 sps:$4 sm:$0xff]   ;;  %v8535_v9 = vld [vmem:[#allocation10 + $0x4c] ss:$16 sps:$4 sm:$0xff]   ;;  %v8537_v10 = vld [vmem:[#allocation10 + $0x40] ss:$16 sps:$4 sm:$0xff]  }
 0x100   :  { %v8538_v11 = vld [vmem:[#allocation10 + $0x48] ss:$16 sps:$4 sm:$0xff]   ;;  %v8539_v12 = vld [vmem:[#allocation10 + $0x64] ss:$16 sps:$4 sm:$0xff]   ;;  %v8541_v13 = vld [vmem:[#allocation10 + $0x6c] ss:$16 sps:$4 sm:$0xff]  }
 0x101   :  { %v8543_v14 = vld [vmem:[#allocation10 + $0x60] ss:$16 sps:$4 sm:$0xff]   ;;  %v8544_v15 = vld [vmem:[#allocation10 + $0x68] ss:$16 sps:$4 sm:$0xff]   ;;  %v8545_v16 = vld [vmem:[#allocation10 + $0x84] ss:$16 sps:$4 sm:$0xff]  }
 0x102   :  { %1055 = vmatpush1.bf16.msra.mxu0 %v8531_v6  ;;  %1157 = vmatpush1.bf16.msra.mxu1 %v8532_v7  ;;  %v8547_v17 = vld [vmem:[#allocation10 + $0x8c] ss:$16 sps:$4 sm:$0xff]   ;;  %v8549_v18 = vld [vmem:[#allocation10 + $0x80] ss:$16 sps:$4 sm:$0xff]   ;;  %v8550_v19 = vld [vmem:[#allocation10 + $0x88] ss:$16 sps:$4 sm:$0xff]  }
 0x103   :  { %1056 = vmatprep.subr.bf16.mxu0 %v8533_v8  ;;  %1158 = vmatprep.subr.bf16.mxu1 %v8535_v9  ;;  %v8551_v20 = vld [vmem:[#allocation10 + $0xa4] ss:$16 sps:$4 sm:$0xff]   ;;  %v8553_v21 = vld [vmem:[#allocation10 + $0xac] ss:$16 sps:$4 sm:$0xff]   ;;  %v8555_v22 = vld [vmem:[#allocation10 + $0xa0] ss:$16 sps:$4 sm:$0xff]  }
 0x104   :  { %v8556_v23 = vld [vmem:[#allocation10 + $0xa8] ss:$16 sps:$4 sm:$0xff]   ;;  %v8557_v24 = vld [vmem:[#allocation10 + $0xc4] ss:$16 sps:$4 sm:$0xff]   ;;  %v8559_v25 = vld [vmem:[#allocation10 + $0xcc] ss:$16 sps:$4 sm:$0xff]  }
 0x105   :  { %v8561_v26 = vld [vmem:[#allocation10 + $0xc0] ss:$16 sps:$4 sm:$0xff]   ;;  %v8562_v27 = vld [vmem:[#allocation10 + $0xc8] ss:$16 sps:$4 sm:$0xff]   ;;  %v8563_v28 = vld [vmem:[#allocation10 + $0xe4] ss:$16 sps:$4 sm:$0xff]  }
 0x106   :  { %1057 = vmatpush1.bf16.msra.mxu0 %v8537_v10  ;;  %1159 = vmatpush1.bf16.msra.mxu1 %v8538_v11  ;;  %v8565_v29 = vld [vmem:[#allocation10 + $0xec] ss:$16 sps:$4 sm:$0xff]   ;;  %v8567_v30 = vld [vmem:[#allocation10 + $0xe0] ss:$16 sps:$4 sm:$0xff]   ;;  %v8568_v31 = vld [vmem:[#allocation10 + $0xe8] ss:$16 sps:$4 sm:$0xff]  }
 0x107   :  { %1058 = vmatprep.subr.bf16.mxu0 %v8539_v12  ;;  %1160 = vmatprep.subr.bf16.mxu1 %v8541_v13  ;;  %v8569_v32 = vld [vmem:[#allocation10 + $0x104] ss:$16 sps:$4 sm:$0xff]   ;;  %v8571_v33 = vld [vmem:[#allocation10 + $0x10c] ss:$16 sps:$4 sm:$0xff]   ;;  %v8573_v34 = vld [vmem:[#allocation10 + $0x100] ss:$16 sps:$4 sm:$0xff]  }
 0x108   :  { %v8574_v35 = vld [vmem:[#allocation10 + $0x108] ss:$16 sps:$4 sm:$0xff]   ;;  %v8575_v36 = vld [vmem:[#allocation10 + $0x124] ss:$16 sps:$4 sm:$0xff]   ;;  %v8577_v37 = vld [vmem:[#allocation10 + $0x12c] ss:$16 sps:$4 sm:$0xff]  }
 0x109   :  { %v8579_v38 = vld [vmem:[#allocation10 + $0x120] ss:$16 sps:$4 sm:$0xff]   ;;  %v8580_v39 = vld [vmem:[#allocation10 + $0x128] ss:$16 sps:$4 sm:$0xff]   ;;  %v8581_v40 = vld [vmem:[#allocation10 + $0x144] ss:$16 sps:$4 sm:$0xff]  }
 0x10a   :  { %1059 = vmatpush1.bf16.msra.mxu0 %v8543_v14  ;;  %1161 = vmatpush1.bf16.msra.mxu1 %v8544_v15  ;;  %v8583_v41 = vld [vmem:[#allocation10 + $0x14c] ss:$16 sps:$4 sm:$0xff]   ;;  %v8585_v42 = vld [vmem:[#allocation10 + $0x140] ss:$16 sps:$4 sm:$0xff]   ;;  %v8586_v43 = vld [vmem:[#allocation10 + $0x148] ss:$16 sps:$4 sm:$0xff]  }
 0x10b   :  { %1060 = vmatprep.subr.bf16.mxu0 %v8545_v16  ;;  %1162 = vmatprep.subr.bf16.mxu1 %v8547_v17  ;;  %v8587_v44 = vld [vmem:[#allocation10 + $0x164] ss:$16 sps:$4 sm:$0xff]   ;;  %v8589_v45 = vld [vmem:[#allocation10 + $0x16c] ss:$16 sps:$4 sm:$0xff]   ;;  %v8591_v48 = vld [vmem:[#allocation10 + $0x160] ss:$16 sps:$4 sm:$0xff]  }
 0x10c   :  { %v231_v46 = vld [vmem:[#allocation2 + $0x8] sm:$0xff]  ;;  %v8592_v49 = vld [vmem:[#allocation10 + $0x168] ss:$16 sps:$4 sm:$0xff]   ;;  %v8593_v51 = vld [vmem:[#allocation10 + $0x184] ss:$16 sps:$4 sm:$0xff]   ;;  %vm9816_vm0 = vmmov 0  }
 0x10d   :  { %v235_v47 = vld [vmem:[#allocation2 + $0x28] sm:$0xff]  ;;  %v8598_v54 = vld [vmem:[#allocation10 + $0x188] ss:$16 sps:$4 sm:$0xff]   ;;  %v8599_v55 = vld [vmem:[#allocation10 + $0x1a4] ss:$16 sps:$4 sm:$0xff]   ;;  %vm3504_vm1 = vcmask 523264  }
 0x10e   :  { %1061 = vmatpush1.bf16.msra.mxu0 %v8549_v18  ;;  %1163 = vmatpush1.bf16.msra.mxu1 %v8550_v19  ;;  %v255_v50 = vpack.c.bf16 %v235_v47, %v231_v46  ;;  %v8595_v52 = vld [vmem:[#allocation10 + $0x18c] ss:$16 sps:$4 sm:$0xff]   ;;  %v8597_v53 = vld [vmem:[#allocation10 + $0x180] ss:$16 sps:$4 sm:$0xff]   ;;  %v8604_v58 = vld [vmem:[#allocation10 + $0x1a8] ss:$16 sps:$4 sm:$0xff]  }
 0x10f   :  { %1062 = vmatprep.subr.bf16.mxu0 %v8551_v20  ;;  %1164 = vmatprep.subr.bf16.mxu1 %v8553_v21  ;;  %v8601_v56 = vld [vmem:[#allocation10 + $0x1ac] ss:$16 sps:$4 sm:$0xff]   ;;  %v8603_v57 = vld [vmem:[#allocation10 + $0x1a0] ss:$16 sps:$4 sm:$0xff]   ;;  %v8605_v59 = vld [vmem:[#allocation10 + $0x1c4] ss:$16 sps:$4 sm:$0xff]  }
 0x110   :  { %1084 = vmatprep.mubr.bf16.mxu0 %v255_v50  ;;  %1186 = vmatprep.mubr.bf16.mxu1 %v255_v50  ;;  %v8607_v60 = vld [vmem:[#allocation10 + $0x1cc] ss:$16 sps:$4 sm:$0xff]   ;;  %v8609_v61 = vld [vmem:[#allocation10 + $0x1c0] ss:$16 sps:$4 sm:$0xff]   ;;  %v8610_v62 = vld [vmem:[#allocation10 + $0x1c8] ss:$16 sps:$4 sm:$0xff]  }
 0x111   :  { %v8611_v63 = vld [vmem:[#allocation10 + $0x1e4] ss:$16 sps:$4 sm:$0xff]   ;;  %v8613_v0 = vld [vmem:[#allocation10 + $0x1ec] ss:$16 sps:$4 sm:$0xff]   ;;  %v8615_v1 = vld [vmem:[#allocation10 + $0x1e0] ss:$16 sps:$4 sm:$0xff]  }
 0x112   :  { %1063 = vmatpush1.bf16.msra.mxu0 %v8555_v22  ;;  %1165 = vmatpush1.bf16.msra.mxu1 %v8556_v23  ;;  %v8616_v2 = vld [vmem:[#allocation10 + $0x1e8] ss:$16 sps:$4 sm:$0xff]   ;;  %v8619_v3 = vld [vmem:[#allocation10 + $0x204] ss:$16 sps:$4 sm:$0xff]   ;;  %v8622_v6 = vld [vmem:[#allocation10 + $0x20c] ss:$16 sps:$4 sm:$0xff]  }
 0x113   :  { %1064 = vmatprep.subr.bf16.mxu0 %v8557_v24  ;;  %1166 = vmatprep.subr.bf16.mxu1 %v8559_v25  ;;  %v230_v4 = vld [vmem:[#allocation2] sm:$0xff]  ;;  %v8617_v7 = vld [vmem:[#allocation10 + $0x200] ss:$16 sps:$4 sm:$0xff]   ;;  %v8628_v11 = vld [vmem:[#allocation10 + $0x22c] ss:$16 sps:$4 sm:$0xff]   ;;  %vm4956_vm2 = vcmask 1043456  }
 0x114   :  { %v234_v5 = vld [vmem:[#allocation2 + $0x20] sm:$0xff]  ;;  %v8623_v12 = vld [vmem:[#allocation10 + $0x220] ss:$16 sps:$4 sm:$0xff]   ;;  %v8634_v15 = vld [vmem:[#allocation10 + $0x24c] ss:$16 sps:$4 sm:$0xff]   ;;  %vm4639_vm3 = vcmask 64512  }
 0x115   :  { %v8620_v8 = vld [vmem:[#allocation10 + $0x208] ss:$16 sps:$4 sm:$0xff]   ;;  %v254_v9 = vpack.c.bf16 %v234_v5, %v230_v4  ;;  %v8625_v10 = vld [vmem:[#allocation10 + $0x224] ss:$16 sps:$4 sm:$0xff]   ;;  %v8629_v16 = vld [vmem:[#allocation10 + $0x240] ss:$16 sps:$4 sm:$0xff]  }
 0x116   :  { %1065 = vmatpush1.bf16.msra.mxu0 %v8561_v26  ;;  %1167 = vmatpush1.bf16.msra.mxu1 %v8562_v27  ;;  %v8626_v13 = vld [vmem:[#allocation10 + $0x228] ss:$16 sps:$4 sm:$0xff]   ;;  %v8631_v14 = vld [vmem:[#allocation10 + $0x244] ss:$16 sps:$4 sm:$0xff]   ;;  %v8640_v19 = vld [vmem:[#allocation10 + $0x26c] ss:$16 sps:$4 sm:$0xff]  }
 0x117   :  { %1066 = vmatprep.subr.bf16.mxu0 %v8563_v28  ;;  %1168 = vmatprep.subr.bf16.mxu1 %v8565_v29  ;;  %v8632_v17 = vld [vmem:[#allocation10 + $0x248] ss:$16 sps:$4 sm:$0xff]   ;;  %v8637_v18 = vld [vmem:[#allocation10 + $0x264] ss:$16 sps:$4 sm:$0xff]   ;;  %v8635_v20 = vld [vmem:[#allocation10 + $0x260] ss:$16 sps:$4 sm:$0xff]  }
 0x118   :  { %v8638_v21 = vld [vmem:[#allocation10 + $0x268] ss:$16 sps:$4 sm:$0xff]   ;;  %v8643_v22 = vld [vmem:[#allocation10 + $0x284] ss:$16 sps:$4 sm:$0xff]   ;;  %v8646_v23 = vld [vmem:[#allocation10 + $0x28c] ss:$16 sps:$4 sm:$0xff]  }
 0x119   :  { %v8641_v24 = vld [vmem:[#allocation10 + $0x280] ss:$16 sps:$4 sm:$0xff]   ;;  %v8644_v25 = vld [vmem:[#allocation10 + $0x288] ss:$16 sps:$4 sm:$0xff]   ;;  %v8649_v26 = vld [vmem:[#allocation10 + $0x2a4] ss:$16 sps:$4 sm:$0xff]  }
 0x11a   :  { %1067 = vmatpush1.bf16.msra.mxu0 %v8567_v30  ;;  %1169 = vmatpush1.bf16.msra.mxu1 %v8568_v31  ;;  %v8652_v27 = vld [vmem:[#allocation10 + $0x2ac] ss:$16 sps:$4 sm:$0xff]   ;;  %v238_v29 = vld [vmem:[#allocation2 + $0x40] sm:$0xff]  ;;  %v8665_v47 = vld [vmem:[#allocation10 + $0x300] ss:$16 sps:$4 sm:$0xff]   ;;  %vm4928_vm4 = vcmask 60416  }
 0x11b   :  { %1068 = vmatprep.subr.bf16.mxu0 %v8569_v32  ;;  %1170 = vmatprep.subr.bf16.mxu1 %v8571_v33  ;;  %v239_v28 = vld [vmem:[#allocation2 + $0x48] sm:$0xff]  ;;  %v258_v31 = vpack.c.bf16 %v238_v29, %v238_v29  ;;  %v8650_v33 = vld [vmem:[#allocation10 + $0x2a8] ss:$16 sps:$4 sm:$0xff]   ;;  %v8703_v5 = vld [vmem:[#allocation10 + $0x3c4] ss:$16 sps:$4 sm:$0xff]   ;;  %s9817_s13 = smov [#allocation26]  }
 0x11c   :  { %v259_v30 = vpack.c.bf16 %v239_v28, %v239_v28  ;;  %v8647_v32 = vld [vmem:[#allocation10 + $0x2a0] ss:$16 sps:$4 sm:$0xff]   ;;  %v8670_v46 = vld [vmem:[#allocation10 + $0x30c] ss:$16 sps:$4 sm:$0xff]   ;;  %v8698_v4 = vld [vmem:[#allocation10 + $0x3a8] ss:$16 sps:$4 sm:$0xff]  }
 0x11d   :  { %v8676_v50 = vld [vmem:[#allocation10 + $0x32c] ss:$16 sps:$4 sm:$0xff]   ;;  %v8730_v28 = vld [vmem:[#allocation13 + $0x4c] ss:$16 sps:$4 sm:$0xff]   ;;  %s7308_s0 = sshll.u32 %s9817_s13, 4  ;;  %s7309_s0 = int_to_ptr.vmem [resolvable:$true] %s7308_s0 }
 0x11e   :  { %1069 = vmatpush1.bf16.msra.mxu0 %v8573_v34  ;;  %1171 = vmatpush1.bf16.msra.mxu1 %v8574_v35  ;;  %v8655_v34 = vld [vmem:[#allocation10 + $0x2c4] ss:$16 sps:$4 sm:$0xff]   ;;  %v8658_v35 = vld [vmem:[#allocation10 + $0x2cc] ss:$16 sps:$4 sm:$0xff]   ;;  %s9731_s16 = scalar_lea.vmem %s7309_s0, 1536  ;;  %p9736_p1 = scmp.lt.s32.totalorder %s7309_s0, %s7309_s0 }
 0x11f   :  { %1070 = vmatprep.subr.bf16.mxu0 %v8575_v36  ;;  %1172 = vmatprep.subr.bf16.mxu1 %v8577_v37  ;;  %v233_v36 = vld [vmem:[#allocation2 + $0x18] sm:$0xff]  ;;  %p9732_p0 = scmp.ne.s32.totalorder %s7309_s0, %s9731_s16  ;;  %p9737_p2 = scmp.lt.s32.totalorder %s9731_s16, %s9731_s16 }
 0x120   :  { %v237_v37 = vld [vmem:[#allocation2 + $0x38] sm:$0xff] }
 0x121   :  { %p9738_p3 = por %p9737_p2, %p9736_p1 }
 0x122   :  { %1071 = vmatpush1.bf16.msra.mxu0 %v8579_v38  ;;  %1173 = vmatpush1.bf16.msra.mxu1 %v8580_v39  ;;  %v8653_v38 = vld [vmem:[#allocation10 + $0x2c0] ss:$16 sps:$4 sm:$0xff]   ;;  %v8656_v39 = vld [vmem:[#allocation10 + $0x2c8] ss:$16 sps:$4 sm:$0xff]  }
 0x123   :  { %1072 = vmatprep.subr.bf16.mxu0 %v8581_v40  ;;  %1174 = vmatprep.subr.bf16.mxu1 %v8583_v41  ;;  %v257_v40 = vpack.c.bf16 %v237_v37, %v233_v36  ;;  %v8661_v41 = vld [vmem:[#allocation10 + $0x2e4] ss:$16 sps:$4 sm:$0xff]   ;;  %v8734_v36 = vld [vmem:[#allocation13 + $0x68] ss:$16 sps:$4 sm:$0xff]   ;;  %v8739_v37 = vld [vmem:[#allocation13 + $0x84] ss:$16 sps:$4 sm:$0xff]   ;;  %p9739_p4 = pnand %p9738_p3, %p9732_p0 }
 0x126   :  { %1073 = vmatpush1.bf16.msra.mxu0 %v8585_v42  ;;  %1175 = vmatpush1.bf16.msra.mxu1 %v8586_v43  ;;  %v8664_v42 = vld [vmem:[#allocation10 + $0x2ec] ss:$16 sps:$4 sm:$0xff]   ;;  %v8659_v43 = vld [vmem:[#allocation10 + $0x2e0] ss:$16 sps:$4 sm:$0xff]  }
 0x127   :  { %1074 = vmatprep.subr.bf16.mxu0 %v8587_v44  ;;  %1176 = vmatprep.subr.bf16.mxu1 %v8589_v45  ;;  %v8662_v44 = vld [vmem:[#allocation10 + $0x2e8] ss:$16 sps:$4 sm:$0xff]   ;;  %v8667_v45 = vld [vmem:[#allocation10 + $0x304] ss:$16 sps:$4 sm:$0xff]  }
 0x12a   :  { %1075 = vmatpush1.bf16.msra.mxu0 %v8591_v48  ;;  %1177 = vmatpush1.bf16.msra.mxu1 %v8592_v49  ;;  %v8668_v48 = vld [vmem:[#allocation10 + $0x308] ss:$16 sps:$4 sm:$0xff]   ;;  %v8673_v49 = vld [vmem:[#allocation10 + $0x324] ss:$16 sps:$4 sm:$0xff]  }
 0x12b   :  { %1076 = vmatprep.subr.bf16.mxu0 %v8593_v51  ;;  %1178 = vmatprep.subr.bf16.mxu1 %v8595_v52  ;;  %v8671_v51 = vld [vmem:[#allocation10 + $0x320] ss:$16 sps:$4 sm:$0xff]   ;;  %v8674_v52 = vld [vmem:[#allocation10 + $0x328] ss:$16 sps:$4 sm:$0xff]  }
 0x12e   :  { %1077 = vmatpush1.bf16.msra.mxu0 %v8597_v53  ;;  %1179 = vmatpush1.bf16.msra.mxu1 %v8598_v54  ;;  %v8679_v53 = vld [vmem:[#allocation10 + $0x344] ss:$16 sps:$4 sm:$0xff]   ;;  %v8682_v54 = vld [vmem:[#allocation10 + $0x34c] ss:$16 sps:$4 sm:$0xff]  }
 0x12f   :  { %1078 = vmatprep.subr.bf16.mxu0 %v8599_v55  ;;  %1180 = vmatprep.subr.bf16.mxu1 %v8601_v56  ;;  %v8677_v55 = vld [vmem:[#allocation10 + $0x340] ss:$16 sps:$4 sm:$0xff]   ;;  %v8680_v56 = vld [vmem:[#allocation10 + $0x348] ss:$16 sps:$4 sm:$0xff]  }
 0x132   :  { %1079 = vmatpush1.bf16.msra.mxu0 %v8603_v57  ;;  %1181 = vmatpush1.bf16.msra.mxu1 %v8604_v58  ;;  %v8685_v57 = vld [vmem:[#allocation10 + $0x364] ss:$16 sps:$4 sm:$0xff]   ;;  %v8688_v58 = vld [vmem:[#allocation10 + $0x36c] ss:$16 sps:$4 sm:$0xff]  }
 0x133   :  { %1080 = vmatprep.subr.bf16.mxu0 %v8605_v59  ;;  %1182 = vmatprep.subr.bf16.mxu1 %v8607_v60  ;;  %v8683_v59 = vld [vmem:[#allocation10 + $0x360] ss:$16 sps:$4 sm:$0xff]   ;;  %v8686_v60 = vld [vmem:[#allocation10 + $0x368] ss:$16 sps:$4 sm:$0xff]  }
 0x136   :  { %1081 = vmatpush1.bf16.msra.mxu0 %v8609_v61  ;;  %1183 = vmatpush1.bf16.msra.mxu1 %v8610_v62  ;;  %v8691_v61 = vld [vmem:[#allocation10 + $0x384] ss:$16 sps:$4 sm:$0xff]   ;;  %v8694_v62 = vld [vmem:[#allocation10 + $0x38c] ss:$16 sps:$4 sm:$0xff]  }
 0x137   :  { %1082 = vmatprep.subr.bf16.mxu0 %v8611_v63  ;;  %1184 = vmatprep.subr.bf16.mxu1 %v8613_v0  ;;  %v8689_v63 = vld [vmem:[#allocation10 + $0x380] ss:$16 sps:$4 sm:$0xff]   ;;  %v8692_v0 = vld [vmem:[#allocation10 + $0x388] ss:$16 sps:$4 sm:$0xff]  }
 0x13a   :  { %1083 = vmatpush1.bf16.msra.mxu0 %v8615_v1  ;;  %1185 = vmatpush1.bf16.msra.mxu1 %v8616_v2  ;;  %v8697_v1 = vld [vmem:[#allocation10 + $0x3a4] ss:$16 sps:$4 sm:$0xff]   ;;  %v8700_v2 = vld [vmem:[#allocation10 + $0x3ac] ss:$16 sps:$4 sm:$0xff]  }
 0x13b   :  { %1103 = vmatprep.subr.bf16.mxu0 %v8619_v3  ;;  %1205 = vmatprep.subr.bf16.mxu1 %v8622_v6  ;;  %v8695_v3 = vld [vmem:[#allocation10 + $0x3a0] ss:$16 sps:$4 sm:$0xff]   ;;  %v8706_v6 = vld [vmem:[#allocation10 + $0x3cc] ss:$16 sps:$4 sm:$0xff]  }
 0x13d   :  { %1085 = vmatmul.mubr.bf16.vlgmr.msra.gmra.mrb[0].mxu0 %v254_v9  ;;  %1187 = vmatmul.mubr.bf16.vlgmr.msra.gmra.mrb[0].mxu1 %v254_v9  ;;  %v8709_v9 = vld [vmem:[#allocation10 + $0x3e4] ss:$16 sps:$4 sm:$0xff]  }
 0x13e   :  { %1104 = vmatpush1.bf16.msra.mxu0 %v8617_v7  ;;  %1206 = vmatpush1.bf16.msra.mxu1 %v8620_v8  ;;  %v8701_v7 = vld [vmem:[#allocation10 + $0x3c0] ss:$16 sps:$4 sm:$0xff]   ;;  %v8704_v8 = vld [vmem:[#allocation10 + $0x3c8] ss:$16 sps:$4 sm:$0xff]  }
 0x13f   :  { %1105 = vmatprep.subr.bf16.mxu0 %v8625_v10  ;;  %1207 = vmatprep.subr.bf16.mxu1 %v8628_v11  ;;  %v8712_v10 = vld [vmem:[#allocation10 + $0x3ec] ss:$16 sps:$4 sm:$0xff]   ;;  %v8707_v11 = vld [vmem:[#allocation10 + $0x3e0] ss:$16 sps:$4 sm:$0xff]  }
 0x140   :  { %1094 = vmatprep.mubr.bf16.mxu0 %v259_v30  ;;  %1196 = vmatprep.mubr.bf16.mxu1 %v259_v30  ;;  %v8725_v30 = vld [vmem:[#allocation13 + $0x40] ss:$16 sps:$4 sm:$0xff]  }
 0x142   :  { %1106 = vmatpush1.bf16.msra.mxu0 %v8623_v12  ;;  %1208 = vmatpush1.bf16.msra.mxu1 %v8626_v13  ;;  %v8710_v12 = vld [vmem:[#allocation10 + $0x3e8] ss:$16 sps:$4 sm:$0xff]  }
 0x143   :  { %1107 = vmatprep.subr.bf16.mxu0 %v8631_v14  ;;  %1209 = vmatprep.subr.bf16.mxu1 %v8634_v15  ;;  %v232_v13 = vld [vmem:[#allocation2 + $0x10] sm:$0xff] }
 0x144   :  { %v236_v14 = vld [vmem:[#allocation2 + $0x30] sm:$0xff] }
 0x145   :  { %1095 = vmatmul.mubr.bf16.gmra.mrb[4].mxu0 %v258_v31  ;;  %1197 = vmatmul.mubr.bf16.gmra.mrb[4].mxu1 %v258_v31  ;;  %v8715_v15 = vld [vmem:[#allocation13 + $0x4] ss:$16 sps:$4 sm:$0xff]   ;;  %v8728_v31 = vld [vmem:[#allocation13 + $0x48] ss:$16 sps:$4 sm:$0xff]  }
 0x146   :  { %1108 = vmatpush1.bf16.msra.mxu0 %v8629_v16  ;;  %1210 = vmatpush1.bf16.msra.mxu1 %v8632_v17  ;;  %v8718_v16 = vld [vmem:[#allocation13 + $0xc] ss:$16 sps:$4 sm:$0xff]   ;;  %v8713_v17 = vld [vmem:[#allocation13] ss:$16 sps:$4 sm:$0xff]  }
 0x147   :  { %1109 = vmatprep.subr.bf16.mxu0 %v8637_v18  ;;  %1211 = vmatprep.subr.bf16.mxu1 %v8640_v19  ;;  %v256_v18 = vpack.c.bf16 %v236_v14, %v232_v13  ;;  %v8716_v19 = vld [vmem:[#allocation13 + $0x8] ss:$16 sps:$4 sm:$0xff]   ;;  %v8799_v13 = vld [vmem:[#allocation13 + $0x1c4] ss:$16 sps:$4 sm:$0xff]   ;;  %v8802_v14 = vld [vmem:[#allocation13 + $0x1cc] ss:$16 sps:$4 sm:$0xff]  }
 0x148   :  { %1135 = vmatprep.mubr.bf16.mxu0 %v257_v40  ;;  %1237 = vmatprep.mubr.bf16.mxu1 %v257_v40  ;;  %v8740_v40 = vld [vmem:[#allocation13 + $0x88] ss:$16 sps:$4 sm:$0xff]  }
 0x14a   :  { %1110 = vmatpush1.bf16.msra.mxu0 %v8635_v20  ;;  %1212 = vmatpush1.bf16.msra.mxu1 %v8638_v21  ;;  %v241_v20 = vld [vmem:[#allocation2 + $0x58] sm:$0xff]  ;;  %v8721_v21 = vld [vmem:[#allocation13 + $0x24] ss:$16 sps:$4 sm:$0xff]  }
 0x14b   :  { %1111 = vmatprep.subr.bf16.mxu0 %v8643_v22  ;;  %1213 = vmatprep.subr.bf16.mxu1 %v8646_v23  ;;  %v8724_v22 = vld [vmem:[#allocation13 + $0x2c] ss:$16 sps:$4 sm:$0xff]   ;;  %v8719_v23 = vld [vmem:[#allocation13 + $0x20] ss:$16 sps:$4 sm:$0xff]  }
 0x14e   :  { %1112 = vmatpush1.bf16.msra.mxu0 %v8641_v24  ;;  %1214 = vmatpush1.bf16.msra.mxu1 %v8644_v25  ;;  %v261_v24 = vpack.c.bf16 %v241_v20, %v241_v20  ;;  %v8722_v25 = vld [vmem:[#allocation13 + $0x28] ss:$16 sps:$4 sm:$0xff]  }
 0x14f   :  { %1113 = vmatprep.subr.bf16.mxu0 %v8649_v26  ;;  %1215 = vmatprep.subr.bf16.mxu1 %v8652_v27  ;;  %v240_v26 = vld [vmem:[#allocation2 + $0x50] sm:$0xff]  ;;  %v8806_v20 = vld [vmem:[#allocation13 + $0x1e8] ss:$16 sps:$4 sm:$0xff]  }
 0x150   :  { %v8727_v27 = vld [vmem:[#allocation13 + $0x44] ss:$16 sps:$4 sm:$0xff]   ;;  %v260_v29 = vpack.c.bf16 %v240_v26, %v240_v26 }
 0x151   :  { %v8820_v26 = vld [vmem:[#allocation13 + $0x224] ss:$16 sps:$4 sm:$0xff]  }
 0x152   :  { %1114 = vmatpush1.bf16.msra.mxu0 %v8647_v32  ;;  %1216 = vmatpush1.bf16.msra.mxu1 %v8650_v33  ;;  %v8733_v32 = vld [vmem:[#allocation13 + $0x64] ss:$16 sps:$4 sm:$0xff]   ;;  %v8736_v33 = vld [vmem:[#allocation13 + $0x6c] ss:$16 sps:$4 sm:$0xff]  }
 0x153   :  { %1115 = vmatprep.subr.bf16.mxu0 %v8655_v34  ;;  %1217 = vmatprep.subr.bf16.mxu1 %v8658_v35  ;;  %v8811_v34 = vld [vmem:[#allocation5 + $0x4] ss:$16 sps:$4 sm:$0xff]   ;;  %v8731_v35 = vld [vmem:[#allocation13 + $0x60] ss:$16 sps:$4 sm:$0xff]  }
 0x156   :  { %1116 = vmatpush1.bf16.msra.mxu0 %v8653_v38  ;;  %1218 = vmatpush1.bf16.msra.mxu1 %v8656_v39  ;;  %v8742_v38 = vld [vmem:[#allocation13 + $0x8c] ss:$16 sps:$4 sm:$0xff]   ;;  %v8737_v39 = vld [vmem:[#allocation13 + $0x80] ss:$16 sps:$4 sm:$0xff]  }
 0x157   :  { %1117 = vmatprep.subr.bf16.mxu0 %v8661_v41  ;;  %1219 = vmatprep.subr.bf16.mxu1 %v8664_v42  ;;  %v8745_v41 = vld [vmem:[#allocation13 + $0xa4] ss:$16 sps:$4 sm:$0xff]   ;;  %v8748_v42 = vld [vmem:[#allocation13 + $0xac] ss:$16 sps:$4 sm:$0xff]  }
 0x15a   :  { %1118 = vmatpush1.bf16.msra.mxu0 %v8659_v43  ;;  %1220 = vmatpush1.bf16.msra.mxu1 %v8662_v44  ;;  %v8743_v43 = vld [vmem:[#allocation13 + $0xa0] ss:$16 sps:$4 sm:$0xff]   ;;  %v8746_v44 = vld [vmem:[#allocation13 + $0xa8] ss:$16 sps:$4 sm:$0xff]  }
 0x15b   :  { %1119 = vmatprep.subr.bf16.mxu0 %v8667_v45  ;;  %1221 = vmatprep.subr.bf16.mxu1 %v8670_v46  ;;  %v8751_v45 = vld [vmem:[#allocation13 + $0xc4] ss:$16 sps:$4 sm:$0xff]   ;;  %v8754_v46 = vld [vmem:[#allocation13 + $0xcc] ss:$16 sps:$4 sm:$0xff]  }
 0x15e   :  { %1120 = vmatpush1.bf16.msra.mxu0 %v8665_v47  ;;  %1222 = vmatpush1.bf16.msra.mxu1 %v8668_v48  ;;  %v8749_v47 = vld [vmem:[#allocation13 + $0xc0] ss:$16 sps:$4 sm:$0xff]   ;;  %v8752_v48 = vld [vmem:[#allocation13 + $0xc8] ss:$16 sps:$4 sm:$0xff]  }
 0x15f   :  { %1121 = vmatprep.subr.bf16.mxu0 %v8673_v49  ;;  %1223 = vmatprep.subr.bf16.mxu1 %v8676_v50  ;;  %v8757_v49 = vld [vmem:[#allocation13 + $0xe4] ss:$16 sps:$4 sm:$0xff]   ;;  %v8760_v50 = vld [vmem:[#allocation13 + $0xec] ss:$16 sps:$4 sm:$0xff]  }
 0x162   :  { %1122 = vmatpush1.bf16.msra.mxu0 %v8671_v51  ;;  %1224 = vmatpush1.bf16.msra.mxu1 %v8674_v52  ;;  %v8755_v51 = vld [vmem:[#allocation13 + $0xe0] ss:$16 sps:$4 sm:$0xff]   ;;  %v8758_v52 = vld [vmem:[#allocation13 + $0xe8] ss:$16 sps:$4 sm:$0xff]  }
 0x163   :  { %1123 = vmatprep.subr.bf16.mxu0 %v8679_v53  ;;  %1225 = vmatprep.subr.bf16.mxu1 %v8682_v54  ;;  %v8763_v53 = vld [vmem:[#allocation13 + $0x104] ss:$16 sps:$4 sm:$0xff]   ;;  %v8766_v54 = vld [vmem:[#allocation13 + $0x10c] ss:$16 sps:$4 sm:$0xff]  }
 0x166   :  { %1124 = vmatpush1.bf16.msra.mxu0 %v8677_v55  ;;  %1226 = vmatpush1.bf16.msra.mxu1 %v8680_v56  ;;  %v8761_v55 = vld [vmem:[#allocation13 + $0x100] ss:$16 sps:$4 sm:$0xff]   ;;  %v8764_v56 = vld [vmem:[#allocation13 + $0x108] ss:$16 sps:$4 sm:$0xff]  }
 0x167   :  { %1125 = vmatprep.subr.bf16.mxu0 %v8685_v57  ;;  %1227 = vmatprep.subr.bf16.mxu1 %v8688_v58  ;;  %v8769_v57 = vld [vmem:[#allocation13 + $0x124] ss:$16 sps:$4 sm:$0xff]   ;;  %v8772_v58 = vld [vmem:[#allocation13 + $0x12c] ss:$16 sps:$4 sm:$0xff]  }
 0x16a   :  { %1126 = vmatpush1.bf16.msra.mxu0 %v8683_v59  ;;  %1228 = vmatpush1.bf16.msra.mxu1 %v8686_v60  ;;  %v8767_v59 = vld [vmem:[#allocation13 + $0x120] ss:$16 sps:$4 sm:$0xff]   ;;  %v8770_v60 = vld [vmem:[#allocation13 + $0x128] ss:$16 sps:$4 sm:$0xff]  }
 0x16b   :  { %1127 = vmatprep.subr.bf16.mxu0 %v8691_v61  ;;  %1229 = vmatprep.subr.bf16.mxu1 %v8694_v62  ;;  %v8775_v61 = vld [vmem:[#allocation13 + $0x144] ss:$16 sps:$4 sm:$0xff]   ;;  %v8778_v62 = vld [vmem:[#allocation13 + $0x14c] ss:$16 sps:$4 sm:$0xff]  }
 0x16e   :  { %1128 = vmatpush1.bf16.msra.mxu0 %v8689_v63  ;;  %1230 = vmatpush1.bf16.msra.mxu1 %v8692_v0  ;;  %v8773_v63 = vld [vmem:[#allocation13 + $0x140] ss:$16 sps:$4 sm:$0xff]   ;;  %v8776_v0 = vld [vmem:[#allocation13 + $0x148] ss:$16 sps:$4 sm:$0xff]  }
 0x16f   :  { %1129 = vmatprep.subr.bf16.mxu0 %v8697_v1  ;;  %1231 = vmatprep.subr.bf16.mxu1 %v8700_v2  ;;  %v8781_v1 = vld [vmem:[#allocation13 + $0x164] ss:$16 sps:$4 sm:$0xff]   ;;  %v8784_v2 = vld [vmem:[#allocation13 + $0x16c] ss:$16 sps:$4 sm:$0xff]  }
 0x172   :  { %1130 = vmatpush1.bf16.msra.mxu0 %v8695_v3  ;;  %1232 = vmatpush1.bf16.msra.mxu1 %v8698_v4  ;;  %v8779_v3 = vld [vmem:[#allocation13 + $0x160] ss:$16 sps:$4 sm:$0xff]   ;;  %v8782_v4 = vld [vmem:[#allocation13 + $0x168] ss:$16 sps:$4 sm:$0xff]  }
 0x173   :  { %1131 = vmatprep.subr.bf16.mxu0 %v8703_v5  ;;  %1233 = vmatprep.subr.bf16.mxu1 %v8706_v6  ;;  %v8787_v5 = vld [vmem:[#allocation13 + $0x184] ss:$16 sps:$4 sm:$0xff]   ;;  %v8790_v6 = vld [vmem:[#allocation13 + $0x18c] ss:$16 sps:$4 sm:$0xff]  }
 0x176   :  { %1132 = vmatpush1.bf16.msra.mxu0 %v8701_v7  ;;  %1234 = vmatpush1.bf16.msra.mxu1 %v8704_v8  ;;  %v8785_v7 = vld [vmem:[#allocation13 + $0x180] ss:$16 sps:$4 sm:$0xff]   ;;  %v8788_v8 = vld [vmem:[#allocation13 + $0x188] ss:$16 sps:$4 sm:$0xff]  }
 0x177   :  { %1133 = vmatprep.subr.bf16.mxu0 %v8709_v9  ;;  %1235 = vmatprep.subr.bf16.mxu1 %v8712_v10  ;;  %v8793_v9 = vld [vmem:[#allocation13 + $0x1a4] ss:$16 sps:$4 sm:$0xff]   ;;  %v8796_v10 = vld [vmem:[#allocation13 + $0x1ac] ss:$16 sps:$4 sm:$0xff]  }
 0x17a   :  { %1134 = vmatpush1.bf16.msra.mxu0 %v8707_v11  ;;  %1236 = vmatpush1.bf16.msra.mxu1 %v8710_v12  ;;  %v8791_v11 = vld [vmem:[#allocation13 + $0x1a0] ss:$16 sps:$4 sm:$0xff]   ;;  %v8794_v12 = vld [vmem:[#allocation13 + $0x1a8] ss:$16 sps:$4 sm:$0xff]  }
 0x17b   :  { %2080 = vmatprep.subr.bf16.mxu0 %v8715_v15  ;;  %2182 = vmatprep.subr.bf16.mxu1 %v8718_v16  ;;  %v8797_v15 = vld [vmem:[#allocation13 + $0x1c0] ss:$16 sps:$4 sm:$0xff]   ;;  %v8800_v16 = vld [vmem:[#allocation13 + $0x1c8] ss:$16 sps:$4 sm:$0xff]  }
 0x17d   :  { %1136 = vmatmul.mubr.bf16.vlgmr.msra.gmra.mrb[0].mxu0 %v256_v18  ;;  %1238 = vmatmul.mubr.bf16.vlgmr.msra.gmra.mrb[0].mxu1 %v256_v18  ;;  %v8808_v18 = vld [vmem:[#allocation13 + $0x1ec] ss:$16 sps:$4 sm:$0xff]  }
 0x17e   :  { %2081 = vmatpush1.bf16.msra.mxu0 %v8713_v17  ;;  %2183 = vmatpush1.bf16.msra.mxu1 %v8716_v19  ;;  %v8805_v17 = vld [vmem:[#allocation13 + $0x1e4] ss:$16 sps:$4 sm:$0xff]   ;;  %v8803_v19 = vld [vmem:[#allocation13 + $0x1e0] ss:$16 sps:$4 sm:$0xff]  }
 0x17f   :  { %2082 = vmatprep.subr.bf16.mxu0 %v8721_v21  ;;  %2184 = vmatprep.subr.bf16.mxu1 %v8724_v22  ;;  %v8809_v21 = vld [vmem:[#allocation5] ss:$16 sps:$4 sm:$0xff]   ;;  %v8814_v22 = vld [vmem:[#allocation13 + $0x204] ss:$16 sps:$4 sm:$0xff]  }
 0x180   :  { %1145 = vmatprep.mubr.bf16.mxu0 %v261_v24  ;;  %1247 = vmatprep.mubr.bf16.mxu1 %v261_v24  ;;  %v8812_v24 = vld [vmem:[#allocation13 + $0x200] ss:$16 sps:$4 sm:$0xff]  }
 0x182   :  { %2083 = vmatpush1.bf16.msra.mxu0 %v8719_v23  ;;  %2185 = vmatpush1.bf16.msra.mxu1 %v8722_v25  ;;  %v8817_v23 = vld [vmem:[#allocation13 + $0x20c] ss:$16 sps:$4 sm:$0xff]   ;;  %v8815_v25 = vld [vmem:[#allocation13 + $0x208] ss:$16 sps:$4 sm:$0xff]  }
 0x183   :  { %2084 = vmatprep.subr.bf16.mxu0 %v8727_v27  ;;  %2186 = vmatprep.subr.bf16.mxu1 %v8730_v28  ;;  %v8823_v27 = vld [vmem:[#allocation13 + $0x22c] ss:$16 sps:$4 sm:$0xff]   ;;  %v246_v28 = vld [vmem:[#allocation5 + $0x20] sm:$0xff] }
 0x185   :  { %1146 = vmatmul.mubr.bf16.gmra.mrb[4].mxu0 %v260_v29  ;;  %1248 = vmatmul.mubr.bf16.gmra.mrb[4].mxu1 %v260_v29  ;;  %v8818_v29 = vld [vmem:[#allocation13 + $0x220] ss:$16 sps:$4 sm:$0xff]  }
 0x186   :  { %2085 = vmatpush1.bf16.msra.mxu0 %v8725_v30  ;;  %2187 = vmatpush1.bf16.msra.mxu1 %v8728_v31  ;;  %v8821_v30 = vld [vmem:[#allocation13 + $0x228] ss:$16 sps:$4 sm:$0xff]   ;;  %v7464_v31 = vcombine.high %v246_v28, %v246_v28 }
 0x187   :  { %2086 = vmatprep.subr.bf16.mxu0 %v8733_v32  ;;  %2188 = vmatprep.subr.bf16.mxu1 %v8736_v33  ;;  %v8826_v32 = vld [vmem:[#allocation13 + $0x244] ss:$16 sps:$4 sm:$0xff]   ;;  %v8829_v33 = vld [vmem:[#allocation13 + $0x24c] ss:$16 sps:$4 sm:$0xff]  }
 0x188   :  { %2112 = vmatprep.mubr.bf16.mxu0 %v8811_v34  ;;  %2214 = vmatprep.mubr.bf16.mxu1 %v8811_v34  ;;  %v8824_v34 = vld [vmem:[#allocation13 + $0x240] ss:$16 sps:$4 sm:$0xff]  }
 0x18a   :  { %2087 = vmatpush1.bf16.msra.mxu0 %v8731_v35  ;;  %2189 = vmatpush1.bf16.msra.mxu1 %v8734_v36  ;;  %v8827_v35 = vld [vmem:[#allocation13 + $0x248] ss:$16 sps:$4 sm:$0xff]   ;;  %v8832_v36 = vld [vmem:[#allocation13 + $0x264] ss:$16 sps:$4 sm:$0xff]  }
 0x18b   :  { %2088 = vmatprep.subr.bf16.mxu0 %v8739_v37  ;;  %2190 = vmatprep.subr.bf16.mxu1 %v8742_v38  ;;  %v8835_v37 = vld [vmem:[#allocation13 + $0x26c] ss:$16 sps:$4 sm:$0xff]   ;;  %v7463_v38 = vcombine.low %v246_v28, %v246_v28  ;;  %v8926_v28 = vld [vmem:[#allocation16 + $0xc] ss:$16 sps:$4 sm:$0xff]  }
 0x18e   :  { %2089 = vmatpush1.bf16.msra.mxu0 %v8737_v39  ;;  %2191 = vmatpush1.bf16.msra.mxu1 %v8740_v40  ;;  %v8912_v39 = vld [vmem:[#allocation5 + $0xc] ss:$16 sps:$4 sm:$0xff]   ;;  %v8830_v40 = vld [vmem:[#allocation13 + $0x260] ss:$16 sps:$4 sm:$0xff]  }
 0x18f   :  { %2090 = vmatprep.subr.bf16.mxu0 %v8745_v41  ;;  %2192 = vmatprep.subr.bf16.mxu1 %v8748_v42  ;;  %v8833_v41 = vld [vmem:[#allocation13 + $0x268] ss:$16 sps:$4 sm:$0xff]   ;;  %v8838_v42 = vld [vmem:[#allocation13 + $0x284] ss:$16 sps:$4 sm:$0xff]  }
 0x192   :  { %2091 = vmatpush1.bf16.msra.mxu0 %v8743_v43  ;;  %2193 = vmatpush1.bf16.msra.mxu1 %v8746_v44  ;;  %v8841_v43 = vld [vmem:[#allocation13 + $0x28c] ss:$16 sps:$4 sm:$0xff]   ;;  %v8836_v44 = vld [vmem:[#allocation13 + $0x280] ss:$16 sps:$4 sm:$0xff]  }
 0x193   :  { %2092 = vmatprep.subr.bf16.mxu0 %v8751_v45  ;;  %2194 = vmatprep.subr.bf16.mxu1 %v8754_v46  ;;  %v8839_v45 = vld [vmem:[#allocation13 + $0x288] ss:$16 sps:$4 sm:$0xff]   ;;  %v8844_v46 = vld [vmem:[#allocation13 + $0x2a4] ss:$16 sps:$4 sm:$0xff]  }
 0x196   :  { %2093 = vmatpush1.bf16.msra.mxu0 %v8749_v47  ;;  %2195 = vmatpush1.bf16.msra.mxu1 %v8752_v48  ;;  %v8847_v47 = vld [vmem:[#allocation13 + $0x2ac] ss:$16 sps:$4 sm:$0xff]   ;;  %v8842_v48 = vld [vmem:[#allocation13 + $0x2a0] ss:$16 sps:$4 sm:$0xff]  }
 0x197   :  { %2094 = vmatprep.subr.bf16.mxu0 %v8757_v49  ;;  %2196 = vmatprep.subr.bf16.mxu1 %v8760_v50  ;;  %v8845_v49 = vld [vmem:[#allocation13 + $0x2a8] ss:$16 sps:$4 sm:$0xff]   ;;  %v8850_v50 = vld [vmem:[#allocation13 + $0x2c4] ss:$16 sps:$4 sm:$0xff]  }
 0x19a   :  { %2095 = vmatpush1.bf16.msra.mxu0 %v8755_v51  ;;  %2197 = vmatpush1.bf16.msra.mxu1 %v8758_v52  ;;  %v8853_v51 = vld [vmem:[#allocation13 + $0x2cc] ss:$16 sps:$4 sm:$0xff]   ;;  %v8848_v52 = vld [vmem:[#allocation13 + $0x2c0] ss:$16 sps:$4 sm:$0xff]  }
 0x19b   :  { %2096 = vmatprep.subr.bf16.mxu0 %v8763_v53  ;;  %2198 = vmatprep.subr.bf16.mxu1 %v8766_v54  ;;  %v8851_v53 = vld [vmem:[#allocation13 + $0x2c8] ss:$16 sps:$4 sm:$0xff]   ;;  %v8856_v54 = vld [vmem:[#allocation13 + $0x2e4] ss:$16 sps:$4 sm:$0xff]  }
 0x19e   :  { %2097 = vmatpush1.bf16.msra.mxu0 %v8761_v55  ;;  %2199 = vmatpush1.bf16.msra.mxu1 %v8764_v56  ;;  %v8859_v55 = vld [vmem:[#allocation13 + $0x2ec] ss:$16 sps:$4 sm:$0xff]   ;;  %v8854_v56 = vld [vmem:[#allocation13 + $0x2e0] ss:$16 sps:$4 sm:$0xff]  }
 0x19f   :  { %2098 = vmatprep.subr.bf16.mxu0 %v8769_v57  ;;  %2200 = vmatprep.subr.bf16.mxu1 %v8772_v58  ;;  %v8857_v57 = vld [vmem:[#allocation13 + $0x2e8] ss:$16 sps:$4 sm:$0xff]   ;;  %v8862_v58 = vld [vmem:[#allocation13 + $0x304] ss:$16 sps:$4 sm:$0xff]  }
 0x1a2   :  { %2099 = vmatpush1.bf16.msra.mxu0 %v8767_v59  ;;  %2201 = vmatpush1.bf16.msra.mxu1 %v8770_v60  ;;  %v8865_v59 = vld [vmem:[#allocation13 + $0x30c] ss:$16 sps:$4 sm:$0xff]   ;;  %v8860_v60 = vld [vmem:[#allocation13 + $0x300] ss:$16 sps:$4 sm:$0xff]  }
 0x1a3   :  { %2100 = vmatprep.subr.bf16.mxu0 %v8775_v61  ;;  %2202 = vmatprep.subr.bf16.mxu1 %v8778_v62  ;;  %v8863_v61 = vld [vmem:[#allocation13 + $0x308] ss:$16 sps:$4 sm:$0xff]   ;;  %v8868_v62 = vld [vmem:[#allocation13 + $0x324] ss:$16 sps:$4 sm:$0xff]  }
 0x1a6   :  { %2101 = vmatpush1.bf16.msra.mxu0 %v8773_v63  ;;  %2203 = vmatpush1.bf16.msra.mxu1 %v8776_v0  ;;  %v8871_v63 = vld [vmem:[#allocation13 + $0x32c] ss:$16 sps:$4 sm:$0xff]   ;;  %v8866_v0 = vld [vmem:[#allocation13 + $0x320] ss:$16 sps:$4 sm:$0xff]  }
 0x1a7   :  { %2102 = vmatprep.subr.bf16.mxu0 %v8781_v1  ;;  %2204 = vmatprep.subr.bf16.mxu1 %v8784_v2  ;;  %v8869_v1 = vld [vmem:[#allocation13 + $0x328] ss:$16 sps:$4 sm:$0xff]   ;;  %v8874_v2 = vld [vmem:[#allocation13 + $0x344] ss:$16 sps:$4 sm:$0xff]  }
 0x1aa   :  { %2103 = vmatpush1.bf16.msra.mxu0 %v8779_v3  ;;  %2205 = vmatpush1.bf16.msra.mxu1 %v8782_v4  ;;  %v8877_v3 = vld [vmem:[#allocation13 + $0x34c] ss:$16 sps:$4 sm:$0xff]   ;;  %v8872_v4 = vld [vmem:[#allocation13 + $0x340] ss:$16 sps:$4 sm:$0xff]  }
 0x1ab   :  { %2104 = vmatprep.subr.bf16.mxu0 %v8787_v5  ;;  %2206 = vmatprep.subr.bf16.mxu1 %v8790_v6  ;;  %v8875_v5 = vld [vmem:[#allocation13 + $0x348] ss:$16 sps:$4 sm:$0xff]   ;;  %v8880_v6 = vld [vmem:[#allocation13 + $0x364] ss:$16 sps:$4 sm:$0xff]  }
 0x1ae   :  { %2105 = vmatpush1.bf16.msra.mxu0 %v8785_v7  ;;  %2207 = vmatpush1.bf16.msra.mxu1 %v8788_v8  ;;  %v8883_v7 = vld [vmem:[#allocation13 + $0x36c] ss:$16 sps:$4 sm:$0xff]   ;;  %v8878_v8 = vld [vmem:[#allocation13 + $0x360] ss:$16 sps:$4 sm:$0xff]  }
 0x1af   :  { %2106 = vmatprep.subr.bf16.mxu0 %v8793_v9  ;;  %2208 = vmatprep.subr.bf16.mxu1 %v8796_v10  ;;  %v8881_v9 = vld [vmem:[#allocation13 + $0x368] ss:$16 sps:$4 sm:$0xff]   ;;  %v8886_v10 = vld [vmem:[#allocation13 + $0x384] ss:$16 sps:$4 sm:$0xff]  }
 0x1b2   :  { %2107 = vmatpush1.bf16.msra.mxu0 %v8791_v11  ;;  %2209 = vmatpush1.bf16.msra.mxu1 %v8794_v12  ;;  %v8889_v11 = vld [vmem:[#allocation13 + $0x38c] ss:$16 sps:$4 sm:$0xff]   ;;  %v8884_v12 = vld [vmem:[#allocation13 + $0x380] ss:$16 sps:$4 sm:$0xff]  }
 0x1b3   :  { %2108 = vmatprep.subr.bf16.mxu0 %v8799_v13  ;;  %2210 = vmatprep.subr.bf16.mxu1 %v8802_v14  ;;  %v8887_v13 = vld [vmem:[#allocation13 + $0x388] ss:$16 sps:$4 sm:$0xff]   ;;  %v8892_v14 = vld [vmem:[#allocation13 + $0x3a4] ss:$16 sps:$4 sm:$0xff]  }
 0x1b6   :  { %2109 = vmatpush1.bf16.msra.mxu0 %v8797_v15  ;;  %2211 = vmatpush1.bf16.msra.mxu1 %v8800_v16  ;;  %v8895_v15 = vld [vmem:[#allocation13 + $0x3ac] ss:$16 sps:$4 sm:$0xff]   ;;  %v8890_v16 = vld [vmem:[#allocation13 + $0x3a0] ss:$16 sps:$4 sm:$0xff]  }
 0x1b7   :  { %2110 = vmatprep.subr.bf16.mxu0 %v8805_v17  ;;  %2212 = vmatprep.subr.bf16.mxu1 %v8808_v18  ;;  %v8893_v17 = vld [vmem:[#allocation13 + $0x3a8] ss:$16 sps:$4 sm:$0xff]   ;;  %v8900_v18 = vld [vmem:[#allocation13 + $0x3c4] ss:$16 sps:$4 sm:$0xff]  }
 0x1ba   :  { %2111 = vmatpush1.bf16.msra.mxu0 %v8803_v19  ;;  %2213 = vmatpush1.bf16.msra.mxu1 %v8806_v20  ;;  %v8903_v19 = vld [vmem:[#allocation13 + $0x3cc] ss:$16 sps:$4 sm:$0xff]   ;;  %v8898_v20 = vld [vmem:[#allocation13 + $0x3c0] ss:$16 sps:$4 sm:$0xff]  }
 0x1bb   :  { %2131 = vmatprep.subr.bf16.mxu0 %v8814_v22  ;;  %2233 = vmatprep.subr.bf16.mxu1 %v8817_v23  ;;  %v8906_v22 = vld [vmem:[#allocation13 + $0x3e4] ss:$16 sps:$4 sm:$0xff]   ;;  %v8909_v23 = vld [vmem:[#allocation13 + $0x3ec] ss:$16 sps:$4 sm:$0xff]  }
 0x1bd   :  { %2113 = vmatmul.mubr.bf16.vlgmr.msra.gmra.mrb[8].mxu0 %v8809_v21  ;;  %2215 = vmatmul.mubr.bf16.vlgmr.msra.gmra.mrb[8].mxu1 %v8809_v21  ;;  %v8901_v21 = vld [vmem:[#allocation13 + $0x3c8] ss:$16 sps:$4 sm:$0xff]  }
 0x1be   :  { %2132 = vmatpush1.bf16.msra.mxu0 %v8812_v24  ;;  %2234 = vmatpush1.bf16.msra.mxu1 %v8815_v25  ;;  %v8904_v24 = vld [vmem:[#allocation13 + $0x3e0] ss:$16 sps:$4 sm:$0xff]   ;;  %v8907_v25 = vld [vmem:[#allocation13 + $0x3e8] ss:$16 sps:$4 sm:$0xff]  }
 0x1bf   :  { %2133 = vmatprep.subr.bf16.mxu0 %v8820_v26  ;;  %2235 = vmatprep.subr.bf16.mxu1 %v8823_v27  ;;  %v247_v26 = vld [vmem:[#allocation5 + $0x28] sm:$0xff] }
 0x1c0   :  { %2122 = vmatprep.mubr.bf16.mxu0 %v7464_v31  ;;  %2224 = vmatprep.mubr.bf16.mxu1 %v7464_v31  ;;  %v8917_v27 = vld [vmem:[#allocation16 + $0x4] ss:$16 sps:$4 sm:$0xff]   ;;  %v8915_v31 = vld [vmem:[#allocation16] ss:$16 sps:$4 sm:$0xff]  }
 0x1c2   :  { %2134 = vmatpush1.bf16.msra.mxu0 %v8818_v29  ;;  %2236 = vmatpush1.bf16.msra.mxu1 %v8821_v30  ;;  %v8910_v29 = vld [vmem:[#allocation5 + $0x8] ss:$16 sps:$4 sm:$0xff]   ;;  %v7466_v30 = vcombine.high %v247_v26, %v247_v26 }
 0x1c3   :  { %2135 = vmatprep.subr.bf16.mxu0 %v8826_v32  ;;  %2237 = vmatprep.subr.bf16.mxu1 %v8829_v33  ;;  %v8920_v32 = vld [vmem:[#allocation16 + $0x24] ss:$16 sps:$4 sm:$0xff]   ;;  %v8924_v33 = vld [vmem:[#allocation16 + $0x8] ss:$16 sps:$4 sm:$0xff]  }
 0x1c5   :  { %2123 = vmatmul.mubr.bf16.gmra.mrb[12].mxu0 %v7463_v38  ;;  %2225 = vmatmul.mubr.bf16.gmra.mrb[12].mxu1 %v7463_v38  ;;  %v8938_v38 = vld [vmem:[#allocation16 + $0x4c] ss:$16 sps:$4 sm:$0xff]  }
 0x1c6   :  { %2136 = vmatpush1.bf16.msra.mxu0 %v8824_v34  ;;  %2238 = vmatpush1.bf16.msra.mxu1 %v8827_v35  ;;  %v8932_v34 = vld [vmem:[#allocation16 + $0x2c] ss:$16 sps:$4 sm:$0xff]   ;;  %v8918_v35 = vld [vmem:[#allocation16 + $0x20] ss:$16 sps:$4 sm:$0xff]  }
 0x1c7   :  { %2137 = vmatprep.subr.bf16.mxu0 %v8832_v36  ;;  %2239 = vmatprep.subr.bf16.mxu1 %v8835_v37  ;;  %v8923_v36 = vld [vmem:[#allocation16 + $0x44] ss:$16 sps:$4 sm:$0xff]   ;;  %v8930_v37 = vld [vmem:[#allocation16 + $0x28] ss:$16 sps:$4 sm:$0xff]  }
 0x1c8   :  { %2163 = vmatprep.mubr.bf16.mxu0 %v8912_v39  ;;  %2265 = vmatprep.mubr.bf16.mxu1 %v8912_v39  ;;  %v7465_v39 = vcombine.low %v247_v26, %v247_v26  ;;  %v9011_v26 = vld [vmem:[#allocation16 + $0x1c8] ss:$16 sps:$4 sm:$0xff]  }
 0x1ca   :  { %2138 = vmatpush1.bf16.msra.mxu0 %v8830_v40  ;;  %2240 = vmatpush1.bf16.msra.mxu1 %v8833_v41  ;;  %v8921_v40 = vld [vmem:[#allocation16 + $0x40] ss:$16 sps:$4 sm:$0xff]  }
 0x1cb   :  { %2139 = vmatprep.subr.bf16.mxu0 %v8838_v42  ;;  %2241 = vmatprep.subr.bf16.mxu1 %v8841_v43  ;;  %v9007_v41 = vld [vmem:[#allocation7 + $0x4] ss:$16 sps:$4 sm:$0xff]   ;;  %v8929_v42 = vld [vmem:[#allocation16 + $0x64] ss:$16 sps:$4 sm:$0xff]   ;;  %v8936_v43 = vld [vmem:[#allocation16 + $0x48] ss:$16 sps:$4 sm:$0xff]  }
 0x1ce   :  { %2140 = vmatpush1.bf16.msra.mxu0 %v8836_v44  ;;  %2242 = vmatpush1.bf16.msra.mxu1 %v8839_v45  ;;  %v8944_v44 = vld [vmem:[#allocation16 + $0x6c] ss:$16 sps:$4 sm:$0xff]   ;;  %v8927_v45 = vld [vmem:[#allocation16 + $0x60] ss:$16 sps:$4 sm:$0xff]  }
 0x1cf   :  { %2141 = vmatprep.subr.bf16.mxu0 %v8844_v46  ;;  %2243 = vmatprep.subr.bf16.mxu1 %v8847_v47  ;;  %v8942_v46 = vld [vmem:[#allocation16 + $0x68] ss:$16 sps:$4 sm:$0xff]   ;;  %v8935_v47 = vld [vmem:[#allocation16 + $0x84] ss:$16 sps:$4 sm:$0xff]  }
 0x1d2   :  { %2142 = vmatpush1.bf16.msra.mxu0 %v8842_v48  ;;  %2244 = vmatpush1.bf16.msra.mxu1 %v8845_v49  ;;  %v8950_v48 = vld [vmem:[#allocation16 + $0x8c] ss:$16 sps:$4 sm:$0xff]   ;;  %v8933_v49 = vld [vmem:[#allocation16 + $0x80] ss:$16 sps:$4 sm:$0xff]  }
 0x1d3   :  { %2143 = vmatprep.subr.bf16.mxu0 %v8850_v50  ;;  %2245 = vmatprep.subr.bf16.mxu1 %v8853_v51  ;;  %v8948_v50 = vld [vmem:[#allocation16 + $0x88] ss:$16 sps:$4 sm:$0xff]   ;;  %v8941_v51 = vld [vmem:[#allocation16 + $0xa4] ss:$16 sps:$4 sm:$0xff]  }
 0x1d6   :  { %2144 = vmatpush1.bf16.msra.mxu0 %v8848_v52  ;;  %2246 = vmatpush1.bf16.msra.mxu1 %v8851_v53  ;;  %v8956_v52 = vld [vmem:[#allocation16 + $0xac] ss:$16 sps:$4 sm:$0xff]   ;;  %v8939_v53 = vld [vmem:[#allocation16 + $0xa0] ss:$16 sps:$4 sm:$0xff]  }
 0x1d7   :  { %2145 = vmatprep.subr.bf16.mxu0 %v8856_v54  ;;  %2247 = vmatprep.subr.bf16.mxu1 %v8859_v55  ;;  %v8954_v54 = vld [vmem:[#allocation16 + $0xa8] ss:$16 sps:$4 sm:$0xff]   ;;  %v8947_v55 = vld [vmem:[#allocation16 + $0xc4] ss:$16 sps:$4 sm:$0xff]  }
 0x1da   :  { %2146 = vmatpush1.bf16.msra.mxu0 %v8854_v56  ;;  %2248 = vmatpush1.bf16.msra.mxu1 %v8857_v57  ;;  %v8962_v56 = vld [vmem:[#allocation16 + $0xcc] ss:$16 sps:$4 sm:$0xff]   ;;  %v8945_v57 = vld [vmem:[#allocation16 + $0xc0] ss:$16 sps:$4 sm:$0xff]  }
 0x1db   :  { %2147 = vmatprep.subr.bf16.mxu0 %v8862_v58  ;;  %2249 = vmatprep.subr.bf16.mxu1 %v8865_v59  ;;  %v8960_v58 = vld [vmem:[#allocation16 + $0xc8] ss:$16 sps:$4 sm:$0xff]   ;;  %v8953_v59 = vld [vmem:[#allocation16 + $0xe4] ss:$16 sps:$4 sm:$0xff]  }
 0x1de   :  { %2148 = vmatpush1.bf16.msra.mxu0 %v8860_v60  ;;  %2250 = vmatpush1.bf16.msra.mxu1 %v8863_v61  ;;  %v8968_v60 = vld [vmem:[#allocation16 + $0xec] ss:$16 sps:$4 sm:$0xff]   ;;  %v8951_v61 = vld [vmem:[#allocation16 + $0xe0] ss:$16 sps:$4 sm:$0xff]  }
 0x1df   :  { %2149 = vmatprep.subr.bf16.mxu0 %v8868_v62  ;;  %2251 = vmatprep.subr.bf16.mxu1 %v8871_v63  ;;  %v8966_v62 = vld [vmem:[#allocation16 + $0xe8] ss:$16 sps:$4 sm:$0xff]   ;;  %v8959_v63 = vld [vmem:[#allocation16 + $0x104] ss:$16 sps:$4 sm:$0xff]  }
 0x1e2   :  { %2150 = vmatpush1.bf16.msra.mxu0 %v8866_v0  ;;  %2252 = vmatpush1.bf16.msra.mxu1 %v8869_v1  ;;  %v8974_v0 = vld [vmem:[#allocation16 + $0x10c] ss:$16 sps:$4 sm:$0xff]   ;;  %v8957_v1 = vld [vmem:[#allocation16 + $0x100] ss:$16 sps:$4 sm:$0xff]  }
 0x1e3   :  { %2151 = vmatprep.subr.bf16.mxu0 %v8874_v2  ;;  %2253 = vmatprep.subr.bf16.mxu1 %v8877_v3  ;;  %v8972_v2 = vld [vmem:[#allocation16 + $0x108] ss:$16 sps:$4 sm:$0xff]   ;;  %v8965_v3 = vld [vmem:[#allocation16 + $0x124] ss:$16 sps:$4 sm:$0xff]  }
 0x1e6   :  { %2152 = vmatpush1.bf16.msra.mxu0 %v8872_v4  ;;  %2254 = vmatpush1.bf16.msra.mxu1 %v8875_v5  ;;  %v8980_v4 = vld [vmem:[#allocation16 + $0x12c] ss:$16 sps:$4 sm:$0xff]   ;;  %v8963_v5 = vld [vmem:[#allocation16 + $0x120] ss:$16 sps:$4 sm:$0xff]  }
 0x1e7   :  { %2153 = vmatprep.subr.bf16.mxu0 %v8880_v6  ;;  %2255 = vmatprep.subr.bf16.mxu1 %v8883_v7  ;;  %v8978_v6 = vld [vmem:[#allocation16 + $0x128] ss:$16 sps:$4 sm:$0xff]   ;;  %v8971_v7 = vld [vmem:[#allocation16 + $0x144] ss:$16 sps:$4 sm:$0xff]  }
 0x1ea   :  { %2154 = vmatpush1.bf16.msra.mxu0 %v8878_v8  ;;  %2256 = vmatpush1.bf16.msra.mxu1 %v8881_v9  ;;  %v8986_v8 = vld [vmem:[#allocation16 + $0x14c] ss:$16 sps:$4 sm:$0xff]   ;;  %v8969_v9 = vld [vmem:[#allocation16 + $0x140] ss:$16 sps:$4 sm:$0xff]  }
 0x1eb   :  { %2155 = vmatprep.subr.bf16.mxu0 %v8886_v10  ;;  %2257 = vmatprep.subr.bf16.mxu1 %v8889_v11  ;;  %v8984_v10 = vld [vmem:[#allocation16 + $0x148] ss:$16 sps:$4 sm:$0xff]   ;;  %v8977_v11 = vld [vmem:[#allocation16 + $0x164] ss:$16 sps:$4 sm:$0xff]  }
 0x1ee   :  { %2156 = vmatpush1.bf16.msra.mxu0 %v8884_v12  ;;  %2258 = vmatpush1.bf16.msra.mxu1 %v8887_v13  ;;  %v8992_v12 = vld [vmem:[#allocation16 + $0x16c] ss:$16 sps:$4 sm:$0xff]   ;;  %v8975_v13 = vld [vmem:[#allocation16 + $0x160] ss:$16 sps:$4 sm:$0xff]  }
 0x1ef   :  { %2157 = vmatprep.subr.bf16.mxu0 %v8892_v14  ;;  %2259 = vmatprep.subr.bf16.mxu1 %v8895_v15  ;;  %v8990_v14 = vld [vmem:[#allocation16 + $0x168] ss:$16 sps:$4 sm:$0xff]   ;;  %v8983_v15 = vld [vmem:[#allocation16 + $0x184] ss:$16 sps:$4 sm:$0xff]  }
 0x1f2   :  { %2158 = vmatpush1.bf16.msra.mxu0 %v8890_v16  ;;  %2260 = vmatpush1.bf16.msra.mxu1 %v8893_v17  ;;  %v8998_v16 = vld [vmem:[#allocation16 + $0x18c] ss:$16 sps:$4 sm:$0xff]   ;;  %v8981_v17 = vld [vmem:[#allocation16 + $0x180] ss:$16 sps:$4 sm:$0xff]  }
 0x1f3   :  { %2159 = vmatprep.subr.bf16.mxu0 %v8900_v18  ;;  %2261 = vmatprep.subr.bf16.mxu1 %v8903_v19  ;;  %v8996_v18 = vld [vmem:[#allocation16 + $0x188] ss:$16 sps:$4 sm:$0xff]   ;;  %v8989_v19 = vld [vmem:[#allocation16 + $0x1a4] ss:$16 sps:$4 sm:$0xff]  }
 0x1f6   :  { %2160 = vmatpush1.bf16.msra.mxu0 %v8898_v20  ;;  %2262 = vmatpush1.bf16.msra.mxu1 %v8901_v21  ;;  %v9004_v20 = vld [vmem:[#allocation16 + $0x1ac] ss:$16 sps:$4 sm:$0xff]   ;;  %v8987_v21 = vld [vmem:[#allocation16 + $0x1a0] ss:$16 sps:$4 sm:$0xff]  }
 0x1f7   :  { %2161 = vmatprep.subr.bf16.mxu0 %v8906_v22  ;;  %2263 = vmatprep.subr.bf16.mxu1 %v8909_v23  ;;  %v9002_v22 = vld [vmem:[#allocation16 + $0x1a8] ss:$16 sps:$4 sm:$0xff]   ;;  %v8995_v23 = vld [vmem:[#allocation16 + $0x1c4] ss:$16 sps:$4 sm:$0xff]  }
 0x1fa   :  { %2162 = vmatpush1.bf16.msra.mxu0 %v8904_v24  ;;  %2264 = vmatpush1.bf16.msra.mxu1 %v8907_v25  ;;  %v9013_v24 = vld [vmem:[#allocation16 + $0x1cc] ss:$16 sps:$4 sm:$0xff]   ;;  %v8993_v25 = vld [vmem:[#allocation16 + $0x1c0] ss:$16 sps:$4 sm:$0xff]  }
 0x1fb   :  { %3108 = vmatprep.subr.bf16.mxu0 %v8917_v27  ;;  %3210 = vmatprep.subr.bf16.mxu1 %v8926_v28  ;;  %v9001_v27 = vld [vmem:[#allocation16 + $0x1e4] ss:$16 sps:$4 sm:$0xff]   ;;  %v9019_v28 = vld [vmem:[#allocation16 + $0x1ec] ss:$16 sps:$4 sm:$0xff]  }
 0x1fd   :  { %2164 = vmatmul.mubr.bf16.vlgmr.msra.gmra.mrb[8].mxu0 %v8910_v29  ;;  %2266 = vmatmul.mubr.bf16.vlgmr.msra.gmra.mrb[8].mxu1 %v8910_v29  ;;  %v8999_v29 = vld [vmem:[#allocation16 + $0x1e0] ss:$16 sps:$4 sm:$0xff]  }
 0x1fe   :  { %2173 = vmatprep.mubr.bf16.mxu0 %v7466_v30  ;;  %2275 = vmatprep.mubr.bf16.mxu1 %v7466_v30  ;;  %v9017_v30 = vld [vmem:[#allocation16 + $0x1e8] ss:$16 sps:$4 sm:$0xff]  }
 0x1ff   :  { %3109 = vmatpush1.bf16.msra.mxu0 %v8915_v31  ;;  %3211 = vmatpush1.bf16.msra.mxu1 %v8924_v33  ;;  %v9010_v31 = vld [vmem:[#allocation16 + $0x204] ss:$16 sps:$4 sm:$0xff]   ;;  %v9005_v33 = vld [vmem:[#allocation7] ss:$16 sps:$4 sm:$0xff]  }
 0x200   :  { %3110 = vmatprep.subr.bf16.mxu0 %v8920_v32  ;;  %3212 = vmatprep.subr.bf16.mxu1 %v8932_v34  ;;  %v9025_v32 = vld [vmem:[#allocation16 + $0x20c] ss:$16 sps:$4 sm:$0xff]  }
 0x201   :  { %v252_v34 = vld [vmem:[#allocation7 + $0x20] sm:$0xff] }
 0x203   :  { %3111 = vmatpush1.bf16.msra.mxu0 %v8918_v35  ;;  %3213 = vmatpush1.bf16.msra.mxu1 %v8930_v37  ;;  %v9008_v35 = vld [vmem:[#allocation16 + $0x200] ss:$16 sps:$4 sm:$0xff]   ;;  %v9016_v37 = vld [vmem:[#allocation16 + $0x224] ss:$16 sps:$4 sm:$0xff]  }
 0x204   :  { %3112 = vmatprep.subr.bf16.mxu0 %v8923_v36  ;;  %3214 = vmatprep.subr.bf16.mxu1 %v8938_v38  ;;  %v9023_v36 = vld [vmem:[#allocation16 + $0x208] ss:$16 sps:$4 sm:$0xff]   ;;  %v9031_v38 = vld [vmem:[#allocation16 + $0x22c] ss:$16 sps:$4 sm:$0xff]  }
 0x205   :  { %2174 = vmatmul.mubr.bf16.gmra.mrb[12].mxu0 %v7465_v39  ;;  %2276 = vmatmul.mubr.bf16.gmra.mrb[12].mxu1 %v7465_v39  ;;  %v7600_v39 = vcombine.high %v252_v34, %v252_v34 }
 0x206   :  { %3140 = vmatprep.mubr.bf16.mxu0 %v9007_v41  ;;  %3242 = vmatprep.mubr.bf16.mxu1 %v9007_v41  ;;  %v9029_v41 = vld [vmem:[#allocation16 + $0x228] ss:$16 sps:$4 sm:$0xff]  }
 0x207   :  { %3113 = vmatpush1.bf16.msra.mxu0 %v8921_v40  ;;  %3215 = vmatpush1.bf16.msra.mxu1 %v8936_v43  ;;  %v9014_v40 = vld [vmem:[#allocation16 + $0x220] ss:$16 sps:$4 sm:$0xff]   ;;  %v9037_v43 = vld [vmem:[#allocation16 + $0x24c] ss:$16 sps:$4 sm:$0xff]  }
 0x208   :  { %3114 = vmatprep.subr.bf16.mxu0 %v8929_v42  ;;  %3216 = vmatprep.subr.bf16.mxu1 %v8944_v44  ;;  %v9022_v42 = vld [vmem:[#allocation16 + $0x244] ss:$16 sps:$4 sm:$0xff]   ;;  %v7599_v44 = vcombine.low %v252_v34, %v252_v34  ;;  %v9074_v34 = vld [vmem:[#allocation16 + $0x360] ss:$16 sps:$4 sm:$0xff]  }
 0x20b   :  { %3115 = vmatpush1.bf16.msra.mxu0 %v8927_v45  ;;  %3217 = vmatpush1.bf16.msra.mxu1 %v8942_v46  ;;  %v9020_v45 = vld [vmem:[#allocation16 + $0x240] ss:$16 sps:$4 sm:$0xff]   ;;  %v9035_v46 = vld [vmem:[#allocation16 + $0x248] ss:$16 sps:$4 sm:$0xff]  }
 0x20c   :  { %3116 = vmatprep.subr.bf16.mxu0 %v8935_v47  ;;  %3218 = vmatprep.subr.bf16.mxu1 %v8950_v48  ;;  %v9028_v47 = vld [vmem:[#allocation16 + $0x264] ss:$16 sps:$4 sm:$0xff]   ;;  %v9043_v48 = vld [vmem:[#allocation16 + $0x26c] ss:$16 sps:$4 sm:$0xff]  }
 0x20f   :  { %3117 = vmatpush1.bf16.msra.mxu0 %v8933_v49  ;;  %3219 = vmatpush1.bf16.msra.mxu1 %v8948_v50  ;;  %v9108_v49 = vld [vmem:[#allocation7 + $0xc] ss:$16 sps:$4 sm:$0xff]   ;;  %v9026_v50 = vld [vmem:[#allocation16 + $0x260] ss:$16 sps:$4 sm:$0xff]  }
 0x210   :  { %3118 = vmatprep.subr.bf16.mxu0 %v8941_v51  ;;  %3220 = vmatprep.subr.bf16.mxu1 %v8956_v52  ;;  %v9041_v51 = vld [vmem:[#allocation16 + $0x268] ss:$16 sps:$4 sm:$0xff]   ;;  %v9034_v52 = vld [vmem:[#allocation16 + $0x284] ss:$16 sps:$4 sm:$0xff]  }
 0x213   :  { %3119 = vmatpush1.bf16.msra.mxu0 %v8939_v53  ;;  %3221 = vmatpush1.bf16.msra.mxu1 %v8954_v54  ;;  %v9049_v53 = vld [vmem:[#allocation16 + $0x28c] ss:$16 sps:$4 sm:$0xff]   ;;  %v9032_v54 = vld [vmem:[#allocation16 + $0x280] ss:$16 sps:$4 sm:$0xff]  }
 0x214   :  { %3120 = vmatprep.subr.bf16.mxu0 %v8947_v55  ;;  %3222 = vmatprep.subr.bf16.mxu1 %v8962_v56  ;;  %v9047_v55 = vld [vmem:[#allocation16 + $0x288] ss:$16 sps:$4 sm:$0xff]   ;;  %v9040_v56 = vld [vmem:[#allocation16 + $0x2a4] ss:$16 sps:$4 sm:$0xff]  }
 0x217   :  { %3121 = vmatpush1.bf16.msra.mxu0 %v8945_v57  ;;  %3223 = vmatpush1.bf16.msra.mxu1 %v8960_v58  ;;  %v9055_v57 = vld [vmem:[#allocation16 + $0x2ac] ss:$16 sps:$4 sm:$0xff]   ;;  %v9038_v58 = vld [vmem:[#allocation16 + $0x2a0] ss:$16 sps:$4 sm:$0xff]  }
 0x218   :  { %3122 = vmatprep.subr.bf16.mxu0 %v8953_v59  ;;  %3224 = vmatprep.subr.bf16.mxu1 %v8968_v60 }
 0x21b   :  { %3123 = vmatpush1.bf16.msra.mxu0 %v8951_v61  ;;  %3225 = vmatpush1.bf16.msra.mxu1 %v8966_v62  ;;  %v9046_v61 = vld [vmem:[#allocation16 + $0x2c4] ss:$16 sps:$4 sm:$0xff]  }
 0x21c   :  { %3124 = vmatprep.subr.bf16.mxu0 %v8959_v63  ;;  %3226 = vmatprep.subr.bf16.mxu1 %v8974_v0  ;;  %v9053_v0 = vld [vmem:[#allocation16 + $0x2a8] ss:$16 sps:$4 sm:$0xff]  }
 0x21f   :  { %3125 = vmatpush1.bf16.msra.mxu0 %v8957_v1  ;;  %3227 = vmatpush1.bf16.msra.mxu1 %v8972_v2 }
 0x220   :  { %3126 = vmatprep.subr.bf16.mxu0 %v8965_v3  ;;  %3228 = vmatprep.subr.bf16.mxu1 %v8980_v4  ;;  %v9061_v3 = vld [vmem:[#allocation16 + $0x2cc] ss:$16 sps:$4 sm:$0xff]  }
 0x223   :  { %3127 = vmatpush1.bf16.msra.mxu0 %v8963_v5  ;;  %3229 = vmatpush1.bf16.msra.mxu1 %v8978_v6  ;;  %v9044_v6 = vld [vmem:[#allocation16 + $0x2c0] ss:$16 sps:$4 sm:$0xff]  }
 0x224   :  { %3128 = vmatprep.subr.bf16.mxu0 %v8971_v7  ;;  %3230 = vmatprep.subr.bf16.mxu1 %v8986_v8  ;;  %v9052_v7 = vld [vmem:[#allocation16 + $0x2e4] ss:$16 sps:$4 sm:$0xff]   ;;  %v9059_v8 = vld [vmem:[#allocation16 + $0x2c8] ss:$16 sps:$4 sm:$0xff]  }
 0x227   :  { %3129 = vmatpush1.bf16.msra.mxu0 %v8969_v9  ;;  %3231 = vmatpush1.bf16.msra.mxu1 %v8984_v10  ;;  %v9067_v9 = vld [vmem:[#allocation16 + $0x2ec] ss:$16 sps:$4 sm:$0xff]   ;;  %v9050_v10 = vld [vmem:[#allocation16 + $0x2e0] ss:$16 sps:$4 sm:$0xff]  }
 0x228   :  { %3130 = vmatprep.subr.bf16.mxu0 %v8977_v11  ;;  %3232 = vmatprep.subr.bf16.mxu1 %v8992_v12 }
 0x22b   :  { %3131 = vmatpush1.bf16.msra.mxu0 %v8975_v13  ;;  %3233 = vmatpush1.bf16.msra.mxu1 %v8990_v14  ;;  %v9058_v13 = vld [vmem:[#allocation16 + $0x304] ss:$16 sps:$4 sm:$0xff]  }
 0x22c   :  { %3132 = vmatprep.subr.bf16.mxu0 %v8983_v15  ;;  %3234 = vmatprep.subr.bf16.mxu1 %v8998_v16  ;;  %v9065_v16 = vld [vmem:[#allocation16 + $0x2e8] ss:$16 sps:$4 sm:$0xff]  }
 0x22f   :  { %3133 = vmatpush1.bf16.msra.mxu0 %v8981_v17  ;;  %3235 = vmatpush1.bf16.msra.mxu1 %v8996_v18 }
 0x230   :  { %3134 = vmatprep.subr.bf16.mxu0 %v8989_v19  ;;  %3236 = vmatprep.subr.bf16.mxu1 %v9004_v20  ;;  %v9073_v19 = vld [vmem:[#allocation16 + $0x30c] ss:$16 sps:$4 sm:$0xff]  }
 0x233   :  { %3135 = vmatpush1.bf16.msra.mxu0 %v8987_v21  ;;  %3237 = vmatpush1.bf16.msra.mxu1 %v9002_v22  ;;  %v9056_v22 = vld [vmem:[#allocation16 + $0x300] ss:$16 sps:$4 sm:$0xff]  }
 0x234   :  { %3136 = vmatprep.subr.bf16.mxu0 %v8995_v23  ;;  %3238 = vmatprep.subr.bf16.mxu1 %v9013_v24  ;;  %v9064_v23 = vld [vmem:[#allocation16 + $0x324] ss:$16 sps:$4 sm:$0xff]   ;;  %v9071_v24 = vld [vmem:[#allocation16 + $0x308] ss:$16 sps:$4 sm:$0xff]  }
 0x237   :  { %3137 = vmatpush1.bf16.msra.mxu0 %v8993_v25  ;;  %3239 = vmatpush1.bf16.msra.mxu1 %v9011_v26  ;;  %v9079_v25 = vld [vmem:[#allocation16 + $0x32c] ss:$16 sps:$4 sm:$0xff]   ;;  %v9062_v26 = vld [vmem:[#allocation16 + $0x320] ss:$16 sps:$4 sm:$0xff]  }
 0x238   :  { %3138 = vmatprep.subr.bf16.mxu0 %v9001_v27  ;;  %3240 = vmatprep.subr.bf16.mxu1 %v9019_v28  ;;  %v9070_v27 = vld [vmem:[#allocation16 + $0x344] ss:$16 sps:$4 sm:$0xff]   ;;  %v9077_v28 = vld [vmem:[#allocation16 + $0x328] ss:$16 sps:$4 sm:$0xff]  }
 0x23b   :  { %3139 = vmatpush1.bf16.msra.mxu0 %v8999_v29  ;;  %3241 = vmatpush1.bf16.msra.mxu1 %v9017_v30  ;;  %v9085_v29 = vld [vmem:[#allocation16 + $0x34c] ss:$16 sps:$4 sm:$0xff]   ;;  %v9068_v30 = vld [vmem:[#allocation16 + $0x340] ss:$16 sps:$4 sm:$0xff]  }
 0x23c   :  { %3159 = vmatprep.subr.bf16.mxu0 %v9010_v31  ;;  %3261 = vmatprep.subr.bf16.mxu1 %v9025_v32  ;;  %v9076_v31 = vld [vmem:[#allocation16 + $0x364] ss:$16 sps:$4 sm:$0xff]   ;;  %v9083_v32 = vld [vmem:[#allocation16 + $0x348] ss:$16 sps:$4 sm:$0xff]  }
 0x23e   :  { %3141 = vmatmul.mubr.bf16.vlgmr.msra.gmra.mrb[16].mxu0 %v9005_v33  ;;  %3243 = vmatmul.mubr.bf16.vlgmr.msra.gmra.mrb[16].mxu1 %v9005_v33  ;;  %v9091_v33 = vld [vmem:[#allocation16 + $0x36c] ss:$16 sps:$4 sm:$0xff]  }
 0x23f   :  { %3160 = vmatpush1.bf16.msra.mxu0 %v9008_v35  ;;  %3262 = vmatpush1.bf16.msra.mxu1 %v9023_v36  ;;  %v9082_v35 = vld [vmem:[#allocation16 + $0x384] ss:$16 sps:$4 sm:$0xff]   ;;  %v9089_v36 = vld [vmem:[#allocation16 + $0x368] ss:$16 sps:$4 sm:$0xff]  }
 0x240   :  { %3161 = vmatprep.subr.bf16.mxu0 %v9016_v37  ;;  %3263 = vmatprep.subr.bf16.mxu1 %v9031_v38  ;;  %v9099_v37 = vld [vmem:[#allocation16 + $0x38c] ss:$16 sps:$4 sm:$0xff]   ;;  %v9080_v38 = vld [vmem:[#allocation16 + $0x380] ss:$16 sps:$4 sm:$0xff]  }
 0x241   :  { %3150 = vmatprep.mubr.bf16.mxu0 %v7600_v39  ;;  %3252 = vmatprep.mubr.bf16.mxu1 %v7600_v39  ;;  %v9088_v39 = vld [vmem:[#allocation16 + $0x3a4] ss:$16 sps:$4 sm:$0xff]  }
 0x243   :  { %3162 = vmatpush1.bf16.msra.mxu0 %v9014_v40  ;;  %3264 = vmatpush1.bf16.msra.mxu1 %v9029_v41  ;;  %v9097_v40 = vld [vmem:[#allocation16 + $0x388] ss:$16 sps:$4 sm:$0xff]   ;;  %v9105_v41 = vld [vmem:[#allocation16 + $0x3ac] ss:$16 sps:$4 sm:$0xff]  }
 0x244   :  { %3163 = vmatprep.subr.bf16.mxu0 %v9022_v42  ;;  %3265 = vmatprep.subr.bf16.mxu1 %v9037_v43  ;;  %v9086_v42 = vld [vmem:[#allocation16 + $0x3a0] ss:$16 sps:$4 sm:$0xff]   ;;  %v9096_v43 = vld [vmem:[#allocation16 + $0x3c4] ss:$16 sps:$4 sm:$0xff]  }
 0x246   :  { %3151 = vmatmul.mubr.bf16.gmra.mrb[20].mxu0 %v7599_v44  ;;  %3253 = vmatmul.mubr.bf16.gmra.mrb[20].mxu1 %v7599_v44  ;;  %v9103_v44 = vld [vmem:[#allocation16 + $0x3a8] ss:$16 sps:$4 sm:$0xff]  }
 0x247   :  { %3164 = vmatpush1.bf16.msra.mxu0 %v9020_v45  ;;  %3266 = vmatpush1.bf16.msra.mxu1 %v9035_v46  ;;  %v9111_v45 = vld [vmem:[#allocation16 + $0x3cc] ss:$16 sps:$4 sm:$0xff]   ;;  %v9094_v46 = vld [vmem:[#allocation16 + $0x3c0] ss:$16 sps:$4 sm:$0xff]  }
 0x248   :  { %3165 = vmatprep.subr.bf16.mxu0 %v9028_v47  ;;  %3267 = vmatprep.subr.bf16.mxu1 %v9043_v48  ;;  %v9102_v47 = vld [vmem:[#allocation16 + $0x3e4] ss:$16 sps:$4 sm:$0xff]   ;;  %v9109_v48 = vld [vmem:[#allocation16 + $0x3c8] ss:$16 sps:$4 sm:$0xff]  }
 0x249   :  { %3191 = vmatprep.mubr.bf16.mxu0 %v9108_v49  ;;  %3293 = vmatprep.mubr.bf16.mxu1 %v9108_v49  ;;  %v9114_v49 = vld [vmem:[#allocation16 + $0x3ec] ss:$16 sps:$4 sm:$0xff]  }
 0x24b   :  { %3166 = vmatpush1.bf16.msra.mxu0 %v9026_v50  ;;  %3268 = vmatpush1.bf16.msra.mxu1 %v9041_v51  ;;  %v9100_v50 = vld [vmem:[#allocation16 + $0x3e0] ss:$16 sps:$4 sm:$0xff]   ;;  %v253_v51 = vld [vmem:[#allocation7 + $0x28] sm:$0xff] }
 0x24c   :  { %3167 = vmatprep.subr.bf16.mxu0 %v9034_v52  ;;  %3269 = vmatprep.subr.bf16.mxu1 %v9049_v53  ;;  %v9112_v52 = vld [vmem:[#allocation16 + $0x3e8] ss:$16 sps:$4 sm:$0xff]   ;;  %v9106_v53 = vld [vmem:[#allocation7 + $0x8] ss:$16 sps:$4 sm:$0xff]  }
 0x24f   :  { %3168 = vmatpush1.bf16.msra.mxu0 %v9032_v54  ;;  %3270 = vmatpush1.bf16.msra.mxu1 %v9047_v55  ;;  %v7602_v54 = vcombine.high %v253_v51, %v253_v51  ;;  %v9815_v55 = vmov 0.0  }
 0x250   :  { %v10091_v59 = vpop.f32.mrb[0].mxu0  ;;  %v10093_v60 = vpop.f32.mrb[0].mxu1  ;;  %3169 = vmatprep.subr.bf16.mxu0 %v9040_v56  ;;  %3271 = vmatprep.subr.bf16.mxu1 %v9055_v57  ;;  %v7601_v56 = vcombine.low %v253_v51, %v253_v51  ;;  %v392_v57 = vlaneseq }
 0x251   :  { %v10095_v62 = vpop.f32.mrb[1].mxu0  ;;  %v10097_v63 = vpop.f32.mrb[1].mxu1 }
 0x252   :  { %v10099_v1 = vpop.f32.mrb[2].mxu0  ;;  %v10101_v2 = vpop.f32.mrb[2].mxu1 }
 0x253   :  { %v10103_v4 = vpop.f32.mrb[3].mxu0  ;;  %v10105_v5 = vpop.f32.mrb[3].mxu1  ;;  %3170 = vmatpush1.bf16.msra.mxu0 %v9038_v58  ;;  %3272 = vmatpush1.bf16.msra.mxu1 %v9053_v0  ;;  %v393_v58 = vshrl.u32 %v392_v57, 7 }
 0x254   :  { %3171 = vmatprep.subr.bf16.mxu0 %v9046_v61  ;;  %3273 = vmatprep.subr.bf16.mxu1 %v9061_v3  ;;  %v1384_v61 = vld [vmem:[#allocation14] sm:$0xf]  ;;  %v390_v3 = vld [vmem:[#allocation11] sm:$0xf] }
 0x255   :  { %v10121_v0 = vsub.s32 0, %v393_v58 }
 0x257   :  { %3172 = vmatpush1.bf16.msra.mxu0 %v9044_v6  ;;  %3274 = vmatpush1.bf16.msra.mxu1 %v9059_v8  ;;  %v10123_v6 = vsub.s32 1, %v393_v58 }
 0x258   :  { %v10107_v11 = vpop.f32.mrb[4].mxu0  ;;  %v10109_v12 = vpop.f32.mrb[4].mxu1  ;;  %3173 = vmatprep.subr.bf16.mxu0 %v9052_v7  ;;  %3275 = vmatprep.subr.bf16.mxu1 %v9067_v9  ;;  %v10126_v7 = vrot.slane %v1384_v61, %v10121_v0  ;;  %v10132_v9 = vrot.slane %v390_v3, %v10121_v0 }
 0x259   :  { %v10111_v14 = vpop.f32.mrb[5].mxu0  ;;  %v10113_v15 = vpop.f32.mrb[5].mxu1  ;;  %v10129_v8 = vrot.slane %v1384_v61, %v10123_v6 }
 0x25a   :  { %v1151_v17 = vpop.f32.mrb[6].mxu0  ;;  %v1253_v18 = vpop.f32.mrb[6].mxu1 }
 0x25b   :  { %v1152_v20 = vpop.f32.mrb[7].mxu0  ;;  %v1254_v21 = vpop.f32.mrb[7].mxu1  ;;  %3174 = vmatpush1.bf16.msra.mxu0 %v9050_v10  ;;  %3276 = vmatpush1.bf16.msra.mxu1 %v9065_v16  ;;  %v10134_v10 = vsub.s32 2, %v393_v58 }
 0x25c   :  { %3175 = vmatprep.subr.bf16.mxu0 %v9058_v13  ;;  %3277 = vmatprep.subr.bf16.mxu1 %v9073_v19  ;;  %v10137_v13 = vrot.slane %v390_v3, %v10123_v6 }
 0x25e   :  { %v8370_v57 = vadd.f32 %v10103_v4, %v10137_v13 }
 0x25f   :  { %3176 = vmatpush1.bf16.msra.mxu0 %v9056_v22  ;;  %3278 = vmatpush1.bf16.msra.mxu1 %v9071_v24  ;;  %v8367_v24 = vadd.f32 %v10091_v59, %v10132_v9 }
 0x260   :  { %3177 = vmatprep.subr.bf16.mxu0 %v9064_v23  ;;  %3279 = vmatprep.subr.bf16.mxu1 %v9079_v25 }
 0x261   :  { %v7943_v59 = vpack.c.bf16 %v8367_v24, %v8367_v24 }
 0x263   :  { %3178 = vmatpush1.bf16.msra.mxu0 %v9062_v26  ;;  %3280 = vmatpush1.bf16.msra.mxu1 %v9077_v28  ;;  %v10144_v26 = vrot.slane %v1384_v61, %v10134_v10 }
 0x264   :  { %3179 = vmatprep.subr.bf16.mxu0 %v9070_v27  ;;  %3281 = vmatprep.subr.bf16.mxu1 %v9085_v29  ;;  %v10147_v29 = vrot.slane %v390_v3, %v10134_v10 }
 0x266   :  { %v8375_v4 = vadd.f32 %v10101_v2, %v10147_v29 }
 0x267   :  { %3180 = vmatpush1.bf16.msra.mxu0 %v9068_v30  ;;  %3282 = vmatpush1.bf16.msra.mxu1 %v9083_v32  ;;  %v8368_v30 = vadd.f32 %v10095_v62, %v10137_v13  ;;  %v8373_v62 = vadd.f32 %v10093_v60, %v10147_v29 }
 0x268   :  { %3181 = vmatprep.subr.bf16.mxu0 %v9076_v31  ;;  %3283 = vmatprep.subr.bf16.mxu1 %v9091_v33  ;;  %v10151_v31 = vsub.s32 3, %v393_v58 }
 0x26b   :  { %3182 = vmatpush1.bf16.msra.mxu0 %v9074_v34  ;;  %3284 = vmatpush1.bf16.msra.mxu1 %v9089_v36  ;;  %v7946_v36 = vpack.c.bf16 %v8368_v30, %v8368_v30 }
 0x26c   :  { %3183 = vmatprep.subr.bf16.mxu0 %v9082_v35  ;;  %3285 = vmatprep.subr.bf16.mxu1 %v9099_v37  ;;  %v10158_v35 = vrot.slane %v1384_v61, %v10151_v31  ;;  %v10164_v37 = vrot.slane %v390_v3, %v10151_v31  ;;  %v7947_v3 = vpack.c.bf16 %v8370_v57, %v8370_v57 }
 0x26f   :  { %3184 = vmatpush1.bf16.msra.mxu0 %v9080_v38  ;;  %3286 = vmatpush1.bf16.msra.mxu1 %v9097_v40 }
 0x270   :  { %3185 = vmatprep.subr.bf16.mxu0 %v9088_v39  ;;  %3287 = vmatprep.subr.bf16.mxu1 %v9105_v41 }
 0x273   :  { %3186 = vmatpush1.bf16.msra.mxu0 %v9086_v42  ;;  %3288 = vmatpush1.bf16.msra.mxu1 %v9103_v44 }
 0x274   :  { %3187 = vmatprep.subr.bf16.mxu0 %v9096_v43  ;;  %3289 = vmatprep.subr.bf16.mxu1 %v9111_v45 }
 0x277   :  { %3188 = vmatpush1.bf16.msra.mxu0 %v9094_v46  ;;  %3290 = vmatpush1.bf16.msra.mxu1 %v9109_v48  ;;  %v8374_v48 = vadd.f32 %v10097_v63, %v10164_v37  ;;  %v8369_v63 = vadd.f32 %v10099_v1, %v10132_v9 }
 0x278   :  { %3189 = vmatprep.subr.bf16.mxu0 %v9102_v47  ;;  %3291 = vmatprep.subr.bf16.mxu1 %v9114_v49  ;;  %v7949_v47 = vpack.c.bf16 %v8373_v62, %v8373_v62 }
 0x27b   :  { %3190 = vmatpush1.bf16.msra.mxu0 %v9100_v50  ;;  %3292 = vmatpush1.bf16.msra.mxu1 %v9112_v52  ;;  %v7952_v52 = vpack.c.bf16 %v8374_v48, %v8374_v48 }
 0x27c   :  { %8079 = vmatprep.subr.bf16.mxu0 %v9815_v55  ;;  %8085 = vmatprep.subr.bf16.mxu1 %v9815_v55 }
 0x27e   :  { %3192 = vmatmul.mubr.bf16.vlgmr.msra.gmra.mrb[16].mxu0 %v9106_v53  ;;  %3294 = vmatmul.mubr.bf16.vlgmr.msra.gmra.mrb[16].mxu1 %v9106_v53 }
 0x27f   :  { %3201 = vmatprep.mubr.bf16.mxu0 %v7602_v54  ;;  %3303 = vmatprep.mubr.bf16.mxu1 %v7602_v54 }
 0x286   :  { %3202 = vmatmul.mubr.bf16.gmra.mrb[20].mxu0 %v7601_v56  ;;  %3304 = vmatmul.mubr.bf16.gmra.mrb[20].mxu1 %v7601_v56  ;;  %v7944_v56 = vpack.c.bf16 %v8369_v63, %v8369_v63 }
 0x287   :  { %8081 = vmatprep.mubr.msk.bf16.mxu0 %vm9816_vm0, %v9815_v55  ;;  %8087 = vmatprep.mubr.msk.bf16.mxu1 %vm9816_vm0, %v9815_v55 }
 0x2d0   :  { %v2165_v16 = vpop.f32.mrb[8].mxu0  ;;  %v2267_v17 = vpop.f32.mrb[8].mxu1 }
 0x2d1   :  { %v8379_v18 = vadd.f32 %v2165_v16, %v10126_v7  ;;  %v2167_v19 = vpop.f32.mrb[9].mxu0  ;;  %v2269_v20 = vpop.f32.mrb[9].mxu1  ;;  %v8385_v34 = vadd.f32 %v2267_v17, %v10144_v26 }
 0x2d2   :  { %v8380_v21 = vadd.f32 %v2167_v19, %v10129_v8  ;;  %v2169_v22 = vpop.f32.mrb[10].mxu0  ;;  %v2271_v23 = vpop.f32.mrb[10].mxu1  ;;  %v8386_v45 = vadd.f32 %v2269_v20, %v10158_v35  ;;  %v8376_v19 = vadd.f32 %v10105_v5, %v10164_v37  ;;  %v8371_v5 = vadd.f32 %v10107_v11, %v10132_v9 }
 0x2d3   :  { %v7955_v25 = vpack.c.bf16 %v8379_v18, %v8379_v18  ;;  %v2171_v27 = vpop.f32.mrb[11].mxu0  ;;  %v2273_v28 = vpop.f32.mrb[11].mxu1  ;;  %v7961_v44 = vpack.c.bf16 %v8385_v34, %v8385_v34  ;;  %v8381_v51 = vadd.f32 %v2169_v22, %v10126_v7  ;;  %v8387_v1 = vadd.f32 %v2271_v23, %v10144_v26 }
 0x2d4   :  { %v7958_v32 = vpack.c.bf16 %v8380_v21, %v8380_v21  ;;  %v7964_v50 = vpack.c.bf16 %v8386_v45, %v8386_v45  ;;  %v8382_v54 = vadd.f32 %v2171_v27, %v10129_v8  ;;  %v8388_v17 = vadd.f32 %v2273_v28, %v10158_v35 }
 0x2d5   :  { %v3509_v33 = vsel %vm3504_vm1, %v7955_v25, 0  ;;  %3416 = vrot.lane.b32.xlu0 %v7955_v25, %s9799_s1  ;;  %v7956_v53 = vpack.c.bf16 %v8381_v51, %v8381_v51  ;;  %v3693_v58 = vsel %vm3504_vm1, %v7961_v44, 0  ;;  %v7962_v16 = vpack.c.bf16 %v8387_v1, %v8387_v1 }
 0x2d6   :  { %3422 = vrot.lane.b32.xlu1 %v7958_v32, %s9799_s1  ;;  %8080 = vmatpush3.bf16.xpose.msra.mxu0 %v3509_v33  ;;  %v3601_v49 = vsel %vm3504_vm1, %v7958_v32, 0  ;;  %v7959_v61 = vpack.c.bf16 %v8382_v54, %v8382_v54  ;;  %v7950_v18 = vpack.c.bf16 %v8375_v4, %v8375_v4  ;;  %v3785_v20 = vsel %vm3504_vm1, %v7964_v50, 0 }
 0x2d7   :  { %8091 = vmatprep.subr.bf16.mxu0 %v9815_v55  ;;  %v7965_v2 = vpack.c.bf16 %v8388_v17, %v8388_v17  ;;  %v7953_v22 = vpack.c.bf16 %v8376_v19, %v8376_v19  ;;  %v7945_v25 = vpack.c.bf16 %v8371_v5, %v8371_v5  ;;  %v3877_v27 = vsel %vm3504_vm1, %v7956_v53, 0 }
 0x2d8   :  { %v2175_v38 = vpop.f32.mrb[12].mxu0  ;;  %v10166_v39 = vpop.f32.mrb[12].mxu1  ;;  %v3969_v32 = vsel %vm3504_vm1, %v7959_v61, 0 }
 0x2d9   :  { %v2177_v40 = vpop.f32.mrb[13].mxu0  ;;  %3352 = vrot.lane.b32.xlu0 %v7943_v59, %s9799_s1  ;;  %v10169_v41 = vpop.f32.mrb[13].mxu1  ;;  %v8383_v21 = vadd.f32 %v2175_v38, %v10126_v7  ;;  %v8372_v7 = vadd.f32 %v10111_v14, %v10137_v13  ;;  %v8389_v9 = vadd.f32 %v10166_v39, %v10144_v26  ;;  %v8377_v14 = vadd.f32 %v10109_v12, %v10147_v29  ;;  %v2412_v38 = vld [vmem:[#allocation17] sm:$0xf] }
 0x2da   :  { %v2179_v42 = vpop.f32.mrb[14].mxu0  ;;  %3358 = vrot.lane.b32.xlu1 %v7946_v36, %s9799_s1  ;;  %v2281_v43 = vpop.f32.mrb[14].mxu1  ;;  %v8384_v24 = vadd.f32 %v2177_v40, %v10129_v8  ;;  %v8390_v28 = vadd.f32 %v10169_v41, %v10158_v35  ;;  %v8378_v26 = vadd.f32 %v10113_v15, %v10164_v37  ;;  %v4061_v15 = vsel %vm3504_vm1, %v7962_v16, 0 }
 0x2db   :  { %v2180_v60 = vpop.f32.mrb[15].mxu0  ;;  %v2282_v46 = vpop.f32.mrb[15].mxu1  ;;  %v7957_v23 = vpack.c.bf16 %v8383_v21, %v8383_v21  ;;  %v7948_v8 = vpack.c.bf16 %v8372_v7, %v8372_v7  ;;  %v7963_v13 = vpack.c.bf16 %v8389_v9, %v8389_v9  ;;  %v7951_v30 = vpack.c.bf16 %v8377_v14, %v8377_v14 }
 0x2dc   :  { %v7960_v11 = vpack.c.bf16 %v8384_v24, %v8384_v24  ;;  %v7966_v12 = vpack.c.bf16 %v8390_v28, %v8390_v28  ;;  %v7954_v29 = vpack.c.bf16 %v8378_v26, %v8378_v26  ;;  %v4153_v33 = vsel %vm3504_vm1, %v7965_v2, 0 }
 0x2dd   :  { %3428 = vrot.lane.b32.xlu0 %v7961_v44, %s9799_s1  ;;  %8082 = vmatmul.mubr.msk.bf16.vlgmr.msra.gmra.mrb[24].mxu0 %vm3504_vm1, %v7943_v59  ;;  %v4245_v59 = vsel %vm3504_vm1, %v7957_v23, 0  ;;  %v4429_v35 = vsel %vm3504_vm1, %v7963_v13, 0  ;;  %v2417_v41 = vrot.slane %v2412_v38, %v10121_v0  ;;  %v10285_v43 = vrot.slane %v2412_v38, %v10134_v10 }
 0x2de   :  { %3364 = vrot.lane.b32.xlu1 %v7949_v47, %s9799_s1  ;;  %8092 = vmatpush3.bf16.xpose.msra.mxu0 %v3601_v49  ;;  %v4337_v34 = vsel %vm3504_vm1, %v7960_v11, 0  ;;  %v4521_v62 = vsel %vm3504_vm1, %v7966_v12, 0  ;;  %v2421_v44 = vrot.slane %v2412_v38, %v10123_v6 }
 0x2df   :  { %8093 = vmatprep.mubr.msk.bf16.mxu0 %vm9816_vm0, %v9815_v55  ;;  %8103 = vmatprep.subr.bf16.mxu0 %v9815_v55 }
 0x2e1   :  { %3434 = vrot.lane.b32.xlu0 %v7964_v50, %s9799_s1 }
 0x2e2   :  { %3370 = vrot.lane.b32.xlu1 %v7952_v52, %s9799_s1 }
 0x2e5   :  { %3418 = vrot.lane.b32.xlu0 %v7956_v53, %s9799_s1  ;;  %8094 = vmatmul.mubr.msk.bf16.vlgmr.msra.gmra.mrb[28].mxu0 %vm3504_vm1, %v7946_v36 }
 0x2e6   :  { %3354 = vrot.lane.b32.xlu1 %v7944_v56, %s9799_s1  ;;  %8104 = vmatpush3.bf16.xpose.msra.mxu0 %v3693_v58 }
 0x2e7   :  { %8105 = vmatprep.mubr.msk.bf16.mxu0 %vm9816_vm0, %v9815_v55  ;;  %8115 = vmatprep.subr.bf16.mxu0 %v9815_v55 }
 0x2e9   :  { %3424 = vrot.lane.b32.xlu0 %v7959_v61, %s9799_s1 }
 0x2ea   :  { %3360 = vrot.lane.b32.xlu1 %v7947_v3, %s9799_s1 }
 0x2ed   :  { %3430 = vrot.lane.b32.xlu0 %v7962_v16, %s9799_s1  ;;  %8106 = vmatmul.mubr.msk.bf16.vlgmr.msra.gmra.mrb[32].mxu0 %vm3504_vm1, %v7949_v47  ;;  %v2429_v47 = vrot.slane %v2412_v38, %v10151_v31 }
 0x2ee   :  { %3366 = vrot.lane.b32.xlu1 %v7950_v18, %s9799_s1  ;;  %8116 = vmatpush3.bf16.xpose.msra.mxu0 %v3785_v20 }
 0x2ef   :  { %8117 = vmatprep.mubr.msk.bf16.mxu0 %vm9816_vm0, %v9815_v55  ;;  %8127 = vmatprep.subr.bf16.mxu0 %v9815_v55 }
 0x2f1   :  { %3436 = vrot.lane.b32.xlu0 %v7965_v2, %s9799_s1 }
 0x2f2   :  { %3372 = vrot.lane.b32.xlu1 %v7953_v22, %s9799_s1 }
 0x2f5   :  { %3420 = vrot.lane.b32.xlu0 %v7957_v23, %s9799_s1  ;;  %8118 = vmatmul.mubr.msk.bf16.vlgmr.msra.gmra.mrb[36].mxu0 %vm3504_vm1, %v7952_v52 }
 0x2f6   :  { %3356 = vrot.lane.b32.xlu1 %v7945_v25, %s9799_s1  ;;  %8128 = vmatpush3.bf16.xpose.msra.mxu0 %v3877_v27 }
 0x2f7   :  { %8129 = vmatprep.mubr.msk.bf16.mxu0 %vm9816_vm0, %v9815_v55  ;;  %8139 = vmatprep.subr.bf16.mxu0 %v9815_v55 }
 0x2f9   :  { %3426 = vrot.lane.b32.xlu0 %v7960_v11, %s9799_s1 }
 0x2fa   :  { %3362 = vrot.lane.b32.xlu1 %v7948_v8, %s9799_s1 }
 0x2fd   :  { %3432 = vrot.lane.b32.xlu0 %v7963_v13, %s9799_s1  ;;  %8130 = vmatmul.mubr.msk.bf16.vlgmr.msra.gmra.mrb[40].mxu0 %vm3504_vm1, %v7944_v56 }
 0x2fe   :  { %3368 = vrot.lane.b32.xlu1 %v7951_v30, %s9799_s1  ;;  %8140 = vmatpush3.bf16.xpose.msra.mxu0 %v3969_v32 }
 0x2ff   :  { %8141 = vmatprep.mubr.msk.bf16.mxu0 %vm9816_vm0, %v9815_v55  ;;  %8151 = vmatprep.subr.bf16.mxu0 %v9815_v55 }
 0x301   :  { %3438 = vrot.lane.b32.xlu0 %v7966_v12, %s9799_s1 }
 0x302   :  { %3374 = vrot.lane.b32.xlu1 %v7954_v29, %s9799_s1 }
 0x305   :  { %8142 = vmatmul.mubr.msk.bf16.vlgmr.msra.gmra.mrb[44].mxu0 %vm3504_vm1, %v7947_v3 }
 0x306   :  { %8152 = vmatpush3.bf16.xpose.msra.mxu0 %v4061_v15  ;;  %8153 = vmatprep.mubr.msk.bf16.mxu0 %vm9816_vm0, %v9815_v55 }
 0x307   :  { %8163 = vmatprep.subr.bf16.mxu0 %v9815_v55 }
 0x30d   :  { %8154 = vmatmul.mubr.msk.bf16.vlgmr.msra.gmra.mrb[48].mxu0 %vm3504_vm1, %v7950_v18 }
 0x30e   :  { %8164 = vmatpush3.bf16.xpose.msra.mxu0 %v4153_v33  ;;  %8165 = vmatprep.mubr.msk.bf16.mxu0 %vm9816_vm0, %v9815_v55 }
 0x30f   :  { %8175 = vmatprep.subr.bf16.mxu0 %v9815_v55 }
 0x315   :  { %8166 = vmatmul.mubr.msk.bf16.vlgmr.msra.gmra.mrb[52].mxu0 %vm3504_vm1, %v7953_v22 }
 0x316   :  { %8176 = vmatpush3.bf16.xpose.msra.mxu0 %v4245_v59  ;;  %8177 = vmatprep.mubr.msk.bf16.mxu0 %vm9816_vm0, %v9815_v55 }
 0x317   :  { %8187 = vmatprep.subr.bf16.mxu0 %v9815_v55 }
 0x31d   :  { %8178 = vmatmul.mubr.msk.bf16.vlgmr.msra.gmra.mrb[56].mxu0 %vm3504_vm1, %v7945_v25 }
 0x31e   :  { %8188 = vmatpush3.bf16.xpose.msra.mxu0 %v4337_v34  ;;  %8189 = vmatprep.mubr.msk.bf16.mxu0 %vm9816_vm0, %v9815_v55 }
 0x31f   :  { %8199 = vmatprep.subr.bf16.mxu0 %v9815_v55 }
 0x325   :  { %8190 = vmatmul.mubr.msk.bf16.vlgmr.msra.gmra.mrb[60].mxu0 %vm3504_vm1, %v7948_v8 }
 0x326   :  { %8200 = vmatpush3.bf16.xpose.msra.mxu0 %v4429_v35  ;;  %8201 = vmatprep.mubr.msk.bf16.mxu0 %vm9816_vm0, %v9815_v55 }
 0x327   :  { %8211 = vmatprep.subr.bf16.mxu0 %v9815_v55 }
 0x32d   :  { %8202 = vmatmul.mubr.msk.bf16.vlgmr.msra.gmra.mrb[64].mxu0 %vm3504_vm1, %v7951_v30 }
 0x32e   :  { %8212 = vmatpush3.bf16.xpose.msra.mxu0 %v4521_v62  ;;  %8213 = vmatprep.mubr.msk.bf16.mxu0 %vm9816_vm0, %v9815_v55 }
 0x32f   :  { %8223 = vmatprep.subr.bf16.mxu0 %v9815_v55 }
 0x335   :  { %8214 = vmatmul.mubr.msk.bf16.vlgmr.msra.gmra.mrb[68].mxu0 %vm3504_vm1, %v7954_v29 }
 0x336   :  { %8225 = vmatprep.mubr.msk.bf16.mxu0 %vm9816_vm0, %v9815_v55 }
 0x347   :  { %v3417_v36 = vpop.permute.xlu0 %3416 }
 0x348   :  { %v3555_v37 = vsel %vm3504_vm1, %v3417_v36, 0  ;;  %v3423_v39 = vpop.permute.xlu1 %3422 }
 0x349   :  { %8086 = vmatpush3.bf16.xpose.msra.mxu1 %v3555_v37  ;;  %v3647_v42 = vsel %vm3504_vm1, %v3423_v39, 0 }
 0x34a   :  { %8097 = vmatprep.subr.bf16.mxu1 %v9815_v55 }
 0x34b   :  { %v3353_v40 = vpop.permute.xlu0 %3352 }
 0x34c   :  { %v3359_v3 = vpop.permute.xlu1 %3358 }
 0x34f   :  { %v3429_v49 = vpop.permute.xlu0 %3428 }
 0x350   :  { %8088 = vmatmul.mubr.msk.bf16.vlgmr.msra.gmra.mrb[24].mxu1 %vm3504_vm1, %v3353_v40  ;;  %v3739_v18 = vsel %vm3504_vm1, %v3429_v49, 0  ;;  %v3365_v7 = vpop.permute.xlu1 %3364  ;;  %v7980_v49 = vld [vmem:[#allocation8] sm:$0xff]  }
 0x351   :  { %8098 = vmatpush3.bf16.xpose.msra.mxu1 %v3647_v42  ;;  %8099 = vmatprep.mubr.msk.bf16.mxu1 %vm9816_vm0, %v9815_v55  ;;  %v3193_v45 = vpop.f32.mrb[16].mxu0  ;;  %v3295_v48 = vpop.f32.mrb[16].mxu1 }
 0x352   :  { %8109 = vmatprep.subr.bf16.mxu1 %v9815_v55  ;;  %v8391_v60 = vadd.f32 %v3193_v45, %v2417_v41  ;;  %v3195_v46 = vpop.f32.mrb[17].mxu0  ;;  %v8397_v51 = vadd.f32 %v3295_v48, %v10285_v43  ;;  %v3297_v56 = vpop.f32.mrb[17].mxu1 }
 0x353   :  { %v8392_v52 = vadd.f32 %v3195_v46, %v2421_v44  ;;  %v3197_v63 = vpop.f32.mrb[18].mxu0  ;;  %v10301_v61 = vadd.f32 %v3297_v56, %v2429_v47  ;;  %v3299_v4 = vpop.f32.mrb[18].mxu1 }
 0x354   :  { %v7967_v50 = vpack.c.bf16 %v8391_v60, %v8391_v60  ;;  %v10293_v53 = vadd.f32 %v3197_v63, %v2417_v41  ;;  %v3199_v54 = vpop.f32.mrb[19].mxu0  ;;  %v10297_v58 = vpack.c.bf16 %v8397_v51, %v8397_v51  ;;  %v10304_v16 = vadd.f32 %v3299_v4, %v10285_v43  ;;  %v3301_v17 = vpop.f32.mrb[19].mxu1 }
 0x355   :  { %v10299_v1 = vadd.f32 %v3199_v54, %v2421_v44  ;;  %v10308_v19 = vpack.c.bf16 %v8392_v52, %v8392_v52  ;;  %v10314_v2 = vadd.f32 %v3301_v17, %v2429_v47  ;;  %v3435_v25 = vpop.permute.xlu0 %3434  ;;  %v3371_v9 = vpop.permute.xlu1 %3370 }
 0x356   :  { %v4958_v57 = vsel %vm4956_vm2, %v7967_v50, 0  ;;  %3480 = vrot.lane.b32.xlu1 %v7967_v50, %s9799_s1  ;;  %3492 = vrot.lane.b32.xlu0 %v10297_v58, %s9799_s1  ;;  %v3831_v27 = vsel %vm3504_vm1, %v3435_v25, 0  ;;  %v10377_v50 = vunpack.c.l.bf16 %v7980_v49 }
 0x357   :  { %8224 = vmatpush3.bf16.msra.mxu0 %v4958_v57 }
 0x358   :  { %8100 = vmatmul.mubr.msk.bf16.vlgmr.msra.gmra.mrb[28].mxu1 %vm3504_vm1, %v3359_v3  ;;  %8235 = vmatprep.subr.bf16.mxu0 %v9815_v55 }
 0x359   :  { %8110 = vmatpush3.bf16.xpose.msra.mxu1 %v3739_v18  ;;  %8111 = vmatprep.mubr.msk.bf16.mxu1 %vm9816_vm0, %v9815_v55  ;;  %v3203_v20 = vpop.f32.mrb[20].mxu0  ;;  %v3419_v11 = vpop.permute.xlu0 %3418 }
 0x35a   :  { %8121 = vmatprep.subr.bf16.mxu1 %v9815_v55  ;;  %v10317_v21 = vadd.f32 %v3203_v20, %v2417_v41  ;;  %v3205_v22 = vpop.f32.mrb[21].mxu0  ;;  %3486 = vrot.lane.b32.xlu0 %v10308_v19, %s9799_s1  ;;  %v3923_v8 = vsel %vm3504_vm1, %v3419_v11, 0  ;;  %v3305_v14 = vpop.f32.mrb[20].mxu1 }
 0x35b   :  { %v10320_v5 = vadd.f32 %v3205_v22, %v2421_v44  ;;  %v3207_v23 = vpop.f32.mrb[22].mxu0  ;;  %v3307_v13 = vpop.f32.mrb[21].mxu1  ;;  %v10335_v12 = vadd.f32 %v3305_v14, %v10285_v43 }
 0x35c   :  { %v3208_v24 = vpop.f32.mrb[23].mxu0  ;;  %v3309_v30 = vpop.f32.mrb[22].mxu1  ;;  %v10337_v29 = vadd.f32 %v3307_v13, %v2429_v47 }
 0x35d   :  { %v3425_v28 = vpop.permute.xlu0 %3424  ;;  %v3310_v26 = vpop.f32.mrb[23].mxu1 }
 0x35e   :  { %v3355_v32 = vpop.permute.xlu1 %3354  ;;  %v4015_v15 = vsel %vm3504_vm1, %v3425_v28, 0 }
 0x360   :  { %8112 = vmatmul.mubr.msk.bf16.vlgmr.msra.gmra.mrb[32].mxu1 %vm3504_vm1, %v3365_v7 }
 0x361   :  { %8122 = vmatpush3.bf16.xpose.msra.mxu1 %v3831_v27  ;;  %8123 = vmatprep.mubr.msk.bf16.mxu1 %vm9816_vm0, %v9815_v55  ;;  %v3431_v33 = vpop.permute.xlu0 %3430 }
 0x362   :  { %8133 = vmatprep.subr.bf16.mxu1 %v9815_v55  ;;  %v3361_v59 = vpop.permute.xlu1 %3360  ;;  %v4107_v34 = vsel %vm3504_vm1, %v3431_v33, 0 }
 0x365   :  { %v3437_v35 = vpop.permute.xlu0 %3436 }
 0x366   :  { %v3367_v62 = vpop.permute.xlu1 %3366  ;;  %v4199_v36 = vsel %vm3504_vm1, %v3437_v35, 0 }
 0x368   :  { %8124 = vmatmul.mubr.msk.bf16.vlgmr.msra.gmra.mrb[36].mxu1 %vm3504_vm1, %v3371_v9 }
 0x369   :  { %8134 = vmatpush3.bf16.xpose.msra.mxu1 %v3923_v8  ;;  %8135 = vmatprep.mubr.msk.bf16.mxu1 %vm9816_vm0, %v9815_v55  ;;  %v3421_v37 = vpop.permute.xlu0 %3420 }
 0x36a   :  { %8145 = vmatprep.subr.bf16.mxu1 %v9815_v55  ;;  %v3373_v38 = vpop.permute.xlu1 %3372  ;;  %v4291_v39 = vsel %vm3504_vm1, %v3421_v37, 0 }
 0x36d   :  { %v3427_v40 = vpop.permute.xlu0 %3426 }
 0x36e   :  { %v3357_v41 = vpop.permute.xlu1 %3356  ;;  %v4383_v42 = vsel %vm3504_vm1, %v3427_v40, 0 }
 0x370   :  { %8136 = vmatmul.mubr.msk.bf16.vlgmr.msra.gmra.mrb[40].mxu1 %vm3504_vm1, %v3355_v32 }
 0x371   :  { %8146 = vmatpush3.bf16.xpose.msra.mxu1 %v4015_v15  ;;  %8147 = vmatprep.mubr.msk.bf16.mxu1 %vm9816_vm0, %v9815_v55  ;;  %v3433_v43 = vpop.permute.xlu0 %3432  ;;  %v10401_v15 = vunpack.c.h.bf16 %v7980_v49 }
 0x372   :  { %8157 = vmatprep.subr.bf16.mxu1 %v9815_v55  ;;  %v3363_v44 = vpop.permute.xlu1 %3362  ;;  %v4475_v45 = vsel %vm3504_vm1, %v3433_v43, 0 }
 0x375   :  { %v3439_v60 = vpop.permute.xlu0 %3438 }
 0x376   :  { %v3369_v46 = vpop.permute.xlu1 %3368  ;;  %v4567_v47 = vsel %vm3504_vm1, %v3439_v60, 0 }
 0x378   :  { %8148 = vmatmul.mubr.msk.bf16.vlgmr.msra.gmra.mrb[44].mxu1 %vm3504_vm1, %v3361_v59 }
 0x379   :  { %8158 = vmatpush3.bf16.xpose.msra.mxu1 %v4107_v34  ;;  %8159 = vmatprep.mubr.msk.bf16.mxu1 %vm9816_vm0, %v9815_v55 }
 0x37a   :  { %8169 = vmatprep.subr.bf16.mxu1 %v9815_v55  ;;  %v3375_v48 = vpop.permute.xlu1 %3374 }
 0x380   :  { %8160 = vmatmul.mubr.msk.bf16.vlgmr.msra.gmra.mrb[48].mxu1 %vm3504_vm1, %v3367_v62 }
 0x381   :  { %8170 = vmatpush3.bf16.xpose.msra.mxu1 %v4199_v36  ;;  %8171 = vmatprep.mubr.msk.bf16.mxu1 %vm9816_vm0, %v9815_v55 }
 0x382   :  { %8181 = vmatprep.subr.bf16.mxu1 %v9815_v55 }
 0x388   :  { %8172 = vmatmul.mubr.msk.bf16.vlgmr.msra.gmra.mrb[52].mxu1 %vm3504_vm1, %v3373_v38 }
 0x389   :  { %8182 = vmatpush3.bf16.xpose.msra.mxu1 %v4291_v39  ;;  %8183 = vmatprep.mubr.msk.bf16.mxu1 %vm9816_vm0, %v9815_v55 }
 0x38a   :  { %8193 = vmatprep.subr.bf16.mxu1 %v9815_v55 }
 0x390   :  { %8184 = vmatmul.mubr.msk.bf16.vlgmr.msra.gmra.mrb[56].mxu1 %vm3504_vm1, %v3357_v41 }
 0x391   :  { %8194 = vmatpush3.bf16.xpose.msra.mxu1 %v4383_v42  ;;  %8195 = vmatprep.mubr.msk.bf16.mxu1 %vm9816_vm0, %v9815_v55 }
 0x392   :  { %8205 = vmatprep.subr.bf16.mxu1 %v9815_v55 }
 0x398   :  { %8196 = vmatmul.mubr.msk.bf16.vlgmr.msra.gmra.mrb[60].mxu1 %vm3504_vm1, %v3363_v44 }
 0x399   :  { %8206 = vmatpush3.bf16.xpose.msra.mxu1 %v4475_v45  ;;  %8207 = vmatprep.mubr.msk.bf16.mxu1 %vm9816_vm0, %v9815_v55 }
 0x39a   :  { %8217 = vmatprep.subr.bf16.mxu1 %v9815_v55 }
 0x3a0   :  { %8208 = vmatmul.mubr.msk.bf16.vlgmr.msra.gmra.mrb[64].mxu1 %vm3504_vm1, %v3369_v46 }
 0x3a1   :  { %8218 = vmatpush3.bf16.xpose.msra.mxu1 %v4567_v47  ;;  %8219 = vmatprep.mubr.msk.bf16.mxu1 %vm9816_vm0, %v9815_v55 }
 0x3a2   :  { %8229 = vmatprep.subr.bf16.mxu1 %v9815_v55 }
 0x3a8   :  { %8220 = vmatmul.mubr.msk.bf16.vlgmr.msra.gmra.mrb[68].mxu1 %vm3504_vm1, %v3375_v48 }
 0x3a9   :  { %8231 = vmatprep.mubr.msk.bf16.mxu1 %vm9816_vm0, %v9815_v55 }
 0x3b0   :  { %v3545_v51 = vpop.f32.mrb[24].mxu0 }
 0x3b1   :  { %v10380_v52 = vadd.f32 %v10377_v50, %v3545_v51  ;;  %v8083_v63 = vpop.f32.mrb[25].mxu0 }
 0x3b2   :  { %v3548_v54 = vpop.f32.mrb[26].mxu0 }
 0x3b3   :  { %v8084_v56 = vpop.f32.mrb[27].mxu0  ;;  %v4640_v57 = vsel %vm4639_vm3, %v10380_v52, -inf }
 0x3b4   :  { %4641 = vmax.xlane.f32.xlu1 %v4640_v57 }
 0x3b8   :  { %v3637_v4 = vpop.f32.mrb[28].mxu0 }
 0x3b9   :  { %v10385_v3 = vadd.f32 %v10377_v50, %v3637_v4  ;;  %v8095_v17 = vpop.f32.mrb[29].mxu0 }
 0x3ba   :  { %v3640_v18 = vpop.f32.mrb[30].mxu0 }
 0x3bb   :  { %v8096_v20 = vpop.f32.mrb[31].mxu0  ;;  %v4646_v22 = vsel %vm4639_vm3, %v10385_v3, -inf }
 0x3bc   :  { %4647 = vmax.xlane.f32.xlu0 %v4646_v22 }
 0x3c0   :  { %v3729_v23 = vpop.f32.mrb[32].mxu0 }
 0x3c1   :  { %v10390_v24 = vadd.f32 %v10377_v50, %v3729_v23  ;;  %v8107_v25 = vpop.f32.mrb[33].mxu0 }
 0x3c2   :  { %v3732_v7 = vpop.f32.mrb[34].mxu0 }
 0x3c3   :  { %v8108_v27 = vpop.f32.mrb[35].mxu0  ;;  %v4652_v11 = vsel %vm4639_vm3, %v10390_v24, -inf }
 0x3c4   :  { %4653 = vmax.xlane.f32.xlu0 %v4652_v11 }
 0x3c8   :  { %v3821_v9 = vpop.f32.mrb[36].mxu0  ;;  %v3481_v8 = vpop.permute.xlu1 %3480 }
 0x3c9   :  { %v10395_v14 = vadd.f32 %v10377_v50, %v3821_v9  ;;  %v8119_v13 = vpop.f32.mrb[37].mxu0  ;;  %v5004_v28 = vsel %vm4956_vm2, %v3481_v8, 0 }
 0x3ca   :  { %v3824_v30 = vpop.f32.mrb[38].mxu0  ;;  %8230 = vmatpush3.bf16.msra.mxu1 %v5004_v28 }
 0x3cb   :  { %v8120_v26 = vpop.f32.mrb[39].mxu0  ;;  %v4658_v32 = vsel %vm4639_vm3, %v10395_v14, -inf  ;;  %8241 = vmatprep.subr.bf16.mxu1 %v9815_v55 }
 0x3cc   :  { %4659 = vmax.xlane.f32.xlu0 %v4658_v32 }
 0x3d0   :  { %v3913_v33 = vpop.f32.mrb[40].mxu0 }
 0x3d1   :  { %v10404_v59 = vadd.f32 %v10401_v15, %v3913_v33  ;;  %v8131_v34 = vpop.f32.mrb[41].mxu0 }
 0x3d2   :  { %v3916_v35 = vpop.f32.mrb[42].mxu0 }
 0x3d3   :  { %v8132_v62 = vpop.f32.mrb[43].mxu0  ;;  %v4664_v36 = vsel %vm4639_vm3, %v10404_v59, -inf }
 0x3d4   :  { %4665 = vmax.xlane.f32.xlu1 %v4664_v36 }
 0x3d8   :  { %v4005_v37 = vpop.f32.mrb[44].mxu0 }
 0x3d9   :  { %v10409_v38 = vadd.f32 %v10401_v15, %v4005_v37  ;;  %v8143_v39 = vpop.f32.mrb[45].mxu0 }
 0x3da   :  { %v4008_v40 = vpop.f32.mrb[46].mxu0 }
 0x3db   :  { %v8144_v41 = vpop.f32.mrb[47].mxu0  ;;  %v4670_v42 = vsel %vm4639_vm3, %v10409_v38, -inf }
 0x3dc   :  { %4671 = vmax.xlane.f32.xlu0 %v4670_v42 }
 0x3e0   :  { %v4097_v43 = vpop.f32.mrb[48].mxu0 }
 0x3e1   :  { %v10414_v44 = vadd.f32 %v10401_v15, %v4097_v43  ;;  %v8155_v45 = vpop.f32.mrb[49].mxu0 }
 0x3e2   :  { %v4100_v60 = vpop.f32.mrb[50].mxu0 }
 0x3e3   :  { %v8156_v46 = vpop.f32.mrb[51].mxu0  ;;  %v4676_v47 = vsel %vm4639_vm3, %v10414_v44, -inf }
 0x3e4   :  { %4677 = vmax.xlane.f32.xlu0 %v4676_v47 }
 0x3e8   :  { %v4189_v48 = vpop.f32.mrb[52].mxu0 }
 0x3e9   :  { %v8167_v49 = vpop.f32.mrb[53].mxu0 }
 0x3ea   :  { %v4192_v51 = vpop.f32.mrb[54].mxu0 }
 0x3eb   :  { %v8168_v63 = vpop.f32.mrb[55].mxu0 }
 0x3f0   :  { %v10418_v54 = vpop.f32.mrb[56].mxu0 }
 0x3f1   :  { %v8179_v56 = vpop.f32.mrb[57].mxu0 }
 0x3f2   :  { %v4284_v57 = vpop.f32.mrb[58].mxu0  ;;  %v10445_v56 = vadd.f32 %v10401_v15, %v4189_v48 }
 0x3f3   :  { %v8180_v4 = vpop.f32.mrb[59].mxu0 }
 0x3f8   :  { %v10420_v17 = vpop.f32.mrb[60].mxu0 }
 0x3f9   :  { %v8191_v18 = vpop.f32.mrb[61].mxu0 }
 0x3fa   :  { %v4376_v20 = vpop.f32.mrb[62].mxu0  ;;  %v4682_v18 = vsel %vm4639_vm3, %v10445_v56, -inf }
 0x3fb   :  { %v8192_v22 = vpop.f32.mrb[63].mxu0 }
 0x400   :  { %v10422_v23 = vpop.f32.mrb[64].mxu0 }
 0x401   :  { %v8203_v25 = vpop.f32.mrb[65].mxu0 }
 0x402   :  { %v4468_v7 = vpop.f32.mrb[66].mxu0 }
 0x403   :  { %v8204_v27 = vpop.f32.mrb[67].mxu0 }
 0x408   :  { %v10424_v11 = vpop.f32.mrb[68].mxu0 }
 0x409   :  { %v8215_v9 = vpop.f32.mrb[69].mxu0 }
 0x40a   :  { %v4560_v8 = vpop.f32.mrb[70].mxu0 }
 0x40b   :  { %v8216_v13 = vpop.f32.mrb[71].mxu0 }
 0x423   :  { %v3591_v28 = vpop.f32.mrb[24].mxu1 }
 0x424   :  { %v10427_v30 = vadd.f32 %v10377_v50, %v3591_v28  ;;  %v8089_v26 = vpop.f32.mrb[25].mxu1 }
 0x425   :  { %v3594_v32 = vpop.f32.mrb[26].mxu1 }
 0x426   :  { %v8090_v33 = vpop.f32.mrb[27].mxu1  ;;  %v4643_v34 = vsel %vm4639_vm3, %v10427_v30, -inf }
 0x427   :  { %4644 = vmax.xlane.f32.xlu0 %v4643_v34  ;;  %v10458_v33 = vpack.c.bf16 %v10301_v61, %v10301_v61 }
 0x42b   :  { %v3683_v35 = vpop.f32.mrb[28].mxu1 }
 0x42c   :  { %v10432_v62 = vadd.f32 %v10377_v50, %v3683_v35  ;;  %v8101_v36 = vpop.f32.mrb[29].mxu1  ;;  %v10462_v35 = vpack.c.bf16 %v10293_v53, %v10293_v53 }
 0x42d   :  { %v3686_v37 = vpop.f32.mrb[30].mxu1 }
 0x42e   :  { %v8102_v39 = vpop.f32.mrb[31].mxu1  ;;  %v4649_v40 = vsel %vm4639_vm3, %v10432_v62, -inf }
 0x42f   :  { %4650 = vmax.xlane.f32.xlu1 %v4649_v40 }
 0x433   :  { %v3775_v41 = vpop.f32.mrb[32].mxu1 }
 0x434   :  { %v10437_v42 = vadd.f32 %v10377_v50, %v3775_v41  ;;  %v8113_v43 = vpop.f32.mrb[33].mxu1 }
 0x435   :  { %v3778_v45 = vpop.f32.mrb[34].mxu1 }
 0x436   :  { %v8114_v60 = vpop.f32.mrb[35].mxu1  ;;  %v4655_v46 = vsel %vm4639_vm3, %v10437_v42, -inf }
 0x437   :  { %4656 = vmax.xlane.f32.xlu0 %v4655_v46 }
 0x43b   :  { %v3867_v47 = vpop.f32.mrb[36].mxu1 }
 0x43c   :  { %v10442_v49 = vadd.f32 %v10377_v50, %v3867_v47  ;;  %v8125_v51 = vpop.f32.mrb[37].mxu1 }
 0x43d   :  { %v3870_v63 = vpop.f32.mrb[38].mxu1 }
 0x43e   :  { %v8126_v57 = vpop.f32.mrb[39].mxu1  ;;  %v4661_v4 = vsel %vm4639_vm3, %v10442_v49, -inf }
 0x43f   :  { %4662 = vmax.xlane.f32.xlu0 %v4661_v4  ;;  %v4611_v4 = vld [vmem:[#allocation8 + $0x8] sm:$0xf] }
 0x441   :  { %v4642_v41 = vpop.xlane.xlu1 %4641 }
 0x442   :  { %v4712_v60 = vsub.f32 %v10380_v52, %v4642_v41 }
 0x443   :  { %v3959_v20 = vpop.f32.mrb[40].mxu1  ;;  %4683 = vmax.xlane.f32.xlu0 %v4682_v18  ;;  %v10469_v18 = vunpack.c.l.bf16 %v4611_v4 }
 0x444   :  { %v10452_v22 = vadd.f32 %v10401_v15, %v3959_v20  ;;  %v8137_v50 = vpop.f32.mrb[41].mxu1  ;;  %v4736_v47 = vmul.f32 1.442695, %v4712_v60 }
 0x445   :  { %v3962_v25 = vpop.f32.mrb[42].mxu1  ;;  %v10476_v52 = vadd.f32 %v10469_v18, %v10418_v54 }
 0x446   :  { %v8138_v7 = vpop.f32.mrb[43].mxu1  ;;  %v4667_v48 = vsel %vm4639_vm3, %v10452_v22, -inf  ;;  %9309 = vpow2.f32 %v4736_v47  ;;  %v10516_v47 = vpop.permute.xlu0 %3492 }
 0x447   :  { %4668 = vmax.xlane.f32.xlu1 %v4667_v48  ;;  %v4688_v54 = vsel %vm4639_vm3, %v10476_v52, -inf }
 0x44b   :  { %v4051_v27 = vpop.f32.mrb[44].mxu1 }
 0x44c   :  { %v8149_v9 = vpop.f32.mrb[45].mxu1  ;;  %v10472_v20 = vadd.f32 %v10401_v15, %v4051_v27 }
 0x44d   :  { %v4054_v8 = vpop.f32.mrb[46].mxu1 }
 0x44e   :  { %v8150_v13 = vpop.f32.mrb[47].mxu1  ;;  %v4673_v9 = vsel %vm4639_vm3, %v10472_v20, -inf }
 0x450   :  { %v10480_v8 = vpop.eup %9309 }
 0x453   :  { %v4143_v28 = vpop.f32.mrb[48].mxu1 }
 0x454   :  { %v8161_v26 = vpop.f32.mrb[49].mxu1  ;;  %v10483_v13 = vadd.f32 %v10401_v15, %v4143_v28 }
 0x455   :  { %v4146_v32 = vpop.f32.mrb[50].mxu1 }
 0x456   :  { %v8162_v34 = vpop.f32.mrb[51].mxu1  ;;  %v4784_v32 = vsel %vm4639_vm3, %v10480_v8, 0.0  ;;  %v4679_v41 = vsel %vm4639_vm3, %v10483_v13, -inf }
 0x458   :  { %3498 = vrot.lane.b32.xlu1 %v10458_v33, %s9799_s1 }
 0x459   :  { %3482 = vrot.lane.b32.xlu0 %v10462_v35, %s9799_s1 }
 0x45b   :  { %v4235_v36 = vpop.f32.mrb[52].mxu1 }
 0x45c   :  { %v8173_v37 = vpop.f32.mrb[53].mxu1 }
 0x45d   :  { %v4238_v39 = vpop.f32.mrb[54].mxu1 }
 0x45e   :  { %v8174_v40 = vpop.f32.mrb[55].mxu1 }
 0x45f   :  { %v10493_v40 = vadd.f32 %v10401_v15, %v4235_v36 }
 0x463   :  { %v4327_v43 = vpop.f32.mrb[56].mxu1 }
 0x464   :  { %v8185_v45 = vpop.f32.mrb[57].mxu1 }
 0x465   :  { %v4330_v61 = vpop.f32.mrb[58].mxu1  ;;  %v10500_v45 = vadd.f32 %v10469_v18, %v4327_v43 }
 0x466   :  { %v8186_v46 = vpop.f32.mrb[59].mxu1  ;;  %v4685_v61 = vsel %vm4639_vm3, %v10493_v40, -inf }
 0x467   :  { %v4691_v15 = vsel %vm4639_vm3, %v10500_v45, -inf }
 0x46b   :  { %v4419_v53 = vpop.f32.mrb[60].mxu1 }
 0x46c   :  { %v8197_v51 = vpop.f32.mrb[61].mxu1  ;;  %v10486_v27 = vadd.f32 %v10469_v18, %v4419_v53  ;;  %v10518_v53 = vpop.permute.xlu0 %3486 }
 0x46d   :  { %v4422_v63 = vpop.f32.mrb[62].mxu1 }
 0x46e   :  { %v8198_v57 = vpop.f32.mrb[63].mxu1  ;;  %v4697_v28 = vsel %vm4639_vm3, %v10486_v27, -inf }
 0x470   :  { %v10520_v51 = vpop.xlane.xlu0 %4647 }
 0x473   :  { %v4511_v50 = vpop.f32.mrb[64].mxu1 }
 0x474   :  { %v8209_v25 = vpop.f32.mrb[65].mxu1  ;;  %v10505_v60 = vadd.f32 %v10469_v18, %v4511_v50  ;;  %v4654_v63 = vpop.xlane.xlu0 %4653 }
 0x475   :  { %v4514_v7 = vpop.f32.mrb[66].mxu1 }
 0x476   :  { %v8210_v48 = vpop.f32.mrb[67].mxu1  ;;  %v4703_v46 = vsel %vm4639_vm3, %v10505_v60, -inf }
 0x478   :  { %4674 = vmax.xlane.f32.xlu0 %v4673_v9  ;;  %v4660_v57 = vpop.xlane.xlu0 %4659  ;;  %v4666_v9 = vpop.xlane.xlu1 %4665 }
 0x47b   :  { %v4603_v26 = vpop.f32.mrb[68].mxu1 }
 0x47c   :  { %v8221_v34 = vpop.f32.mrb[69].mxu1  ;;  %4785 = vadd.xlane.f32.xlu0 %v4784_v32  ;;  %4689 = vmax.xlane.f32.xlu1 %v4688_v54  ;;  %v10510_v36 = vadd.f32 %v10469_v18, %v4603_v26  ;;  %v4672_v4 = vpop.xlane.xlu0 %4671  ;;  %v4716_v26 = vsub.f32 %v10390_v24, %v4654_v63 }
 0x47d   :  { %v4606_v37 = vpop.f32.mrb[70].mxu1 }
 0x47e   :  { %v8222_v39 = vpop.f32.mrb[71].mxu1  ;;  %v4709_v43 = vsel %vm4639_vm3, %v10510_v36, -inf  ;;  %v4744_v34 = vmul.f32 1.442695, %v4716_v26 }
 0x480   :  { %4698 = vmax.xlane.f32.xlu0 %v4697_v28  ;;  %4680 = vmax.xlane.f32.xlu1 %v4679_v41  ;;  %v10522_v50 = vpop.xlane.xlu0 %4677  ;;  %v4718_v28 = vsub.f32 %v10395_v14, %v4660_v57  ;;  %v10532_v41 = vadd.f32 %v10469_v18, %v10420_v17 }
 0x482   :  { %v4748_v24 = vmul.f32 1.442695, %v4718_v28 }
 0x484   :  { %4686 = vmax.xlane.f32.xlu1 %v4685_v61  ;;  %v4720_v61 = vsub.f32 %v10404_v59, %v4666_v9 }
 0x486   :  { %v4752_v17 = vmul.f32 1.442695, %v4720_v61 }
 0x488   :  { %4692 = vmax.xlane.f32.xlu1 %v4691_v15 }
 0x48c   :  { %4704 = vmax.xlane.f32.xlu1 %v4703_v46  ;;  %v4694_v46 = vsel %vm4639_vm3, %v10532_v41, -inf }
 0x490   :  { %4710 = vmax.xlane.f32.xlu1 %v4709_v43 }
 0x4b4   :  { %v4645_v25 = vpop.xlane.xlu0 %4644 }
 0x4b5   :  { %v4713_v7 = vsub.f32 %v10427_v30, %v4645_v25 }
 0x4b7   :  { %v4738_v48 = vmul.f32 1.442695, %v4713_v7 }
 0x4b9   :  { %9311 = vpow2.f32 %v4738_v48  ;;  %v10555_v48 = vadd.f32 %v10469_v18, %v10424_v11 }
 0x4bc   :  { %v4651_v32 = vpop.xlane.xlu1 %4650 }
 0x4bd   :  { %v4715_v54 = vsub.f32 %v10432_v62, %v4651_v32  ;;  %v10539_v62 = vadd.f32 %v10469_v18, %v10422_v23  ;;  %v4706_v32 = vsel %vm4639_vm3, %v10555_v48, -inf }
 0x4bf   :  { %v4742_v37 = vmul.f32 1.442695, %v4715_v54  ;;  %v4700_v59 = vsel %vm4639_vm3, %v10539_v62, -inf }
 0x4c1   :  { %9313 = vpow2.f32 %v4742_v37 }
 0x4c2   :  { %9315 = vpow2.f32 %v4744_v34 }
 0x4c3   :  { %v10527_v39 = vpop.eup %9311  ;;  %9317 = vpow2.f32 %v4748_v24 }
 0x4c4   :  { %v4787_v30 = vsel %vm4639_vm3, %v10527_v39, 0.0  ;;  %v4657_v15 = vpop.xlane.xlu0 %4656  ;;  %9319 = vpow2.f32 %v4752_v17  ;;  %v4714_v17 = vsub.f32 %v10385_v3, %v10520_v51  ;;  %v10611_v3 = vpack.c.bf16 %v10317_v21, %v10317_v21 }
 0x4c5   :  { %4788 = vadd.xlane.f32.xlu0 %v4787_v30  ;;  %v4717_v43 = vsub.f32 %v10437_v42, %v4657_v15  ;;  %v10571_v30 = vpack.c.bf16 %v10299_v1, %v10299_v1 }
 0x4c7   :  { %v4746_v25 = vmul.f32 1.442695, %v4717_v43 }
 0x4c9   :  { %4695 = vmax.xlane.f32.xlu0 %v4694_v46  ;;  %9321 = vpow2.f32 %v4746_v25  ;;  %v10601_v25 = vpack.c.bf16 %v10314_v2, %v10314_v2 }
 0x4cb   :  { %v10543_v14 = vpop.eup %9313 }
 0x4cc   :  { %v4663_v63 = vpop.xlane.xlu0 %4662  ;;  %v4793_v57 = vsel %vm4639_vm3, %v10543_v14, 0.0  ;;  %v10550_v23 = vpop.eup %9315 }
 0x4cd   :  { %4794 = vadd.xlane.f32.xlu1 %v4793_v57  ;;  %4701 = vmax.xlane.f32.xlu0 %v4700_v59  ;;  %v4719_v7 = vsub.f32 %v10442_v49, %v4663_v63  ;;  %v4796_v42 = vsel %vm4639_vm3, %v10550_v23, 0.0  ;;  %v10561_v54 = vpop.eup %9317  ;;  %v4722_v49 = vsub.f32 %v10409_v38, %v4672_v4  ;;  %v4740_v63 = vmul.f32 1.442695, %v4714_v17 }
 0x4ce   :  { %v4802_v18 = vsel %vm4639_vm3, %v10561_v54, 0.0  ;;  %v10567_v37 = vpop.eup %9319 }
 0x4cf   :  { %v4750_v9 = vmul.f32 1.442695, %v4719_v7  ;;  %v4756_v28 = vmul.f32 1.442695, %v4722_v49 }
 0x4d0   :  { %v10595_v57 = vpop.xlane.xlu0 %4683 }
 0x4d1   :  { %4797 = vadd.xlane.f32.xlu0 %v4796_v42  ;;  %9323 = vpow2.f32 %v4750_v9 }
 0x4d3   :  { %v10575_v24 = vpop.eup %9321 }
 0x4d4   :  { %v4669_v26 = vpop.xlane.xlu1 %4668  ;;  %v4799_v38 = vsel %vm4639_vm3, %v10575_v24, 0.0  ;;  %v10603_v7 = vpop.permute.xlu0 %3482 }
 0x4d5   :  { %v4721_v34 = vsub.f32 %v10452_v22, %v4669_v26  ;;  %4707 = vmax.xlane.f32.xlu0 %v4706_v32  ;;  %v4808_v22 = vsel %vm4639_vm3, %v10567_v37, 0.0  ;;  %v10620_v32 = vpack.c.bf16 %v10320_v5, %v10320_v5 }
 0x4d7   :  { %v4754_v11 = vmul.f32 1.442695, %v4721_v34 }
 0x4d8   :  { %v10613_v51 = vpop.permute.xlu1 %3498 }
 0x4d9   :  { %4803 = vadd.xlane.f32.xlu0 %v4802_v18  ;;  %9325 = vpow2.f32 %v4754_v11 }
 0x4da   :  { %9327 = vpow2.f32 %v4756_v28 }
 0x4db   :  { %v10581_v4 = vpop.eup %9323  ;;  %9329 = vpow2.f32 %v4740_v63 }
 0x4dc   :  { %v4805_v1 = vsel %vm4639_vm3, %v10581_v4, 0.0 }
 0x4dd   :  { %4809 = vadd.xlane.f32.xlu0 %v4808_v22 }
 0x4de   :  { %3488 = vrot.lane.b32.xlu1 %v10571_v30, %s9799_s1 }
 0x4e1   :  { %4800 = vadd.xlane.f32.xlu0 %v4799_v38 }
 0x4e3   :  { %v10585_v61 = vpop.eup %9325 }
 0x4e4   :  { %v4811_v15 = vsel %vm4639_vm3, %v10585_v61, 0.0  ;;  %v10589_v46 = vpop.eup %9327 }
 0x4e5   :  { %4806 = vadd.xlane.f32.xlu0 %v4805_v1  ;;  %v4814_v43 = vsel %vm4639_vm3, %v10589_v46, 0.0  ;;  %v10597_v59 = vpop.eup %9329 }
 0x4e6   :  { %v4790_v42 = vsel %vm4639_vm3, %v10597_v59, 0.0 }
 0x4e9   :  { %4812 = vadd.xlane.f32.xlu0 %v4811_v15 }
 0x4ed   :  { %4815 = vadd.xlane.f32.xlu0 %v4814_v43  ;;  %v5050_v43 = vsel %vm4956_vm2, %v10308_v19, 0 }
 0x502   :  { %4791 = vadd.xlane.f32.xlu1 %v4790_v42 }
 0x503   :  { %3500 = vrot.lane.b32.xlu0 %v10601_v25, %s9799_s1 }
 0x505   :  { %v4675_v9 = vpop.xlane.xlu0 %4674 }
 0x506   :  { %v4723_v26 = vsub.f32 %v10472_v20, %v4675_v9 }
 0x507   :  { %3484 = vrot.lane.b32.xlu0 %v10611_v3, %s9799_s1 }
 0x508   :  { %v4758_v2 = vmul.f32 1.442695, %v4723_v26 }
 0x509   :  { %v4786_v34 = vpop.xlane.xlu0 %4785  ;;  %v10622_v49 = vpop.xlane.xlu1 %4689 }
 0x50a   :  { %9331 = vpow2.f32 %v4758_v2  ;;  %v10645_v2 = vpack.c.bf16 %v10304_v16, %v10304_v16 }
 0x50b   :  { %9333 = vrcp.f32 %v4786_v34  ;;  %3490 = vrot.lane.b32.xlu0 %v10620_v32, %s9799_s1 }
 0x50d   :  { %v4681_v21 = vpop.xlane.xlu1 %4680 }
 0x50e   :  { %v4725_v20 = vsub.f32 %v10483_v13, %v4681_v21 }
 0x510   :  { %v4762_v38 = vmul.f32 1.442695, %v4725_v20 }
 0x511   :  { %v4687_v11 = vpop.xlane.xlu1 %4686 }
 0x512   :  { %v4727_v1 = vsub.f32 %v10493_v40, %v4687_v11  ;;  %9335 = vpow2.f32 %v4762_v38  ;;  %v4699_v40 = vpop.xlane.xlu0 %4698 }
 0x513   :  { %v4731_v63 = vsub.f32 %v10486_v27, %v4699_v40  ;;  %v4724_v40 = vsub.f32 %v10414_v44, %v10522_v50 }
 0x514   :  { %v10626_v18 = vpop.eup %9331 }
 0x515   :  { %v9334_v28 = vpop.eup %9333  ;;  %v4817_v22 = vsel %vm4639_vm3, %v10626_v18, 0.0  ;;  %v4693_v17 = vpop.xlane.xlu1 %4692  ;;  %v4774_v9 = vmul.f32 1.442695, %v4731_v63  ;;  %v10684_v63 = vpack.c.bf16 %v10337_v29, %v10337_v29 }
 0x516   :  { %v4880_v5 = vmul.f32 %v9334_v28, %v10480_v8  ;;  %4818 = vadd.xlane.f32.xlu1 %v4817_v22  ;;  %v4766_v8 = vmul.f32 1.442695, %v4727_v1  ;;  %v4729_v13 = vsub.f32 %v10500_v45, %v4693_v17 }
 0x518   :  { %v4904_v15 = vpack.c.bf16 %v4880_v5, %v4880_v5  ;;  %9337 = vpow2.f32 %v4766_v8  ;;  %v4770_v42 = vmul.f32 1.442695, %v4729_v13 }
 0x519   :  { %v4705_v19 = vpop.xlane.xlu1 %4704 }
 0x51a   :  { %4929 = vst.msk [vmem:[#allocation26] sm:$0xf] %vm4928_vm4, %v4904_v15  ;;  %8226 = vmatmul.mubr.msk.bf16.vlgmr.msra.gmra.mrb[72].mxu0 %vm4639_vm3, %v4904_v15  ;;  %9339 = vpow2.f32 %v4770_v42  ;;  %v4733_v26 = vsub.f32 %v10505_v60, %v4705_v19 }
 0x51b   :  { %8236 = vmatpush3.bf16.msra.mxu0 %v5050_v43  ;;  %8237 = vmatprep.mubr.msk.bf16.mxu0 %vm9816_vm0, %v9815_v55  ;;  %9341 = vpow2.f32 %v4774_v9  ;;  %v4760_v9 = vmul.f32 1.442695, %v4724_v40 }
 0x51c   :  { %8247 = vmatprep.subr.bf16.mxu0 %v9815_v55  ;;  %v10647_v34 = vpop.eup %9335  ;;  %v4778_v45 = vmul.f32 1.442695, %v4733_v26  ;;  %v4728_v26 = vsub.f32 %v10476_v52, %v10622_v49 }
 0x51d   :  { %v4823_v27 = vsel %vm4639_vm3, %v10647_v34, 0.0  ;;  %v4711_v28 = vpop.xlane.xlu1 %4710 }
 0x51e   :  { %9343 = vpow2.f32 %v4778_v45  ;;  %v4735_v22 = vsub.f32 %v10510_v36, %v4711_v28  ;;  %v10676_v36 = vpack.c.bf16 %v10335_v12, %v10335_v12  ;;  %v4768_v50 = vmul.f32 1.442695, %v4728_v26 }
 0x520   :  { %v4782_v1 = vmul.f32 1.442695, %v4735_v22 }
 0x522   :  { %v10653_v21 = vpop.eup %9337  ;;  %9345 = vpow2.f32 %v4782_v1 }
 0x523   :  { %v4829_v60 = vsel %vm4639_vm3, %v10653_v21, 0.0 }
 0x524   :  { %v10657_v11 = vpop.eup %9339 }
 0x525   :  { %v4835_v16 = vsel %vm4639_vm3, %v10657_v11, 0.0  ;;  %v10661_v20 = vpop.eup %9341 }
 0x526   :  { %v4841_v5 = vsel %vm4639_vm3, %v10661_v20, 0.0 }
 0x527   :  { %3494 = vrot.lane.b32.xlu1 %v10645_v2, %s9799_s1 }
 0x528   :  { %v10666_v38 = vpop.eup %9343 }
 0x529   :  { %v4847_v15 = vsel %vm4639_vm3, %v10666_v38, 0.0 }
 0x52a   :  { %4824 = vadd.xlane.f32.xlu0 %v4823_v27 }
 0x52c   :  { %v10670_v17 = vpop.eup %9345 }
 0x52d   :  { %v4853_v43 = vsel %vm4639_vm3, %v10670_v17, 0.0 }
 0x52e   :  { %4830 = vadd.xlane.f32.xlu0 %v4829_v60  ;;  %v5096_v60 = vsel %vm4956_vm2, %v10518_v53, 0 }
 0x532   :  { %4836 = vadd.xlane.f32.xlu0 %v4835_v16 }
 0x536   :  { %4842 = vadd.xlane.f32.xlu0 %v4841_v5 }
 0x53a   :  { %4848 = vadd.xlane.f32.xlu0 %v4847_v15  ;;  %v4726_v15 = vsub.f32 %v10445_v56, %v10595_v57 }
 0x54b   :  { %4854 = vadd.xlane.f32.xlu1 %v4853_v43 }
 0x550   :  { %3496 = vrot.lane.b32.xlu0 %v10676_v36, %s9799_s1 }
 0x552   :  { %v4789_v8 = vpop.xlane.xlu0 %4788 }
 0x553   :  { %9347 = vrcp.f32 %v4789_v8 }
 0x556   :  { %v4696_v13 = vpop.xlane.xlu0 %4695 }
 0x557   :  { %v4730_v29 = vsub.f32 %v10532_v41, %v4696_v13 }
 0x559   :  { %v4772_v52 = vmul.f32 1.442695, %v4730_v29 }
 0x55a   :  { %v4795_v42 = vpop.xlane.xlu1 %4794  ;;  %v4702_v19 = vpop.xlane.xlu0 %4701 }
 0x55b   :  { %9349 = vrcp.f32 %v4795_v42 }
 0x55c   :  { %3502 = vrot.lane.b32.xlu1 %v10684_v63, %s9799_s1 }
 0x55d   :  { %v9348_v12 = vpop.eup %9347 }
 0x55e   :  { %v4881_v45 = vmul.f32 %v9348_v12, %v10527_v39  ;;  %v4798_v27 = vpop.xlane.xlu0 %4797  ;;  %v4732_v39 = vsub.f32 %v10539_v62, %v4702_v19  ;;  %v5188_v62 = vsel %vm4956_vm2, %v10516_v47, 0 }
 0x55f   :  { %9351 = vrcp.f32 %v4798_v27 }
 0x560   :  { %v4905_v44 = vpack.c.bf16 %v4881_v45, %v4881_v45  ;;  %9353 = vpow2.f32 %v4760_v9  ;;  %v4776_v53 = vmul.f32 1.442695, %v4732_v39 }
 0x561   :  { %9355 = vpow2.f32 %v4768_v50 }
 0x562   :  { %4930 = vst.msk [vmem:[#allocation26 + $0x4] sm:$0xf] %vm4928_vm4, %v4905_v44  ;;  %8232 = vmatmul.mubr.msk.bf16.vlgmr.msra.gmra.mrb[72].mxu1 %vm4639_vm3, %v4905_v44  ;;  %v4708_v16 = vpop.xlane.xlu0 %4707 }
 0x563   :  { %8242 = vmatpush3.bf16.msra.mxu1 %v5096_v60  ;;  %8243 = vmatprep.mubr.msk.bf16.mxu1 %vm9816_vm0, %v9815_v55  ;;  %v4734_v22 = vsub.f32 %v10555_v48, %v4708_v16  ;;  %v4764_v48 = vmul.f32 1.442695, %v4726_v15 }
 0x564   :  { %8253 = vmatprep.subr.bf16.mxu1 %v9815_v55 }
 0x565   :  { %v9350_v49 = vpop.eup %9349 }
 0x566   :  { %v4804_v41 = vpop.xlane.xlu0 %4803  ;;  %v4883_v28 = vmul.f32 %v9350_v49, %v10543_v14  ;;  %v4780_v14 = vmul.f32 1.442695, %v4734_v22 }
 0x567   :  { %9357 = vrcp.f32 %v4804_v41 }
 0x568   :  { %9359 = vpow2.f32 %v4772_v52  ;;  %v4907_v5 = vpack.c.bf16 %v4883_v28, %v4883_v28 }
 0x569   :  { %v9352_v1 = vpop.eup %9351 }
 0x56a   :  { %v4810_v43 = vpop.xlane.xlu0 %4809  ;;  %v10704_v8 = vpop.eup %9353  ;;  %v4884_v13 = vmul.f32 %v9352_v1, %v10550_v23  ;;  %4932 = vst.msk [vmem:[#allocation26 + $0xc] sm:$0xf] %vm4928_vm4, %v4907_v5  ;;  %8244 = vmatmul.mubr.msk.bf16.vlgmr.msra.gmra.mrb[76].mxu1 %vm4639_vm3, %v4907_v5 }
 0x56b   :  { %9361 = vrcp.f32 %v4810_v43  ;;  %8254 = vmatpush3.bf16.msra.mxu1 %v5188_v62  ;;  %8255 = vmatprep.mubr.msk.bf16.mxu1 %vm9816_vm0, %v9815_v55  ;;  %v4820_v47 = vsel %vm4639_vm3, %v10704_v8, 0.0  ;;  %v10718_v23 = vpop.eup %9355  ;;  %v5372_v62 = vsel %vm4956_vm2, %v10603_v7, 0 }
 0x56c   :  { %9363 = vpow2.f32 %v4776_v53  ;;  %8265 = vmatprep.subr.bf16.mxu1 %v9815_v55  ;;  %v10714_v56 = vpack.c.bf16 %v4884_v13, %v4884_v13  ;;  %v4832_v19 = vsel %vm4639_vm3, %v10718_v23, 0.0  ;;  %v5280_v53 = vsel %vm4956_vm2, %v10613_v51, 0 }
 0x56e   :  { %v4801_v57 = vpop.xlane.xlu0 %4800  ;;  %4933 = vst.msk [vmem:[#allocation26 + $0x10] sm:$0xf] %vm4928_vm4, %v10714_v56 }
 0x56f   :  { %9365 = vrcp.f32 %v4801_v57  ;;  %4821 = vadd.xlane.f32.xlu0 %v4820_v47 }
 0x570   :  { %9367 = vpow2.f32 %v4780_v14  ;;  %v3489_v14 = vpop.permute.xlu1 %3488 }
 0x571   :  { %v9358_v40 = vpop.eup %9357  ;;  %9369 = vpow2.f32 %v4764_v48  ;;  %v5464_v48 = vsel %vm4956_vm2, %v3489_v14, 0 }
 0x572   :  { %v4807_v42 = vpop.xlane.xlu0 %4806  ;;  %v10724_v12 = vpop.eup %9359  ;;  %v4886_v9 = vmul.f32 %v9358_v40, %v10561_v54  ;;  %v5142_v40 = vsel %vm4956_vm2, %v10297_v58, 0 }
 0x573   :  { %9371 = vrcp.f32 %v4807_v42  ;;  %4833 = vadd.xlane.f32.xlu0 %v4832_v19  ;;  %v4838_v50 = vsel %vm4639_vm3, %v10724_v12, 0.0  ;;  %v5234_v19 = vsel %vm4956_vm2, %v10458_v33, 0 }
 0x574   :  { %v10727_v45 = vpack.c.bf16 %v4886_v9, %v4886_v9 }
 0x575   :  { %v9362_v26 = vpop.eup %9361 }
 0x576   :  { %v4888_v27 = vmul.f32 %v9362_v26, %v10567_v37  ;;  %v4813_v44 = vpop.xlane.xlu0 %4812  ;;  %v10732_v29 = vpop.eup %9363  ;;  %4935 = vst.msk [vmem:[#allocation26 + $0x18] sm:$0xf] %vm4928_vm4, %v10727_v45  ;;  %v5326_v26 = vsel %vm4956_vm2, %v10462_v35, 0  ;;  %v5418_v35 = vsel %vm4956_vm2, %v10571_v30, 0 }
 0x577   :  { %9373 = vrcp.f32 %v4813_v44  ;;  %4839 = vadd.xlane.f32.xlu0 %v4838_v50  ;;  %v4844_v37 = vsel %vm4639_vm3, %v10732_v29, 0.0 }
 0x578   :  { %v10736_v60 = vpack.c.bf16 %v4888_v27, %v4888_v27 }
 0x579   :  { %v9366_v54 = vpop.eup %9365 }
 0x57a   :  { %v4885_v16 = vmul.f32 %v9366_v54, %v10575_v24  ;;  %v4816_v52 = vpop.xlane.xlu0 %4815  ;;  %4937 = vst.msk [vmem:[#allocation26 + $0x20] sm:$0xf] %vm4928_vm4, %v10736_v60  ;;  %v10743_v39 = vpop.eup %9367  ;;  %v5510_v54 = vsel %vm4956_vm2, %v10645_v2, 0 }
 0x57b   :  { %9375 = vrcp.f32 %v4816_v52  ;;  %4845 = vadd.xlane.f32.xlu0 %v4844_v37  ;;  %v10745_v49 = vpop.eup %9369  ;;  %v4850_v22 = vsel %vm4639_vm3, %v10743_v39, 0.0 }
 0x57c   :  { %v4909_v41 = vpack.c.bf16 %v4885_v16, %v4885_v16  ;;  %v4826_v5 = vsel %vm4639_vm3, %v10745_v49, 0.0 }
 0x57d   :  { %v9372_v28 = vpop.eup %9371 }
 0x57e   :  { %v4887_v24 = vmul.f32 %v9372_v28, %v10581_v4  ;;  %4934 = vst.msk [vmem:[#allocation26 + $0x14] sm:$0xf] %vm4928_vm4, %v4909_v41  ;;  %8256 = vmatmul.mubr.msk.bf16.vlgmr.msra.gmra.mrb[80].mxu1 %vm4639_vm3, %v4909_v41 }
 0x57f   :  { %8266 = vmatpush3.bf16.msra.mxu1 %v5280_v53  ;;  %4851 = vadd.xlane.f32.xlu0 %v4850_v22 }
 0x580   :  { %4827 = vadd.xlane.f32.xlu1 %v4826_v5  ;;  %8267 = vmatprep.mubr.msk.bf16.mxu1 %vm9816_vm0, %v9815_v55  ;;  %v4911_v1 = vpack.c.bf16 %v4887_v24, %v4887_v24 }
 0x581   :  { %v9374_v51 = vpop.eup %9373  ;;  %8277 = vmatprep.subr.bf16.mxu1 %v9815_v55 }
 0x582   :  { %v4889_v4 = vmul.f32 %v9374_v51, %v10585_v61  ;;  %4936 = vst.msk [vmem:[#allocation26 + $0x1c] sm:$0xf] %vm4928_vm4, %v4911_v1 }
 0x584   :  { %v4913_v15 = vpack.c.bf16 %v4889_v4, %v4889_v4 }
 0x585   :  { %v9376_v43 = vpop.eup %9375 }
 0x586   :  { %v4890_v13 = vmul.f32 %v9376_v43, %v10589_v46  ;;  %8268 = vmatmul.mubr.msk.bf16.vlgmr.msra.gmra.mrb[84].mxu1 %vm4639_vm3, %v4911_v1  ;;  %4938 = vst.msk [vmem:[#allocation26 + $0x24] sm:$0xf] %vm4928_vm4, %v4913_v15 }
 0x587   :  { %8278 = vmatpush3.bf16.msra.mxu1 %v5372_v62  ;;  %8279 = vmatprep.mubr.msk.bf16.mxu1 %vm9816_vm0, %v9815_v55 }
 0x588   :  { %8289 = vmatprep.subr.bf16.mxu1 %v9815_v55  ;;  %v4914_v61 = vpack.c.bf16 %v4890_v13, %v4890_v13 }
 0x58a   :  { %4939 = vst.msk [vmem:[#allocation26 + $0x28] sm:$0xf] %vm4928_vm4, %v4914_v61 }
 0x58e   :  { %8280 = vmatmul.mubr.msk.bf16.vlgmr.msra.gmra.mrb[88].mxu1 %vm4639_vm3, %v4913_v15 }
 0x58f   :  { %8290 = vmatpush3.bf16.msra.mxu1 %v5464_v48  ;;  %v4792_v46 = vpop.xlane.xlu1 %4791  ;;  %8291 = vmatprep.mubr.msk.bf16.mxu1 %vm9816_vm0, %v9815_v55 }
 0x590   :  { %9377 = vrcp.f32 %v4792_v46  ;;  %8301 = vmatprep.subr.bf16.mxu1 %v9815_v55 }
 0x59a   :  { %v9378_v7 = vpop.eup %9377 }
 0x59b   :  { %v4882_v57 = vmul.f32 %v9378_v7, %v10597_v59  ;;  %v3501_v59 = vpop.permute.xlu0 %3500 }
 0x59c   :  { %v5648_v28 = vsel %vm4956_vm2, %v3501_v59, 0 }
 0x59d   :  { %v4906_v47 = vpack.c.bf16 %v4882_v57, %v4882_v57 }
 0x59f   :  { %4931 = vst.msk [vmem:[#allocation26 + $0x8] sm:$0xf] %vm4928_vm4, %v4906_v47  ;;  %8238 = vmatmul.mubr.msk.bf16.vlgmr.msra.gmra.mrb[76].mxu0 %vm4639_vm3, %v4906_v47  ;;  %v3485_v58 = vpop.permute.xlu0 %3484 }
 0x5a0   :  { %8248 = vmatpush3.bf16.msra.mxu0 %v5142_v40  ;;  %8249 = vmatprep.mubr.msk.bf16.mxu0 %vm9816_vm0, %v9815_v55  ;;  %v5740_v1 = vsel %vm4956_vm2, %v3485_v58, 0 }
 0x5a1   :  { %8259 = vmatprep.subr.bf16.mxu0 %v9815_v55 }
 0x5a3   :  { %v4819_v42 = vpop.xlane.xlu1 %4818  ;;  %v3491_v44 = vpop.permute.xlu0 %3490 }
 0x5a4   :  { %9379 = vrcp.f32 %v4819_v42  ;;  %v5832_v62 = vsel %vm4956_vm2, %v3491_v44, 0 }
 0x5a7   :  { %8250 = vmatmul.mubr.msk.bf16.vlgmr.msra.gmra.mrb[80].mxu0 %vm4639_vm3, %v10714_v56  ;;  %v3495_v33 = vpop.permute.xlu1 %3494 }
 0x5a8   :  { %8260 = vmatpush3.bf16.msra.mxu0 %v5234_v19  ;;  %8261 = vmatprep.mubr.msk.bf16.mxu0 %vm9816_vm0, %v9815_v55  ;;  %v5556_v50 = vsel %vm4956_vm2, %v3495_v33, 0 }
 0x5a9   :  { %8271 = vmatprep.subr.bf16.mxu0 %v9815_v55 }
 0x5ae   :  { %v9380_v9 = vpop.eup %9379 }
 0x5af   :  { %v4891_v27 = vmul.f32 %v9380_v9, %v10626_v18  ;;  %8262 = vmatmul.mubr.msk.bf16.vlgmr.msra.gmra.mrb[84].mxu0 %vm4639_vm3, %v10727_v45 }
 0x5b0   :  { %8272 = vmatpush3.bf16.msra.mxu0 %v5326_v26  ;;  %8273 = vmatprep.mubr.msk.bf16.mxu0 %vm9816_vm0, %v9815_v55 }
 0x5b1   :  { %v4915_v56 = vpack.c.bf16 %v4891_v27, %v4891_v27  ;;  %8283 = vmatprep.subr.bf16.mxu0 %v9815_v55 }
 0x5b3   :  { %4940 = vst.msk [vmem:[#allocation26 + $0x2c] sm:$0xf] %vm4928_vm4, %v4915_v56  ;;  %8292 = vmatmul.mubr.msk.bf16.vlgmr.msra.gmra.mrb[92].mxu1 %vm4639_vm3, %v4915_v56  ;;  %v5602_v56 = vsel %vm4956_vm2, %v10601_v25, 0 }
 0x5b4   :  { %8302 = vmatpush3.bf16.msra.mxu1 %v5556_v50  ;;  %8303 = vmatprep.mubr.msk.bf16.mxu1 %vm9816_vm0, %v9815_v55 }
 0x5b5   :  { %8313 = vmatprep.subr.bf16.mxu1 %v9815_v55 }
 0x5b7   :  { %8274 = vmatmul.mubr.msk.bf16.vlgmr.msra.gmra.mrb[88].mxu0 %vm4639_vm3, %v10736_v60  ;;  %v4825_v18 = vpop.xlane.xlu0 %4824 }
 0x5b8   :  { %8284 = vmatpush3.bf16.msra.mxu0 %v5418_v35  ;;  %9381 = vrcp.f32 %v4825_v18  ;;  %8285 = vmatprep.mubr.msk.bf16.mxu0 %vm9816_vm0, %v9815_v55 }
 0x5b9   :  { %8295 = vmatprep.subr.bf16.mxu0 %v9815_v55 }
 0x5bb   :  { %v4831_v45 = vpop.xlane.xlu0 %4830 }
 0x5bc   :  { %9383 = vrcp.f32 %v4831_v45 }
 0x5bf   :  { %8286 = vmatmul.mubr.msk.bf16.vlgmr.msra.gmra.mrb[92].mxu0 %vm4639_vm3, %v4914_v61  ;;  %v4837_v16 = vpop.xlane.xlu0 %4836 }
 0x5c0   :  { %8296 = vmatpush3.bf16.msra.mxu0 %v5510_v54  ;;  %9385 = vrcp.f32 %v4837_v16  ;;  %8297 = vmatprep.mubr.msk.bf16.mxu0 %vm9816_vm0, %v9815_v55 }
 0x5c1   :  { %8307 = vmatprep.subr.bf16.mxu0 %v9815_v55 }
 0x5c2   :  { %v9382_v30 = vpop.eup %9381 }
 0x5c3   :  { %v4893_v60 = vmul.f32 %v9382_v30, %v10647_v34  ;;  %v4843_v52 = vpop.xlane.xlu0 %4842 }
 0x5c4   :  { %9387 = vrcp.f32 %v4843_v52 }
 0x5c5   :  { %v4917_v37 = vpack.c.bf16 %v4893_v60, %v4893_v60 }
 0x5c6   :  { %v9384_v41 = vpop.eup %9383 }
 0x5c7   :  { %v4895_v2 = vmul.f32 %v9384_v41, %v10653_v21  ;;  %4942 = vst.msk [vmem:[#allocation26 + $0x34] sm:$0xf] %vm4928_vm4, %v4917_v37  ;;  %8304 = vmatmul.mubr.msk.bf16.vlgmr.msra.gmra.mrb[96].mxu1 %vm4639_vm3, %v4917_v37  ;;  %v4849_v53 = vpop.xlane.xlu0 %4848 }
 0x5c8   :  { %8314 = vmatpush3.bf16.msra.mxu1 %v5648_v28  ;;  %9389 = vrcp.f32 %v4849_v53  ;;  %8315 = vmatprep.mubr.msk.bf16.mxu1 %vm9816_vm0, %v9815_v55  ;;  %v9117_v53 = vld [vmem:[#allocation19] ss:$16 sps:$4 sm:$0xff]  }
 0x5c9   :  { %8325 = vmatprep.subr.bf16.mxu1 %v9815_v55  ;;  %v4919_v34 = vpack.c.bf16 %v4895_v2, %v4895_v2 }
 0x5ca   :  { %v9386_v24 = vpop.eup %9385 }
 0x5cb   :  { %v4897_v22 = vmul.f32 %v9386_v24, %v10657_v11  ;;  %4944 = vst.msk [vmem:[#allocation26 + $0x3c] sm:$0xf] %vm4928_vm4, %v4919_v34  ;;  %v3497_v13 = vpop.permute.xlu0 %3496  ;;  %v9120_v24 = vld [vmem:[#allocation19 + $0x8] ss:$16 sps:$4 sm:$0xff]  }
 0x5cd   :  { %v4921_v5 = vpack.c.bf16 %v4897_v22, %v4897_v22 }
 0x5ce   :  { %v9388_v21 = vpop.eup %9387 }
 0x5cf   :  { %v4899_v51 = vmul.f32 %v9388_v21, %v10661_v20  ;;  %8316 = vmatmul.mubr.msk.bf16.vlgmr.msra.gmra.mrb[100].mxu1 %vm4639_vm3, %v4919_v34  ;;  %4946 = vst.msk [vmem:[#allocation26 + $0x44] sm:$0xf] %vm4928_vm4, %v4921_v5  ;;  %v9119_v34 = vld [vmem:[#allocation19 + $0x4] ss:$16 sps:$4 sm:$0xff]  }
 0x5d0   :  { %8326 = vmatpush3.bf16.msra.mxu1 %v5740_v1  ;;  %8327 = vmatprep.mubr.msk.bf16.mxu1 %vm9816_vm0, %v9815_v55 }
 0x5d1   :  { %8337 = vmatprep.subr.bf16.mxu1 %v9815_v55  ;;  %v4923_v4 = vpack.c.bf16 %v4899_v51, %v4899_v51  ;;  %v9123_v51 = vld [vmem:[#allocation19 + $0x28] ss:$16 sps:$4 sm:$0xff]  }
 0x5d2   :  { %v9390_v11 = vpop.eup %9389 }
 0x5d3   :  { %v4901_v15 = vmul.f32 %v9390_v11, %v10666_v38  ;;  %4948 = vst.msk [vmem:[#allocation26 + $0x4c] sm:$0xf] %vm4928_vm4, %v4923_v4  ;;  %v5924_v38 = vsel %vm4956_vm2, %v3497_v13, 0  ;;  %v9128_v11 = vld [vmem:[#allocation19 + $0x24] ss:$16 sps:$4 sm:$0xff]  }
 0x5d4   :  { %v9140_v13 = vld [vmem:[#allocation19 + $0x6c] ss:$16 sps:$4 sm:$0xff]  }
 0x5d5   :  { %v4925_v43 = vpack.c.bf16 %v4901_v15, %v4901_v15  ;;  %v9131_v15 = vld [vmem:[#allocation19 + $0x44] ss:$16 sps:$4 sm:$0xff]  }
 0x5d7   :  { %8328 = vmatmul.mubr.msk.bf16.vlgmr.msra.gmra.mrb[104].mxu1 %vm4639_vm3, %v4921_v5  ;;  %4950 = vst.msk [vmem:[#allocation26 + $0x54] sm:$0xf] %vm4928_vm4, %v4925_v43  ;;  %v9122_v5 = vld [vmem:[#allocation19 + $0xc] ss:$16 sps:$4 sm:$0xff]  }
 0x5d8   :  { %8338 = vmatpush3.bf16.msra.mxu1 %v5832_v62  ;;  %v4855_v20 = vpop.xlane.xlu1 %4854  ;;  %8339 = vmatprep.mubr.msk.bf16.mxu1 %vm9816_vm0, %v9815_v55  ;;  %v9132_v62 = vld [vmem:[#allocation19 + $0x48] ss:$16 sps:$4 sm:$0xff]  }
 0x5d9   :  { %9391 = vrcp.f32 %v4855_v20  ;;  %8349 = vmatprep.subr.bf16.mxu1 %v9815_v55  ;;  %v9129_v20 = vld [vmem:[#allocation19 + $0x40] ss:$16 sps:$4 sm:$0xff]  }
 0x5dc   :  { %v3503_v48 = vpop.permute.xlu1 %3502 }
 0x5dd   :  { %v6016_v7 = vsel %vm4956_vm2, %v3503_v48, 0  ;;  %v9146_v48 = vld [vmem:[#allocation19 + $0x8c] ss:$16 sps:$4 sm:$0xff]  }
 0x5df   :  { %8340 = vmatmul.mubr.msk.bf16.vlgmr.msra.gmra.mrb[108].mxu1 %vm4639_vm3, %v4923_v4  ;;  %v9125_v4 = vld [vmem:[#allocation19 + $0x2c] ss:$16 sps:$4 sm:$0xff]  }
 0x5e0   :  { %8350 = vmatpush3.bf16.msra.mxu1 %v5924_v38  ;;  %8351 = vmatprep.mubr.msk.bf16.mxu1 %vm9816_vm0, %v9815_v55  ;;  %v9137_v38 = vld [vmem:[#allocation19 + $0x64] ss:$16 sps:$4 sm:$0xff]  }
 0x5e1   :  { %8361 = vmatprep.subr.bf16.mxu1 %v9815_v55 }
 0x5e3   :  { %v9392_v61 = vpop.eup %9391 }
 0x5e4   :  { %v4903_v14 = vmul.f32 %v9392_v61, %v10670_v17  ;;  %v9138_v61 = vld [vmem:[#allocation19 + $0x68] ss:$16 sps:$4 sm:$0xff]  }
 0x5e6   :  { %v4927_v46 = vpack.c.bf16 %v4903_v14, %v4903_v14  ;;  %v9135_v14 = vld [vmem:[#allocation19 + $0x60] ss:$16 sps:$4 sm:$0xff]  }
 0x5e7   :  { %8352 = vmatmul.mubr.msk.bf16.vlgmr.msra.gmra.mrb[112].mxu1 %vm4639_vm3, %v4925_v43  ;;  %v9134_v43 = vld [vmem:[#allocation19 + $0x4c] ss:$16 sps:$4 sm:$0xff]  }
 0x5e8   :  { %8362 = vmatpush3.bf16.msra.mxu1 %v6016_v7  ;;  %8363 = vmatprep.mubr.msk.bf16.mxu1 %vm9816_vm0, %v9815_v55  ;;  %4952 = vst.msk [vmem:[#allocation26 + $0x5c] sm:$0xf] %vm4928_vm4, %v4927_v46  ;;  %v9144_v7 = vld [vmem:[#allocation19 + $0x88] ss:$16 sps:$4 sm:$0xff]  }
 0x5e9   :  { %7018 = vmatprep.subr.bf16.mxu1 %v9122_v5  ;;  %v9188_v5 = vld [vmem:[#allocation19 + $0x16c] ss:$16 sps:$4 sm:$0xff]  }
 0x5ed   :  { %v10853_v57 = vpop.f32.mrb[72].mxu0 }
 0x5ee   :  { %v8227_v47 = vpop.f32.mrb[73].mxu0 }
 0x5ef   :  { %v4997_v40 = vpop.f32.mrb[74].mxu0  ;;  %8364 = vmatmul.mubr.msk.bf16.vlgmr.msra.gmra.mrb[116].mxu1 %vm4639_vm3, %v4927_v46  ;;  %v9143_v46 = vld [vmem:[#allocation19 + $0x84] ss:$16 sps:$4 sm:$0xff]   ;;  %v9141_v47 = vld [vmem:[#allocation19 + $0x80] ss:$16 sps:$4 sm:$0xff]  }
 0x5f0   :  { %v8228_v42 = vpop.f32.mrb[75].mxu0  ;;  %7019 = vmatpush1.bf16.msra.mxu1 %v9120_v24  ;;  %v9152_v40 = vld [vmem:[#allocation19 + $0xac] ss:$16 sps:$4 sm:$0xff]   ;;  %v9185_v24 = vld [vmem:[#allocation19 + $0x164] ss:$16 sps:$4 sm:$0xff]  }
 0x5f1   :  { %7020 = vmatprep.subr.bf16.mxu1 %v9125_v4  ;;  %v9192_v4 = vld [vmem:[#allocation19 + $0x188] ss:$16 sps:$4 sm:$0xff]  }
 0x5f4   :  { %7021 = vmatpush1.bf16.msra.mxu1 %v9123_v51  ;;  %v9191_v51 = vld [vmem:[#allocation19 + $0x184] ss:$16 sps:$4 sm:$0xff]  }
 0x5f5   :  { %7022 = vmatprep.subr.bf16.mxu1 %v9134_v43  ;;  %v9197_v43 = vld [vmem:[#allocation19 + $0x1a4] ss:$16 sps:$4 sm:$0xff]  }
 0x5f8   :  { %7023 = vmatpush1.bf16.msra.mxu1 %v9132_v62 }
 0x5f9   :  { %7024 = vmatprep.subr.bf16.mxu1 %v9140_v13 }
 0x5fc   :  { %v4822_v17 = vpop.xlane.xlu0 %4821  ;;  %7025 = vmatpush1.bf16.msra.mxu1 %v9138_v61  ;;  %v9198_v61 = vld [vmem:[#allocation19 + $0x1a8] ss:$16 sps:$4 sm:$0xff]  }
 0x5fd   :  { %9393 = vrcp.f32 %v4822_v17  ;;  %7026 = vmatprep.subr.bf16.mxu1 %v9146_v48  ;;  %v9149_v17 = vld [vmem:[#allocation19 + $0xa4] ss:$16 sps:$4 sm:$0xff]  }
 0x5fe   :  { %v9203_v48 = vld [vmem:[#allocation19 + $0x1c4] ss:$16 sps:$4 sm:$0xff]  }
 0x600   :  { %v4834_v19 = vpop.xlane.xlu0 %4833  ;;  %7027 = vmatpush1.bf16.msra.mxu1 %v9144_v7 }
 0x601   :  { %9395 = vrcp.f32 %v4834_v19  ;;  %7028 = vmatprep.subr.bf16.mxu1 %v9152_v40 }
 0x604   :  { %v4840_v59 = vpop.xlane.xlu0 %4839 }
 0x605   :  { %9397 = vrcp.f32 %v4840_v59 }
 0x607   :  { %v9394_v58 = vpop.eup %9393 }
 0x608   :  { %v4892_v9 = vmul.f32 %v9394_v58, %v10704_v8  ;;  %v4846_v26 = vpop.xlane.xlu0 %4845  ;;  %v9150_v58 = vld [vmem:[#allocation19 + $0xa8] ss:$16 sps:$4 sm:$0xff]  }
 0x609   :  { %9399 = vrcp.f32 %v4846_v26  ;;  %v9147_v26 = vld [vmem:[#allocation19 + $0xa0] ss:$16 sps:$4 sm:$0xff]   ;;  %7029 = vmatpush1.bf16.msra.mxu1 %v9150_v58 }
 0x60a   :  { %v4916_v27 = vpack.c.bf16 %v4892_v9, %v4892_v9 }
 0x60b   :  { %v9396_v33 = vpop.eup %9395 }
 0x60c   :  { %v4896_v44 = vmul.f32 %v9396_v33, %v10718_v23  ;;  %4941 = vst.msk [vmem:[#allocation26 + $0x30] sm:$0xf] %vm4928_vm4, %v4916_v27  ;;  %8298 = vmatmul.mubr.msk.bf16.vlgmr.msra.gmra.mrb[96].mxu0 %vm4639_vm3, %v4916_v27  ;;  %v4852_v50 = vpop.xlane.xlu0 %4851  ;;  %v9155_v33 = vld [vmem:[#allocation19 + $0xc4] ss:$16 sps:$4 sm:$0xff]  }
 0x60d   :  { %8308 = vmatpush3.bf16.msra.mxu0 %v5602_v56  ;;  %9401 = vrcp.f32 %v4852_v50  ;;  %v4828_v35 = vpop.xlane.xlu1 %4827  ;;  %8309 = vmatprep.mubr.msk.bf16.mxu0 %vm9816_vm0, %v9815_v55  ;;  %v9158_v56 = vld [vmem:[#allocation19 + $0xcc] ss:$16 sps:$4 sm:$0xff]   ;;  %v9153_v50 = vld [vmem:[#allocation19 + $0xc0] ss:$16 sps:$4 sm:$0xff]  }
 0x60e   :  { %9403 = vrcp.f32 %v4828_v35  ;;  %8319 = vmatprep.subr.bf16.mxu0 %v9815_v55  ;;  %v4920_v8 = vpack.c.bf16 %v4896_v44, %v4896_v44  ;;  %v9156_v35 = vld [vmem:[#allocation19 + $0xc8] ss:$16 sps:$4 sm:$0xff]   ;;  %7030 = vmatprep.subr.bf16.mxu1 %v9158_v56 }
 0x60f   :  { %v9398_v18 = vpop.eup %9397  ;;  %7031 = vmatpush1.bf16.msra.mxu1 %v9156_v35 }
 0x610   :  { %v4898_v25 = vmul.f32 %v9398_v18, %v10724_v12  ;;  %4945 = vst.msk [vmem:[#allocation26 + $0x40] sm:$0xf] %vm4928_vm4, %v4920_v8  ;;  %v5694_v12 = vsel %vm4956_vm2, %v10611_v3, 0  ;;  %v5878_v3 = vsel %vm4956_vm2, %v10676_v36, 0  ;;  %v9159_v18 = vld [vmem:[#allocation19 + $0xe0] ss:$16 sps:$4 sm:$0xff]  }
 0x612   :  { %v4922_v23 = vpack.c.bf16 %v4898_v25, %v4898_v25  ;;  %v9161_v25 = vld [vmem:[#allocation19 + $0xe4] ss:$16 sps:$4 sm:$0xff]  }
 0x613   :  { %v9400_v45 = vpop.eup %9399 }
 0x614   :  { %v4900_v54 = vmul.f32 %v9400_v45, %v10732_v29  ;;  %4947 = vst.msk [vmem:[#allocation26 + $0x48] sm:$0xf] %vm4928_vm4, %v4922_v23  ;;  %v5786_v29 = vsel %vm4956_vm2, %v10620_v32, 0  ;;  %v5970_v32 = vsel %vm4956_vm2, %v10684_v63, 0  ;;  %v9162_v45 = vld [vmem:[#allocation19 + $0xe8] ss:$16 sps:$4 sm:$0xff]  }
 0x616   :  { %v4924_v16 = vpack.c.bf16 %v4900_v54, %v4900_v54  ;;  %v9164_v54 = vld [vmem:[#allocation19 + $0xec] ss:$16 sps:$4 sm:$0xff]  }
 0x617   :  { %v9402_v30 = vpop.eup %9401  ;;  %7032 = vmatprep.subr.bf16.mxu1 %v9164_v54 }
 0x618   :  { %v9404_v60 = vpop.eup %9403  ;;  %v4902_v52 = vmul.f32 %v9402_v30, %v10743_v39  ;;  %4949 = vst.msk [vmem:[#allocation26 + $0x50] sm:$0xf] %vm4928_vm4, %v4924_v16  ;;  %7033 = vmatpush1.bf16.msra.mxu1 %v9162_v45  ;;  %v9165_v30 = vld [vmem:[#allocation19 + $0x100] ss:$16 sps:$4 sm:$0xff]  }
 0x619   :  { %v4894_v37 = vmul.f32 %v9404_v60, %v10745_v49  ;;  %v9167_v60 = vld [vmem:[#allocation19 + $0x104] ss:$16 sps:$4 sm:$0xff]  }
 0x61a   :  { %v4926_v41 = vpack.c.bf16 %v4902_v52, %v4902_v52 }
 0x61b   :  { %v4918_v28 = vpack.c.bf16 %v4894_v37, %v4894_v37 }
 0x61c   :  { %4951 = vst.msk [vmem:[#allocation26 + $0x58] sm:$0xf] %vm4928_vm4, %v4926_v41 }
 0x61d   :  { %4943 = vst.msk [vmem:[#allocation26 + $0x38] sm:$0xf] %vm4928_vm4, %v4918_v28  ;;  %8310 = vmatmul.mubr.msk.bf16.vlgmr.msra.gmra.mrb[100].mxu0 %vm4639_vm3, %v4918_v28  ;;  %v9170_v28 = vld [vmem:[#allocation19 + $0x10c] ss:$16 sps:$4 sm:$0xff]  }
 0x61e   :  { %8320 = vmatpush3.bf16.msra.mxu0 %v5694_v12  ;;  %8321 = vmatprep.mubr.msk.bf16.mxu0 %vm9816_vm0, %v9815_v55 }
 0x61f   :  { %8331 = vmatprep.subr.bf16.mxu0 %v9815_v55  ;;  %7034 = vmatprep.subr.bf16.mxu1 %v9170_v28 }
 0x625   :  { %8322 = vmatmul.mubr.msk.bf16.vlgmr.msra.gmra.mrb[104].mxu0 %vm4639_vm3, %v4920_v8 }
 0x626   :  { %8332 = vmatpush3.bf16.msra.mxu0 %v5786_v29  ;;  %8333 = vmatprep.mubr.msk.bf16.mxu0 %vm9816_vm0, %v9815_v55  ;;  %v9173_v29 = vld [vmem:[#allocation19 + $0x124] ss:$16 sps:$4 sm:$0xff]  }
 0x627   :  { %8343 = vmatprep.subr.bf16.mxu0 %v9815_v55 }
 0x62d   :  { %8334 = vmatmul.mubr.msk.bf16.vlgmr.msra.gmra.mrb[108].mxu0 %vm4639_vm3, %v4922_v23 }
 0x62e   :  { %8344 = vmatpush3.bf16.msra.mxu0 %v5878_v3  ;;  %8345 = vmatprep.mubr.msk.bf16.mxu0 %vm9816_vm0, %v9815_v55 }
 0x62f   :  { %8355 = vmatprep.subr.bf16.mxu0 %v9815_v55 }
 0x635   :  { %v10894_v39 = vpop.f32.mrb[72].mxu1  ;;  %8346 = vmatmul.mubr.msk.bf16.vlgmr.msra.gmra.mrb[112].mxu0 %vm4639_vm3, %v4924_v16 }
 0x636   :  { %8356 = vmatpush3.bf16.msra.mxu0 %v5970_v32  ;;  %v8233_v49 = vpop.f32.mrb[73].mxu1  ;;  %8357 = vmatprep.mubr.msk.bf16.mxu0 %vm9816_vm0, %v9815_v55  ;;  %v9126_v55 = vld [vmem:[#allocation19 + $0x20] ss:$16 sps:$4 sm:$0xff]   ;;  %v9176_v32 = vld [vmem:[#allocation19 + $0x12c] ss:$16 sps:$4 sm:$0xff]  }
 0x637   :  { %v5043_v36 = vpop.f32.mrb[74].mxu1  ;;  %6916 = vmatprep.subr.bf16.mxu0 %v9119_v34  ;;  %v9171_v49 = vld [vmem:[#allocation19 + $0x120] ss:$16 sps:$4 sm:$0xff]   ;;  %v9180_v34 = vld [vmem:[#allocation19 + $0x148] ss:$16 sps:$4 sm:$0xff]  }
 0x638   :  { %v8234_v2 = vpop.f32.mrb[75].mxu1  ;;  %v9174_v36 = vld [vmem:[#allocation19 + $0x128] ss:$16 sps:$4 sm:$0xff]  }
 0x639   :  { %v9179_v2 = vld [vmem:[#allocation19 + $0x144] ss:$16 sps:$4 sm:$0xff]  }
 0x63d   :  { %8358 = vmatmul.mubr.msk.bf16.vlgmr.msra.gmra.mrb[116].mxu0 %vm4639_vm3, %v4926_v41  ;;  %v10900_v22 = vpop.f32.mrb[76].mxu1  ;;  %v9168_v41 = vld [vmem:[#allocation19 + $0x108] ss:$16 sps:$4 sm:$0xff]  }
 0x63e   :  { %v8245_v63 = vpop.f32.mrb[77].mxu1  ;;  %6917 = vmatpush1.bf16.msra.mxu0 %v9117_v53  ;;  %7035 = vmatpush1.bf16.msra.mxu1 %v9168_v41  ;;  %v9182_v53 = vld [vmem:[#allocation19 + $0x14c] ss:$16 sps:$4 sm:$0xff]  }
 0x63f   :  { %v5135_v21 = vpop.f32.mrb[78].mxu1  ;;  %6918 = vmatprep.subr.bf16.mxu0 %v9128_v11  ;;  %7036 = vmatprep.subr.bf16.mxu1 %v9176_v32  ;;  %v9183_v63 = vld [vmem:[#allocation19 + $0x160] ss:$16 sps:$4 sm:$0xff]   ;;  %v9194_v11 = vld [vmem:[#allocation19 + $0x18c] ss:$16 sps:$4 sm:$0xff]  }
 0x640   :  { %v8246_v1 = vpop.f32.mrb[79].mxu1  ;;  %v9186_v21 = vld [vmem:[#allocation19 + $0x168] ss:$16 sps:$4 sm:$0xff]  }
 0x641   :  { %v9189_v1 = vld [vmem:[#allocation19 + $0x180] ss:$16 sps:$4 sm:$0xff]  }
 0x642   :  { %6919 = vmatpush1.bf16.msra.mxu0 %v9126_v55  ;;  %7037 = vmatpush1.bf16.msra.mxu1 %v9174_v36 }
 0x643   :  { %6920 = vmatprep.subr.bf16.mxu0 %v9131_v15  ;;  %7038 = vmatprep.subr.bf16.mxu1 %v9182_v53 }
 0x646   :  { %6921 = vmatpush1.bf16.msra.mxu0 %v9129_v20  ;;  %7039 = vmatpush1.bf16.msra.mxu1 %v9180_v34  ;;  %v9200_v20 = vld [vmem:[#allocation19 + $0x1ac] ss:$16 sps:$4 sm:$0xff]  }
 0x647   :  { %6922 = vmatprep.subr.bf16.mxu0 %v9137_v38  ;;  %7040 = vmatprep.subr.bf16.mxu1 %v9188_v5  ;;  %v9195_v38 = vld [vmem:[#allocation19 + $0x1a0] ss:$16 sps:$4 sm:$0xff]  }
 0x64a   :  { %6923 = vmatpush1.bf16.msra.mxu0 %v9135_v14  ;;  %7041 = vmatpush1.bf16.msra.mxu1 %v9186_v21  ;;  %v9201_v14 = vld [vmem:[#allocation19 + $0x1c0] ss:$16 sps:$4 sm:$0xff]  }
 0x64b   :  { %6924 = vmatprep.subr.bf16.mxu0 %v9143_v46  ;;  %7042 = vmatprep.subr.bf16.mxu1 %v9194_v11  ;;  %v9204_v46 = vld [vmem:[#allocation19 + $0x1c8] ss:$16 sps:$4 sm:$0xff]  }
 0x64e   :  { %6925 = vmatpush1.bf16.msra.mxu0 %v9141_v47  ;;  %7043 = vmatpush1.bf16.msra.mxu1 %v9192_v4  ;;  %v9206_v47 = vld [vmem:[#allocation19 + $0x1cc] ss:$16 sps:$4 sm:$0xff]  }
 0x64f   :  { %6926 = vmatprep.subr.bf16.mxu0 %v9149_v17  ;;  %7044 = vmatprep.subr.bf16.mxu1 %v9200_v20 }
 0x651   :  { %v10902_v42 = vpop.f32.mrb[80].mxu1 }
 0x652   :  { %v8257_v19 = vpop.f32.mrb[81].mxu1  ;;  %6927 = vmatpush1.bf16.msra.mxu0 %v9147_v26  ;;  %7045 = vmatpush1.bf16.msra.mxu1 %v9198_v61  ;;  %v9212_v26 = vld [vmem:[#allocation19 + $0x1ec] ss:$16 sps:$4 sm:$0xff]  }
 0x653   :  { %v5227_v59 = vpop.f32.mrb[82].mxu1  ;;  %6928 = vmatprep.subr.bf16.mxu0 %v9155_v33  ;;  %7046 = vmatprep.subr.bf16.mxu1 %v9206_v47  ;;  %v9207_v19 = vld [vmem:[#allocation19 + $0x1e0] ss:$16 sps:$4 sm:$0xff]   ;;  %v9215_v33 = vld [vmem:[#allocation19 + $0x204] ss:$16 sps:$4 sm:$0xff]  }
 0x654   :  { %v8258_v9 = vpop.f32.mrb[83].mxu1  ;;  %v9209_v59 = vld [vmem:[#allocation19 + $0x1e4] ss:$16 sps:$4 sm:$0xff]  }
 0x655   :  { %v9210_v9 = vld [vmem:[#allocation19 + $0x1e8] ss:$16 sps:$4 sm:$0xff]  }
 0x656   :  { %6929 = vmatpush1.bf16.msra.mxu0 %v9153_v50  ;;  %7047 = vmatpush1.bf16.msra.mxu1 %v9204_v46 }
 0x657   :  { %6930 = vmatprep.subr.bf16.mxu0 %v9161_v25  ;;  %7048 = vmatprep.subr.bf16.mxu1 %v9212_v26 }
 0x659   :  { %v10904_v27 = vpop.f32.mrb[84].mxu1 }
 0x65a   :  { %v8269_v44 = vpop.f32.mrb[85].mxu1  ;;  %6931 = vmatpush1.bf16.msra.mxu0 %v9159_v18  ;;  %7049 = vmatpush1.bf16.msra.mxu1 %v9210_v9 }
 0x65b   :  { %v5319_v8 = vpop.f32.mrb[86].mxu1  ;;  %6932 = vmatprep.subr.bf16.mxu0 %v9167_v60  ;;  %v9218_v44 = vld [vmem:[#allocation19 + $0x20c] ss:$16 sps:$4 sm:$0xff]  }
 0x65c   :  { %v8270_v23 = vpop.f32.mrb[87].mxu1  ;;  %7069 = vmatprep.subr.bf16.mxu1 %v9218_v44 }
 0x65e   :  { %6933 = vmatpush1.bf16.msra.mxu0 %v9165_v30 }
 0x65f   :  { %6934 = vmatprep.subr.bf16.mxu0 %v9173_v29 }
 0x661   :  { %v5408_v16 = vpop.f32.mrb[88].mxu1 }
 0x662   :  { %v8496_v52 = vpack.i.bf16 %v5408_v16, %v10894_v39  ;;  %v8281_v37 = vpop.f32.mrb[89].mxu1  ;;  %6935 = vmatpush1.bf16.msra.mxu0 %v9171_v49  ;;  %v9177_v39 = vld [vmem:[#allocation19 + $0x140] ss:$16 sps:$4 sm:$0xff]  }
 0x663   :  { %v5411_v12 = vpop.f32.mrb[90].mxu1  ;;  %6936 = vmatprep.subr.bf16.mxu0 %v9179_v2 }
 0x664   :  { %8497 = vrot.lane.b32.xlu1 %v8496_v52, %s9799_s1  ;;  %v8282_v3 = vpop.f32.mrb[91].mxu1 }
 0x666   :  { %6937 = vmatpush1.bf16.msra.mxu0 %v9177_v39 }
 0x667   :  { %6938 = vmatprep.subr.bf16.mxu0 %v9185_v24 }
 0x66a   :  { %6939 = vmatpush1.bf16.msra.mxu0 %v9183_v63 }
 0x66b   :  { %6940 = vmatprep.subr.bf16.mxu0 %v9191_v51 }
 0x66e   :  { %6941 = vmatpush1.bf16.msra.mxu0 %v9189_v1 }
 0x66f   :  { %6942 = vmatprep.subr.bf16.mxu0 %v9197_v43 }
 0x672   :  { %v10908_v55 = vpop.f32.mrb[76].mxu0  ;;  %6943 = vmatpush1.bf16.msra.mxu0 %v9195_v38 }
 0x673   :  { %v8239_v15 = vpop.f32.mrb[77].mxu0  ;;  %6944 = vmatprep.subr.bf16.mxu0 %v9203_v48 }
 0x674   :  { %v5089_v62 = vpop.f32.mrb[78].mxu0 }
 0x675   :  { %v8240_v13 = vpop.f32.mrb[79].mxu0 }
 0x676   :  { %6945 = vmatpush1.bf16.msra.mxu0 %v9201_v14 }
 0x677   :  { %6946 = vmatprep.subr.bf16.mxu0 %v9209_v59 }
 0x67a   :  { %v10910_v7 = vpop.f32.mrb[80].mxu0  ;;  %6947 = vmatpush1.bf16.msra.mxu0 %v9207_v19 }
 0x67b   :  { %v8251_v40 = vpop.f32.mrb[81].mxu0  ;;  %6967 = vmatprep.subr.bf16.mxu0 %v9215_v33 }
 0x67c   :  { %v5181_v17 = vpop.f32.mrb[82].mxu0 }
 0x67d   :  { %v8252_v58 = vpop.f32.mrb[83].mxu0 }
 0x682   :  { %v10912_v56 = vpop.f32.mrb[84].mxu0 }
 0x683   :  { %v8263_v50 = vpop.f32.mrb[85].mxu0 }
 0x684   :  { %v5273_v35 = vpop.f32.mrb[86].mxu0 }
 0x685   :  { %v8264_v8 = vpop.f32.mrb[87].mxu0 }
 0x686   :  { %v5500_v18 = vpop.f32.mrb[92].mxu1 }
 0x687   :  { %v8491_v25 = vpack.i.bf16 %v5500_v18, %v10900_v22  ;;  %v8293_v23 = vpop.f32.mrb[93].mxu1 }
 0x688   :  { %v5503_v45 = vpop.f32.mrb[94].mxu1 }
 0x689   :  { %8492 = vrot.lane.b32.xlu0 %v8491_v25, %s9799_s1  ;;  %v8294_v54 = vpop.f32.mrb[95].mxu1 }
 0x68a   :  { %v5362_v16 = vpop.f32.mrb[88].mxu0 }
 0x68b   :  { %v8275_v30 = vpop.f32.mrb[89].mxu0 }
 0x68c   :  { %v5365_v60 = vpop.f32.mrb[90].mxu0 }
 0x68d   :  { %v8276_v52 = vpop.f32.mrb[91].mxu0 }
 0x68e   :  { %v9213_v52 = vld [vmem:[#allocation19 + $0x200] ss:$16 sps:$4 sm:$0xff]  }
 0x692   :  { %v5454_v37 = vpop.f32.mrb[92].mxu0 }
 0x693   :  { %v8287_v41 = vpop.f32.mrb[93].mxu0 }
 0x694   :  { %v5457_v28 = vpop.f32.mrb[94].mxu0  ;;  %v9216_v41 = vld [vmem:[#allocation19 + $0x208] ss:$16 sps:$4 sm:$0xff]  }
 0x695   :  { %v8288_v12 = vpop.f32.mrb[95].mxu0 }
 0x696   :  { %v9221_v12 = vld [vmem:[#allocation19 + $0x224] ss:$16 sps:$4 sm:$0xff]  }
 0x69a   :  { %v5592_v29 = vpop.f32.mrb[96].mxu1 }
 0x69b   :  { %v8511_v3 = vpack.i.bf16 %v5592_v29, %v10902_v42  ;;  %v8305_v32 = vpop.f32.mrb[97].mxu1  ;;  %v9224_v29 = vld [vmem:[#allocation19 + $0x22c] ss:$16 sps:$4 sm:$0xff]  }
 0x69c   :  { %v5595_v49 = vpop.f32.mrb[98].mxu1 }
 0x69d   :  { %v8306_v36 = vpop.f32.mrb[99].mxu1 }
 0x69e   :  { %v9219_v36 = vld [vmem:[#allocation19 + $0x220] ss:$16 sps:$4 sm:$0xff]  }
 0x6a2   :  { %v5684_v22 = vpop.f32.mrb[100].mxu1 }
 0x6a3   :  { %v8506_v2 = vpack.i.bf16 %v5684_v22, %v10904_v27  ;;  %v8317_v53 = vpop.f32.mrb[101].mxu1  ;;  %v9230_v22 = vld [vmem:[#allocation19 + $0x24c] ss:$16 sps:$4 sm:$0xff]  }
 0x6a4   :  { %v5687_v39 = vpop.f32.mrb[102].mxu1  ;;  %v9228_v53 = vld [vmem:[#allocation19 + $0x248] ss:$16 sps:$4 sm:$0xff]  }
 0x6a5   :  { %v8318_v34 = vpop.f32.mrb[103].mxu1 }
 0x6a6   :  { %v9233_v34 = vld [vmem:[#allocation19 + $0x264] ss:$16 sps:$4 sm:$0xff]  }
 0x6aa   :  { %v5776_v24 = vpop.f32.mrb[104].mxu1 }
 0x6ab   :  { %v8329_v5 = vpop.f32.mrb[105].mxu1 }
 0x6ac   :  { %v5779_v63 = vpop.f32.mrb[106].mxu1 }
 0x6ad   :  { %v8330_v21 = vpop.f32.mrb[107].mxu1 }
 0x6b2   :  { %v5868_v1 = vpop.f32.mrb[108].mxu1 }
 0x6b3   :  { %v8501_v51 = vpack.i.bf16 %v5776_v24, %v5868_v1  ;;  %v8341_v4 = vpop.f32.mrb[109].mxu1  ;;  %v9236_v24 = vld [vmem:[#allocation19 + $0x26c] ss:$16 sps:$4 sm:$0xff]   ;;  %v9231_v1 = vld [vmem:[#allocation19 + $0x260] ss:$16 sps:$4 sm:$0xff]  }
 0x6b4   :  { %v5871_v11 = vpop.f32.mrb[110].mxu1  ;;  %v9239_v4 = vld [vmem:[#allocation19 + $0x284] ss:$16 sps:$4 sm:$0xff]  }
 0x6b5   :  { %8502 = vrot.lane.b32.xlu0 %v8501_v51, %s9799_s1  ;;  %v8342_v42 = vpop.f32.mrb[111].mxu1  ;;  %v9234_v51 = vld [vmem:[#allocation19 + $0x268] ss:$16 sps:$4 sm:$0xff]   ;;  %v9242_v11 = vld [vmem:[#allocation19 + $0x28c] ss:$16 sps:$4 sm:$0xff]  }
 0x6b6   :  { %v9237_v42 = vld [vmem:[#allocation19 + $0x280] ss:$16 sps:$4 sm:$0xff]  }
 0x6b9   :  { %8507 = vrot.lane.b32.xlu0 %v8506_v2, %s9799_s1  ;;  %v9225_v2 = vld [vmem:[#allocation19 + $0x240] ss:$16 sps:$4 sm:$0xff]  }
 0x6ba   :  { %v5960_v15 = vpop.f32.mrb[112].mxu1 }
 0x6bb   :  { %v8353_v43 = vpop.f32.mrb[113].mxu1 }
 0x6bc   :  { %v5963_v62 = vpop.f32.mrb[114].mxu1 }
 0x6bd   :  { %8512 = vrot.lane.b32.xlu0 %v8511_v3, %s9799_s1  ;;  %v8354_v27 = vpop.f32.mrb[115].mxu1  ;;  %v9245_v62 = vld [vmem:[#allocation19 + $0x2a4] ss:$16 sps:$4 sm:$0xff]  }
 0x6be   :  { %v9248_v27 = vld [vmem:[#allocation19 + $0x2ac] ss:$16 sps:$4 sm:$0xff]  }
 0x6c2   :  { %v6052_v20 = vpop.f32.mrb[116].mxu1 }
 0x6c3   :  { %v8516_v13 = vpack.i.bf16 %v5960_v15, %v6052_v20  ;;  %v8365_v38 = vpop.f32.mrb[117].mxu1  ;;  %v9240_v15 = vld [vmem:[#allocation19 + $0x288] ss:$16 sps:$4 sm:$0xff]  }
 0x6c4   :  { %v6055_v61 = vpop.f32.mrb[118].mxu1 }
 0x6c5   :  { %8517 = vrot.lane.b32.xlu1 %v8516_v13, %s9799_s1  ;;  %v8366_v14 = vpop.f32.mrb[119].mxu1  ;;  %v9243_v61 = vld [vmem:[#allocation19 + $0x2a0] ss:$16 sps:$4 sm:$0xff]  }
 0x6c6   :  { %v9246_v14 = vld [vmem:[#allocation19 + $0x2a8] ss:$16 sps:$4 sm:$0xff]  }
 0x6d6   :  { %v8498_v48 = vpop.permute.xlu1 %8497 }
 0x6d7   :  { %v8500_v46 = vunpack.i.h.bf16 %v8498_v48  ;;  %v8499_v47 = vunpack.i.l.bf16 %v8498_v48  ;;  %v9251_v48 = vld [vmem:[#allocation19 + $0x2c4] ss:$16 sps:$4 sm:$0xff]  }
 0x6d9   :  { %v6106_v40 = vsel %vm3504_vm1, %v10853_v57, %v8499_v47  ;;  %v6107_v17 = vsel %vm3504_vm1, %v5362_v16, %v8500_v46  ;;  %v9254_v46 = vld [vmem:[#allocation19 + $0x2cc] ss:$16 sps:$4 sm:$0xff]   ;;  %v9249_v47 = vld [vmem:[#allocation19 + $0x2c0] ss:$16 sps:$4 sm:$0xff]  }
 0x6da   :  { %v6118_v19 = vpack.c.bf16 %v6107_v17, %v6106_v40  ;;  %v9252_v40 = vld [vmem:[#allocation19 + $0x2c8] ss:$16 sps:$4 sm:$0xff]   ;;  %v9257_v17 = vld [vmem:[#allocation19 + $0x2e4] ss:$16 sps:$4 sm:$0xff]  }
 0x6df   :  { %v10925_v59 = vpop.f32.mrb[96].mxu0 }
 0x6e0   :  { %v8299_v58 = vpop.f32.mrb[97].mxu0 }
 0x6e1   :  { %v5549_v9 = vpop.f32.mrb[98].mxu0  ;;  %v9255_v58 = vld [vmem:[#allocation19 + $0x2e0] ss:$16 sps:$4 sm:$0xff]  }
 0x6e2   :  { %v8300_v26 = vpop.f32.mrb[99].mxu0  ;;  %v9258_v9 = vld [vmem:[#allocation19 + $0x2e8] ss:$16 sps:$4 sm:$0xff]  }
 0x6e3   :  { %v9263_v26 = vld [vmem:[#allocation19 + $0x304] ss:$16 sps:$4 sm:$0xff]  }
 0x6f0   :  { %v10927_v33 = vpop.f32.mrb[100].mxu0 }
 0x6f1   :  { %v8311_v44 = vpop.f32.mrb[101].mxu0 }
 0x6f2   :  { %v5641_v50 = vpop.f32.mrb[102].mxu0  ;;  %v9266_v44 = vld [vmem:[#allocation19 + $0x30c] ss:$16 sps:$4 sm:$0xff]  }
 0x6f3   :  { %v8312_v35 = vpop.f32.mrb[103].mxu0  ;;  %v9261_v50 = vld [vmem:[#allocation19 + $0x300] ss:$16 sps:$4 sm:$0xff]  }
 0x6f4   :  { %v9264_v35 = vld [vmem:[#allocation19 + $0x308] ss:$16 sps:$4 sm:$0xff]  }
 0x6f8   :  { %v10929_v8 = vpop.f32.mrb[104].mxu0 }
 0x6f9   :  { %v8323_v18 = vpop.f32.mrb[105].mxu0 }
 0x6fa   :  { %v5733_v25 = vpop.f32.mrb[106].mxu0  ;;  %v9269_v18 = vld [vmem:[#allocation19 + $0x324] ss:$16 sps:$4 sm:$0xff]  }
 0x6fb   :  { %v8493_v23 = vpop.permute.xlu0 %8492  ;;  %v8324_v45 = vpop.f32.mrb[107].mxu0  ;;  %v9272_v25 = vld [vmem:[#allocation19 + $0x32c] ss:$16 sps:$4 sm:$0xff]  }
 0x6fc   :  { %v8495_v57 = vunpack.i.h.bf16 %v8493_v23  ;;  %v8494_v54 = vunpack.i.l.bf16 %v8493_v23  ;;  %v9267_v23 = vld [vmem:[#allocation19 + $0x320] ss:$16 sps:$4 sm:$0xff]   ;;  %v9270_v45 = vld [vmem:[#allocation19 + $0x328] ss:$16 sps:$4 sm:$0xff]  }
 0x6fe   :  { %v6109_v16 = vsel %vm3504_vm1, %v10908_v55, %v8494_v54  ;;  %v6110_v30 = vsel %vm3504_vm1, %v5454_v37, %v8495_v57  ;;  %v9222_v55 = vld [vmem:[#allocation19 + $0x228] ss:$16 sps:$4 sm:$0xff]   ;;  %v9227_v37 = vld [vmem:[#allocation19 + $0x244] ss:$16 sps:$4 sm:$0xff]   ;;  %v9278_v54 = vld [vmem:[#allocation19 + $0x34c] ss:$16 sps:$4 sm:$0xff]  }
 0x6ff   :  { %v6119_v60 = vpack.c.bf16 %v6110_v30, %v6109_v16  ;;  %v9275_v57 = vld [vmem:[#allocation19 + $0x344] ss:$16 sps:$4 sm:$0xff]   ;;  %v9273_v30 = vld [vmem:[#allocation19 + $0x340] ss:$16 sps:$4 sm:$0xff]  }
 0x700   :  { %v10934_v28 = vpop.f32.mrb[108].mxu0 }
 0x701   :  { %v8335_v3 = vpop.f32.mrb[109].mxu0  ;;  %6948 = vmatprep.mubr.bf16.mxu0 %v6119_v60  ;;  %7050 = vmatprep.mubr.bf16.mxu1 %v6119_v60  ;;  %v9276_v60 = vld [vmem:[#allocation19 + $0x348] ss:$16 sps:$4 sm:$0xff]  }
 0x702   :  { %v5825_v32 = vpop.f32.mrb[110].mxu0  ;;  %6949 = vmatmul.mubr.bf16.vlgmr.msra.gmra.mrb[120].mxu0 %v6118_v19  ;;  %7051 = vmatmul.mubr.bf16.vlgmr.msra.gmra.mrb[120].mxu1 %v6118_v19  ;;  %v9260_v19 = vld [vmem:[#allocation19 + $0x2ec] ss:$16 sps:$4 sm:$0xff]  }
 0x703   :  { %6968 = vmatpush1.bf16.msra.mxu0 %v9213_v52  ;;  %7070 = vmatpush1.bf16.msra.mxu1 %v9216_v41  ;;  %v8336_v49 = vpop.f32.mrb[111].mxu0 }
 0x704   :  { %6969 = vmatprep.subr.bf16.mxu0 %v9221_v12  ;;  %7071 = vmatprep.subr.bf16.mxu1 %v9224_v29  ;;  %v9281_v12 = vld [vmem:[#allocation19 + $0x364] ss:$16 sps:$4 sm:$0xff]   ;;  %v9284_v29 = vld [vmem:[#allocation19 + $0x36c] ss:$16 sps:$4 sm:$0xff]  }
 0x707   :  { %6970 = vmatpush1.bf16.msra.mxu0 %v9219_v36  ;;  %7072 = vmatpush1.bf16.msra.mxu1 %v9222_v55  ;;  %v9279_v55 = vld [vmem:[#allocation19 + $0x360] ss:$16 sps:$4 sm:$0xff]  }
 0x708   :  { %v10936_v39 = vpop.f32.mrb[112].mxu0  ;;  %6971 = vmatprep.subr.bf16.mxu0 %v9227_v37  ;;  %7073 = vmatprep.subr.bf16.mxu1 %v9230_v22  ;;  %v9282_v37 = vld [vmem:[#allocation19 + $0x368] ss:$16 sps:$4 sm:$0xff]  }
 0x709   :  { %v8347_v5 = vpop.f32.mrb[113].mxu0 }
 0x70a   :  { %v5917_v63 = vpop.f32.mrb[114].mxu0 }
 0x70b   :  { %6972 = vmatpush1.bf16.msra.mxu0 %v9225_v2  ;;  %7074 = vmatpush1.bf16.msra.mxu1 %v9228_v53  ;;  %v8348_v21 = vpop.f32.mrb[115].mxu0  ;;  %v9285_v63 = vld [vmem:[#allocation19 + $0x380] ss:$16 sps:$4 sm:$0xff]  }
 0x70c   :  { %6973 = vmatprep.subr.bf16.mxu0 %v9233_v34  ;;  %7075 = vmatprep.subr.bf16.mxu1 %v9236_v24  ;;  %v9287_v34 = vld [vmem:[#allocation19 + $0x384] ss:$16 sps:$4 sm:$0xff]   ;;  %v9290_v24 = vld [vmem:[#allocation19 + $0x38c] ss:$16 sps:$4 sm:$0xff]  }
 0x70f   :  { %6974 = vmatpush1.bf16.msra.mxu0 %v9231_v1  ;;  %7076 = vmatpush1.bf16.msra.mxu1 %v9234_v51  ;;  %v9288_v1 = vld [vmem:[#allocation19 + $0x388] ss:$16 sps:$4 sm:$0xff]  }
 0x710   :  { %v10938_v43 = vpop.f32.mrb[116].mxu0  ;;  %6975 = vmatprep.subr.bf16.mxu0 %v9239_v4  ;;  %7077 = vmatprep.subr.bf16.mxu1 %v9242_v11  ;;  %v9293_v11 = vld [vmem:[#allocation19 + $0x3a4] ss:$16 sps:$4 sm:$0xff]  }
 0x711   :  { %v8359_v20 = vpop.f32.mrb[117].mxu0 }
 0x712   :  { %v6009_v13 = vpop.f32.mrb[118].mxu0  ;;  %v9299_v20 = vld [vmem:[#allocation19 + $0x3c4] ss:$16 sps:$4 sm:$0xff]  }
 0x713   :  { %6976 = vmatpush1.bf16.msra.mxu0 %v9237_v42  ;;  %7078 = vmatpush1.bf16.msra.mxu1 %v9240_v15  ;;  %v8360_v38 = vpop.f32.mrb[119].mxu0  ;;  %v9296_v42 = vld [vmem:[#allocation19 + $0x3ac] ss:$16 sps:$4 sm:$0xff]  }
 0x714   :  { %6977 = vmatprep.subr.bf16.mxu0 %v9245_v62  ;;  %7079 = vmatprep.subr.bf16.mxu1 %v9248_v27  ;;  %v9291_v62 = vld [vmem:[#allocation19 + $0x3a0] ss:$16 sps:$4 sm:$0xff]   ;;  %v9294_v27 = vld [vmem:[#allocation19 + $0x3a8] ss:$16 sps:$4 sm:$0xff]   ;;  %v9302_v13 = vld [vmem:[#allocation19 + $0x3cc] ss:$16 sps:$4 sm:$0xff]  }
 0x717   :  { %6978 = vmatpush1.bf16.msra.mxu0 %v9243_v61  ;;  %7080 = vmatpush1.bf16.msra.mxu1 %v9246_v14  ;;  %v9297_v61 = vld [vmem:[#allocation19 + $0x3c0] ss:$16 sps:$4 sm:$0xff]   ;;  %v9300_v14 = vld [vmem:[#allocation19 + $0x3c8] ss:$16 sps:$4 sm:$0xff]  }
 0x718   :  { %6979 = vmatprep.subr.bf16.mxu0 %v9251_v48  ;;  %7081 = vmatprep.subr.bf16.mxu1 %v9254_v46  ;;  %v9308_v48 = vld [vmem:[#allocation19 + $0x3ec] ss:$16 sps:$4 sm:$0xff]  }
 0x71b   :  { %6980 = vmatpush1.bf16.msra.mxu0 %v9249_v47  ;;  %7082 = vmatpush1.bf16.msra.mxu1 %v9252_v40  ;;  %v9306_v47 = vld [vmem:[#allocation19 + $0x3e8] ss:$16 sps:$4 sm:$0xff]  }
 0x71c   :  { %6981 = vmatprep.subr.bf16.mxu0 %v9257_v17  ;;  %7083 = vmatprep.subr.bf16.mxu1 %v9260_v19 }
 0x71f   :  { %6982 = vmatpush1.bf16.msra.mxu0 %v9255_v58  ;;  %7084 = vmatpush1.bf16.msra.mxu1 %v9258_v9 }
 0x720   :  { %6983 = vmatprep.subr.bf16.mxu0 %v9263_v26  ;;  %7085 = vmatprep.subr.bf16.mxu1 %v9266_v44 }
 0x723   :  { %6984 = vmatpush1.bf16.msra.mxu0 %v9261_v50  ;;  %7086 = vmatpush1.bf16.msra.mxu1 %v9264_v35 }
 0x724   :  { %6985 = vmatprep.subr.bf16.mxu0 %v9269_v18  ;;  %7087 = vmatprep.subr.bf16.mxu1 %v9272_v25 }
 0x727   :  { %6986 = vmatpush1.bf16.msra.mxu0 %v9267_v23  ;;  %7088 = vmatpush1.bf16.msra.mxu1 %v9270_v45  ;;  %v8503_v16 = vpop.permute.xlu0 %8502  ;;  %v6254_v45 = vld [vmem:[#allocation20] sm:$0xf] }
 0x728   :  { %v8505_v52 = vunpack.i.h.bf16 %v8503_v16  ;;  %v8504_v41 = vunpack.i.l.bf16 %v8503_v16  ;;  %6987 = vmatprep.subr.bf16.mxu0 %v9275_v57  ;;  %7089 = vmatprep.subr.bf16.mxu1 %v9278_v54  ;;  %v6259_v57 = vrot.slane %v6254_v45, %v10121_v0  ;;  %v6267_v54 = vrot.slane %v6254_v45, %v10134_v10 }
 0x729   :  { %v6263_v16 = vrot.slane %v6254_v45, %v10123_v6 }
 0x72a   :  { %v6111_v3 = vsel %vm3504_vm1, %v10934_v28, %v8504_v41  ;;  %v6108_v32 = vsel %vm3504_vm1, %v10929_v8, %v8505_v52 }
 0x72b   :  { %6988 = vmatpush1.bf16.msra.mxu0 %v9273_v30  ;;  %7090 = vmatpush1.bf16.msra.mxu1 %v9276_v60  ;;  %v8508_v49 = vpop.permute.xlu0 %8507  ;;  %v6123_v36 = vpack.c.bf16 %v6111_v3, %v6111_v3  ;;  %v6122_v22 = vpack.c.bf16 %v6108_v32, %v6108_v32 }
 0x72c   :  { %v8510_v2 = vunpack.i.h.bf16 %v8508_v49  ;;  %v8509_v53 = vunpack.i.l.bf16 %v8508_v49  ;;  %6989 = vmatprep.subr.bf16.mxu0 %v9281_v12  ;;  %7091 = vmatprep.subr.bf16.mxu1 %v9284_v29  ;;  %v6271_v12 = vrot.slane %v6254_v45, %v10151_v31  ;;  %v9420_v45 = vld [vmem:[#allocation2 + $0x48] sm:$0xff] }
 0x72d   :  { %6958 = vmatprep.mubr.bf16.mxu0 %v6123_v36  ;;  %7060 = vmatprep.mubr.bf16.mxu1 %v6123_v36  ;;  %v9411_v36 = vld [vmem:[#allocation2] sm:$0xff] }
 0x72e   :  { %6959 = vmatmul.mubr.bf16.gmra.mrb[124].mxu0 %v6122_v22  ;;  %7061 = vmatmul.mubr.bf16.gmra.mrb[124].mxu1 %v6122_v22  ;;  %v6115_v8 = vsel %vm3504_vm1, %v10912_v56, %v8509_v53  ;;  %v6116_v28 = vsel %vm3504_vm1, %v10927_v33, %v8510_v2  ;;  %v9412_v53 = vld [vmem:[#allocation2 + $0x8] sm:$0xff] }
 0x72f   :  { %6990 = vmatpush1.bf16.msra.mxu0 %v9279_v55  ;;  %7092 = vmatpush1.bf16.msra.mxu1 %v9282_v37  ;;  %v8513_v5 = vpop.permute.xlu0 %8512  ;;  %v6121_v21 = vpack.c.bf16 %v6116_v28, %v6115_v8 }
 0x730   :  { %v8515_v51 = vunpack.i.h.bf16 %v8513_v5  ;;  %v8514_v4 = vunpack.i.l.bf16 %v8513_v5  ;;  %6991 = vmatprep.subr.bf16.mxu0 %v9287_v34  ;;  %7093 = vmatprep.subr.bf16.mxu1 %v9290_v24  ;;  %v9413_v5 = vld [vmem:[#allocation2 + $0x20] sm:$0xff] }
 0x731   :  { %6999 = vmatprep.mubr.bf16.mxu0 %v6121_v21  ;;  %7101 = vmatprep.mubr.bf16.mxu1 %v6121_v21 }
 0x732   :  { %v6112_v56 = vsel %vm3504_vm1, %v10910_v7, %v8514_v4  ;;  %v6113_v33 = vsel %vm3504_vm1, %v10925_v59, %v8515_v51  ;;  %v9305_v7 = vld [vmem:[#allocation19 + $0x3e4] ss:$16 sps:$4 sm:$0xff]   ;;  %v9303_v59 = vld [vmem:[#allocation19 + $0x3e0] ss:$16 sps:$4 sm:$0xff]  }
 0x733   :  { %v6120_v15 = vpack.c.bf16 %v6113_v33, %v6112_v56  ;;  %6992 = vmatpush1.bf16.msra.mxu0 %v9285_v63  ;;  %7094 = vmatpush1.bf16.msra.mxu1 %v9288_v1  ;;  %v9414_v1 = vld [vmem:[#allocation2 + $0x10] sm:$0xff] }
 0x734   :  { %6993 = vmatprep.subr.bf16.mxu0 %v9293_v11  ;;  %7095 = vmatprep.subr.bf16.mxu1 %v9296_v42  ;;  %v9415_v11 = vld [vmem:[#allocation2 + $0x28] sm:$0xff] }
 0x737   :  { %6994 = vmatpush1.bf16.msra.mxu0 %v9291_v62  ;;  %7096 = vmatpush1.bf16.msra.mxu1 %v9294_v27  ;;  %v8518_v38 = vpop.permute.xlu1 %8517  ;;  %v9416_v27 = vld [vmem:[#allocation2 + $0x18] sm:$0xff] }
 0x738   :  { %6995 = vmatprep.subr.bf16.mxu0 %v9299_v20  ;;  %7097 = vmatprep.subr.bf16.mxu1 %v9302_v13  ;;  %v8519_v46 = vunpack.i.l.bf16 %v8518_v38  ;;  %v8520_v17 = vunpack.i.h.bf16 %v8518_v38  ;;  %v9417_v13 = vld [vmem:[#allocation2 + $0x30] sm:$0xff] }
 0x73a   :  { %v6117_v40 = vsel %vm3504_vm1, %v10938_v43, %v8519_v46  ;;  %v6114_v58 = vsel %vm3504_vm1, %v10936_v39, %v8520_v17  ;;  %v9418_v46 = vld [vmem:[#allocation2 + $0x38] sm:$0xff] }
 0x73b   :  { %6996 = vmatpush1.bf16.msra.mxu0 %v9297_v61  ;;  %7098 = vmatpush1.bf16.msra.mxu1 %v9300_v14  ;;  %v6125_v19 = vpack.c.bf16 %v6117_v40, %v6117_v40  ;;  %v6124_v9 = vpack.c.bf16 %v6114_v58, %v6114_v58 }
 0x73c   :  { %6997 = vmatprep.subr.bf16.mxu0 %v9305_v7  ;;  %7099 = vmatprep.subr.bf16.mxu1 %v9308_v48 }
 0x73f   :  { %6998 = vmatpush1.bf16.msra.mxu0 %v9303_v59  ;;  %7100 = vmatpush1.bf16.msra.mxu1 %v9306_v47 }
 0x742   :  { %7000 = vmatmul.mubr.bf16.vlgmr.msra.gmra.mrb[120].mxu0 %v6120_v15  ;;  %7102 = vmatmul.mubr.bf16.vlgmr.msra.gmra.mrb[120].mxu1 %v6120_v15 }
 0x743   :  { %7009 = vmatprep.mubr.bf16.mxu0 %v6125_v19  ;;  %7111 = vmatprep.mubr.bf16.mxu1 %v6125_v19 }
 0x74a   :  { %7010 = vmatmul.mubr.bf16.gmra.mrb[128].mxu0 %v6124_v9  ;;  %7112 = vmatmul.mubr.bf16.gmra.mrb[128].mxu1 %v6124_v9 }
 0x801   :  { %v6960_v26 = vpop.f32.mrb[124].mxu0  ;;  %v7062_v44 = vpop.f32.mrb[124].mxu1 }
 0x802   :  { %v6962_v50 = vpop.f32.mrb[125].mxu0  ;;  %v7064_v35 = vpop.f32.mrb[125].mxu1  ;;  %v6961_v56 = vadd.f32 %v6960_v26, %v6259_v57  ;;  %v7063_v33 = vadd.f32 %v7062_v44, %v6267_v54 }
 0x803   :  { %v6964_v18 = vpop.f32.mrb[126].mxu0  ;;  %v7066_v43 = vpop.f32.mrb[126].mxu1  ;;  %v6963_v15 = vadd.f32 %v6962_v50, %v6263_v16  ;;  %v7065_v62 = vadd.f32 %v7064_v35, %v6271_v12 }
 0x804   :  { %v6965_v25 = vpop.f32.mrb[127].mxu0  ;;  %v7067_v23 = vpop.f32.mrb[127].mxu1  ;;  %v9419_v18 = vld [vmem:[#allocation2 + $0x40] sm:$0xff] }
 0x815   :  { %v7001_v30 = vpop.f32.mrb[120].mxu0  ;;  %v7103_v39 = vpop.f32.mrb[120].mxu1 }
 0x816   :  { %v8403_v60 = vadd.f32 %v7001_v30, %v6259_v57  ;;  %v7003_v52 = vpop.f32.mrb[121].mxu0  ;;  %v7105_v41 = vpop.f32.mrb[121].mxu1  ;;  %v8407_v29 = vadd.f32 %v7103_v39, %v6267_v54 }
 0x817   :  { %v8404_v3 = vadd.f32 %v7003_v52, %v6263_v16  ;;  %v7005_v32 = vpop.f32.mrb[122].mxu0  ;;  %v7107_v49 = vpop.f32.mrb[122].mxu1  ;;  %v8408_v24 = vadd.f32 %v7105_v41, %v6271_v12 }
 0x818   :  { %v7120_v55 = vadd.f32 %v9411_v36, %v8403_v60  ;;  %v8405_v37 = vadd.f32 %v7005_v32, %v6259_v57  ;;  %v7007_v22 = vpop.f32.mrb[123].mxu0  ;;  %v7109_v2 = vpop.f32.mrb[123].mxu1  ;;  %v8409_v8 = vadd.f32 %v7107_v49, %v6267_v54  ;;  %v7122_v51 = vadd.f32 %v9414_v1, %v8407_v29  ;;  %v9422_v60 = vld [vmem:[#allocation2 + $0x58] sm:$0xff] }
 0x819   :  { %v7121_v34 = vadd.f32 %v9412_v53, %v8404_v3  ;;  %v8406_v28 = vadd.f32 %v7007_v22, %v6263_v16  ;;  %v8410_v21 = vadd.f32 %v7109_v2, %v6271_v12  ;;  %v7123_v20 = vadd.f32 %v9416_v27, %v8408_v24  ;;  %v9421_v16 = vld [vmem:[#allocation2 + $0x50] sm:$0xff] }
 0x81a   :  { %v7124_v63 = vadd.f32 %v9413_v5, %v8405_v37  ;;  %v7126_v38 = vadd.f32 %v9417_v13, %v8409_v8 }
 0x81b   :  { %v7132_v4 = vadd.f32 %v7121_v34, %v7120_v55  ;;  %v7125_v42 = vadd.f32 %v9415_v11, %v8406_v28  ;;  %v7127_v59 = vadd.f32 %v9418_v46, %v8410_v21 }
 0x81d   :  { %v7137_v61 = vadd.f32 %v7125_v42, %v7124_v63  ;;  %v7011_v14 = vpop.f32.mrb[128].mxu0  ;;  %v7113_v7 = vpop.f32.mrb[128].mxu1  ;;  %v7133_v48 = vadd.f32 %v7132_v4, %v7122_v51 }
 0x81e   :  { %v7012_v47 = vadd.f32 %v7011_v14, %v6961_v56  ;;  %v7114_v40 = vadd.f32 %v7113_v7, %v7063_v33  ;;  %v7013_v17 = vpop.f32.mrb[129].mxu0  ;;  %v7115_v19 = vpop.f32.mrb[129].mxu1 }
 0x81f   :  { %v7014_v58 = vadd.f32 %v7013_v17, %v6963_v15  ;;  %v7116_v9 = vadd.f32 %v7115_v19, %v7065_v62  ;;  %v7015_v26 = vpop.f32.mrb[130].mxu0  ;;  %v7117_v44 = vpop.f32.mrb[130].mxu1  ;;  %v7134_v50 = vadd.f32 %v7133_v48, %v7123_v20  ;;  %v7138_v35 = vadd.f32 %v7137_v61, %v7126_v38 }
 0x820   :  { %v7128_v43 = vadd.f32 %v9419_v18, %v7012_v47  ;;  %v7016_v25 = vpop.f32.mrb[131].mxu0  ;;  %v7118_v23 = vpop.f32.mrb[131].mxu1  ;;  %v7130_v30 = vadd.f32 %v9421_v16, %v7114_v40 }
 0x821   :  { %v7129_v57 = vadd.f32 %v9420_v45, %v7014_v58  ;;  %7135 = vadd.xlane.f32.xlu0 %v7134_v50  ;;  %v7139_v54 = vadd.f32 %v7138_v35, %v7127_v59  ;;  %v7131_v52 = vadd.f32 %v9422_v60, %v7116_v9 }
 0x823   :  { %v7142_v39 = vadd.f32 %v7129_v57, %v7128_v43  ;;  %7140 = vadd.xlane.f32.xlu1 %v7139_v54 }
 0x825   :  { %v7143_v41 = vadd.f32 %v7142_v39, %v7130_v30 }
 0x827   :  { %v7144_v12 = vadd.f32 %v7143_v41, %v7131_v52 }
 0x829   :  { %7145 = vadd.xlane.f32.xlu0 %v7144_v12 }
 0x8ae   :  { %v7136_v29 = vpop.xlane.xlu0 %7135 }
 0x8af   :  { %v7148_v3 = vmul.f32 0.001953125, %v7136_v29 }
 0x8b0   :  { %v7141_v32 = vpop.xlane.xlu1 %7140 }
 0x8b1   :  { %v10960_v49 = vsub.f32 %v7120_v55, %v7148_v3  ;;  %v10962_v36 = vsub.f32 %v7121_v34, %v7148_v3  ;;  %v10964_v37 = vsub.f32 %v7122_v51, %v7148_v3  ;;  %v7149_v22 = vmul.f32 0.001953125, %v7141_v32 }
 0x8b2   :  { %v10966_v2 = vsub.f32 %v7123_v20, %v7148_v3 }
 0x8b3   :  { %v10968_v53 = vsub.f32 %v7124_v63, %v7149_v22  ;;  %v10970_v24 = vsub.f32 %v7125_v42, %v7149_v22  ;;  %v7163_v8 = vmul.f32 %v10960_v49, %v10960_v49  ;;  %v7164_v28 = vmul.f32 %v10962_v36, %v10962_v36 }
 0x8b4   :  { %v10976_v5 = vsub.f32 %v7126_v38, %v7149_v22  ;;  %v7165_v55 = vmul.f32 %v10964_v37, %v10964_v37  ;;  %v10984_v51 = vsub.f32 %v7127_v59, %v7149_v22  ;;  %v7166_v11 = vmul.f32 %v10966_v2, %v10966_v2 }
 0x8b5   :  { %v7175_v34 = vadd.f32 %v7164_v28, %v7163_v8  ;;  %v7167_v21 = vmul.f32 %v10968_v53, %v10968_v53  ;;  %v7168_v63 = vmul.f32 %v10970_v24, %v10970_v24 }
 0x8b6   :  { %v7146_v1 = vpop.xlane.xlu0 %7145  ;;  %v7169_v33 = vmul.f32 %v10976_v5, %v10976_v5  ;;  %v7170_v13 = vmul.f32 %v10984_v51, %v10984_v51 }
 0x8b7   :  { %v7150_v4 = vmul.f32 0.001953125, %v7146_v1  ;;  %v7176_v42 = vadd.f32 %v7175_v34, %v7165_v55  ;;  %v7180_v56 = vadd.f32 %v7168_v63, %v7167_v21 }
 0x8b9   :  { %v10990_v15 = vsub.f32 %v7128_v43, %v7150_v4  ;;  %v10992_v62 = vsub.f32 %v7129_v57, %v7150_v4  ;;  %v10994_v27 = vsub.f32 %v7130_v30, %v7150_v4  ;;  %v7177_v20 = vadd.f32 %v7176_v42, %v7166_v11 }
 0x8ba   :  { %v7181_v38 = vadd.f32 %v7180_v56, %v7169_v33  ;;  %v10998_v61 = vsub.f32 %v7131_v52, %v7150_v4 }
 0x8bb   :  { %7178 = vadd.xlane.f32.xlu0 %v7177_v20  ;;  %v7171_v14 = vmul.f32 %v10990_v15, %v10990_v15  ;;  %v7172_v7 = vmul.f32 %v10992_v62, %v10992_v62  ;;  %v7173_v46 = vmul.f32 %v10994_v27, %v10994_v27 }
 0x8bc   :  { %v7182_v48 = vadd.f32 %v7181_v38, %v7170_v13  ;;  %v7174_v47 = vmul.f32 %v10998_v61, %v10998_v61 }
 0x8bd   :  { %v7185_v59 = vadd.f32 %v7172_v7, %v7171_v14 }
 0x8be   :  { %7183 = vadd.xlane.f32.xlu1 %v7182_v48 }
 0x8bf   :  { %v7186_v40 = vadd.f32 %v7185_v59, %v7173_v46 }
 0x8c1   :  { %v7187_v17 = vadd.f32 %v7186_v40, %v7174_v47 }
 0x8c3   :  { %7188 = vadd.xlane.f32.xlu0 %v7187_v17 }
 0x8c4   :  { %9742 = shalt.err (!%p9739_p4)
}
 0x8c5   :  { %s9743_s5 = scalar_lea.hbm %s11073_s15, 1536 }
 0x8c6   :  { %p9744_p5 = scmp.ne.s32.totalorder %s11073_s15, %s9743_s5  ;;  %p9747_p6 = scmp.lt.u32.totalorder %s9743_s5, %s11073_s15 }
 0x8c8   :  { %p9749_p7 = pnand %p9747_p6, %p9744_p5 }
 0x8ca   :  { %9752 = shalt.err (!%p9749_p7)
}
 0x8cb   :  { %7314 = dma.vmem_to_hbm [thread:$0]  %s7309_s0, 1536, %s11073_s15, [#allocation27], %s9799_s1, %s9799_s1, %s9800_s19   ;;  %v7211_v43 = vld [vmem:[#allocation22] sm:$0xf]  ;;  %v7245_v23 = vld [vmem:[#allocation23] sm:$0xf] }
 0x8cc   :  { %v7216_v45 = vrot.slane %v7211_v43, %v10121_v0  ;;  %v7224_v57 = vrot.slane %v7211_v43, %v10134_v10  ;;  %v7220_v54 = vrot.slane %v7211_v43, %v10123_v6  ;;  %v7228_v16 = vrot.slane %v7211_v43, %v10151_v31  ;;  %s9818_s15 = smov [#allocation25]  }
 0x8cd   :  { %v7250_v39 = vrot.slane %v7245_v23, %v10121_v0  ;;  %v7258_v60 = vrot.slane %v7245_v23, %v10134_v10  ;;  %v7254_v52 = vrot.slane %v7245_v23, %v10123_v6  ;;  %v7262_v41 = vrot.slane %v7245_v23, %v10151_v31  ;;  %s7296_s1 = sshll.u32 %s9818_s15, 4  ;;  %s7297_s1 = int_to_ptr.vmem [resolvable:$true] %s7296_s1 }
 0x8ce   :  { %s9753_s19 = scalar_lea.vmem %s7297_s1, 1536  ;;  %p9758_p9 = scmp.lt.s32.totalorder %s7297_s1, %s7297_s1 }
 0x8cf   :  { %p9754_p8 = scmp.ne.s32.totalorder %s7297_s1, %s9753_s19  ;;  %p9759_p10 = scmp.lt.s32.totalorder %s9753_s19, %s9753_s19 }
 0x8d1   :  { %p9760_p11 = por %p9759_p10, %p9758_p9 }
 0x8d3   :  { %p9761_p12 = pnand %p9760_p11, %p9754_p8 }
 0x948   :  { %v7179_v19 = vpop.xlane.xlu0 %7178 }
 0x949   :  { %v7190_v58 = vmul.f32 0.001953125, %v7179_v19 }
 0x94b   :  { %v7193_v9 = vadd.f32 1e-05, %v7190_v58  ;;  %v7184_v26 = vpop.xlane.xlu1 %7183 }
 0x94c   :  { %v7191_v44 = vmul.f32 0.001953125, %v7184_v26 }
 0x94d   :  { %9405 = vrsqrt.f32 %v7193_v9 }
 0x94e   :  { %v7194_v50 = vadd.f32 1e-05, %v7191_v44 }
 0x950   :  { %9407 = vrsqrt.f32 %v7194_v50  ;;  %v7189_v35 = vpop.xlane.xlu0 %7188 }
 0x951   :  { %v7192_v18 = vmul.f32 0.001953125, %v7189_v35 }
 0x953   :  { %v7195_v25 = vadd.f32 1e-05, %v7192_v18 }
 0x955   :  { %9409 = vrsqrt.f32 %v7195_v25 }
 0x957   :  { %v9406_v30 = vpop.eup %9405 }
 0x958   :  { %v7199_v12 = vmul.f32 %v9406_v30, %v10960_v49  ;;  %v7200_v29 = vmul.f32 %v9406_v30, %v10962_v36  ;;  %v7201_v3 = vmul.f32 %v9406_v30, %v10964_v37  ;;  %v7202_v32 = vmul.f32 %v9406_v30, %v10966_v2 }
 0x95a   :  { %v9408_v22 = vpop.eup %9407  ;;  %v7233_v8 = vmul.f32 %v7216_v45, %v7199_v12  ;;  %v7234_v28 = vmul.f32 %v7220_v54, %v7200_v29  ;;  %v7235_v55 = vmul.f32 %v7224_v57, %v7201_v3  ;;  %v7236_v34 = vmul.f32 %v7228_v16, %v7202_v32 }
 0x95b   :  { %v7203_v0 = vmul.f32 %v9408_v22, %v10968_v53  ;;  %v7204_v10 = vmul.f32 %v9408_v22, %v10970_v24  ;;  %v7205_v6 = vmul.f32 %v9408_v22, %v10976_v5  ;;  %v7206_v31 = vmul.f32 %v9408_v22, %v10984_v51 }
 0x95c   :  { %v7267_v49 = vadd.f32 %v7250_v39, %v7233_v8  ;;  %v7268_v21 = vadd.f32 %v7254_v52, %v7234_v28  ;;  %v7269_v36 = vadd.f32 %v7258_v60, %v7235_v55  ;;  %v7270_v63 = vadd.f32 %v7262_v41, %v7236_v34 }
 0x95d   :  { %v7237_v37 = vmul.f32 %v7216_v45, %v7203_v0  ;;  %v7238_v1 = vmul.f32 %v7220_v54, %v7204_v10  ;;  %v7239_v2 = vmul.f32 %v7224_v57, %v7205_v6  ;;  %v7240_v4 = vmul.f32 %v7228_v16, %v7206_v31 }
 0x95e   :  { %7279 = vst [vmem:[#allocation25] sm:$0xff] %v7267_v49  ;;  %7280 = vst [vmem:[#allocation25 + $0x8] sm:$0xff] %v7268_v21 }
 0x95f   :  { %7281 = vst [vmem:[#allocation25 + $0x10] sm:$0xff] %v7269_v36  ;;  %7282 = vst [vmem:[#allocation25 + $0x18] sm:$0xff] %v7270_v63  ;;  %v9410_v11 = vpop.eup %9409  ;;  %v7271_v53 = vadd.f32 %v7250_v39, %v7237_v37  ;;  %v7272_v42 = vadd.f32 %v7254_v52, %v7238_v1  ;;  %v7273_v24 = vadd.f32 %v7258_v60, %v7239_v2 }
 0x960   :  { %v7274_v56 = vadd.f32 %v7262_v41, %v7240_v4  ;;  %v7207_v5 = vmul.f32 %v9410_v11, %v10990_v15  ;;  %v7208_v51 = vmul.f32 %v9410_v11, %v10992_v62  ;;  %v7209_v33 = vmul.f32 %v9410_v11, %v10994_v27 }
 0x961   :  { %v7210_v20 = vmul.f32 %v9410_v11, %v10998_v61  ;;  %7283 = vst [vmem:[#allocation25 + $0x20] sm:$0xff] %v7271_v53  ;;  %7284 = vst [vmem:[#allocation25 + $0x28] sm:$0xff] %v7272_v42 }
 0x962   :  { %7285 = vst [vmem:[#allocation25 + $0x30] sm:$0xff] %v7273_v24  ;;  %7286 = vst [vmem:[#allocation25 + $0x38] sm:$0xff] %v7274_v56  ;;  %v7241_v13 = vmul.f32 %v7216_v45, %v7207_v5  ;;  %v7242_v38 = vmul.f32 %v7220_v54, %v7208_v51  ;;  %v7243_v14 = vmul.f32 %v7224_v57, %v7209_v33 }
 0x963   :  { %v7244_v7 = vmul.f32 %v7228_v16, %v7210_v20 }
 0x964   :  { %v7275_v48 = vadd.f32 %v7250_v39, %v7241_v13  ;;  %v7276_v46 = vadd.f32 %v7254_v52, %v7242_v38  ;;  %v7277_v59 = vadd.f32 %v7258_v60, %v7243_v14 }
 0x965   :  { %v7278_v15 = vadd.f32 %v7262_v41, %v7244_v7 }
 0x966   :  { %7287 = vst [vmem:[#allocation25 + $0x40] sm:$0xff] %v7275_v48  ;;  %7288 = vst [vmem:[#allocation25 + $0x48] sm:$0xff] %v7276_v46 }
 0x967   :  { %7289 = vst [vmem:[#allocation25 + $0x50] sm:$0xff] %v7277_v59  ;;  %7290 = vst [vmem:[#allocation25 + $0x58] sm:$0xff] %v7278_v15 }
 0x968   :  { %9764 = shalt.err (!%p9761_p12)
}
 0x969   :  { %s9765_s3 = scalar_lea.hbm %s11072_s14, 1536 }
 0x96a   :  { %p9766_p13 = scmp.ne.s32.totalorder %s11072_s14, %s9765_s3  ;;  %p9769_p0 = scmp.lt.u32.totalorder %s9765_s3, %s11072_s14 }
 0x96c   :  { %p9771_p1 = pnand %p9769_p0, %p9766_p13 }
 0x96e   :  { %9774 = shalt.err (!%p9771_p1)
}
 0x96f   :  { %7302 = dma.vmem_to_hbm [thread:$0]  %s7297_s1, 1536, %s11072_s14, [#allocation4], %s9806_s11, %s9806_s11, %s9807_s18  }
 0x970   :  { %9791 = dma.done.wait [#allocation4], 1536  }
 0x971   :  { %9792 = vsyncadd [#allocation4], 4294965760 }
 0x972   :  { %9793 = dma.done.wait [#allocation27], 1536  }
 0x973   :  { %9794 = vsyncadd [#allocation27], 4294965760 }
 0x974   :  { %7321 = vsyncpa [#allocation3], 1 }
 0x975   :  { %7322 = vsyncpa [#allocation6], 1 }
 0x976   :  { %7323 = vsyncpa [#allocation9], 1 }
 0x977   :  { %7324 = vsyncpa [#allocation12], 1 }
 0x978   :  { %7325 = vsyncpa [#allocation15], 1 }
 0x979   :  { %7326 = vsyncpa [#allocation18], 1 }
 0x97a   :  { %7327 = vsyncpa [#allocation21], 1 }
 0x97b   :  { %7328 = vsyncpa [#allocation24], 1 }
 0x97c   :  { %7329 = vsyncpa [#allocation4], 1 }
 0x97d   :  { %7330 = vsyncpa [#allocation27], 1 }

// kernel: tpu_custom_call.1
= control target key start
LH: loop header
LB: loop body
LE: loop exit
PB: predicated region body
PF: predicated region fallthrough
CT: control target
= control target key end

     0   :  { %21 = vsyncpa [#allocation3], 0  ;;  %s11058_s0 = inlined_call_operand.hbm [shape: f32[3,8,512], index: 0, kind: input, shape index: {}]   ;;  %s11059_s1 = inlined_call_operand.hbm [shape: bf16[3,8,512], index: 1, kind: input, shape index: {}]   ;;  %s11060_s2 = inlined_call_operand.hbm [shape: bf16[3,8,512], index: 2, kind: input, shape index: {}]   ;;  %s11061_s3 = inlined_call_operand.hbm [shape: bf16[3,8,8], index: 3, kind: input, shape index: {}]   ;;  %s11062_s4 = inlined_call_operand.hbm [shape: bf16[512,512], index: 4, kind: input, shape index: {}]   ;;  %s11063_s5 = inlined_call_operand.hbm [shape: f32[1,512], index: 5, kind: input, shape index: {}]   ;;  %s11064_s6 = inlined_call_operand.hbm [shape: bf16[512,512], index: 6, kind: input, shape index: {}]   ;;  %s11065_s7 = inlined_call_operand.hbm [shape: f32[1,512], index: 7, kind: input, shape index: {}]   ;;  %s11066_s8 = inlined_call_operand.hbm [shape: bf16[512,512], index: 8, kind: input, shape index: {}]   ;;  %s11067_s9 = inlined_call_operand.hbm [shape: f32[1,512], index: 9, kind: input, shape index: {}]   ;;  %s11068_s10 = inlined_call_operand.hbm [shape: bf16[512,512], index: 10, kind: input, shape index: {}]   ;;  %s11069_s11 = inlined_call_operand.hbm [shape: f32[1,512], index: 11, kind: input, shape index: {}]   ;;  %s11070_s12 = inlined_call_operand.hbm [shape: f32[1,512], index: 12, kind: input, shape index: {}]   ;;  %s11071_s13 = inlined_call_operand.hbm [shape: f32[1,512], index: 13, kind: input, shape index: {}]   ;;  %s11072_s14 = inlined_call_operand.hbm [shape: f32[3,8,512], index: 14, kind: output, shape index: {0}]   ;;  %s11073_s15 = inlined_call_operand.hbm [shape: bf16[3,8,8,8], index: 15, kind: output, shape index: {1}]  }
   0x1   :  { %22 = vsyncpa [#allocation6], 0 }
   0x2   :  { %23 = vsyncpa [#allocation9], 0 }
   0x3   :  { %24 = vsyncpa [#allocation12], 0 }
   0x4   :  { %25 = vsyncpa [#allocation15], 0 }
   0x5   :  { %26 = vsyncpa [#allocation18], 0 }
   0x6   :  { %27 = vsyncpa [#allocation21], 0 }
   0x7   :  { %28 = vsyncpa [#allocation24], 0 }
   0x8   :  { %29 = vsyncpa [#allocation4], 0 }
   0x9   :  { %30 = vsyncpa [#allocation27], 0  ;;  %s9795_s18 = smov [#allocation5]   ;;  %s9423_s22 = scalar_lea.hbm %s11059_s1, 768 }
   0xa   :  { %s48_s19 = sshll.u32 %s9795_s18, 4  ;;  %p9424_p0 = scmp.ne.s32.totalorder %s11059_s1, %s9423_s22  ;;  %s49_s19 = int_to_ptr.vmem [resolvable:$true] %s48_s19 }
   0xb   :  { %p9427_p1 = scmp.lt.u32.totalorder %s9423_s22, %s11059_s1 }
   0xd   :  { %p9429_p2 = pnand %p9427_p1, %p9424_p0 }
   0xf   :  { %9432 = shalt.err (!%p9429_p2)
}
  0x10   :  { %s9433_s27 = scalar_lea.vmem %s49_s19, 768  ;;  %p9438_p4 = scmp.lt.s32.totalorder %s49_s19, %s49_s19 }
  0x11   :  { %p9434_p3 = scmp.ne.s32.totalorder %s49_s19, %s9433_s27  ;;  %p9439_p5 = scmp.lt.s32.totalorder %s9433_s27, %s9433_s27 }
  0x13   :  { %p9440_p6 = por %p9439_p5, %p9438_p4 }
  0x15   :  { %p9441_p7 = pnand %p9440_p6, %p9434_p3 }
  0x17   :  { %9444 = shalt.err (!%p9441_p7)
}
  0x18   :  { %s11074_s28 = smov 256   ;;  %s11076_s29 = smov 16  }
  0x19   :  { %54 = dma.hbm_to_vmem [thread:$0]  %s11059_s1, 768, %s49_s19, [#allocation6], %s11074_s28, %s11074_s28, %s11076_s29  }
  0x1a   :  { %s9798_s17 = smov [#allocation8]   ;;  %s9445_s22 = scalar_lea.hbm %s11061_s3, 192 }
  0x1b   :  { %s72_s18 = sshll.u32 %s9798_s17, 4  ;;  %p9446_p8 = scmp.ne.s32.totalorder %s11061_s3, %s9445_s22  ;;  %s73_s18 = int_to_ptr.vmem [resolvable:$true] %s72_s18 }
  0x1c   :  { %p9449_p9 = scmp.lt.u32.totalorder %s9445_s22, %s11061_s3 }
  0x1e   :  { %p9451_p10 = pnand %p9449_p9, %p9446_p8 }
  0x20   :  { %9454 = shalt.err (!%p9451_p10)
}
  0x21   :  { %s9455_s27 = scalar_lea.vmem %s73_s18, 192  ;;  %p9460_p12 = scmp.lt.s32.totalorder %s73_s18, %s73_s18 }
  0x22   :  { %p9456_p11 = scmp.ne.s32.totalorder %s73_s18, %s9455_s27  ;;  %p9461_p13 = scmp.lt.s32.totalorder %s9455_s27, %s9455_s27 }
  0x24   :  { %p9462_p0 = por %p9461_p13, %p9460_p12 }
  0x26   :  { %p9463_p1 = pnand %p9462_p0, %p9456_p11 }
  0x28   :  { %9466 = shalt.err (!%p9463_p1)
}
  0x29   :  { %s9799_s1 = smov 64   ;;  %s9800_s19 = smov 4  }
  0x2a   :  { %78 = dma.hbm_to_vmem [thread:$0]  %s11061_s3, 192, %s73_s18, [#allocation9], %s9799_s1, %s9799_s1, %s9800_s19  }
  0x2b   :  { %s9801_s17 = smov [#allocation11]   ;;  %s9802_s21 = smov [#allocation14]  }
  0x2c   :  { %s97_s20 = sshll.u32 %s9801_s17, 4  ;;  %s119_s22 = sshll.u32 %s9802_s21, 4  ;;  %s98_s20 = int_to_ptr.vmem [resolvable:$true] %s97_s20  ;;  %s120_s22 = int_to_ptr.vmem [resolvable:$true] %s119_s22 }
  0x2d   :  { %s9467_s25 = scalar_lea.hbm %s11063_s5, 64 }
  0x2e   :  { %p9468_p2 = scmp.ne.s32.totalorder %s11063_s5, %s9467_s25  ;;  %p9471_p3 = scmp.lt.u32.totalorder %s9467_s25, %s11063_s5 }
  0x30   :  { %p9473_p4 = pnand %p9471_p3, %p9468_p2 }
  0x32   :  { %9476 = shalt.err (!%p9473_p4)
}
  0x33   :  { %s9477_s3 = scalar_lea.vmem %s98_s20, 64  ;;  %p9482_p6 = scmp.lt.s32.totalorder %s98_s20, %s98_s20 }
  0x34   :  { %p9478_p5 = scmp.ne.s32.totalorder %s98_s20, %s9477_s3  ;;  %p9483_p7 = scmp.lt.s32.totalorder %s9477_s3, %s9477_s3 }
  0x36   :  { %p9484_p8 = por %p9483_p7, %p9482_p6 }
  0x38   :  { %p9485_p9 = pnand %p9484_p8, %p9478_p5 }
  0x3a   :  { %9488 = shalt.err (!%p9485_p9)
}
  0x3b   :  { %100 = dma.hbm_to_vmem [thread:$0]  %s11063_s5, 64, %s98_s20, [#allocation12]  }
  0x3c   :  { %s9489_s21 = scalar_lea.hbm %s11065_s7, 64 }
  0x3d   :  { %p9490_p10 = scmp.ne.s32.totalorder %s11065_s7, %s9489_s21  ;;  %p9493_p11 = scmp.lt.u32.totalorder %s9489_s21, %s11065_s7 }
  0x3f   :  { %p9495_p12 = pnand %p9493_p11, %p9490_p10 }
  0x41   :  { %9498 = shalt.err (!%p9495_p12)
}
  0x42   :  { %s9499_s25 = scalar_lea.vmem %s120_s22, 64  ;;  %p9504_p0 = scmp.lt.s32.totalorder %s120_s22, %s120_s22 }
  0x43   :  { %p9500_p13 = scmp.ne.s32.totalorder %s120_s22, %s9499_s25  ;;  %p9505_p1 = scmp.lt.s32.totalorder %s9499_s25, %s9499_s25 }
  0x45   :  { %p9506_p2 = por %p9505_p1, %p9504_p0 }
  0x47   :  { %p9507_p3 = pnand %p9506_p2, %p9500_p13 }
  0x49   :  { %9510 = shalt.err (!%p9507_p3)
}
  0x4a   :  { %122 = dma.hbm_to_vmem [thread:$0]  %s11065_s7, 64, %s120_s22, [#allocation15]  }
  0x4b   :  { %s9803_s26 = smov [#allocation17]   ;;  %s9804_s3 = smov [#allocation20]  }
  0x4c   :  { %s141_s27 = sshll.u32 %s9803_s26, 4  ;;  %s163_s18 = sshll.u32 %s9804_s3, 4  ;;  %s142_s27 = int_to_ptr.vmem [resolvable:$true] %s141_s27  ;;  %s164_s18 = int_to_ptr.vmem [resolvable:$true] %s163_s18 }
  0x4d   :  { %s9511_s17 = scalar_lea.hbm %s11067_s9, 64 }
  0x4e   :  { %p9512_p4 = scmp.ne.s32.totalorder %s11067_s9, %s9511_s17  ;;  %p9515_p5 = scmp.lt.u32.totalorder %s9511_s17, %s11067_s9 }
  0x50   :  { %p9517_p6 = pnand %p9515_p5, %p9512_p4 }
  0x52   :  { %9520 = shalt.err (!%p9517_p6)
}
  0x53   :  { %s9521_s7 = scalar_lea.vmem %s142_s27, 64  ;;  %p9526_p8 = scmp.lt.s32.totalorder %s142_s27, %s142_s27 }
  0x54   :  { %p9522_p7 = scmp.ne.s32.totalorder %s142_s27, %s9521_s7  ;;  %p9527_p9 = scmp.lt.s32.totalorder %s9521_s7, %s9521_s7 }
  0x56   :  { %p9528_p10 = por %p9527_p9, %p9526_p8 }
  0x58   :  { %p9529_p11 = pnand %p9528_p10, %p9522_p7 }
  0x5a   :  { %9532 = shalt.err (!%p9529_p11)
}
  0x5b   :  { %144 = dma.hbm_to_vmem [thread:$0]  %s11067_s9, 64, %s142_s27, [#allocation18]  }
  0x5c   :  { %s9533_s20 = scalar_lea.hbm %s11069_s11, 64 }
  0x5d   :  { %p9534_p12 = scmp.ne.s32.totalorder %s11069_s11, %s9533_s20  ;;  %p9537_p13 = scmp.lt.u32.totalorder %s9533_s20, %s11069_s11 }
  0x5f   :  { %p9539_p0 = pnand %p9537_p13, %p9534_p12 }
  0x61   :  { %9542 = shalt.err (!%p9539_p0)
}
  0x62   :  { %s9543_s17 = scalar_lea.vmem %s164_s18, 64  ;;  %p9548_p2 = scmp.lt.s32.totalorder %s164_s18, %s164_s18 }
  0x63   :  { %p9544_p1 = scmp.ne.s32.totalorder %s164_s18, %s9543_s17  ;;  %p9549_p3 = scmp.lt.s32.totalorder %s9543_s17, %s9543_s17 }
  0x65   :  { %p9550_p4 = por %p9549_p3, %p9548_p2 }
  0x67   :  { %p9551_p5 = pnand %p9550_p4, %p9544_p1 }
  0x69   :  { %9554 = shalt.err (!%p9551_p5)
}
  0x6a   :  { %166 = dma.hbm_to_vmem [thread:$0]  %s11069_s11, 64, %s164_s18, [#allocation21]  }
  0x6b   :  { %s9805_s21 = smov [#allocation2]   ;;  %s9555_s7 = scalar_lea.hbm %s11058_s0, 1536 }
  0x6c   :  { %s36_s23 = sshll.u32 %s9805_s21, 4  ;;  %p9556_p6 = scmp.ne.s32.totalorder %s11058_s0, %s9555_s7  ;;  %s37_s23 = int_to_ptr.vmem [resolvable:$true] %s36_s23 }
  0x6d   :  { %p9559_p7 = scmp.lt.u32.totalorder %s9555_s7, %s11058_s0 }
  0x6f   :  { %p9561_p8 = pnand %p9559_p7, %p9556_p6 }
  0x71   :  { %9564 = shalt.err (!%p9561_p8)
}
  0x72   :  { %s9565_s20 = scalar_lea.vmem %s37_s23, 1536  ;;  %p9570_p10 = scmp.lt.s32.totalorder %s37_s23, %s37_s23 }
  0x73   :  { %p9566_p9 = scmp.ne.s32.totalorder %s37_s23, %s9565_s20  ;;  %p9571_p11 = scmp.lt.s32.totalorder %s9565_s20, %s9565_s20 }
  0x75   :  { %p9572_p12 = por %p9571_p11, %p9570_p10 }
  0x77   :  { %p9573_p13 = pnand %p9572_p12, %p9566_p9 }
  0x79   :  { %9576 = shalt.err (!%p9573_p13)
}
  0x7a   :  { %s9806_s11 = smov 512   ;;  %s9807_s18 = smov 32  }
  0x7b   :  { %42 = dma.hbm_to_vmem [thread:$0]  %s11058_s0, 1536, %s37_s23, [#allocation3], %s9806_s11, %s9806_s11, %s9807_s18  }
  0x7c   :  { %s9808_s30 = smov [#allocation7]   ;;  %s9809_s17 = smov [#allocation10]  }
  0x7d   :  { %s60_s16 = sshll.u32 %s9808_s30, 4  ;;  %s84_s9 = sshll.u32 %s9809_s17, 4  ;;  %s61_s16 = int_to_ptr.vmem [resolvable:$true] %s60_s16  ;;  %s85_s9 = int_to_ptr.vmem [resolvable:$true] %s84_s9 }
  0x7e   :  { %s9577_s28 = scalar_lea.hbm %s11060_s2, 768 }
  0x7f   :  { %p9578_p0 = scmp.ne.s32.totalorder %s11060_s2, %s9577_s28  ;;  %p9581_p1 = scmp.lt.u32.totalorder %s9577_s28, %s11060_s2 }
  0x81   :  { %p9583_p2 = pnand %p9581_p1, %p9578_p0 }
  0x83   :  { %9586 = shalt.err (!%p9583_p2)
}
  0x84   :  { %s9587_s0 = scalar_lea.vmem %s61_s16, 768  ;;  %p9592_p4 = scmp.lt.s32.totalorder %s61_s16, %s61_s16 }
  0x85   :  { %p9588_p3 = scmp.ne.s32.totalorder %s61_s16, %s9587_s0  ;;  %p9593_p5 = scmp.lt.s32.totalorder %s9587_s0, %s9587_s0 }
  0x87   :  { %p9594_p6 = por %p9593_p5, %p9592_p4 }
  0x89   :  { %p9595_p7 = pnand %p9594_p6, %p9588_p3 }
  0x8b   :  { %9598 = shalt.err (!%p9595_p7)
}
  0x8c   :  { %s11078_s23 = smov 16   ;;  %s11079_s25 = smov 256  }
  0x8d   :  { %66 = dma.hbm_to_vmem [thread:$0]  %s11060_s2, 768, %s61_s16, [#allocation6], %s11079_s25, %s11079_s25, %s11078_s23  }
  0x8e   :  { %s9599_s30 = scalar_lea.hbm %s11062_s4, 16384 }
  0x8f   :  { %p9600_p8 = scmp.ne.s32.totalorder %s11062_s4, %s9599_s30  ;;  %p9603_p9 = scmp.lt.u32.totalorder %s9599_s30, %s11062_s4 }
  0x91   :  { %p9605_p10 = pnand %p9603_p9, %p9600_p8 }
  0x93   :  { %9608 = shalt.err (!%p9605_p10)
}
  0x94   :  { %s9609_s29 = scalar_lea.vmem %s85_s9, 16384  ;;  %p9614_p12 = scmp.lt.s32.totalorder %s85_s9, %s85_s9 }
  0x95   :  { %p9610_p11 = scmp.ne.s32.totalorder %s85_s9, %s9609_s29  ;;  %p9615_p13 = scmp.lt.s32.totalorder %s9609_s29, %s9609_s29 }
  0x97   :  { %p9616_p0 = por %p9615_p13, %p9614_p12 }
  0x99   :  { %p9617_p1 = pnand %p9616_p0, %p9610_p11 }
  0x9b   :  { %9620 = shalt.err (!%p9617_p1)
}
  0x9c   :  { %90 = dma.hbm_to_vmem [thread:$0]  %s11062_s4, 16384, %s85_s9, [#allocation9], %s11079_s25, %s11079_s25, %s11078_s23  }
  0x9d   :  { %s9810_s7 = smov [#allocation13]   ;;  %s9811_s24 = smov [#allocation16]  }
  0x9e   :  { %s106_s22 = sshll.u32 %s9810_s7, 4  ;;  %s128_s0 = sshll.u32 %s9811_s24, 4  ;;  %s107_s22 = int_to_ptr.vmem [resolvable:$true] %s106_s22  ;;  %s129_s0 = int_to_ptr.vmem [resolvable:$true] %s128_s0 }
  0x9f   :  { %s9621_s26 = scalar_lea.hbm %s11064_s6, 16384 }
  0xa0   :  { %p9622_p2 = scmp.ne.s32.totalorder %s11064_s6, %s9621_s26  ;;  %p9625_p3 = scmp.lt.u32.totalorder %s9621_s26, %s11064_s6 }
  0xa2   :  { %p9627_p4 = pnand %p9625_p3, %p9622_p2 }
  0xa4   :  { %9630 = shalt.err (!%p9627_p4)
}
  0xa5   :  { %s9631_s4 = scalar_lea.vmem %s107_s22, 16384  ;;  %p9636_p6 = scmp.lt.s32.totalorder %s107_s22, %s107_s22 }
  0xa6   :  { %p9632_p5 = scmp.ne.s32.totalorder %s107_s22, %s9631_s4  ;;  %p9637_p7 = scmp.lt.s32.totalorder %s9631_s4, %s9631_s4 }
  0xa8   :  { %p9638_p8 = por %p9637_p7, %p9636_p6 }
  0xaa   :  { %p9639_p9 = pnand %p9638_p8, %p9632_p5 }
  0xac   :  { %9642 = shalt.err (!%p9639_p9)
}
  0xad   :  { %112 = dma.hbm_to_vmem [thread:$0]  %s11064_s6, 16384, %s107_s22, [#allocation12], %s11079_s25, %s11079_s25, %s11078_s23  }
  0xae   :  { %s9643_s2 = scalar_lea.hbm %s11066_s8, 16384 }
  0xaf   :  { %p9644_p10 = scmp.ne.s32.totalorder %s11066_s8, %s9643_s2  ;;  %p9647_p11 = scmp.lt.u32.totalorder %s9643_s2, %s11066_s8 }
  0xb1   :  { %p9649_p12 = pnand %p9647_p11, %p9644_p10 }
  0xb3   :  { %9652 = shalt.err (!%p9649_p12)
}
  0xb4   :  { %s9653_s20 = scalar_lea.vmem %s129_s0, 16384  ;;  %p9658_p0 = scmp.lt.s32.totalorder %s129_s0, %s129_s0 }
  0xb5   :  { %p9654_p13 = scmp.ne.s32.totalorder %s129_s0, %s9653_s20  ;;  %p9659_p1 = scmp.lt.s32.totalorder %s9653_s20, %s9653_s20 }
  0xb7   :  { %p9660_p2 = por %p9659_p1, %p9658_p0 }
  0xb9   :  { %p9661_p3 = pnand %p9660_p2, %p9654_p13 }
  0xbb   :  { %9664 = shalt.err (!%p9661_p3)
}
  0xbc   :  { %134 = dma.hbm_to_vmem [thread:$0]  %s11066_s8, 16384, %s129_s0, [#allocation15], %s11079_s25, %s11079_s25, %s11078_s23  }
  0xbd   :  { %s9812_s26 = smov [#allocation19]   ;;  %s9813_s30 = smov [#allocation22]  }
  0xbe   :  { %s150_s3 = sshll.u32 %s9812_s26, 4  ;;  %s173_s17 = sshll.u32 %s9813_s30, 4  ;;  %s151_s3 = int_to_ptr.vmem [resolvable:$true] %s150_s3  ;;  %s174_s17 = int_to_ptr.vmem [resolvable:$true] %s173_s17 }
  0xbf   :  { %s9665_s9 = scalar_lea.hbm %s11068_s10, 16384 }
  0xc0   :  { %p9666_p4 = scmp.ne.s32.totalorder %s11068_s10, %s9665_s9  ;;  %p9669_p5 = scmp.lt.u32.totalorder %s9665_s9, %s11068_s10 }
  0xc2   :  { %p9671_p6 = pnand %p9669_p5, %p9666_p4 }
  0xc4   :  { %9674 = shalt.err (!%p9671_p6)
}
  0xc5   :  { %s9675_s8 = scalar_lea.vmem %s151_s3, 16384  ;;  %p9680_p8 = scmp.lt.s32.totalorder %s151_s3, %s151_s3 }
  0xc6   :  { %p9676_p7 = scmp.ne.s32.totalorder %s151_s3, %s9675_s8  ;;  %p9681_p9 = scmp.lt.s32.totalorder %s9675_s8, %s9675_s8 }
  0xc8   :  { %p9682_p10 = por %p9681_p9, %p9680_p8 }
  0xca   :  { %p9683_p11 = pnand %p9682_p10, %p9676_p7 }
  0xcc   :  { %9686 = shalt.err (!%p9683_p11)
}
  0xcd   :  { %156 = dma.hbm_to_vmem [thread:$0]  %s11068_s10, 16384, %s151_s3, [#allocation18], %s11079_s25, %s11079_s25, %s11078_s23  }
  0xce   :  { %s9687_s5 = scalar_lea.hbm %s11070_s12, 64 }
  0xcf   :  { %p9688_p12 = scmp.ne.s32.totalorder %s11070_s12, %s9687_s5  ;;  %p9691_p13 = scmp.lt.u32.totalorder %s9687_s5, %s11070_s12 }
  0xd1   :  { %p9693_p0 = pnand %p9691_p13, %p9688_p12 }
  0xd3   :  { %9696 = shalt.err (!%p9693_p0)
}
  0xd4   :  { %s9697_s30 = scalar_lea.vmem %s174_s17, 64  ;;  %p9702_p2 = scmp.lt.s32.totalorder %s174_s17, %s174_s17 }
  0xd5   :  { %p9698_p1 = scmp.ne.s32.totalorder %s174_s17, %s9697_s30  ;;  %p9703_p3 = scmp.lt.s32.totalorder %s9697_s30, %s9697_s30 }
  0xd7   :  { %p9704_p4 = por %p9703_p3, %p9702_p2 }
  0xd9   :  { %p9705_p5 = pnand %p9704_p4, %p9698_p1 }
  0xdb   :  { %9708 = shalt.err (!%p9705_p5)
}
  0xdc   :  { %176 = dma.hbm_to_vmem [thread:$0]  %s11070_s12, 64, %s174_s17, [#allocation21]  }
  0xdd   :  { %s9814_s25 = smov [#allocation23]   ;;  %s9709_s9 = scalar_lea.hbm %s11071_s13, 64 }
  0xde   :  { %s183_s3 = sshll.u32 %s9814_s25, 4  ;;  %p9710_p6 = scmp.ne.s32.totalorder %s11071_s13, %s9709_s9  ;;  %s184_s3 = int_to_ptr.vmem [resolvable:$true] %s183_s3 }
  0xdf   :  { %p9713_p7 = scmp.lt.u32.totalorder %s9709_s9, %s11071_s13 }
  0xe1   :  { %p9715_p8 = pnand %p9713_p7, %p9710_p6 }
  0xe3   :  { %9718 = shalt.err (!%p9715_p8)
}
  0xe4   :  { %s9719_s8 = scalar_lea.vmem %s184_s3, 64  ;;  %p9724_p10 = scmp.lt.s32.totalorder %s184_s3, %s184_s3 }
  0xe5   :  { %p9720_p9 = scmp.ne.s32.totalorder %s184_s3, %s9719_s8  ;;  %p9725_p11 = scmp.lt.s32.totalorder %s9719_s8, %s9719_s8 }
  0xe7   :  { %p9726_p12 = por %p9725_p11, %p9724_p10 }
  0xe9   :  { %p9727_p13 = pnand %p9726_p12, %p9720_p9 }
  0xeb   :  { %9730 = shalt.err (!%p9727_p13)
}
  0xec   :  { %186 = dma.hbm_to_vmem [thread:$0]  %s11071_s13, 64, %s184_s3, [#allocation24]  }
  0xed   :  { %9775 = dma.done.wait [#allocation3], 1536  }
  0xee   :  { %9776 = vsyncadd [#allocation3], 4294965760 }
  0xef   :  { %9777 = dma.done.wait [#allocation6], 1536  }
  0xf0   :  { %9778 = vsyncadd [#allocation6], 4294965760 }
  0xf1   :  { %9779 = dma.done.wait [#allocation9], 16576  }
  0xf2   :  { %9780 = vsyncadd [#allocation9], 4294950720 }
  0xf3   :  { %9781 = dma.done.wait [#allocation12], 16448  }
  0xf4   :  { %9782 = vsyncadd [#allocation12], 4294950848 }
  0xf5   :  { %9783 = dma.done.wait [#allocation15], 16448  }
  0xf6   :  { %9784 = vsyncadd [#allocation15], 4294950848 }
  0xf7   :  { %9785 = dma.done.wait [#allocation18], 16448  }
  0xf8   :  { %9786 = vsyncadd [#allocation18], 4294950848 }
  0xf9   :  { %9787 = dma.done.wait [#allocation21], 128  }
  0xfa   :  { %9788 = vsyncadd [#allocation21], 4294967168 }
  0xfb   :  { %9789 = dma.done.wait [#allocation24], 64  }
  0xfc   :  { %9790 = vsyncadd [#allocation24], 4294967232  ;;  %v8521_v0 = vld [vmem:[#allocation10 + $0x4] ss:$16 sps:$4 sm:$0xff]   ;;  %v8523_v1 = vld [vmem:[#allocation10 + $0xc] ss:$16 sps:$4 sm:$0xff]  }
  0xfd   :  { %1052 = vmatprep.subr.bf16.mxu0 %v8521_v0  ;;  %v8525_v2 = vld [vmem:[#allocation10] ss:$16 sps:$4 sm:$0xff]   ;;  %v8526_v3 = vld [vmem:[#allocation10 + $0x8] ss:$16 sps:$4 sm:$0xff]   ;;  %1154 = vmatprep.subr.bf16.mxu1 %v8523_v1  ;;  %v8527_v4 = vld [vmem:[#allocation10 + $0x24] ss:$16 sps:$4 sm:$0xff]  }
  0xfe   :  { %1053 = vmatpush1.bf16.msra.mxu0 %v8525_v2  ;;  %1155 = vmatpush1.bf16.msra.mxu1 %v8526_v3  ;;  %v8529_v5 = vld [vmem:[#allocation10 + $0x2c] ss:$16 sps:$4 sm:$0xff]   ;;  %v8531_v6 = vld [vmem:[#allocation10 + $0x20] ss:$16 sps:$4 sm:$0xff]   ;;  %v8532_v7 = vld [vmem:[#allocation10 + $0x28] ss:$16 sps:$4 sm:$0xff]  }
  0xff   :  { %1054 = vmatprep.subr.bf16.mxu0 %v8527_v4  ;;  %1156 = vmatprep.subr.bf16.mxu1 %v8529_v5  ;;  %v8533_v8 = vld [vmem:[#allocation10 + $0x44] ss:$16 sps:$4 sm:$0xff]   ;;  %v8535_v9 = vld [vmem:[#allocation10 + $0x4c] ss:$16 sps:$4 sm:$0xff]   ;;  %v8537_v10 = vld [vmem:[#allocation10 + $0x40] ss:$16 sps:$4 sm:$0xff]  }
 0x100   :  { %v8538_v11 = vld [vmem:[#allocation10 + $0x48] ss:$16 sps:$4 sm:$0xff]   ;;  %v8539_v12 = vld [vmem:[#allocation10 + $0x64] ss:$16 sps:$4 sm:$0xff]   ;;  %v8541_v13 = vld [vmem:[#allocation10 + $0x6c] ss:$16 sps:$4 sm:$0xff]  }
 0x101   :  { %v8543_v14 = vld [vmem:[#allocation10 + $0x60] ss:$16 sps:$4 sm:$0xff]   ;;  %v8544_v15 = vld [vmem:[#allocation10 + $0x68] ss:$16 sps:$4 sm:$0xff]   ;;  %v8545_v16 = vld [vmem:[#allocation10 + $0x84] ss:$16 sps:$4 sm:$0xff]  }
 0x102   :  { %1055 = vmatpush1.bf16.msra.mxu0 %v8531_v6  ;;  %1157 = vmatpush1.bf16.msra.mxu1 %v8532_v7  ;;  %v8547_v17 = vld [vmem:[#allocation10 + $0x8c] ss:$16 sps:$4 sm:$0xff]   ;;  %v8549_v18 = vld [vmem:[#allocation10 + $0x80] ss:$16 sps:$4 sm:$0xff]   ;;  %v8550_v19 = vld [vmem:[#allocation10 + $0x88] ss:$16 sps:$4 sm:$0xff]  }
 0x103   :  { %1056 = vmatprep.subr.bf16.mxu0 %v8533_v8  ;;  %1158 = vmatprep.subr.bf16.mxu1 %v8535_v9  ;;  %v8551_v20 = vld [vmem:[#allocation10 + $0xa4] ss:$16 sps:$4 sm:$0xff]   ;;  %v8553_v21 = vld [vmem:[#allocation10 + $0xac] ss:$16 sps:$4 sm:$0xff]   ;;  %v8555_v22 = vld [vmem:[#allocation10 + $0xa0] ss:$16 sps:$4 sm:$0xff]  }
 0x104   :  { %v8556_v23 = vld [vmem:[#allocation10 + $0xa8] ss:$16 sps:$4 sm:$0xff]   ;;  %v8557_v24 = vld [vmem:[#allocation10 + $0xc4] ss:$16 sps:$4 sm:$0xff]   ;;  %v8559_v25 = vld [vmem:[#allocation10 + $0xcc] ss:$16 sps:$4 sm:$0xff]  }
 0x105   :  { %v8561_v26 = vld [vmem:[#allocation10 + $0xc0] ss:$16 sps:$4 sm:$0xff]   ;;  %v8562_v27 = vld [vmem:[#allocation10 + $0xc8] ss:$16 sps:$4 sm:$0xff]   ;;  %v8563_v28 = vld [vmem:[#allocation10 + $0xe4] ss:$16 sps:$4 sm:$0xff]  }
 0x106   :  { %1057 = vmatpush1.bf16.msra.mxu0 %v8537_v10  ;;  %1159 = vmatpush1.bf16.msra.mxu1 %v8538_v11  ;;  %v8565_v29 = vld [vmem:[#allocation10 + $0xec] ss:$16 sps:$4 sm:$0xff]   ;;  %v8567_v30 = vld [vmem:[#allocation10 + $0xe0] ss:$16 sps:$4 sm:$0xff]   ;;  %v8568_v31 = vld [vmem:[#allocation10 + $0xe8] ss:$16 sps:$4 sm:$0xff]  }
 0x107   :  { %1058 = vmatprep.subr.bf16.mxu0 %v8539_v12  ;;  %1160 = vmatprep.subr.bf16.mxu1 %v8541_v13  ;;  %v8569_v32 = vld [vmem:[#allocation10 + $0x104] ss:$16 sps:$4 sm:$0xff]   ;;  %v8571_v33 = vld [vmem:[#allocation10 + $0x10c] ss:$16 sps:$4 sm:$0xff]   ;;  %v8573_v34 = vld [vmem:[#allocation10 + $0x100] ss:$16 sps:$4 sm:$0xff]  }
 0x108   :  { %v8574_v35 = vld [vmem:[#allocation10 + $0x108] ss:$16 sps:$4 sm:$0xff]   ;;  %v8575_v36 = vld [vmem:[#allocation10 + $0x124] ss:$16 sps:$4 sm:$0xff]   ;;  %v8577_v37 = vld [vmem:[#allocation10 + $0x12c] ss:$16 sps:$4 sm:$0xff]  }
 0x109   :  { %v8579_v38 = vld [vmem:[#allocation10 + $0x120] ss:$16 sps:$4 sm:$0xff]   ;;  %v8580_v39 = vld [vmem:[#allocation10 + $0x128] ss:$16 sps:$4 sm:$0xff]   ;;  %v8581_v40 = vld [vmem:[#allocation10 + $0x144] ss:$16 sps:$4 sm:$0xff]  }
 0x10a   :  { %1059 = vmatpush1.bf16.msra.mxu0 %v8543_v14  ;;  %1161 = vmatpush1.bf16.msra.mxu1 %v8544_v15  ;;  %v8583_v41 = vld [vmem:[#allocation10 + $0x14c] ss:$16 sps:$4 sm:$0xff]   ;;  %v8585_v42 = vld [vmem:[#allocation10 + $0x140] ss:$16 sps:$4 sm:$0xff]   ;;  %v8586_v43 = vld [vmem:[#allocation10 + $0x148] ss:$16 sps:$4 sm:$0xff]  }
 0x10b   :  { %1060 = vmatprep.subr.bf16.mxu0 %v8545_v16  ;;  %1162 = vmatprep.subr.bf16.mxu1 %v8547_v17  ;;  %v8587_v44 = vld [vmem:[#allocation10 + $0x164] ss:$16 sps:$4 sm:$0xff]   ;;  %v8589_v45 = vld [vmem:[#allocation10 + $0x16c] ss:$16 sps:$4 sm:$0xff]   ;;  %v8591_v48 = vld [vmem:[#allocation10 + $0x160] ss:$16 sps:$4 sm:$0xff]  }
 0x10c   :  { %v231_v46 = vld [vmem:[#allocation2 + $0x8] sm:$0xff]  ;;  %v8592_v49 = vld [vmem:[#allocation10 + $0x168] ss:$16 sps:$4 sm:$0xff]   ;;  %v8593_v51 = vld [vmem:[#allocation10 + $0x184] ss:$16 sps:$4 sm:$0xff]   ;;  %vm9816_vm0 = vmmov 0  }
 0x10d   :  { %v235_v47 = vld [vmem:[#allocation2 + $0x28] sm:$0xff]  ;;  %v8598_v54 = vld [vmem:[#allocation10 + $0x188] ss:$16 sps:$4 sm:$0xff]   ;;  %v8599_v55 = vld [vmem:[#allocation10 + $0x1a4] ss:$16 sps:$4 sm:$0xff]   ;;  %vm3504_vm1 = vcmask 523264  }
 0x10e   :  { %1061 = vmatpush1.bf16.msra.mxu0 %v8549_v18  ;;  %1163 = vmatpush1.bf16.msra.mxu1 %v8550_v19  ;;  %v255_v50 = vpack.c.bf16 %v235_v47, %v231_v46  ;;  %v8595_v52 = vld [vmem:[#allocation10 + $0x18c] ss:$16 sps:$4 sm:$0xff]   ;;  %v8597_v53 = vld [vmem:[#allocation10 + $0x180] ss:$16 sps:$4 sm:$0xff]   ;;  %v8604_v58 = vld [vmem:[#allocation10 + $0x1a8] ss:$16 sps:$4 sm:$0xff]  }
 0x10f   :  { %1062 = vmatprep.subr.bf16.mxu0 %v8551_v20  ;;  %1164 = vmatprep.subr.bf16.mxu1 %v8553_v21  ;;  %v8601_v56 = vld [vmem:[#allocation10 + $0x1ac] ss:$16 sps:$4 sm:$0xff]   ;;  %v8603_v57 = vld [vmem:[#allocation10 + $0x1a0] ss:$16 sps:$4 sm:$0xff]   ;;  %v8605_v59 = vld [vmem:[#allocation10 + $0x1c4] ss:$16 sps:$4 sm:$0xff]  }
 0x110   :  { %1084 = vmatprep.mubr.bf16.mxu0 %v255_v50  ;;  %1186 = vmatprep.mubr.bf16.mxu1 %v255_v50  ;;  %v8607_v60 = vld [vmem:[#allocation10 + $0x1cc] ss:$16 sps:$4 sm:$0xff]   ;;  %v8609_v61 = vld [vmem:[#allocation10 + $0x1c0] ss:$16 sps:$4 sm:$0xff]   ;;  %v8610_v62 = vld [vmem:[#allocation10 + $0x1c8] ss:$16 sps:$4 sm:$0xff]  }
 0x111   :  { %v8611_v63 = vld [vmem:[#allocation10 + $0x1e4] ss:$16 sps:$4 sm:$0xff]   ;;  %v8613_v0 = vld [vmem:[#allocation10 + $0x1ec] ss:$16 sps:$4 sm:$0xff]   ;;  %v8615_v1 = vld [vmem:[#allocation10 + $0x1e0] ss:$16 sps:$4 sm:$0xff]  }
 0x112   :  { %1063 = vmatpush1.bf16.msra.mxu0 %v8555_v22  ;;  %1165 = vmatpush1.bf16.msra.mxu1 %v8556_v23  ;;  %v8616_v2 = vld [vmem:[#allocation10 + $0x1e8] ss:$16 sps:$4 sm:$0xff]   ;;  %v8619_v3 = vld [vmem:[#allocation10 + $0x204] ss:$16 sps:$4 sm:$0xff]   ;;  %v8622_v6 = vld [vmem:[#allocation10 + $0x20c] ss:$16 sps:$4 sm:$0xff]  }
 0x113   :  { %1064 = vmatprep.subr.bf16.mxu0 %v8557_v24  ;;  %1166 = vmatprep.subr.bf16.mxu1 %v8559_v25  ;;  %v230_v4 = vld [vmem:[#allocation2] sm:$0xff]  ;;  %v8617_v7 = vld [vmem:[#allocation10 + $0x200] ss:$16 sps:$4 sm:$0xff]   ;;  %v8628_v11 = vld [vmem:[#allocation10 + $0x22c] ss:$16 sps:$4 sm:$0xff]   ;;  %vm4956_vm2 = vcmask 1043456  }
 0x114   :  { %v234_v5 = vld [vmem:[#allocation2 + $0x20] sm:$0xff]  ;;  %v8623_v12 = vld [vmem:[#allocation10 + $0x220] ss:$16 sps:$4 sm:$0xff]   ;;  %v8634_v15 = vld [vmem:[#allocation10 + $0x24c] ss:$16 sps:$4 sm:$0xff]   ;;  %vm4639_vm3 = vcmask 64512  }
 0x115   :  { %v8620_v8 = vld [vmem:[#allocation10 + $0x208] ss:$16 sps:$4 sm:$0xff]   ;;  %v254_v9 = vpack.c.bf16 %v234_v5, %v230_v4  ;;  %v8625_v10 = vld [vmem:[#allocation10 + $0x224] ss:$16 sps:$4 sm:$0xff]   ;;  %v8629_v16 = vld [vmem:[#allocation10 + $0x240] ss:$16 sps:$4 sm:$0xff]  }
 0x116   :  { %1065 = vmatpush1.bf16.msra.mxu0 %v8561_v26  ;;  %1167 = vmatpush1.bf16.msra.mxu1 %v8562_v27  ;;  %v8626_v13 = vld [vmem:[#allocation10 + $0x228] ss:$16 sps:$4 sm:$0xff]   ;;  %v8631_v14 = vld [vmem:[#allocation10 + $0x244] ss:$16 sps:$4 sm:$0xff]   ;;  %v8640_v19 = vld [vmem:[#allocation10 + $0x26c] ss:$16 sps:$4 sm:$0xff]  }
 0x117   :  { %1066 = vmatprep.subr.bf16.mxu0 %v8563_v28  ;;  %1168 = vmatprep.subr.bf16.mxu1 %v8565_v29  ;;  %v8632_v17 = vld [vmem:[#allocation10 + $0x248] ss:$16 sps:$4 sm:$0xff]   ;;  %v8637_v18 = vld [vmem:[#allocation10 + $0x264] ss:$16 sps:$4 sm:$0xff]   ;;  %v8635_v20 = vld [vmem:[#allocation10 + $0x260] ss:$16 sps:$4 sm:$0xff]  }
 0x118   :  { %v8638_v21 = vld [vmem:[#allocation10 + $0x268] ss:$16 sps:$4 sm:$0xff]   ;;  %v8643_v22 = vld [vmem:[#allocation10 + $0x284] ss:$16 sps:$4 sm:$0xff]   ;;  %v8646_v23 = vld [vmem:[#allocation10 + $0x28c] ss:$16 sps:$4 sm:$0xff]  }
 0x119   :  { %v8641_v24 = vld [vmem:[#allocation10 + $0x280] ss:$16 sps:$4 sm:$0xff]   ;;  %v8644_v25 = vld [vmem:[#allocation10 + $0x288] ss:$16 sps:$4 sm:$0xff]   ;;  %v8649_v26 = vld [vmem:[#allocation10 + $0x2a4] ss:$16 sps:$4 sm:$0xff]  }
 0x11a   :  { %1067 = vmatpush1.bf16.msra.mxu0 %v8567_v30  ;;  %1169 = vmatpush1.bf16.msra.mxu1 %v8568_v31  ;;  %v8652_v27 = vld [vmem:[#allocation10 + $0x2ac] ss:$16 sps:$4 sm:$0xff]   ;;  %v238_v29 = vld [vmem:[#allocation2 + $0x40] sm:$0xff]  ;;  %v8665_v47 = vld [vmem:[#allocation10 + $0x300] ss:$16 sps:$4 sm:$0xff]   ;;  %vm4928_vm4 = vcmask 60416  }
 0x11b   :  { %1068 = vmatprep.subr.bf16.mxu0 %v8569_v32  ;;  %1170 = vmatprep.subr.bf16.mxu1 %v8571_v33  ;;  %v239_v28 = vld [vmem:[#allocation2 + $0x48] sm:$0xff]  ;;  %v258_v31 = vpack.c.bf16 %v238_v29, %v238_v29  ;;  %v8650_v33 = vld [vmem:[#allocation10 + $0x2a8] ss:$16 sps:$4 sm:$0xff]   ;;  %v8703_v5 = vld [vmem:[#allocation10 + $0x3c4] ss:$16 sps:$4 sm:$0xff]   ;;  %s9817_s13 = smov [#allocation26]  }
 0x11c   :  { %v259_v30 = vpack.c.bf16 %v239_v28, %v239_v28  ;;  %v8647_v32 = vld [vmem:[#allocation10 + $0x2a0] ss:$16 sps:$4 sm:$0xff]   ;;  %v8670_v46 = vld [vmem:[#allocation10 + $0x30c] ss:$16 sps:$4 sm:$0xff]   ;;  %v8698_v4 = vld [vmem:[#allocation10 + $0x3a8] ss:$16 sps:$4 sm:$0xff]  }
 0x11d   :  { %v8676_v50 = vld [vmem:[#allocation10 + $0x32c] ss:$16 sps:$4 sm:$0xff]   ;;  %v8730_v28 = vld [vmem:[#allocation13 + $0x4c] ss:$16 sps:$4 sm:$0xff]   ;;  %s7308_s0 = sshll.u32 %s9817_s13, 4  ;;  %s7309_s0 = int_to_ptr.vmem [resolvable:$true] %s7308_s0 }
 0x11e   :  { %1069 = vmatpush1.bf16.msra.mxu0 %v8573_v34  ;;  %1171 = vmatpush1.bf16.msra.mxu1 %v8574_v35  ;;  %v8655_v34 = vld [vmem:[#allocation10 + $0x2c4] ss:$16 sps:$4 sm:$0xff]   ;;  %v8658_v35 = vld [vmem:[#allocation10 + $0x2cc] ss:$16 sps:$4 sm:$0xff]   ;;  %s9731_s16 = scalar_lea.vmem %s7309_s0, 1536  ;;  %p9736_p1 = scmp.lt.s32.totalorder %s7309_s0, %s7309_s0 }
 0x11f   :  { %1070 = vmatprep.subr.bf16.mxu0 %v8575_v36  ;;  %1172 = vmatprep.subr.bf16.mxu1 %v8577_v37  ;;  %v233_v36 = vld [vmem:[#allocation2 + $0x18] sm:$0xff]  ;;  %p9732_p0 = scmp.ne.s32.totalorder %s7309_s0, %s9731_s16  ;;  %p9737_p2 = scmp.lt.s32.totalorder %s9731_s16, %s9731_s16 }
 0x120   :  { %v237_v37 = vld [vmem:[#allocation2 + $0x38] sm:$0xff] }
 0x121   :  { %p9738_p3 = por %p9737_p2, %p9736_p1 }
 0x122   :  { %1071 = vmatpush1.bf16.msra.mxu0 %v8579_v38  ;;  %1173 = vmatpush1.bf16.msra.mxu1 %v8580_v39  ;;  %v8653_v38 = vld [vmem:[#allocation10 + $0x2c0] ss:$16 sps:$4 sm:$0xff]   ;;  %v8656_v39 = vld [vmem:[#allocation10 + $0x2c8] ss:$16 sps:$4 sm:$0xff]  }
 0x123   :  { %1072 = vmatprep.subr.bf16.mxu0 %v8581_v40  ;;  %1174 = vmatprep.subr.bf16.mxu1 %v8583_v41  ;;  %v257_v40 = vpack.c.bf16 %v237_v37, %v233_v36  ;;  %v8661_v41 = vld [vmem:[#allocation10 + $0x2e4] ss:$16 sps:$4 sm:$0xff]   ;;  %v8734_v36 = vld [vmem:[#allocation13 + $0x68] ss:$16 sps:$4 sm:$0xff]   ;;  %v8739_v37 = vld [vmem:[#allocation13 + $0x84] ss:$16 sps:$4 sm:$0xff]   ;;  %p9739_p4 = pnand %p9738_p3, %p9732_p0 }
 0x126   :  { %1073 = vmatpush1.bf16.msra.mxu0 %v8585_v42  ;;  %1175 = vmatpush1.bf16.msra.mxu1 %v8586_v43  ;;  %v8664_v42 = vld [vmem:[#allocation10 + $0x2ec] ss:$16 sps:$4 sm:$0xff]   ;;  %v8659_v43 = vld [vmem:[#allocation10 + $0x2e0] ss:$16 sps:$4 sm:$0xff]  }
 0x127   :  { %1074 = vmatprep.subr.bf16.mxu0 %v8587_v44  ;;  %1176 = vmatprep.subr.bf16.mxu1 %v8589_v45  ;;  %v8662_v44 = vld [vmem:[#allocation10 + $0x2e8] ss:$16 sps:$4 sm:$0xff]   ;;  %v8667_v45 = vld [vmem:[#allocation10 + $0x304] ss:$16 sps:$4 sm:$0xff]  }
 0x12a   :  { %1075 = vmatpush1.bf16.msra.mxu0 %v8591_v48  ;;  %1177 = vmatpush1.bf16.msra.mxu1 %v8592_v49  ;;  %v8668_v48 = vld [vmem:[#allocation10 + $0x308] ss:$16 sps:$4 sm:$0xff]   ;;  %v8673_v49 = vld [vmem:[#allocation10 + $0x324] ss:$16 sps:$4 sm:$0xff]  }
 0x12b   :  { %1076 = vmatprep.subr.bf16.mxu0 %v8593_v51  ;;  %1178 = vmatprep.subr.bf16.mxu1 %v8595_v52  ;;  %v8671_v51 = vld [vmem:[#allocation10 + $0x320] ss:$16 sps:$4 sm:$0xff]   ;;  %v8674_v52 = vld [vmem:[#allocation10 + $0x328] ss:$16 sps:$4 sm:$0xff]  }
 0x12e   :  { %1077 = vmatpush1.bf16.msra.mxu0 %v8597_v53  ;;  %1179 = vmatpush1.bf16.msra.mxu1 %v8598_v54  ;;  %v8679_v53 = vld [vmem:[#allocation10 + $0x344] ss:$16 sps:$4 sm:$0xff]   ;;  %v8682_v54 = vld [vmem:[#allocation10 + $0x34c] ss:$16 sps:$4 sm:$0xff]  }
 0x12f   :  { %1078 = vmatprep.subr.bf16.mxu0 %v8599_v55  ;;  %1180 = vmatprep.subr.bf16.mxu1 %v8601_v56  ;;  %v8677_v55 = vld [vmem:[#allocation10 + $0x340] ss:$16 sps:$4 sm:$0xff]   ;;  %v8680_v56 = vld [vmem:[#allocation10 + $0x348] ss:$16 sps:$4 sm:$0xff]  }
 0x132   :  { %1079 = vmatpush1.bf16.msra.mxu0 %v8603_v57  ;;  %1181 = vmatpush1.bf16.msra.mxu1 %v8604_v58  ;;  %v8685_v57 = vld [vmem:[#allocation10 + $0x364] ss:$16 sps:$4 sm:$0xff]   ;;  %v8688_v58 = vld [vmem:[#allocation10 + $0x36c] ss:$16 sps:$4 sm:$0xff]  }
 0x133   :  { %1080 = vmatprep.subr.bf16.mxu0 %v8605_v59  ;;  %1182 = vmatprep.subr.bf16.mxu1 %v8607_v60  ;;  %v8683_v59 = vld [vmem:[#allocation10 + $0x360] ss:$16 sps:$4 sm:$0xff]   ;;  %v8686_v60 = vld [vmem:[#allocation10 + $0x368] ss:$16 sps:$4 sm:$0xff]  }
 0x136   :  { %1081 = vmatpush1.bf16.msra.mxu0 %v8609_v61  ;;  %1183 = vmatpush1.bf16.msra.mxu1 %v8610_v62  ;;  %v8691_v61 = vld [vmem:[#allocation10 + $0x384] ss:$16 sps:$4 sm:$0xff]   ;;  %v8694_v62 = vld [vmem:[#allocation10 + $0x38c] ss:$16 sps:$4 sm:$0xff]  }
 0x137   :  { %1082 = vmatprep.subr.bf16.mxu0 %v8611_v63  ;;  %1184 = vmatprep.subr.bf16.mxu1 %v8613_v0  ;;  %v8689_v63 = vld [vmem:[#allocation10 + $0x380] ss:$16 sps:$4 sm:$0xff]   ;;  %v8692_v0 = vld [vmem:[#allocation10 + $0x388] ss:$16 sps:$4 sm:$0xff]  }
 0x13a   :  { %1083 = vmatpush1.bf16.msra.mxu0 %v8615_v1  ;;  %1185 = vmatpush1.bf16.msra.mxu1 %v8616_v2  ;;  %v8697_v1 = vld [vmem:[#allocation10 + $0x3a4] ss:$16 sps:$4 sm:$0xff]   ;;  %v8700_v2 = vld [vmem:[#allocation10 + $0x3ac] ss:$16 sps:$4 sm:$0xff]  }
 0x13b   :  { %1103 = vmatprep.subr.bf16.mxu0 %v8619_v3  ;;  %1205 = vmatprep.subr.bf16.mxu1 %v8622_v6  ;;  %v8695_v3 = vld [vmem:[#allocation10 + $0x3a0] ss:$16 sps:$4 sm:$0xff]   ;;  %v8706_v6 = vld [vmem:[#allocation10 + $0x3cc] ss:$16 sps:$4 sm:$0xff]  }
 0x13d   :  { %1085 = vmatmul.mubr.bf16.vlgmr.msra.gmra.mrb[0].mxu0 %v254_v9  ;;  %1187 = vmatmul.mubr.bf16.vlgmr.msra.gmra.mrb[0].mxu1 %v254_v9  ;;  %v8709_v9 = vld [vmem:[#allocation10 + $0x3e4] ss:$16 sps:$4 sm:$0xff]  }
 0x13e   :  { %1104 = vmatpush1.bf16.msra.mxu0 %v8617_v7  ;;  %1206 = vmatpush1.bf16.msra.mxu1 %v8620_v8  ;;  %v8701_v7 = vld [vmem:[#allocation10 + $0x3c0] ss:$16 sps:$4 sm:$0xff]   ;;  %v8704_v8 = vld [vmem:[#allocation10 + $0x3c8] ss:$16 sps:$4 sm:$0xff]  }
 0x13f   :  { %1105 = vmatprep.subr.bf16.mxu0 %v8625_v10  ;;  %1207 = vmatprep.subr.bf16.mxu1 %v8628_v11  ;;  %v8712_v10 = vld [vmem:[#allocation10 + $0x3ec] ss:$16 sps:$4 sm:$0xff]   ;;  %v8707_v11 = vld [vmem:[#allocation10 + $0x3e0] ss:$16 sps:$4 sm:$0xff]  }
 0x140   :  { %1094 = vmatprep.mubr.bf16.mxu0 %v259_v30  ;;  %1196 = vmatprep.mubr.bf16.mxu1 %v259_v30  ;;  %v8725_v30 = vld [vmem:[#allocation13 + $0x40] ss:$16 sps:$4 sm:$0xff]  }
 0x142   :  { %1106 = vmatpush1.bf16.msra.mxu0 %v8623_v12  ;;  %1208 = vmatpush1.bf16.msra.mxu1 %v8626_v13  ;;  %v8710_v12 = vld [vmem:[#allocation10 + $0x3e8] ss:$16 sps:$4 sm:$0xff]  }
 0x143   :  { %1107 = vmatprep.subr.bf16.mxu0 %v8631_v14  ;;  %1209 = vmatprep.subr.bf16.mxu1 %v8634_v15  ;;  %v232_v13 = vld [vmem:[#allocation2 + $0x10] sm:$0xff] }
 0x144   :  { %v236_v14 = vld [vmem:[#allocation2 + $0x30] sm:$0xff] }
 0x145   :  { %1095 = vmatmul.mubr.bf16.gmra.mrb[4].mxu0 %v258_v31  ;;  %1197 = vmatmul.mubr.bf16.gmra.mrb[4].mxu1 %v258_v31  ;;  %v8715_v15 = vld [vmem:[#allocation13 + $0x4] ss:$16 sps:$4 sm:$0xff]   ;;  %v8728_v31 = vld [vmem:[#allocation13 + $0x48] ss:$16 sps:$4 sm:$0xff]  }
 0x146   :  { %1108 = vmatpush1.bf16.msra.mxu0 %v8629_v16  ;;  %1210 = vmatpush1.bf16.msra.mxu1 %v8632_v17  ;;  %v8718_v16 = vld [vmem:[#allocation13 + $0xc] ss:$16 sps:$4 sm:$0xff]   ;;  %v8713_v17 = vld [vmem:[#allocation13] ss:$16 sps:$4 sm:$0xff]  }
 0x147   :  { %1109 = vmatprep.subr.bf16.mxu0 %v8637_v18  ;;  %1211 = vmatprep.subr.bf16.mxu1 %v8640_v19  ;;  %v256_v18 = vpack.c.bf16 %v236_v14, %v232_v13  ;;  %v8716_v19 = vld [vmem:[#allocation13 + $0x8] ss:$16 sps:$4 sm:$0xff]   ;;  %v8799_v13 = vld [vmem:[#allocation13 + $0x1c4] ss:$16 sps:$4 sm:$0xff]   ;;  %v8802_v14 = vld [vmem:[#allocation13 + $0x1cc] ss:$16 sps:$4 sm:$0xff]  }
 0x148   :  { %1135 = vmatprep.mubr.bf16.mxu0 %v257_v40  ;;  %1237 = vmatprep.mubr.bf16.mxu1 %v257_v40  ;;  %v8740_v40 = vld [vmem:[#allocation13 + $0x88] ss:$16 sps:$4 sm:$0xff]  }
 0x14a   :  { %1110 = vmatpush1.bf16.msra.mxu0 %v8635_v20  ;;  %1212 = vmatpush1.bf16.msra.mxu1 %v8638_v21  ;;  %v241_v20 = vld [vmem:[#allocation2 + $0x58] sm:$0xff]  ;;  %v8721_v21 = vld [vmem:[#allocation13 + $0x24] ss:$16 sps:$4 sm:$0xff]  }
 0x14b   :  { %1111 = vmatprep.subr.bf16.mxu0 %v8643_v22  ;;  %1213 = vmatprep.subr.bf16.mxu1 %v8646_v23  ;;  %v8724_v22 = vld [vmem:[#allocation13 + $0x2c] ss:$16 sps:$4 sm:$0xff]   ;;  %v8719_v23 = vld [vmem:[#allocation13 + $0x20] ss:$16 sps:$4 sm:$0xff]  }
 0x14e   :  { %1112 = vmatpush1.bf16.msra.mxu0 %v8641_v24  ;;  %1214 = vmatpush1.bf16.msra.mxu1 %v8644_v25  ;;  %v261_v24 = vpack.c.bf16 %v241_v20, %v241_v20  ;;  %v8722_v25 = vld [vmem:[#allocation13 + $0x28] ss:$16 sps:$4 sm:$0xff]  }
 0x14f   :  { %1113 = vmatprep.subr.bf16.mxu0 %v8649_v26  ;;  %1215 = vmatprep.subr.bf16.mxu1 %v8652_v27  ;;  %v240_v26 = vld [vmem:[#allocation2 + $0x50] sm:$0xff]  ;;  %v8806_v20 = vld [vmem:[#allocation13 + $0x1e8] ss:$16 sps:$4 sm:$0xff]  }
 0x150   :  { %v8727_v27 = vld [vmem:[#allocation13 + $0x44] ss:$16 sps:$4 sm:$0xff]   ;;  %v260_v29 = vpack.c.bf16 %v240_v26, %v240_v26 }
 0x151   :  { %v8820_v26 = vld [vmem:[#allocation13 + $0x224] ss:$16 sps:$4 sm:$0xff]  }
 0x152   :  { %1114 = vmatpush1.bf16.msra.mxu0 %v8647_v32  ;;  %1216 = vmatpush1.bf16.msra.mxu1 %v8650_v33  ;;  %v8733_v32 = vld [vmem:[#allocation13 + $0x64] ss:$16 sps:$4 sm:$0xff]   ;;  %v8736_v33 = vld [vmem:[#allocation13 + $0x6c] ss:$16 sps:$4 sm:$0xff]  }
 0x153   :  { %1115 = vmatprep.subr.bf16.mxu0 %v8655_v34  ;;  %1217 = vmatprep.subr.bf16.mxu1 %v8658_v35  ;;  %v8811_v34 = vld [vmem:[#allocation5 + $0x4] ss:$16 sps:$4 sm:$0xff]   ;;  %v8731_v35 = vld [vmem:[#allocation13 + $0x60] ss:$16 sps:$4 sm:$0xff]  }
 0x156   :  { %1116 = vmatpush1.bf16.msra.mxu0 %v8653_v38  ;;  %1218 = vmatpush1.bf16.msra.mxu1 %v8656_v39  ;;  %v8742_v38 = vld [vmem:[#allocation13 + $0x8c] ss:$16 sps:$4 sm:$0xff]   ;;  %v8737_v39 = vld [vmem:[#allocation13 + $0x80] ss:$16 sps:$4 sm:$0xff]  }
 0x157   :  { %1117 = vmatprep.subr.bf16.mxu0 %v8661_v41  ;;  %1219 = vmatprep.subr.bf16.mxu1 %v8664_v42  ;;  %v8745_v41 = vld [vmem:[#allocation13 + $0xa4] ss:$16 sps:$4 sm:$0xff]   ;;  %v8748_v42 = vld [vmem:[#allocation13 + $0xac] ss:$16 sps:$4 sm:$0xff]  }
 0x15a   :  { %1118 = vmatpush1.bf16.msra.mxu0 %v8659_v43  ;;  %1220 = vmatpush1.bf16.msra.mxu1 %v8662_v44  ;;  %v8743_v43 = vld [vmem:[#allocation13 + $0xa0] ss:$16 sps:$4 sm:$0xff]   ;;  %v8746_v44 = vld [vmem:[#allocation13 + $0xa8] ss:$16 sps:$4 sm:$0xff]  }
 0x15b   :  { %1119 = vmatprep.subr.bf16.mxu0 %v8667_v45  ;;  %1221 = vmatprep.subr.bf16.mxu1 %v8670_v46  ;;  %v8751_v45 = vld [vmem:[#allocation13 + $0xc4] ss:$16 sps:$4 sm:$0xff]   ;;  %v8754_v46 = vld [vmem:[#allocation13 + $0xcc] ss:$16 sps:$4 sm:$0xff]  }
 0x15e   :  { %1120 = vmatpush1.bf16.msra.mxu0 %v8665_v47  ;;  %1222 = vmatpush1.bf16.msra.mxu1 %v8668_v48  ;;  %v8749_v47 = vld [vmem:[#allocation13 + $0xc0] ss:$16 sps:$4 sm:$0xff]   ;;  %v8752_v48 = vld [vmem:[#allocation13 + $0xc8] ss:$16 sps:$4 sm:$0xff]  }
 0x15f   :  { %1121 = vmatprep.subr.bf16.mxu0 %v8673_v49  ;;  %1223 = vmatprep.subr.bf16.mxu1 %v8676_v50  ;;  %v8757_v49 = vld [vmem:[#allocation13 + $0xe4] ss:$16 sps:$4 sm:$0xff]   ;;  %v8760_v50 = vld [vmem:[#allocation13 + $0xec] ss:$16 sps:$4 sm:$0xff]  }
 0x162   :  { %1122 = vmatpush1.bf16.msra.mxu0 %v8671_v51  ;;  %1224 = vmatpush1.bf16.msra.mxu1 %v8674_v52  ;;  %v8755_v51 = vld [vmem:[#allocation13 + $0xe0] ss:$16 sps:$4 sm:$0xff]   ;;  %v8758_v52 = vld [vmem:[#allocation13 + $0xe8] ss:$16 sps:$4 sm:$0xff]  }
 0x163   :  { %1123 = vmatprep.subr.bf16.mxu0 %v8679_v53  ;;  %1225 = vmatprep.subr.bf16.mxu1 %v8682_v54  ;;  %v8763_v53 = vld [vmem:[#allocation13 + $0x104] ss:$16 sps:$4 sm:$0xff]   ;;  %v8766_v54 = vld [vmem:[#allocation13 + $0x10c] ss:$16 sps:$4 sm:$0xff]  }
 0x166   :  { %1124 = vmatpush1.bf16.msra.mxu0 %v8677_v55  ;;  %1226 = vmatpush1.bf16.msra.mxu1 %v8680_v56  ;;  %v8761_v55 = vld [vmem:[#allocation13 + $0x100] ss:$16 sps:$4 sm:$0xff]   ;;  %v8764_v56 = vld [vmem:[#allocation13 + $0x108] ss:$16 sps:$4 sm:$0xff]  }
 0x167   :  { %1125 = vmatprep.subr.bf16.mxu0 %v8685_v57  ;;  %1227 = vmatprep.subr.bf16.mxu1 %v8688_v58  ;;  %v8769_v57 = vld [vmem:[#allocation13 + $0x124] ss:$16 sps:$4 sm:$0xff]   ;;  %v8772_v58 = vld [vmem:[#allocation13 + $0x12c] ss:$16 sps:$4 sm:$0xff]  }
 0x16a   :  { %1126 = vmatpush1.bf16.msra.mxu0 %v8683_v59  ;;  %1228 = vmatpush1.bf16.msra.mxu1 %v8686_v60  ;;  %v8767_v59 = vld [vmem:[#allocation13 + $0x120] ss:$16 sps:$4 sm:$0xff]   ;;  %v8770_v60 = vld [vmem:[#allocation13 + $0x128] ss:$16 sps:$4 sm:$0xff]  }
 0x16b   :  { %1127 = vmatprep.subr.bf16.mxu0 %v8691_v61  ;;  %1229 = vmatprep.subr.bf16.mxu1 %v8694_v62  ;;  %v8775_v61 = vld [vmem:[#allocation13 + $0x144] ss:$16 sps:$4 sm:$0xff]   ;;  %v8778_v62 = vld [vmem:[#allocation13 + $0x14c] ss:$16 sps:$4 sm:$0xff]  }
 0x16e   :  { %1128 = vmatpush1.bf16.msra.mxu0 %v8689_v63  ;;  %1230 = vmatpush1.bf16.msra.mxu1 %v8692_v0  ;;  %v8773_v63 = vld [vmem:[#allocation13 + $0x140] ss:$16 sps:$4 sm:$0xff]   ;;  %v8776_v0 = vld [vmem:[#allocation13 + $0x148] ss:$16 sps:$4 sm:$0xff]  }
 0x16f   :  { %1129 = vmatprep.subr.bf16.mxu0 %v8697_v1  ;;  %1231 = vmatprep.subr.bf16.mxu1 %v8700_v2  ;;  %v8781_v1 = vld [vmem:[#allocation13 + $0x164] ss:$16 sps:$4 sm:$0xff]   ;;  %v8784_v2 = vld [vmem:[#allocation13 + $0x16c] ss:$16 sps:$4 sm:$0xff]  }
 0x172   :  { %1130 = vmatpush1.bf16.msra.mxu0 %v8695_v3  ;;  %1232 = vmatpush1.bf16.msra.mxu1 %v8698_v4  ;;  %v8779_v3 = vld [vmem:[#allocation13 + $0x160] ss:$16 sps:$4 sm:$0xff]   ;;  %v8782_v4 = vld [vmem:[#allocation13 + $0x168] ss:$16 sps:$4 sm:$0xff]  }
 0x173   :  { %1131 = vmatprep.subr.bf16.mxu0 %v8703_v5  ;;  %1233 = vmatprep.subr.bf16.mxu1 %v8706_v6  ;;  %v8787_v5 = vld [vmem:[#allocation13 + $0x184] ss:$16 sps:$4 sm:$0xff]   ;;  %v8790_v6 = vld [vmem:[#allocation13 + $0x18c] ss:$16 sps:$4 sm:$0xff]  }
 0x176   :  { %1132 = vmatpush1.bf16.msra.mxu0 %v8701_v7  ;;  %1234 = vmatpush1.bf16.msra.mxu1 %v8704_v8  ;;  %v8785_v7 = vld [vmem:[#allocation13 + $0x180] ss:$16 sps:$4 sm:$0xff]   ;;  %v8788_v8 = vld [vmem:[#allocation13 + $0x188] ss:$16 sps:$4 sm:$0xff]  }
 0x177   :  { %1133 = vmatprep.subr.bf16.mxu0 %v8709_v9  ;;  %1235 = vmatprep.subr.bf16.mxu1 %v8712_v10  ;;  %v8793_v9 = vld [vmem:[#allocation13 + $0x1a4] ss:$16 sps:$4 sm:$0xff]   ;;  %v8796_v10 = vld [vmem:[#allocation13 + $0x1ac] ss:$16 sps:$4 sm:$0xff]  }
 0x17a   :  { %1134 = vmatpush1.bf16.msra.mxu0 %v8707_v11  ;;  %1236 = vmatpush1.bf16.msra.mxu1 %v8710_v12  ;;  %v8791_v11 = vld [vmem:[#allocation13 + $0x1a0] ss:$16 sps:$4 sm:$0xff]   ;;  %v8794_v12 = vld [vmem:[#allocation13 + $0x1a8] ss:$16 sps:$4 sm:$0xff]  }
 0x17b   :  { %2080 = vmatprep.subr.bf16.mxu0 %v8715_v15  ;;  %2182 = vmatprep.subr.bf16.mxu1 %v8718_v16  ;;  %v8797_v15 = vld [vmem:[#allocation13 + $0x1c0] ss:$16 sps:$4 sm:$0xff]   ;;  %v8800_v16 = vld [vmem:[#allocation13 + $0x1c8] ss:$16 sps:$4 sm:$0xff]  }
 0x17d   :  { %1136 = vmatmul.mubr.bf16.vlgmr.msra.gmra.mrb[0].mxu0 %v256_v18  ;;  %1238 = vmatmul.mubr.bf16.vlgmr.msra.gmra.mrb[0].mxu1 %v256_v18  ;;  %v8808_v18 = vld [vmem:[#allocation13 + $0x1ec] ss:$16 sps:$4 sm:$0xff]  }
 0x17e   :  { %2081 = vmatpush1.bf16.msra.mxu0 %v8713_v17  ;;  %2183 = vmatpush1.bf16.msra.mxu1 %v8716_v19  ;;  %v8805_v17 = vld [vmem:[#allocation13 + $0x1e4] ss:$16 sps:$4 sm:$0xff]   ;;  %v8803_v19 = vld [vmem:[#allocation13 + $0x1e0] ss:$16 sps:$4 sm:$0xff]  }
 0x17f   :  { %2082 = vmatprep.subr.bf16.mxu0 %v8721_v21  ;;  %2184 = vmatprep.subr.bf16.mxu1 %v8724_v22  ;;  %v8809_v21 = vld [vmem:[#allocation5] ss:$16 sps:$4 sm:$0xff]   ;;  %v8814_v22 = vld [vmem:[#allocation13 + $0x204] ss:$16 sps:$4 sm:$0xff]  }
 0x180   :  { %1145 = vmatprep.mubr.bf16.mxu0 %v261_v24  ;;  %1247 = vmatprep.mubr.bf16.mxu1 %v261_v24  ;;  %v8812_v24 = vld [vmem:[#allocation13 + $0x200] ss:$16 sps:$4 sm:$0xff]  }
 0x182   :  { %2083 = vmatpush1.bf16.msra.mxu0 %v8719_v23  ;;  %2185 = vmatpush1.bf16.msra.mxu1 %v8722_v25  ;;  %v8817_v23 = vld [vmem:[#allocation13 + $0x20c] ss:$16 sps:$4 sm:$0xff]   ;;  %v8815_v25 = vld [vmem:[#allocation13 + $0x208] ss:$16 sps:$4 sm:$0xff]  }
 0x183   :  { %2084 = vmatprep.subr.bf16.mxu0 %v8727_v27  ;;  %2186 = vmatprep.subr.bf16.mxu1 %v8730_v28  ;;  %v8823_v27 = vld [vmem:[#allocation13 + $0x22c] ss:$16 sps:$4 sm:$0xff]   ;;  %v246_v28 = vld [vmem:[#allocation5 + $0x20] sm:$0xff] }
 0x185   :  { %1146 = vmatmul.mubr.bf16.gmra.mrb[4].mxu0 %v260_v29  ;;  %1248 = vmatmul.mubr.bf16.gmra.mrb[4].mxu1 %v260_v29  ;;  %v8818_v29 = vld [vmem:[#allocation13 + $0x220] ss:$16 sps:$4 sm:$0xff]  }
 0x186   :  { %2085 = vmatpush1.bf16.msra.mxu0 %v8725_v30  ;;  %2187 = vmatpush1.bf16.msra.mxu1 %v8728_v31  ;;  %v8821_v30 = vld [vmem:[#allocation13 + $0x228] ss:$16 sps:$4 sm:$0xff]   ;;  %v7464_v31 = vcombine.high %v246_v28, %v246_v28 }
 0x187   :  { %2086 = vmatprep.subr.bf16.mxu0 %v8733_v32  ;;  %2188 = vmatprep.subr.bf16.mxu1 %v8736_v33  ;;  %v8826_v32 = vld [vmem:[#allocation13 + $0x244] ss:$16 sps:$4 sm:$0xff]   ;;  %v8829_v33 = vld [vmem:[#allocation13 + $0x24c] ss:$16 sps:$4 sm:$0xff]  }
 0x188   :  { %2112 = vmatprep.mubr.bf16.mxu0 %v8811_v34  ;;  %2214 = vmatprep.mubr.bf16.mxu1 %v8811_v34  ;;  %v8824_v34 = vld [vmem:[#allocation13 + $0x240] ss:$16 sps:$4 sm:$0xff]  }
 0x18a   :  { %2087 = vmatpush1.bf16.msra.mxu0 %v8731_v35  ;;  %2189 = vmatpush1.bf16.msra.mxu1 %v8734_v36  ;;  %v8827_v35 = vld [vmem:[#allocation13 + $0x248] ss:$16 sps:$4 sm:$0xff]   ;;  %v8832_v36 = vld [vmem:[#allocation13 + $0x264] ss:$16 sps:$4 sm:$0xff]  }
 0x18b   :  { %2088 = vmatprep.subr.bf16.mxu0 %v8739_v37  ;;  %2190 = vmatprep.subr.bf16.mxu1 %v8742_v38  ;;  %v8835_v37 = vld [vmem:[#allocation13 + $0x26c] ss:$16 sps:$4 sm:$0xff]   ;;  %v7463_v38 = vcombine.low %v246_v28, %v246_v28  ;;  %v8926_v28 = vld [vmem:[#allocation16 + $0xc] ss:$16 sps:$4 sm:$0xff]  }
 0x18e   :  { %2089 = vmatpush1.bf16.msra.mxu0 %v8737_v39  ;;  %2191 = vmatpush1.bf16.msra.mxu1 %v8740_v40  ;;  %v8912_v39 = vld [vmem:[#allocation5 + $0xc] ss:$16 sps:$4 sm:$0xff]   ;;  %v8830_v40 = vld [vmem:[#allocation13 + $0x260] ss:$16 sps:$4 sm:$0xff]  }
 0x18f   :  { %2090 = vmatprep.subr.bf16.mxu0 %v8745_v41  ;;  %2192 = vmatprep.subr.bf16.mxu1 %v8748_v42  ;;  %v8833_v41 = vld [vmem:[#allocation13 + $0x268] ss:$16 sps:$4 sm:$0xff]   ;;  %v8838_v42 = vld [vmem:[#allocation13 + $0x284] ss:$16 sps:$4 sm:$0xff]  }
 0x192   :  { %2091 = vmatpush1.bf16.msra.mxu0 %v8743_v43  ;;  %2193 = vmatpush1.bf16.msra.mxu1 %v8746_v44  ;;  %v8841_v43 = vld [vmem:[#allocation13 + $0x28c] ss:$16 sps:$4 sm:$0xff]   ;;  %v8836_v44 = vld [vmem:[#allocation13 + $0x280] ss:$16 sps:$4 sm:$0xff]  }
 0x193   :  { %2092 = vmatprep.subr.bf16.mxu0 %v8751_v45  ;;  %2194 = vmatprep.subr.bf16.mxu1 %v8754_v46  ;;  %v8839_v45 = vld [vmem:[#allocation13 + $0x288] ss:$16 sps:$4 sm:$0xff]   ;;  %v8844_v46 = vld [vmem:[#allocation13 + $0x2a4] ss:$16 sps:$4 sm:$0xff]  }
 0x196   :  { %2093 = vmatpush1.bf16.msra.mxu0 %v8749_v47  ;;  %2195 = vmatpush1.bf16.msra.mxu1 %v8752_v48  ;;  %v8847_v47 = vld [vmem:[#allocation13 + $0x2ac] ss:$16 sps:$4 sm:$0xff]   ;;  %v8842_v48 = vld [vmem:[#allocation13 + $0x2a0] ss:$16 sps:$4 sm:$0xff]  }
 0x197   :  { %2094 = vmatprep.subr.bf16.mxu0 %v8757_v49  ;;  %2196 = vmatprep.subr.bf16.mxu1 %v8760_v50  ;;  %v8845_v49 = vld [vmem:[#allocation13 + $0x2a8] ss:$16 sps:$4 sm:$0xff]   ;;  %v8850_v50 = vld [vmem:[#allocation13 + $0x2c4] ss:$16 sps:$4 sm:$0xff]  }
 0x19a   :  { %2095 = vmatpush1.bf16.msra.mxu0 %v8755_v51  ;;  %2197 = vmatpush1.bf16.msra.mxu1 %v8758_v52  ;;  %v8853_v51 = vld [vmem:[#allocation13 + $0x2cc] ss:$16 sps:$4 sm:$0xff]   ;;  %v8848_v52 = vld [vmem:[#allocation13 + $0x2c0] ss:$16 sps:$4 sm:$0xff]  }
 0x19b   :  { %2096 = vmatprep.subr.bf16.mxu0 %v8763_v53  ;;  %2198 = vmatprep.subr.bf16.mxu1 %v8766_v54  ;;  %v8851_v53 = vld [vmem:[#allocation13 + $0x2c8] ss:$16 sps:$4 sm:$0xff]   ;;  %v8856_v54 = vld [vmem:[#allocation13 + $0x2e4] ss:$16 sps:$4 sm:$0xff]  }
 0x19e   :  { %2097 = vmatpush1.bf16.msra.mxu0 %v8761_v55  ;;  %2199 = vmatpush1.bf16.msra.mxu1 %v8764_v56  ;;  %v8859_v55 = vld [vmem:[#allocation13 + $0x2ec] ss:$16 sps:$4 sm:$0xff]   ;;  %v8854_v56 = vld [vmem:[#allocation13 + $0x2e0] ss:$16 sps:$4 sm:$0xff]  }
 0x19f   :  { %2098 = vmatprep.subr.bf16.mxu0 %v8769_v57  ;;  %2200 = vmatprep.subr.bf16.mxu1 %v8772_v58  ;;  %v8857_v57 = vld [vmem:[#allocation13 + $0x2e8] ss:$16 sps:$4 sm:$0xff]   ;;  %v8862_v58 = vld [vmem:[#allocation13 + $0x304] ss:$16 sps:$4 sm:$0xff]  }
 0x1a2   :  { %2099 = vmatpush1.bf16.msra.mxu0 %v8767_v59  ;;  %2201 = vmatpush1.bf16.msra.mxu1 %v8770_v60  ;;  %v8865_v59 = vld [vmem:[#allocation13 + $0x30c] ss:$16 sps:$4 sm:$0xff]   ;;  %v8860_v60 = vld [vmem:[#allocation13 + $0x300] ss:$16 sps:$4 sm:$0xff]  }
 0x1a3   :  { %2100 = vmatprep.subr.bf16.mxu0 %v8775_v61  ;;  %2202 = vmatprep.subr.bf16.mxu1 %v8778_v62  ;;  %v8863_v61 = vld [vmem:[#allocation13 + $0x308] ss:$16 sps:$4 sm:$0xff]   ;;  %v8868_v62 = vld [vmem:[#allocation13 + $0x324] ss:$16 sps:$4 sm:$0xff]  }
 0x1a6   :  { %2101 = vmatpush1.bf16.msra.mxu0 %v8773_v63  ;;  %2203 = vmatpush1.bf16.msra.mxu1 %v8776_v0  ;;  %v8871_v63 = vld [vmem:[#allocation13 + $0x32c] ss:$16 sps:$4 sm:$0xff]   ;;  %v8866_v0 = vld [vmem:[#allocation13 + $0x320] ss:$16 sps:$4 sm:$0xff]  }
 0x1a7   :  { %2102 = vmatprep.subr.bf16.mxu0 %v8781_v1  ;;  %2204 = vmatprep.subr.bf16.mxu1 %v8784_v2  ;;  %v8869_v1 = vld [vmem:[#allocation13 + $0x328] ss:$16 sps:$4 sm:$0xff]   ;;  %v8874_v2 = vld [vmem:[#allocation13 + $0x344] ss:$16 sps:$4 sm:$0xff]  }
 0x1aa   :  { %2103 = vmatpush1.bf16.msra.mxu0 %v8779_v3  ;;  %2205 = vmatpush1.bf16.msra.mxu1 %v8782_v4  ;;  %v8877_v3 = vld [vmem:[#allocation13 + $0x34c] ss:$16 sps:$4 sm:$0xff]   ;;  %v8872_v4 = vld [vmem:[#allocation13 + $0x340] ss:$16 sps:$4 sm:$0xff]  }
 0x1ab   :  { %2104 = vmatprep.subr.bf16.mxu0 %v8787_v5  ;;  %2206 = vmatprep.subr.bf16.mxu1 %v8790_v6  ;;  %v8875_v5 = vld [vmem:[#allocation13 + $0x348] ss:$16 sps:$4 sm:$0xff]   ;;  %v8880_v6 = vld [vmem:[#allocation13 + $0x364] ss:$16 sps:$4 sm:$0xff]  }
 0x1ae   :  { %2105 = vmatpush1.bf16.msra.mxu0 %v8785_v7  ;;  %2207 = vmatpush1.bf16.msra.mxu1 %v8788_v8  ;;  %v8883_v7 = vld [vmem:[#allocation13 + $0x36c] ss:$16 sps:$4 sm:$0xff]   ;;  %v8878_v8 = vld [vmem:[#allocation13 + $0x360] ss:$16 sps:$4 sm:$0xff]  }
 0x1af   :  { %2106 = vmatprep.subr.bf16.mxu0 %v8793_v9  ;;  %2208 = vmatprep.subr.bf16.mxu1 %v8796_v10  ;;  %v8881_v9 = vld [vmem:[#allocation13 + $0x368] ss:$16 sps:$4 sm:$0xff]   ;;  %v8886_v10 = vld [vmem:[#allocation13 + $0x384] ss:$16 sps:$4 sm:$0xff]  }
 0x1b2   :  { %2107 = vmatpush1.bf16.msra.mxu0 %v8791_v11  ;;  %2209 = vmatpush1.bf16.msra.mxu1 %v8794_v12  ;;  %v8889_v11 = vld [vmem:[#allocation13 + $0x38c] ss:$16 sps:$4 sm:$0xff]   ;;  %v8884_v12 = vld [vmem:[#allocation13 + $0x380] ss:$16 sps:$4 sm:$0xff]  }
 0x1b3   :  { %2108 = vmatprep.subr.bf16.mxu0 %v8799_v13  ;;  %2210 = vmatprep.subr.bf16.mxu1 %v8802_v14  ;;  %v8887_v13 = vld [vmem:[#allocation13 + $0x388] ss:$16 sps:$4 sm:$0xff]   ;;  %v8892_v14 = vld [vmem:[#allocation13 + $0x3a4] ss:$16 sps:$4 sm:$0xff]  }
 0x1b6   :  { %2109 = vmatpush1.bf16.msra.mxu0 %v8797_v15  ;;  %2211 = vmatpush1.bf16.msra.mxu1 %v8800_v16  ;;  %v8895_v15 = vld [vmem:[#allocation13 + $0x3ac] ss:$16 sps:$4 sm:$0xff]   ;;  %v8890_v16 = vld [vmem:[#allocation13 + $0x3a0] ss:$16 sps:$4 sm:$0xff]  }
 0x1b7   :  { %2110 = vmatprep.subr.bf16.mxu0 %v8805_v17  ;;  %2212 = vmatprep.subr.bf16.mxu1 %v8808_v18  ;;  %v8893_v17 = vld [vmem:[#allocation13 + $0x3a8] ss:$16 sps:$4 sm:$0xff]   ;;  %v8900_v18 = vld [vmem:[#allocation13 + $0x3c4] ss:$16 sps:$4 sm:$0xff]  }
 0x1ba   :  { %2111 = vmatpush1.bf16.msra.mxu0 %v8803_v19  ;;  %2213 = vmatpush1.bf16.msra.mxu1 %v8806_v20  ;;  %v8903_v19 = vld [vmem:[#allocation13 + $0x3cc] ss:$16 sps:$4 sm:$0xff]   ;;  %v8898_v20 = vld [vmem:[#allocation13 + $0x3c0] ss:$16 sps:$4 sm:$0xff]  }
 0x1bb   :  { %2131 = vmatprep.subr.bf16.mxu0 %v8814_v22  ;;  %2233 = vmatprep.subr.bf16.mxu1 %v8817_v23  ;;  %v8906_v22 = vld [vmem:[#allocation13 + $0x3e4] ss:$16 sps:$4 sm:$0xff]   ;;  %v8909_v23 = vld [vmem:[#allocation13 + $0x3ec] ss:$16 sps:$4 sm:$0xff]  }
 0x1bd   :  { %2113 = vmatmul.mubr.bf16.vlgmr.msra.gmra.mrb[8].mxu0 %v8809_v21  ;;  %2215 = vmatmul.mubr.bf16.vlgmr.msra.gmra.mrb[8].mxu1 %v8809_v21  ;;  %v8901_v21 = vld [vmem:[#allocation13 + $0x3c8] ss:$16 sps:$4 sm:$0xff]  }
 0x1be   :  { %2132 = vmatpush1.bf16.msra.mxu0 %v8812_v24  ;;  %2234 = vmatpush1.bf16.msra.mxu1 %v8815_v25  ;;  %v8904_v24 = vld [vmem:[#allocation13 + $0x3e0] ss:$16 sps:$4 sm:$0xff]   ;;  %v8907_v25 = vld [vmem:[#allocation13 + $0x3e8] ss:$16 sps:$4 sm:$0xff]  }
 0x1bf   :  { %2133 = vmatprep.subr.bf16.mxu0 %v8820_v26  ;;  %2235 = vmatprep.subr.bf16.mxu1 %v8823_v27  ;;  %v247_v26 = vld [vmem:[#allocation5 + $0x28] sm:$0xff] }
 0x1c0   :  { %2122 = vmatprep.mubr.bf16.mxu0 %v7464_v31  ;;  %2224 = vmatprep.mubr.bf16.mxu1 %v7464_v31  ;;  %v8917_v27 = vld [vmem:[#allocation16 + $0x4] ss:$16 sps:$4 sm:$0xff]   ;;  %v8915_v31 = vld [vmem:[#allocation16] ss:$16 sps:$4 sm:$0xff]  }
 0x1c2   :  { %2134 = vmatpush1.bf16.msra.mxu0 %v8818_v29  ;;  %2236 = vmatpush1.bf16.msra.mxu1 %v8821_v30  ;;  %v8910_v29 = vld [vmem:[#allocation5 + $0x8] ss:$16 sps:$4 sm:$0xff]   ;;  %v7466_v30 = vcombine.high %v247_v26, %v247_v26 }
 0x1c3   :  { %2135 = vmatprep.subr.bf16.mxu0 %v8826_v32  ;;  %2237 = vmatprep.subr.bf16.mxu1 %v8829_v33  ;;  %v8920_v32 = vld [vmem:[#allocation16 + $0x24] ss:$16 sps:$4 sm:$0xff]   ;;  %v8924_v33 = vld [vmem:[#allocation16 + $0x8] ss:$16 sps:$4 sm:$0xff]  }
 0x1c5   :  { %2123 = vmatmul.mubr.bf16.gmra.mrb[12].mxu0 %v7463_v38  ;;  %2225 = vmatmul.mubr.bf16.gmra.mrb[12].mxu1 %v7463_v38  ;;  %v8938_v38 = vld [vmem:[#allocation16 + $0x4c] ss:$16 sps:$4 sm:$0xff]  }
 0x1c6   :  { %2136 = vmatpush1.bf16.msra.mxu0 %v8824_v34  ;;  %2238 = vmatpush1.bf16.msra.mxu1 %v8827_v35  ;;  %v8932_v34 = vld [vmem:[#allocation16 + $0x2c] ss:$16 sps:$4 sm:$0xff]   ;;  %v8918_v35 = vld [vmem:[#allocation16 + $0x20] ss:$16 sps:$4 sm:$0xff]  }
 0x1c7   :  { %2137 = vmatprep.subr.bf16.mxu0 %v8832_v36  ;;  %2239 = vmatprep.subr.bf16.mxu1 %v8835_v37  ;;  %v8923_v36 = vld [vmem:[#allocation16 + $0x44] ss:$16 sps:$4 sm:$0xff]   ;;  %v8930_v37 = vld [vmem:[#allocation16 + $0x28] ss:$16 sps:$4 sm:$0xff]  }
 0x1c8   :  { %2163 = vmatprep.mubr.bf16.mxu0 %v8912_v39  ;;  %2265 = vmatprep.mubr.bf16.mxu1 %v8912_v39  ;;  %v7465_v39 = vcombine.low %v247_v26, %v247_v26  ;;  %v9011_v26 = vld [vmem:[#allocation16 + $0x1c8] ss:$16 sps:$4 sm:$0xff]  }
 0x1ca   :  { %2138 = vmatpush1.bf16.msra.mxu0 %v8830_v40  ;;  %2240 = vmatpush1.bf16.msra.mxu1 %v8833_v41  ;;  %v8921_v40 = vld [vmem:[#allocation16 + $0x40] ss:$16 sps:$4 sm:$0xff]  }
 0x1cb   :  { %2139 = vmatprep.subr.bf16.mxu0 %v8838_v42  ;;  %2241 = vmatprep.subr.bf16.mxu1 %v8841_v43  ;;  %v9007_v41 = vld [vmem:[#allocation7 + $0x4] ss:$16 sps:$4 sm:$0xff]   ;;  %v8929_v42 = vld [vmem:[#allocation16 + $0x64] ss:$16 sps:$4 sm:$0xff]   ;;  %v8936_v43 = vld [vmem:[#allocation16 + $0x48] ss:$16 sps:$4 sm:$0xff]  }
 0x1ce   :  { %2140 = vmatpush1.bf16.msra.mxu0 %v8836_v44  ;;  %2242 = vmatpush1.bf16.msra.mxu1 %v8839_v45  ;;  %v8944_v44 = vld [vmem:[#allocation16 + $0x6c] ss:$16 sps:$4 sm:$0xff]   ;;  %v8927_v45 = vld [vmem:[#allocation16 + $0x60] ss:$16 sps:$4 sm:$0xff]  }
 0x1cf   :  { %2141 = vmatprep.subr.bf16.mxu0 %v8844_v46  ;;  %2243 = vmatprep.subr.bf16.mxu1 %v8847_v47  ;;  %v8942_v46 = vld [vmem:[#allocation16 + $0x68] ss:$16 sps:$4 sm:$0xff]   ;;  %v8935_v47 = vld [vmem:[#allocation16 + $0x84] ss:$16 sps:$4 sm:$0xff]  }
 0x1d2   :  { %2142 = vmatpush1.bf16.msra.mxu0 %v8842_v48  ;;  %2244 = vmatpush1.bf16.msra.mxu1 %v8845_v49  ;;  %v8950_v48 = vld [vmem:[#allocation16 + $0x8c] ss:$16 sps:$4 sm:$0xff]   ;;  %v8933_v49 = vld [vmem:[#allocation16 + $0x80] ss:$16 sps:$4 sm:$0xff]  }
 0x1d3   :  { %2143 = vmatprep.subr.bf16.mxu0 %v8850_v50  ;;  %2245 = vmatprep.subr.bf16.mxu1 %v8853_v51  ;;  %v8948_v50 = vld [vmem:[#allocation16 + $0x88] ss:$16 sps:$4 sm:$0xff]   ;;  %v8941_v51 = vld [vmem:[#allocation16 + $0xa4] ss:$16 sps:$4 sm:$0xff]  }
 0x1d6   :  { %2144 = vmatpush1.bf16.msra.mxu0 %v8848_v52  ;;  %2246 = vmatpush1.bf16.msra.mxu1 %v8851_v53  ;;  %v8956_v52 = vld [vmem:[#allocation16 + $0xac] ss:$16 sps:$4 sm:$0xff]   ;;  %v8939_v53 = vld [vmem:[#allocation16 + $0xa0] ss:$16 sps:$4 sm:$0xff]  }
 0x1d7   :  { %2145 = vmatprep.subr.bf16.mxu0 %v8856_v54  ;;  %2247 = vmatprep.subr.bf16.mxu1 %v8859_v55  ;;  %v8954_v54 = vld [vmem:[#allocation16 + $0xa8] ss:$16 sps:$4 sm:$0xff]   ;;  %v8947_v55 = vld [vmem:[#allocation16 + $0xc4] ss:$16 sps:$4 sm:$0xff]  }
 0x1da   :  { %2146 = vmatpush1.bf16.msra.mxu0 %v8854_v56  ;;  %2248 = vmatpush1.bf16.msra.mxu1 %v8857_v57  ;;  %v8962_v56 = vld [vmem:[#allocation16 + $0xcc] ss:$16 sps:$4 sm:$0xff]   ;;  %v8945_v57 = vld [vmem:[#allocation16 + $0xc0] ss:$16 sps:$4 sm:$0xff]  }
 0x1db   :  { %2147 = vmatprep.subr.bf16.mxu0 %v8862_v58  ;;  %2249 = vmatprep.subr.bf16.mxu1 %v8865_v59  ;;  %v8960_v58 = vld [vmem:[#allocation16 + $0xc8] ss:$16 sps:$4 sm:$0xff]   ;;  %v8953_v59 = vld [vmem:[#allocation16 + $0xe4] ss:$16 sps:$4 sm:$0xff]  }
 0x1de   :  { %2148 = vmatpush1.bf16.msra.mxu0 %v8860_v60  ;;  %2250 = vmatpush1.bf16.msra.mxu1 %v8863_v61  ;;  %v8968_v60 = vld [vmem:[#allocation16 + $0xec] ss:$16 sps:$4 sm:$0xff]   ;;  %v8951_v61 = vld [vmem:[#allocation16 + $0xe0] ss:$16 sps:$4 sm:$0xff]  }
 0x1df   :  { %2149 = vmatprep.subr.bf16.mxu0 %v8868_v62  ;;  %2251 = vmatprep.subr.bf16.mxu1 %v8871_v63  ;;  %v8966_v62 = vld [vmem:[#allocation16 + $0xe8] ss:$16 sps:$4 sm:$0xff]   ;;  %v8959_v63 = vld [vmem:[#allocation16 + $0x104] ss:$16 sps:$4 sm:$0xff]  }
 0x1e2   :  { %2150 = vmatpush1.bf16.msra.mxu0 %v8866_v0  ;;  %2252 = vmatpush1.bf16.msra.mxu1 %v8869_v1  ;;  %v8974_v0 = vld [vmem:[#allocation16 + $0x10c] ss:$16 sps:$4 sm:$0xff]   ;;  %v8957_v1 = vld [vmem:[#allocation16 + $0x100] ss:$16 sps:$4 sm:$0xff]  }
 0x1e3   :  { %2151 = vmatprep.subr.bf16.mxu0 %v8874_v2  ;;  %2253 = vmatprep.subr.bf16.mxu1 %v8877_v3  ;;  %v8972_v2 = vld [vmem:[#allocation16 + $0x108] ss:$16 sps:$4 sm:$0xff]   ;;  %v8965_v3 = vld [vmem:[#allocation16 + $0x124] ss:$16 sps:$4 sm:$0xff]  }
 0x1e6   :  { %2152 = vmatpush1.bf16.msra.mxu0 %v8872_v4  ;;  %2254 = vmatpush1.bf16.msra.mxu1 %v8875_v5  ;;  %v8980_v4 = vld [vmem:[#allocation16 + $0x12c] ss:$16 sps:$4 sm:$0xff]   ;;  %v8963_v5 = vld [vmem:[#allocation16 + $0x120] ss:$16 sps:$4 sm:$0xff]  }
 0x1e7   :  { %2153 = vmatprep.subr.bf16.mxu0 %v8880_v6  ;;  %2255 = vmatprep.subr.bf16.mxu1 %v8883_v7  ;;  %v8978_v6 = vld [vmem:[#allocation16 + $0x128] ss:$16 sps:$4 sm:$0xff]   ;;  %v8971_v7 = vld [vmem:[#allocation16 + $0x144] ss:$16 sps:$4 sm:$0xff]  }
 0x1ea   :  { %2154 = vmatpush1.bf16.msra.mxu0 %v8878_v8  ;;  %2256 = vmatpush1.bf16.msra.mxu1 %v8881_v9  ;;  %v8986_v8 = vld [vmem:[#allocation16 + $0x14c] ss:$16 sps:$4 sm:$0xff]   ;;  %v8969_v9 = vld [vmem:[#allocation16 + $0x140] ss:$16 sps:$4 sm:$0xff]  }
 0x1eb   :  { %2155 = vmatprep.subr.bf16.mxu0 %v8886_v10  ;;  %2257 = vmatprep.subr.bf16.mxu1 %v8889_v11  ;;  %v8984_v10 = vld [vmem:[#allocation16 + $0x148] ss:$16 sps:$4 sm:$0xff]   ;;  %v8977_v11 = vld [vmem:[#allocation16 + $0x164] ss:$16 sps:$4 sm:$0xff]  }
 0x1ee   :  { %2156 = vmatpush1.bf16.msra.mxu0 %v8884_v12  ;;  %2258 = vmatpush1.bf16.msra.mxu1 %v8887_v13  ;;  %v8992_v12 = vld [vmem:[#allocation16 + $0x16c] ss:$16 sps:$4 sm:$0xff]   ;;  %v8975_v13 = vld [vmem:[#allocation16 + $0x160] ss:$16 sps:$4 sm:$0xff]  }
 0x1ef   :  { %2157 = vmatprep.subr.bf16.mxu0 %v8892_v14  ;;  %2259 = vmatprep.subr.bf16.mxu1 %v8895_v15  ;;  %v8990_v14 = vld [vmem:[#allocation16 + $0x168] ss:$16 sps:$4 sm:$0xff]   ;;  %v8983_v15 = vld [vmem:[#allocation16 + $0x184] ss:$16 sps:$4 sm:$0xff]  }
 0x1f2   :  { %2158 = vmatpush1.bf16.msra.mxu0 %v8890_v16  ;;  %2260 = vmatpush1.bf16.msra.mxu1 %v8893_v17  ;;  %v8998_v16 = vld [vmem:[#allocation16 + $0x18c] ss:$16 sps:$4 sm:$0xff]   ;;  %v8981_v17 = vld [vmem:[#allocation16 + $0x180] ss:$16 sps:$4 sm:$0xff]  }
 0x1f3   :  { %2159 = vmatprep.subr.bf16.mxu0 %v8900_v18  ;;  %2261 = vmatprep.subr.bf16.mxu1 %v8903_v19  ;;  %v8996_v18 = vld [vmem:[#allocation16 + $0x188] ss:$16 sps:$4 sm:$0xff]   ;;  %v8989_v19 = vld [vmem:[#allocation16 + $0x1a4] ss:$16 sps:$4 sm:$0xff]  }
 0x1f6   :  { %2160 = vmatpush1.bf16.msra.mxu0 %v8898_v20  ;;  %2262 = vmatpush1.bf16.msra.mxu1 %v8901_v21  ;;  %v9004_v20 = vld [vmem:[#allocation16 + $0x1ac] ss:$16 sps:$4 sm:$0xff]   ;;  %v8987_v21 = vld [vmem:[#allocation16 + $0x1a0] ss:$16 sps:$4 sm:$0xff]  }
 0x1f7   :  { %2161 = vmatprep.subr.bf16.mxu0 %v8906_v22  ;;  %2263 = vmatprep.subr.bf16.mxu1 %v8909_v23  ;;  %v9002_v22 = vld [vmem:[#allocation16 + $0x1a8] ss:$16 sps:$4 sm:$0xff]   ;;  %v8995_v23 = vld [vmem:[#allocation16 + $0x1c4] ss:$16 sps:$4 sm:$0xff]  }
 0x1fa   :  { %2162 = vmatpush1.bf16.msra.mxu0 %v8904_v24  ;;  %2264 = vmatpush1.bf16.msra.mxu1 %v8907_v25  ;;  %v9013_v24 = vld [vmem:[#allocation16 + $0x1cc] ss:$16 sps:$4 sm:$0xff]   ;;  %v8993_v25 = vld [vmem:[#allocation16 + $0x1c0] ss:$16 sps:$4 sm:$0xff]  }
 0x1fb   :  { %3108 = vmatprep.subr.bf16.mxu0 %v8917_v27  ;;  %3210 = vmatprep.subr.bf16.mxu1 %v8926_v28  ;;  %v9001_v27 = vld [vmem:[#allocation16 + $0x1e4] ss:$16 sps:$4 sm:$0xff]   ;;  %v9019_v28 = vld [vmem:[#allocation16 + $0x1ec] ss:$16 sps:$4 sm:$0xff]  }
 0x1fd   :  { %2164 = vmatmul.mubr.bf16.vlgmr.msra.gmra.mrb[8].mxu0 %v8910_v29  ;;  %2266 = vmatmul.mubr.bf16.vlgmr.msra.gmra.mrb[8].mxu1 %v8910_v29  ;;  %v8999_v29 = vld [vmem:[#allocation16 + $0x1e0] ss:$16 sps:$4 sm:$0xff]  }
 0x1fe   :  { %2173 = vmatprep.mubr.bf16.mxu0 %v7466_v30  ;;  %2275 = vmatprep.mubr.bf16.mxu1 %v7466_v30  ;;  %v9017_v30 = vld [vmem:[#allocation16 + $0x1e8] ss:$16 sps:$4 sm:$0xff]  }
 0x1ff   :  { %3109 = vmatpush1.bf16.msra.mxu0 %v8915_v31  ;;  %3211 = vmatpush1.bf16.msra.mxu1 %v8924_v33  ;;  %v9010_v31 = vld [vmem:[#allocation16 + $0x204] ss:$16 sps:$4 sm:$0xff]   ;;  %v9005_v33 = vld [vmem:[#allocation7] ss:$16 sps:$4 sm:$0xff]  }
 0x200   :  { %3110 = vmatprep.subr.bf16.mxu0 %v8920_v32  ;;  %3212 = vmatprep.subr.bf16.mxu1 %v8932_v34  ;;  %v9025_v32 = vld [vmem:[#allocation16 + $0x20c] ss:$16 sps:$4 sm:$0xff]  }
 0x201   :  { %v252_v34 = vld [vmem:[#allocation7 + $0x20] sm:$0xff] }
 0x203   :  { %3111 = vmatpush1.bf16.msra.mxu0 %v8918_v35  ;;  %3213 = vmatpush1.bf16.msra.mxu1 %v8930_v37  ;;  %v9008_v35 = vld [vmem:[#allocation16 + $0x200] ss:$16 sps:$4 sm:$0xff]   ;;  %v9016_v37 = vld [vmem:[#allocation16 + $0x224] ss:$16 sps:$4 sm:$0xff]  }
 0x204   :  { %3112 = vmatprep.subr.bf16.mxu0 %v8923_v36  ;;  %3214 = vmatprep.subr.bf16.mxu1 %v8938_v38  ;;  %v9023_v36 = vld [vmem:[#allocation16 + $0x208] ss:$16 sps:$4 sm:$0xff]   ;;  %v9031_v38 = vld [vmem:[#allocation16 + $0x22c] ss:$16 sps:$4 sm:$0xff]  }
 0x205   :  { %2174 = vmatmul.mubr.bf16.gmra.mrb[12].mxu0 %v7465_v39  ;;  %2276 = vmatmul.mubr.bf16.gmra.mrb[12].mxu1 %v7465_v39  ;;  %v7600_v39 = vcombine.high %v252_v34, %v252_v34 }
 0x206   :  { %3140 = vmatprep.mubr.bf16.mxu0 %v9007_v41  ;;  %3242 = vmatprep.mubr.bf16.mxu1 %v9007_v41  ;;  %v9029_v41 = vld [vmem:[#allocation16 + $0x228] ss:$16 sps:$4 sm:$0xff]  }
 0x207   :  { %3113 = vmatpush1.bf16.msra.mxu0 %v8921_v40  ;;  %3215 = vmatpush1.bf16.msra.mxu1 %v8936_v43  ;;  %v9014_v40 = vld [vmem:[#allocation16 + $0x220] ss:$16 sps:$4 sm:$0xff]   ;;  %v9037_v43 = vld [vmem:[#allocation16 + $0x24c] ss:$16 sps:$4 sm:$0xff]  }
 0x208   :  { %3114 = vmatprep.subr.bf16.mxu0 %v8929_v42  ;;  %3216 = vmatprep.subr.bf16.mxu1 %v8944_v44  ;;  %v9022_v42 = vld [vmem:[#allocation16 + $0x244] ss:$16 sps:$4 sm:$0xff]   ;;  %v7599_v44 = vcombine.low %v252_v34, %v252_v34  ;;  %v9074_v34 = vld [vmem:[#allocation16 + $0x360] ss:$16 sps:$4 sm:$0xff]  }
 0x20b   :  { %3115 = vmatpush1.bf16.msra.mxu0 %v8927_v45  ;;  %3217 = vmatpush1.bf16.msra.mxu1 %v8942_v46  ;;  %v9020_v45 = vld [vmem:[#allocation16 + $0x240] ss:$16 sps:$4 sm:$0xff]   ;;  %v9035_v46 = vld [vmem:[#allocation16 + $0x248] ss:$16 sps:$4 sm:$0xff]  }
 0x20c   :  { %3116 = vmatprep.subr.bf16.mxu0 %v8935_v47  ;;  %3218 = vmatprep.subr.bf16.mxu1 %v8950_v48  ;;  %v9028_v47 = vld [vmem:[#allocation16 + $0x264] ss:$16 sps:$4 sm:$0xff]   ;;  %v9043_v48 = vld [vmem:[#allocation16 + $0x26c] ss:$16 sps:$4 sm:$0xff]  }
 0x20f   :  { %3117 = vmatpush1.bf16.msra.mxu0 %v8933_v49  ;;  %3219 = vmatpush1.bf16.msra.mxu1 %v8948_v50  ;;  %v9108_v49 = vld [vmem:[#allocation7 + $0xc] ss:$16 sps:$4 sm:$0xff]   ;;  %v9026_v50 = vld [vmem:[#allocation16 + $0x260] ss:$16 sps:$4 sm:$0xff]  }
 0x210   :  { %3118 = vmatprep.subr.bf16.mxu0 %v8941_v51  ;;  %3220 = vmatprep.subr.bf16.mxu1 %v8956_v52  ;;  %v9041_v51 = vld [vmem:[#allocation16 + $0x268] ss:$16 sps:$4 sm:$0xff]   ;;  %v9034_v52 = vld [vmem:[#allocation16 + $0x284] ss:$16 sps:$4 sm:$0xff]  }
 0x213   :  { %3119 = vmatpush1.bf16.msra.mxu0 %v8939_v53  ;;  %3221 = vmatpush1.bf16.msra.mxu1 %v8954_v54  ;;  %v9049_v53 = vld [vmem:[#allocation16 + $0x28c] ss:$16 sps:$4 sm:$0xff]   ;;  %v9032_v54 = vld [vmem:[#allocation16 + $0x280] ss:$16 sps:$4 sm:$0xff]  }
 0x214   :  { %3120 = vmatprep.subr.bf16.mxu0 %v8947_v55  ;;  %3222 = vmatprep.subr.bf16.mxu1 %v8962_v56  ;;  %v9047_v55 = vld [vmem:[#allocation16 + $0x288] ss:$16 sps:$4 sm:$0xff]   ;;  %v9040_v56 = vld [vmem:[#allocation16 + $0x2a4] ss:$16 sps:$4 sm:$0xff]  }
 0x217   :  { %3121 = vmatpush1.bf16.msra.mxu0 %v8945_v57  ;;  %3223 = vmatpush1.bf16.msra.mxu1 %v8960_v58  ;;  %v9055_v57 = vld [vmem:[#allocation16 + $0x2ac] ss:$16 sps:$4 sm:$0xff]   ;;  %v9038_v58 = vld [vmem:[#allocation16 + $0x2a0] ss:$16 sps:$4 sm:$0xff]  }
 0x218   :  { %3122 = vmatprep.subr.bf16.mxu0 %v8953_v59  ;;  %3224 = vmatprep.subr.bf16.mxu1 %v8968_v60 }
 0x21b   :  { %3123 = vmatpush1.bf16.msra.mxu0 %v8951_v61  ;;  %3225 = vmatpush1.bf16.msra.mxu1 %v8966_v62  ;;  %v9046_v61 = vld [vmem:[#allocation16 + $0x2c4] ss:$16 sps:$4 sm:$0xff]  }
 0x21c   :  { %3124 = vmatprep.subr.bf16.mxu0 %v8959_v63  ;;  %3226 = vmatprep.subr.bf16.mxu1 %v8974_v0  ;;  %v9053_v0 = vld [vmem:[#allocation16 + $0x2a8] ss:$16 sps:$4 sm:$0xff]  }
 0x21f   :  { %3125 = vmatpush1.bf16.msra.mxu0 %v8957_v1  ;;  %3227 = vmatpush1.bf16.msra.mxu1 %v8972_v2 }
 0x220   :  { %3126 = vmatprep.subr.bf16.mxu0 %v8965_v3  ;;  %3228 = vmatprep.subr.bf16.mxu1 %v8980_v4  ;;  %v9061_v3 = vld [vmem:[#allocation16 + $0x2cc] ss:$16 sps:$4 sm:$0xff]  }
 0x223   :  { %3127 = vmatpush1.bf16.msra.mxu0 %v8963_v5  ;;  %3229 = vmatpush1.bf16.msra.mxu1 %v8978_v6  ;;  %v9044_v6 = vld [vmem:[#allocation16 + $0x2c0] ss:$16 sps:$4 sm:$0xff]  }
 0x224   :  { %3128 = vmatprep.subr.bf16.mxu0 %v8971_v7  ;;  %3230 = vmatprep.subr.bf16.mxu1 %v8986_v8  ;;  %v9052_v7 = vld [vmem:[#allocation16 + $0x2e4] ss:$16 sps:$4 sm:$0xff]   ;;  %v9059_v8 = vld [vmem:[#allocation16 + $0x2c8] ss:$16 sps:$4 sm:$0xff]  }
 0x227   :  { %3129 = vmatpush1.bf16.msra.mxu0 %v8969_v9  ;;  %3231 = vmatpush1.bf16.msra.mxu1 %v8984_v10  ;;  %v9067_v9 = vld [vmem:[#allocation16 + $0x2ec] ss:$16 sps:$4 sm:$0xff]   ;;  %v9050_v10 = vld [vmem:[#allocation16 + $0x2e0] ss:$16 sps:$4 sm:$0xff]  }
 0x228   :  { %3130 = vmatprep.subr.bf16.mxu0 %v8977_v11  ;;  %3232 = vmatprep.subr.bf16.mxu1 %v8992_v12 }
 0x22b   :  { %3131 = vmatpush1.bf16.msra.mxu0 %v8975_v13  ;;  %3233 = vmatpush1.bf16.msra.mxu1 %v8990_v14  ;;  %v9058_v13 = vld [vmem:[#allocation16 + $0x304] ss:$16 sps:$4 sm:$0xff]  }
 0x22c   :  { %3132 = vmatprep.subr.bf16.mxu0 %v8983_v15  ;;  %3234 = vmatprep.subr.bf16.mxu1 %v8998_v16  ;;  %v9065_v16 = vld [vmem:[#allocation16 + $0x2e8] ss:$16 sps:$4 sm:$0xff]  }
 0x22f   :  { %3133 = vmatpush1.bf16.msra.mxu0 %v8981_v17  ;;  %3235 = vmatpush1.bf16.msra.mxu1 %v8996_v18 }
 0x230   :  { %3134 = vmatprep.subr.bf16.mxu0 %v8989_v19  ;;  %3236 = vmatprep.subr.bf16.mxu1 %v9004_v20  ;;  %v9073_v19 = vld [vmem:[#allocation16 + $0x30c] ss:$16 sps:$4 sm:$0xff]  }
 0x233   :  { %3135 = vmatpush1.bf16.msra.mxu0 %v8987_v21  ;;  %3237 = vmatpush1.bf16.msra.mxu1 %v9002_v22  ;;  %v9056_v22 = vld [vmem:[#allocation16 + $0x300] ss:$16 sps:$4 sm:$0xff]  }
 0x234   :  { %3136 = vmatprep.subr.bf16.mxu0 %v8995_v23  ;;  %3238 = vmatprep.subr.bf16.mxu1 %v9013_v24  ;;  %v9064_v23 = vld [vmem:[#allocation16 + $0x324] ss:$16 sps:$4 sm:$0xff]   ;;  %v9071_v24 = vld [vmem:[#allocation16 + $0x308] ss:$16 sps:$4 sm:$0xff]  }
 0x237   :  { %3137 = vmatpush1.bf16.msra.mxu0 %v8993_v25  ;;  %3239 = vmatpush1.bf16.msra.mxu1 %v9011_v26  ;;  %v9079_v25 = vld [vmem:[#allocation16 + $0x32c] ss:$16 sps:$4 sm:$0xff]   ;;  %v9062_v26 = vld [vmem:[#allocation16 + $0x320] ss:$16 sps:$4 sm:$0xff]  }
 0x238   :  { %3138 = vmatprep.subr.bf16.mxu0 %v9001_v27  ;;  %3240 = vmatprep.subr.bf16.mxu1 %v9019_v28  ;;  %v9070_v27 = vld [vmem:[#allocation16 + $0x344] ss:$16 sps:$4 sm:$0xff]   ;;  %v9077_v28 = vld [vmem:[#allocation16 + $0x328] ss:$16 sps:$4 sm:$0xff]  }
 0x23b   :  { %3139 = vmatpush1.bf16.msra.mxu0 %v8999_v29  ;;  %3241 = vmatpush1.bf16.msra.mxu1 %v9017_v30  ;;  %v9085_v29 = vld [vmem:[#allocation16 + $0x34c] ss:$16 sps:$4 sm:$0xff]   ;;  %v9068_v30 = vld [vmem:[#allocation16 + $0x340] ss:$16 sps:$4 sm:$0xff]  }
 0x23c   :  { %3159 = vmatprep.subr.bf16.mxu0 %v9010_v31  ;;  %3261 = vmatprep.subr.bf16.mxu1 %v9025_v32  ;;  %v9076_v31 = vld [vmem:[#allocation16 + $0x364] ss:$16 sps:$4 sm:$0xff]   ;;  %v9083_v32 = vld [vmem:[#allocation16 + $0x348] ss:$16 sps:$4 sm:$0xff]  }
 0x23e   :  { %3141 = vmatmul.mubr.bf16.vlgmr.msra.gmra.mrb[16].mxu0 %v9005_v33  ;;  %3243 = vmatmul.mubr.bf16.vlgmr.msra.gmra.mrb[16].mxu1 %v9005_v33  ;;  %v9091_v33 = vld [vmem:[#allocation16 + $0x36c] ss:$16 sps:$4 sm:$0xff]  }
 0x23f   :  { %3160 = vmatpush1.bf16.msra.mxu0 %v9008_v35  ;;  %3262 = vmatpush1.bf16.msra.mxu1 %v9023_v36  ;;  %v9082_v35 = vld [vmem:[#allocation16 + $0x384] ss:$16 sps:$4 sm:$0xff]   ;;  %v9089_v36 = vld [vmem:[#allocation16 + $0x368] ss:$16 sps:$4 sm:$0xff]  }
 0x240   :  { %3161 = vmatprep.subr.bf16.mxu0 %v9016_v37  ;;  %3263 = vmatprep.subr.bf16.mxu1 %v9031_v38  ;;  %v9099_v37 = vld [vmem:[#allocation16 + $0x38c] ss:$16 sps:$4 sm:$0xff]   ;;  %v9080_v38 = vld [vmem:[#allocation16 + $0x380] ss:$16 sps:$4 sm:$0xff]  }
 0x241   :  { %3150 = vmatprep.mubr.bf16.mxu0 %v7600_v39  ;;  %3252 = vmatprep.mubr.bf16.mxu1 %v7600_v39  ;;  %v9088_v39 = vld [vmem:[#allocation16 + $0x3a4] ss:$16 sps:$4 sm:$0xff]  }
 0x243   :  { %3162 = vmatpush1.bf16.msra.mxu0 %v9014_v40  ;;  %3264 = vmatpush1.bf16.msra.mxu1 %v9029_v41  ;;  %v9097_v40 = vld [vmem:[#allocation16 + $0x388] ss:$16 sps:$4 sm:$0xff]   ;;  %v9105_v41 = vld [vmem:[#allocation16 + $0x3ac] ss:$16 sps:$4 sm:$0xff]  }
 0x244   :  { %3163 = vmatprep.subr.bf16.mxu0 %v9022_v42  ;;  %3265 = vmatprep.subr.bf16.mxu1 %v9037_v43  ;;  %v9086_v42 = vld [vmem:[#allocation16 + $0x3a0] ss:$16 sps:$4 sm:$0xff]   ;;  %v9096_v43 = vld [vmem:[#allocation16 + $0x3c4] ss:$16 sps:$4 sm:$0xff]  }
 0x246   :  { %3151 = vmatmul.mubr.bf16.gmra.mrb[20].mxu0 %v7599_v44  ;;  %3253 = vmatmul.mubr.bf16.gmra.mrb[20].mxu1 %v7599_v44  ;;  %v9103_v44 = vld [vmem:[#allocation16 + $0x3a8] ss:$16 sps:$4 sm:$0xff]  }
 0x247   :  { %3164 = vmatpush1.bf16.msra.mxu0 %v9020_v45  ;;  %3266 = vmatpush1.bf16.msra.mxu1 %v9035_v46  ;;  %v9111_v45 = vld [vmem:[#allocation16 + $0x3cc] ss:$16 sps:$4 sm:$0xff]   ;;  %v9094_v46 = vld [vmem:[#allocation16 + $0x3c0] ss:$16 sps:$4 sm:$0xff]  }
 0x248   :  { %3165 = vmatprep.subr.bf16.mxu0 %v9028_v47  ;;  %3267 = vmatprep.subr.bf16.mxu1 %v9043_v48  ;;  %v9102_v47 = vld [vmem:[#allocation16 + $0x3e4] ss:$16 sps:$4 sm:$0xff]   ;;  %v9109_v48 = vld [vmem:[#allocation16 + $0x3c8] ss:$16 sps:$4 sm:$0xff]  }
 0x249   :  { %3191 = vmatprep.mubr.bf16.mxu0 %v9108_v49  ;;  %3293 = vmatprep.mubr.bf16.mxu1 %v9108_v49  ;;  %v9114_v49 = vld [vmem:[#allocation16 + $0x3ec] ss:$16 sps:$4 sm:$0xff]  }
 0x24b   :  { %3166 = vmatpush1.bf16.msra.mxu0 %v9026_v50  ;;  %3268 = vmatpush1.bf16.msra.mxu1 %v9041_v51  ;;  %v9100_v50 = vld [vmem:[#allocation16 + $0x3e0] ss:$16 sps:$4 sm:$0xff]   ;;  %v253_v51 = vld [vmem:[#allocation7 + $0x28] sm:$0xff] }
 0x24c   :  { %3167 = vmatprep.subr.bf16.mxu0 %v9034_v52  ;;  %3269 = vmatprep.subr.bf16.mxu1 %v9049_v53  ;;  %v9112_v52 = vld [vmem:[#allocation16 + $0x3e8] ss:$16 sps:$4 sm:$0xff]   ;;  %v9106_v53 = vld [vmem:[#allocation7 + $0x8] ss:$16 sps:$4 sm:$0xff]  }
 0x24f   :  { %3168 = vmatpush1.bf16.msra.mxu0 %v9032_v54  ;;  %3270 = vmatpush1.bf16.msra.mxu1 %v9047_v55  ;;  %v7602_v54 = vcombine.high %v253_v51, %v253_v51  ;;  %v9815_v55 = vmov 0.0  }
 0x250   :  { %v10091_v59 = vpop.f32.mrb[0].mxu0  ;;  %v10093_v60 = vpop.f32.mrb[0].mxu1  ;;  %3169 = vmatprep.subr.bf16.mxu0 %v9040_v56  ;;  %3271 = vmatprep.subr.bf16.mxu1 %v9055_v57  ;;  %v7601_v56 = vcombine.low %v253_v51, %v253_v51  ;;  %v392_v57 = vlaneseq }
 0x251   :  { %v10095_v62 = vpop.f32.mrb[1].mxu0  ;;  %v10097_v63 = vpop.f32.mrb[1].mxu1 }
 0x252   :  { %v10099_v1 = vpop.f32.mrb[2].mxu0  ;;  %v10101_v2 = vpop.f32.mrb[2].mxu1 }
 0x253   :  { %v10103_v4 = vpop.f32.mrb[3].mxu0  ;;  %v10105_v5 = vpop.f32.mrb[3].mxu1  ;;  %3170 = vmatpush1.bf16.msra.mxu0 %v9038_v58  ;;  %3272 = vmatpush1.bf16.msra.mxu1 %v9053_v0  ;;  %v393_v58 = vshrl.u32 %v392_v57, 7 }
 0x254   :  { %3171 = vmatprep.subr.bf16.mxu0 %v9046_v61  ;;  %3273 = vmatprep.subr.bf16.mxu1 %v9061_v3  ;;  %v1384_v61 = vld [vmem:[#allocation14] sm:$0xf]  ;;  %v390_v3 = vld [vmem:[#allocation11] sm:$0xf] }
 0x255   :  { %v10121_v0 = vsub.s32 0, %v393_v58 }
 0x257   :  { %3172 = vmatpush1.bf16.msra.mxu0 %v9044_v6  ;;  %3274 = vmatpush1.bf16.msra.mxu1 %v9059_v8  ;;  %v10123_v6 = vsub.s32 1, %v393_v58 }
 0x258   :  { %v10107_v11 = vpop.f32.mrb[4].mxu0  ;;  %v10109_v12 = vpop.f32.mrb[4].mxu1  ;;  %3173 = vmatprep.subr.bf16.mxu0 %v9052_v7  ;;  %3275 = vmatprep.subr.bf16.mxu1 %v9067_v9  ;;  %v10126_v7 = vrot.slane %v1384_v61, %v10121_v0  ;;  %v10132_v9 = vrot.slane %v390_v3, %v10121_v0 }
 0x259   :  { %v10111_v14 = vpop.f32.mrb[5].mxu0  ;;  %v10113_v15 = vpop.f32.mrb[5].mxu1  ;;  %v10129_v8 = vrot.slane %v1384_v61, %v10123_v6 }
 0x25a   :  { %v1151_v17 = vpop.f32.mrb[6].mxu0  ;;  %v1253_v18 = vpop.f32.mrb[6].mxu1 }
 0x25b   :  { %v1152_v20 = vpop.f32.mrb[7].mxu0  ;;  %v1254_v21 = vpop.f32.mrb[7].mxu1  ;;  %3174 = vmatpush1.bf16.msra.mxu0 %v9050_v10  ;;  %3276 = vmatpush1.bf16.msra.mxu1 %v9065_v16  ;;  %v10134_v10 = vsub.s32 2, %v393_v58 }
 0x25c   :  { %3175 = vmatprep.subr.bf16.mxu0 %v9058_v13  ;;  %3277 = vmatprep.subr.bf16.mxu1 %v9073_v19  ;;  %v10137_v13 = vrot.slane %v390_v3, %v10123_v6 }
 0x25e   :  { %v8370_v57 = vadd.f32 %v10103_v4, %v10137_v13 }
 0x25f   :  { %3176 = vmatpush1.bf16.msra.mxu0 %v9056_v22  ;;  %3278 = vmatpush1.bf16.msra.mxu1 %v9071_v24  ;;  %v8367_v24 = vadd.f32 %v10091_v59, %v10132_v9 }
 0x260   :  { %3177 = vmatprep.subr.bf16.mxu0 %v9064_v23  ;;  %3279 = vmatprep.subr.bf16.mxu1 %v9079_v25 }
 0x261   :  { %v7943_v59 = vpack.c.bf16 %v8367_v24, %v8367_v24 }
 0x263   :  { %3178 = vmatpush1.bf16.msra.mxu0 %v9062_v26  ;;  %3280 = vmatpush1.bf16.msra.mxu1 %v9077_v28  ;;  %v10144_v26 = vrot.slane %v1384_v61, %v10134_v10 }
 0x264   :  { %3179 = vmatprep.subr.bf16.mxu0 %v9070_v27  ;;  %3281 = vmatprep.subr.bf16.mxu1 %v9085_v29  ;;  %v10147_v29 = vrot.slane %v390_v3, %v10134_v10 }
 0x266   :  { %v8375_v4 = vadd.f32 %v10101_v2, %v10147_v29 }
 0x267   :  { %3180 = vmatpush1.bf16.msra.mxu0 %v9068_v30  ;;  %3282 = vmatpush1.bf16.msra.mxu1 %v9083_v32  ;;  %v8368_v30 = vadd.f32 %v10095_v62, %v10137_v13  ;;  %v8373_v62 = vadd.f32 %v10093_v60, %v10147_v29 }
 0x268   :  { %3181 = vmatprep.subr.bf16.mxu0 %v9076_v31  ;;  %3283 = vmatprep.subr.bf16.mxu1 %v9091_v33  ;;  %v10151_v31 = vsub.s32 3, %v393_v58 }
 0x26b   :  { %3182 = vmatpush1.bf16.msra.mxu0 %v9074_v34  ;;  %3284 = vmatpush1.bf16.msra.mxu1 %v9089_v36  ;;  %v7946_v36 = vpack.c.bf16 %v8368_v30, %v8368_v30 }
 0x26c   :  { %3183 = vmatprep.subr.bf16.mxu0 %v9082_v35  ;;  %3285 = vmatprep.subr.bf16.mxu1 %v9099_v37  ;;  %v10158_v35 = vrot.slane %v1384_v61, %v10151_v31  ;;  %v10164_v37 = vrot.slane %v390_v3, %v10151_v31  ;;  %v7947_v3 = vpack.c.bf16 %v8370_v57, %v8370_v57 }
 0x26f   :  { %3184 = vmatpush1.bf16.msra.mxu0 %v9080_v38  ;;  %3286 = vmatpush1.bf16.msra.mxu1 %v9097_v40 }
 0x270   :  { %3185 = vmatprep.subr.bf16.mxu0 %v9088_v39  ;;  %3287 = vmatprep.subr.bf16.mxu1 %v9105_v41 }
 0x273   :  { %3186 = vmatpush1.bf16.msra.mxu0 %v9086_v42  ;;  %3288 = vmatpush1.bf16.msra.mxu1 %v9103_v44 }
 0x274   :  { %3187 = vmatprep.subr.bf16.mxu0 %v9096_v43  ;;  %3289 = vmatprep.subr.bf16.mxu1 %v9111_v45 }
 0x277   :  { %3188 = vmatpush1.bf16.msra.mxu0 %v9094_v46  ;;  %3290 = vmatpush1.bf16.msra.mxu1 %v9109_v48  ;;  %v8374_v48 = vadd.f32 %v10097_v63, %v10164_v37  ;;  %v8369_v63 = vadd.f32 %v10099_v1, %v10132_v9 }
 0x278   :  { %3189 = vmatprep.subr.bf16.mxu0 %v9102_v47  ;;  %3291 = vmatprep.subr.bf16.mxu1 %v9114_v49  ;;  %v7949_v47 = vpack.c.bf16 %v8373_v62, %v8373_v62 }
 0x27b   :  { %3190 = vmatpush1.bf16.msra.mxu0 %v9100_v50  ;;  %3292 = vmatpush1.bf16.msra.mxu1 %v9112_v52  ;;  %v7952_v52 = vpack.c.bf16 %v8374_v48, %v8374_v48 }
 0x27c   :  { %8079 = vmatprep.subr.bf16.mxu0 %v9815_v55  ;;  %8085 = vmatprep.subr.bf16.mxu1 %v9815_v55 }
 0x27e   :  { %3192 = vmatmul.mubr.bf16.vlgmr.msra.gmra.mrb[16].mxu0 %v9106_v53  ;;  %3294 = vmatmul.mubr.bf16.vlgmr.msra.gmra.mrb[16].mxu1 %v9106_v53 }
 0x27f   :  { %3201 = vmatprep.mubr.bf16.mxu0 %v7602_v54  ;;  %3303 = vmatprep.mubr.bf16.mxu1 %v7602_v54 }
 0x286   :  { %3202 = vmatmul.mubr.bf16.gmra.mrb[20].mxu0 %v7601_v56  ;;  %3304 = vmatmul.mubr.bf16.gmra.mrb[20].mxu1 %v7601_v56  ;;  %v7944_v56 = vpack.c.bf16 %v8369_v63, %v8369_v63 }
 0x287   :  { %8081 = vmatprep.mubr.msk.bf16.mxu0 %vm9816_vm0, %v9815_v55  ;;  %8087 = vmatprep.mubr.msk.bf16.mxu1 %vm9816_vm0, %v9815_v55 }
 0x2d0   :  { %v2165_v16 = vpop.f32.mrb[8].mxu0  ;;  %v2267_v17 = vpop.f32.mrb[8].mxu1 }
 0x2d1   :  { %v8379_v18 = vadd.f32 %v2165_v16, %v10126_v7  ;;  %v2167_v19 = vpop.f32.mrb[9].mxu0  ;;  %v2269_v20 = vpop.f32.mrb[9].mxu1  ;;  %v8385_v34 = vadd.f32 %v2267_v17, %v10144_v26 }
 0x2d2   :  { %v8380_v21 = vadd.f32 %v2167_v19, %v10129_v8  ;;  %v2169_v22 = vpop.f32.mrb[10].mxu0  ;;  %v2271_v23 = vpop.f32.mrb[10].mxu1  ;;  %v8386_v45 = vadd.f32 %v2269_v20, %v10158_v35  ;;  %v8376_v19 = vadd.f32 %v10105_v5, %v10164_v37  ;;  %v8371_v5 = vadd.f32 %v10107_v11, %v10132_v9 }
 0x2d3   :  { %v7955_v25 = vpack.c.bf16 %v8379_v18, %v8379_v18  ;;  %v2171_v27 = vpop.f32.mrb[11].mxu0  ;;  %v2273_v28 = vpop.f32.mrb[11].mxu1  ;;  %v7961_v44 = vpack.c.bf16 %v8385_v34, %v8385_v34  ;;  %v8381_v51 = vadd.f32 %v2169_v22, %v10126_v7  ;;  %v8387_v1 = vadd.f32 %v2271_v23, %v10144_v26 }
 0x2d4   :  { %v7958_v32 = vpack.c.bf16 %v8380_v21, %v8380_v21  ;;  %v7964_v50 = vpack.c.bf16 %v8386_v45, %v8386_v45  ;;  %v8382_v54 = vadd.f32 %v2171_v27, %v10129_v8  ;;  %v8388_v17 = vadd.f32 %v2273_v28, %v10158_v35 }
 0x2d5   :  { %v3509_v33 = vsel %vm3504_vm1, %v7955_v25, 0  ;;  %3416 = vrot.lane.b32.xlu0 %v7955_v25, %s9799_s1  ;;  %v7956_v53 = vpack.c.bf16 %v8381_v51, %v8381_v51  ;;  %v3693_v58 = vsel %vm3504_vm1, %v7961_v44, 0  ;;  %v7962_v16 = vpack.c.bf16 %v8387_v1, %v8387_v1 }
 0x2d6   :  { %3422 = vrot.lane.b32.xlu1 %v7958_v32, %s9799_s1  ;;  %8080 = vmatpush3.bf16.xpose.msra.mxu0 %v3509_v33  ;;  %v3601_v49 = vsel %vm3504_vm1, %v7958_v32, 0  ;;  %v7959_v61 = vpack.c.bf16 %v8382_v54, %v8382_v54  ;;  %v7950_v18 = vpack.c.bf16 %v8375_v4, %v8375_v4  ;;  %v3785_v20 = vsel %vm3504_vm1, %v7964_v50, 0 }
 0x2d7   :  { %8091 = vmatprep.subr.bf16.mxu0 %v9815_v55  ;;  %v7965_v2 = vpack.c.bf16 %v8388_v17, %v8388_v17  ;;  %v7953_v22 = vpack.c.bf16 %v8376_v19, %v8376_v19  ;;  %v7945_v25 = vpack.c.bf16 %v8371_v5, %v8371_v5  ;;  %v3877_v27 = vsel %vm3504_vm1, %v7956_v53, 0 }
 0x2d8   :  { %v2175_v38 = vpop.f32.mrb[12].mxu0  ;;  %v10166_v39 = vpop.f32.mrb[12].mxu1  ;;  %v3969_v32 = vsel %vm3504_vm1, %v7959_v61, 0 }
 0x2d9   :  { %v2177_v40 = vpop.f32.mrb[13].mxu0  ;;  %3352 = vrot.lane.b32.xlu0 %v7943_v59, %s9799_s1  ;;  %v10169_v41 = vpop.f32.mrb[13].mxu1  ;;  %v8383_v21 = vadd.f32 %v2175_v38, %v10126_v7  ;;  %v8372_v7 = vadd.f32 %v10111_v14, %v10137_v13  ;;  %v8389_v9 = vadd.f32 %v10166_v39, %v10144_v26  ;;  %v8377_v14 = vadd.f32 %v10109_v12, %v10147_v29  ;;  %v2412_v38 = vld [vmem:[#allocation17] sm:$0xf] }
 0x2da   :  { %v2179_v42 = vpop.f32.mrb[14].mxu0  ;;  %3358 = vrot.lane.b32.xlu1 %v7946_v36, %s9799_s1  ;;  %v2281_v43 = vpop.f32.mrb[14].mxu1  ;;  %v8384_v24 = vadd.f32 %v2177_v40, %v10129_v8  ;;  %v8390_v28 = vadd.f32 %v10169_v41, %v10158_v35  ;;  %v8378_v26 = vadd.f32 %v10113_v15, %v10164_v37  ;;  %v4061_v15 = vsel %vm3504_vm1, %v7962_v16, 0 }
 0x2db   :  { %v2180_v60 = vpop.f32.mrb[15].mxu0  ;;  %v2282_v46 = vpop.f32.mrb[15].mxu1  ;;  %v7957_v23 = vpack.c.bf16 %v8383_v21, %v8383_v21  ;;  %v7948_v8 = vpack.c.bf16 %v8372_v7, %v8372_v7  ;;  %v7963_v13 = vpack.c.bf16 %v8389_v9, %v8389_v9  ;;  %v7951_v30 = vpack.c.bf16 %v8377_v14, %v8377_v14 }
 0x2dc   :  { %v7960_v11 = vpack.c.bf16 %v8384_v24, %v8384_v24  ;;  %v7966_v12 = vpack.c.bf16 %v8390_v28, %v8390_v28  ;;  %v7954_v29 = vpack.c.bf16 %v8378_v26, %v8378_v26  ;;  %v4153_v33 = vsel %vm3504_vm1, %v7965_v2, 0 }
 0x2dd   :  { %3428 = vrot.lane.b32.xlu0 %v7961_v44, %s9799_s1  ;;  %8082 = vmatmul.mubr.msk.bf16.vlgmr.msra.gmra.mrb[24].mxu0 %vm3504_vm1, %v7943_v59  ;;  %v4245_v59 = vsel %vm3504_vm1, %v7957_v23, 0  ;;  %v4429_v35 = vsel %vm3504_vm1, %v7963_v13, 0  ;;  %v2417_v41 = vrot.slane %v2412_v38, %v10121_v0  ;;  %v10285_v43 = vrot.slane %v2412_v38, %v10134_v10 }
 0x2de   :  { %3364 = vrot.lane.b32.xlu1 %v7949_v47, %s9799_s1  ;;  %8092 = vmatpush3.bf16.xpose.msra.mxu0 %v3601_v49  ;;  %v4337_v34 = vsel %vm3504_vm1, %v7960_v11, 0  ;;  %v4521_v62 = vsel %vm3504_vm1, %v7966_v12, 0  ;;  %v2421_v44 = vrot.slane %v2412_v38, %v10123_v6 }
 0x2df   :  { %8093 = vmatprep.mubr.msk.bf16.mxu0 %vm9816_vm0, %v9815_v55  ;;  %8103 = vmatprep.subr.bf16.mxu0 %v9815_v55 }
 0x2e1   :  { %3434 = vrot.lane.b32.xlu0 %v7964_v50, %s9799_s1 }
 0x2e2   :  { %3370 = vrot.lane.b32.xlu1 %v7952_v52, %s9799_s1 }
 0x2e5   :  { %3418 = vrot.lane.b32.xlu0 %v7956_v53, %s9799_s1  ;;  %8094 = vmatmul.mubr.msk.bf16.vlgmr.msra.gmra.mrb[28].mxu0 %vm3504_vm1, %v7946_v36 }
 0x2e6   :  { %3354 = vrot.lane.b32.xlu1 %v7944_v56, %s9799_s1  ;;  %8104 = vmatpush3.bf16.xpose.msra.mxu0 %v3693_v58 }
 0x2e7   :  { %8105 = vmatprep.mubr.msk.bf16.mxu0 %vm9816_vm0, %v9815_v55  ;;  %8115 = vmatprep.subr.bf16.mxu0 %v9815_v55 }
 0x2e9   :  { %3424 = vrot.lane.b32.xlu0 %v7959_v61, %s9799_s1 }
 0x2ea   :  { %3360 = vrot.lane.b32.xlu1 %v7947_v3, %s9799_s1 }
 0x2ed   :  { %3430 = vrot.lane.b32.xlu0 %v7962_v16, %s9799_s1  ;;  %8106 = vmatmul.mubr.msk.bf16.vlgmr.msra.gmra.mrb[32].mxu0 %vm3504_vm1, %v7949_v47  ;;  %v2429_v47 = vrot.slane %v2412_v38, %v10151_v31 }
 0x2ee   :  { %3366 = vrot.lane.b32.xlu1 %v7950_v18, %s9799_s1  ;;  %8116 = vmatpush3.bf16.xpose.msra.mxu0 %v3785_v20 }
 0x2ef   :  { %8117 = vmatprep.mubr.msk.bf16.mxu0 %vm9816_vm0, %v9815_v55  ;;  %8127 = vmatprep.subr.bf16.mxu0 %v9815_v55 }
 0x2f1   :  { %3436 = vrot.lane.b32.xlu0 %v7965_v2, %s9799_s1 }
 0x2f2   :  { %3372 = vrot.lane.b32.xlu1 %v7953_v22, %s9799_s1 }
 0x2f5   :  { %3420 = vrot.lane.b32.xlu0 %v7957_v23, %s9799_s1  ;;  %8118 = vmatmul.mubr.msk.bf16.vlgmr.msra.gmra.mrb[36].mxu0 %vm3504_vm1, %v7952_v52 }
 0x2f6   :  { %3356 = vrot.lane.b32.xlu1 %v7945_v25, %s9799_s1  ;;  %8128 = vmatpush3.bf16.xpose.msra.mxu0 %v3877_v27 }
 0x2f7   :  { %8129 = vmatprep.mubr.msk.bf16.mxu0 %vm9816_vm0, %v9815_v55  ;;  %8139 = vmatprep.subr.bf16.mxu0 %v9815_v55 }
 0x2f9   :  { %3426 = vrot.lane.b32.xlu0 %v7960_v11, %s9799_s1 }
 0x2fa   :  { %3362 = vrot.lane.b32.xlu1 %v7948_v8, %s9799_s1 }
 0x2fd   :  { %3432 = vrot.lane.b32.xlu0 %v7963_v13, %s9799_s1  ;;  %8130 = vmatmul.mubr.msk.bf16.vlgmr.msra.gmra.mrb[40].mxu0 %vm3504_vm1, %v7944_v56 }
 0x2fe   :  { %3368 = vrot.lane.b32.xlu1 %v7951_v30, %s9799_s1  ;;  %8140 = vmatpush3.bf16.xpose.msra.mxu0 %v3969_v32 }
 0x2ff   :  { %8141 = vmatprep.mubr.msk.bf16.mxu0 %vm9816_vm0, %v9815_v55  ;;  %8151 = vmatprep.subr.bf16.mxu0 %v9815_v55 }
 0x301   :  { %3438 = vrot.lane.b32.xlu0 %v7966_v12, %s9799_s1 }
 0x302   :  { %3374 = vrot.lane.b32.xlu1 %v7954_v29, %s9799_s1 }
 0x305   :  { %8142 = vmatmul.mubr.msk.bf16.vlgmr.msra.gmra.mrb[44].mxu0 %vm3504_vm1, %v7947_v3 }
 0x306   :  { %8152 = vmatpush3.bf16.xpose.msra.mxu0 %v4061_v15  ;;  %8153 = vmatprep.mubr.msk.bf16.mxu0 %vm9816_vm0, %v9815_v55 }
 0x307   :  { %8163 = vmatprep.subr.bf16.mxu0 %v9815_v55 }
 0x30d   :  { %8154 = vmatmul.mubr.msk.bf16.vlgmr.msra.gmra.mrb[48].mxu0 %vm3504_vm1, %v7950_v18 }
 0x30e   :  { %8164 = vmatpush3.bf16.xpose.msra.mxu0 %v4153_v33  ;;  %8165 = vmatprep.mubr.msk.bf16.mxu0 %vm9816_vm0, %v9815_v55 }
 0x30f   :  { %8175 = vmatprep.subr.bf16.mxu0 %v9815_v55 }
 0x315   :  { %8166 = vmatmul.mubr.msk.bf16.vlgmr.msra.gmra.mrb[52].mxu0 %vm3504_vm1, %v7953_v22 }
 0x316   :  { %8176 = vmatpush3.bf16.xpose.msra.mxu0 %v4245_v59  ;;  %8177 = vmatprep.mubr.msk.bf16.mxu0 %vm9816_vm0, %v9815_v55 }
 0x317   :  { %8187 = vmatprep.subr.bf16.mxu0 %v9815_v55 }
 0x31d   :  { %8178 = vmatmul.mubr.msk.bf16.vlgmr.msra.gmra.mrb[56].mxu0 %vm3504_vm1, %v7945_v25 }
 0x31e   :  { %8188 = vmatpush3.bf16.xpose.msra.mxu0 %v4337_v34  ;;  %8189 = vmatprep.mubr.msk.bf16.mxu0 %vm9816_vm0, %v9815_v55 }
 0x31f   :  { %8199 = vmatprep.subr.bf16.mxu0 %v9815_v55 }
 0x325   :  { %8190 = vmatmul.mubr.msk.bf16.vlgmr.msra.gmra.mrb[60].mxu0 %vm3504_vm1, %v7948_v8 }
 0x326   :  { %8200 = vmatpush3.bf16.xpose.msra.mxu0 %v4429_v35  ;;  %8201 = vmatprep.mubr.msk.bf16.mxu0 %vm9816_vm0, %v9815_v55 }
 0x327   :  { %8211 = vmatprep.subr.bf16.mxu0 %v9815_v55 }
 0x32d   :  { %8202 = vmatmul.mubr.msk.bf16.vlgmr.msra.gmra.mrb[64].mxu0 %vm3504_vm1, %v7951_v30 }
 0x32e   :  { %8212 = vmatpush3.bf16.xpose.msra.mxu0 %v4521_v62  ;;  %8213 = vmatprep.mubr.msk.bf16.mxu0 %vm9816_vm0, %v9815_v55 }
 0x32f   :  { %8223 = vmatprep.subr.bf16.mxu0 %v9815_v55 }
 0x335   :  { %8214 = vmatmul.mubr.msk.bf16.vlgmr.msra.gmra.mrb[68].mxu0 %vm3504_vm1, %v7954_v29 }
 0x336   :  { %8225 = vmatprep.mubr.msk.bf16.mxu0 %vm9816_vm0, %v9815_v55 }
 0x347   :  { %v3417_v36 = vpop.permute.xlu0 %3416 }
 0x348   :  { %v3555_v37 = vsel %vm3504_vm1, %v3417_v36, 0  ;;  %v3423_v39 = vpop.permute.xlu1 %3422 }
 0x349   :  { %8086 = vmatpush3.bf16.xpose.msra.mxu1 %v3555_v37  ;;  %v3647_v42 = vsel %vm3504_vm1, %v3423_v39, 0 }
 0x34a   :  { %8097 = vmatprep.subr.bf16.mxu1 %v9815_v55 }
 0x34b   :  { %v3353_v40 = vpop.permute.xlu0 %3352 }
 0x34c   :  { %v3359_v3 = vpop.permute.xlu1 %3358 }
 0x34f   :  { %v3429_v49 = vpop.permute.xlu0 %3428 }
 0x350   :  { %8088 = vmatmul.mubr.msk.bf16.vlgmr.msra.gmra.mrb[24].mxu1 %vm3504_vm1, %v3353_v40  ;;  %v3739_v18 = vsel %vm3504_vm1, %v3429_v49, 0  ;;  %v3365_v7 = vpop.permute.xlu1 %3364  ;;  %v7980_v49 = vld [vmem:[#allocation8] sm:$0xff]  }
 0x351   :  { %8098 = vmatpush3.bf16.xpose.msra.mxu1 %v3647_v42  ;;  %8099 = vmatprep.mubr.msk.bf16.mxu1 %vm9816_vm0, %v9815_v55  ;;  %v3193_v45 = vpop.f32.mrb[16].mxu0  ;;  %v3295_v48 = vpop.f32.mrb[16].mxu1 }
 0x352   :  { %8109 = vmatprep.subr.bf16.mxu1 %v9815_v55  ;;  %v8391_v60 = vadd.f32 %v3193_v45, %v2417_v41  ;;  %v3195_v46 = vpop.f32.mrb[17].mxu0  ;;  %v8397_v51 = vadd.f32 %v3295_v48, %v10285_v43  ;;  %v3297_v56 = vpop.f32.mrb[17].mxu1 }
 0x353   :  { %v8392_v52 = vadd.f32 %v3195_v46, %v2421_v44  ;;  %v3197_v63 = vpop.f32.mrb[18].mxu0  ;;  %v10301_v61 = vadd.f32 %v3297_v56, %v2429_v47  ;;  %v3299_v4 = vpop.f32.mrb[18].mxu1 }
 0x354   :  { %v7967_v50 = vpack.c.bf16 %v8391_v60, %v8391_v60  ;;  %v10293_v53 = vadd.f32 %v3197_v63, %v2417_v41  ;;  %v3199_v54 = vpop.f32.mrb[19].mxu0  ;;  %v10297_v58 = vpack.c.bf16 %v8397_v51, %v8397_v51  ;;  %v10304_v16 = vadd.f32 %v3299_v4, %v10285_v43  ;;  %v3301_v17 = vpop.f32.mrb[19].mxu1 }
 0x355   :  { %v10299_v1 = vadd.f32 %v3199_v54, %v2421_v44  ;;  %v10308_v19 = vpack.c.bf16 %v8392_v52, %v8392_v52  ;;  %v10314_v2 = vadd.f32 %v3301_v17, %v2429_v47  ;;  %v3435_v25 = vpop.permute.xlu0 %3434  ;;  %v3371_v9 = vpop.permute.xlu1 %3370 }
 0x356   :  { %v4958_v57 = vsel %vm4956_vm2, %v7967_v50, 0  ;;  %3480 = vrot.lane.b32.xlu1 %v7967_v50, %s9799_s1  ;;  %3492 = vrot.lane.b32.xlu0 %v10297_v58, %s9799_s1  ;;  %v3831_v27 = vsel %vm3504_vm1, %v3435_v25, 0  ;;  %v10377_v50 = vunpack.c.l.bf16 %v7980_v49 }
 0x357   :  { %8224 = vmatpush3.bf16.msra.mxu0 %v4958_v57 }
 0x358   :  { %8100 = vmatmul.mubr.msk.bf16.vlgmr.msra.gmra.mrb[28].mxu1 %vm3504_vm1, %v3359_v3  ;;  %8235 = vmatprep.subr.bf16.mxu0 %v9815_v55 }
 0x359   :  { %8110 = vmatpush3.bf16.xpose.msra.mxu1 %v3739_v18  ;;  %8111 = vmatprep.mubr.msk.bf16.mxu1 %vm9816_vm0, %v9815_v55  ;;  %v3203_v20 = vpop.f32.mrb[20].mxu0  ;;  %v3419_v11 = vpop.permute.xlu0 %3418 }
 0x35a   :  { %8121 = vmatprep.subr.bf16.mxu1 %v9815_v55  ;;  %v10317_v21 = vadd.f32 %v3203_v20, %v2417_v41  ;;  %v3205_v22 = vpop.f32.mrb[21].mxu0  ;;  %3486 = vrot.lane.b32.xlu0 %v10308_v19, %s9799_s1  ;;  %v3923_v8 = vsel %vm3504_vm1, %v3419_v11, 0  ;;  %v3305_v14 = vpop.f32.mrb[20].mxu1 }
 0x35b   :  { %v10320_v5 = vadd.f32 %v3205_v22, %v2421_v44  ;;  %v3207_v23 = vpop.f32.mrb[22].mxu0  ;;  %v3307_v13 = vpop.f32.mrb[21].mxu1  ;;  %v10335_v12 = vadd.f32 %v3305_v14, %v10285_v43 }
 0x35c   :  { %v3208_v24 = vpop.f32.mrb[23].mxu0  ;;  %v3309_v30 = vpop.f32.mrb[22].mxu1  ;;  %v10337_v29 = vadd.f32 %v3307_v13, %v2429_v47 }
 0x35d   :  { %v3425_v28 = vpop.permute.xlu0 %3424  ;;  %v3310_v26 = vpop.f32.mrb[23].mxu1 }
 0x35e   :  { %v3355_v32 = vpop.permute.xlu1 %3354  ;;  %v4015_v15 = vsel %vm3504_vm1, %v3425_v28, 0 }
 0x360   :  { %8112 = vmatmul.mubr.msk.bf16.vlgmr.msra.gmra.mrb[32].mxu1 %vm3504_vm1, %v3365_v7 }
 0x361   :  { %8122 = vmatpush3.bf16.xpose.msra.mxu1 %v3831_v27  ;;  %8123 = vmatprep.mubr.msk.bf16.mxu1 %vm9816_vm0, %v9815_v55  ;;  %v3431_v33 = vpop.permute.xlu0 %3430 }
 0x362   :  { %8133 = vmatprep.subr.bf16.mxu1 %v9815_v55  ;;  %v3361_v59 = vpop.permute.xlu1 %3360  ;;  %v4107_v34 = vsel %vm3504_vm1, %v3431_v33, 0 }
 0x365   :  { %v3437_v35 = vpop.permute.xlu0 %3436 }
 0x366   :  { %v3367_v62 = vpop.permute.xlu1 %3366  ;;  %v4199_v36 = vsel %vm3504_vm1, %v3437_v35, 0 }
 0x368   :  { %8124 = vmatmul.mubr.msk.bf16.vlgmr.msra.gmra.mrb[36].mxu1 %vm3504_vm1, %v3371_v9 }
 0x369   :  { %8134 = vmatpush3.bf16.xpose.msra.mxu1 %v3923_v8  ;;  %8135 = vmatprep.mubr.msk.bf16.mxu1 %vm9816_vm0, %v9815_v55  ;;  %v3421_v37 = vpop.permute.xlu0 %3420 }
 0x36a   :  { %8145 = vmatprep.subr.bf16.mxu1 %v9815_v55  ;;  %v3373_v38 = vpop.permute.xlu1 %3372  ;;  %v4291_v39 = vsel %vm3504_vm1, %v3421_v37, 0 }
 0x36d   :  { %v3427_v40 = vpop.permute.xlu0 %3426 }
 0x36e   :  { %v3357_v41 = vpop.permute.xlu1 %3356  ;;  %v4383_v42 = vsel %vm3504_vm1, %v3427_v40, 0 }
 0x370   :  { %8136 = vmatmul.mubr.msk.bf16.vlgmr.msra.gmra.mrb[40].mxu1 %vm3504_vm1, %v3355_v32 }
 0x371   :  { %8146 = vmatpush3.bf16.xpose.msra.mxu1 %v4015_v15  ;;  %8147 = vmatprep.mubr.msk.bf16.mxu1 %vm9816_vm0, %v9815_v55  ;;  %v3433_v43 = vpop.permute.xlu0 %3432  ;;  %v10401_v15 = vunpack.c.h.bf16 %v7980_v49 }
 0x372   :  { %8157 = vmatprep.subr.bf16.mxu1 %v9815_v55  ;;  %v3363_v44 = vpop.permute.xlu1 %3362  ;;  %v4475_v45 = vsel %vm3504_vm1, %v3433_v43, 0 }
 0x375   :  { %v3439_v60 = vpop.permute.xlu0 %3438 }
 0x376   :  { %v3369_v46 = vpop.permute.xlu1 %3368  ;;  %v4567_v47 = vsel %vm3504_vm1, %v3439_v60, 0 }
 0x378   :  { %8148 = vmatmul.mubr.msk.bf16.vlgmr.msra.gmra.mrb[44].mxu1 %vm3504_vm1, %v3361_v59 }
 0x379   :  { %8158 = vmatpush3.bf16.xpose.msra.mxu1 %v4107_v34  ;;  %8159 = vmatprep.mubr.msk.bf16.mxu1 %vm9816_vm0, %v9815_v55 }
 0x37a   :  { %8169 = vmatprep.subr.bf16.mxu1 %v9815_v55  ;;  %v3375_v48 = vpop.permute.xlu1 %3374 }
 0x380   :  { %8160 = vmatmul.mubr.msk.bf16.vlgmr.msra.gmra.mrb[48].mxu1 %vm3504_vm1, %v3367_v62 }
 0x381   :  { %8170 = vmatpush3.bf16.xpose.msra.mxu1 %v4199_v36  ;;  %8171 = vmatprep.mubr.msk.bf16.mxu1 %vm9816_vm0, %v9815_v55 }
 0x382   :  { %8181 = vmatprep.subr.bf16.mxu1 %v9815_v55 }
 0x388   :  { %8172 = vmatmul.mubr.msk.bf16.vlgmr.msra.gmra.mrb[52].mxu1 %vm3504_vm1, %v3373_v38 }
 0x389   :  { %8182 = vmatpush3.bf16.xpose.msra.mxu1 %v4291_v39  ;;  %8183 = vmatprep.mubr.msk.bf16.mxu1 %vm9816_vm0, %v9815_v55 }
 0x38a   :  { %8193 = vmatprep.subr.bf16.mxu1 %v9815_v55 }
 0x390   :  { %8184 = vmatmul.mubr.msk.bf16.vlgmr.msra.gmra.mrb[56].mxu1 %vm3504_vm1, %v3357_v41 }
 0x391   :  { %8194 = vmatpush3.bf16.xpose.msra.mxu1 %v4383_v42  ;;  %8195 = vmatprep.mubr.msk.bf16.mxu1 %vm9816_vm0, %v9815_v55 }
 0x392   :  { %8205 = vmatprep.subr.bf16.mxu1 %v9815_v55 }
 0x398   :  { %8196 = vmatmul.mubr.msk.bf16.vlgmr.msra.gmra.mrb[60].mxu1 %vm3504_vm1, %v3363_v44 }
 0x399   :  { %8206 = vmatpush3.bf16.xpose.msra.mxu1 %v4475_v45  ;;  %8207 = vmatprep.mubr.msk.bf16.mxu1 %vm9816_vm0, %v9815_v55 }
 0x39a   :  { %8217 = vmatprep.subr.bf16.mxu1 %v9815_v55 }
 0x3a0   :  { %8208 = vmatmul.mubr.msk.bf16.vlgmr.msra.gmra.mrb[64].mxu1 %vm3504_vm1, %v3369_v46 }
 0x3a1   :  { %8218 = vmatpush3.bf16.xpose.msra.mxu1 %v4567_v47  ;;  %8219 = vmatprep.mubr.msk.bf16.mxu1 %vm9816_vm0, %v9815_v55 }
 0x3a2   :  { %8229 = vmatprep.subr.bf16.mxu1 %v9815_v55 }
 0x3a8   :  { %8220 = vmatmul.mubr.msk.bf16.vlgmr.msra.gmra.mrb[68].mxu1 %vm3504_vm1, %v3375_v48 }
 0x3a9   :  { %8231 = vmatprep.mubr.msk.bf16.mxu1 %vm9816_vm0, %v9815_v55 }
 0x3b0   :  { %v3545_v51 = vpop.f32.mrb[24].mxu0 }
 0x3b1   :  { %v10380_v52 = vadd.f32 %v10377_v50, %v3545_v51  ;;  %v8083_v63 = vpop.f32.mrb[25].mxu0 }
 0x3b2   :  { %v3548_v54 = vpop.f32.mrb[26].mxu0 }
 0x3b3   :  { %v8084_v56 = vpop.f32.mrb[27].mxu0  ;;  %v4640_v57 = vsel %vm4639_vm3, %v10380_v52, -inf }
 0x3b4   :  { %4641 = vmax.xlane.f32.xlu1 %v4640_v57 }
 0x3b8   :  { %v3637_v4 = vpop.f32.mrb[28].mxu0 }
 0x3b9   :  { %v10385_v3 = vadd.f32 %v10377_v50, %v3637_v4  ;;  %v8095_v17 = vpop.f32.mrb[29].mxu0 }
 0x3ba   :  { %v3640_v18 = vpop.f32.mrb[30].mxu0 }
 0x3bb   :  { %v8096_v20 = vpop.f32.mrb[31].mxu0  ;;  %v4646_v22 = vsel %vm4639_vm3, %v10385_v3, -inf }
 0x3bc   :  { %4647 = vmax.xlane.f32.xlu0 %v4646_v22 }
 0x3c0   :  { %v3729_v23 = vpop.f32.mrb[32].mxu0 }
 0x3c1   :  { %v10390_v24 = vadd.f32 %v10377_v50, %v3729_v23  ;;  %v8107_v25 = vpop.f32.mrb[33].mxu0 }
 0x3c2   :  { %v3732_v7 = vpop.f32.mrb[34].mxu0 }
 0x3c3   :  { %v8108_v27 = vpop.f32.mrb[35].mxu0  ;;  %v4652_v11 = vsel %vm4639_vm3, %v10390_v24, -inf }
 0x3c4   :  { %4653 = vmax.xlane.f32.xlu0 %v4652_v11 }
 0x3c8   :  { %v3821_v9 = vpop.f32.mrb[36].mxu0  ;;  %v3481_v8 = vpop.permute.xlu1 %3480 }
 0x3c9   :  { %v10395_v14 = vadd.f32 %v10377_v50, %v3821_v9  ;;  %v8119_v13 = vpop.f32.mrb[37].mxu0  ;;  %v5004_v28 = vsel %vm4956_vm2, %v3481_v8, 0 }
 0x3ca   :  { %v3824_v30 = vpop.f32.mrb[38].mxu0  ;;  %8230 = vmatpush3.bf16.msra.mxu1 %v5004_v28 }
 0x3cb   :  { %v8120_v26 = vpop.f32.mrb[39].mxu0  ;;  %v4658_v32 = vsel %vm4639_vm3, %v10395_v14, -inf  ;;  %8241 = vmatprep.subr.bf16.mxu1 %v9815_v55 }
 0x3cc   :  { %4659 = vmax.xlane.f32.xlu0 %v4658_v32 }
 0x3d0   :  { %v3913_v33 = vpop.f32.mrb[40].mxu0 }
 0x3d1   :  { %v10404_v59 = vadd.f32 %v10401_v15, %v3913_v33  ;;  %v8131_v34 = vpop.f32.mrb[41].mxu0 }
 0x3d2   :  { %v3916_v35 = vpop.f32.mrb[42].mxu0 }
 0x3d3   :  { %v8132_v62 = vpop.f32.mrb[43].mxu0  ;;  %v4664_v36 = vsel %vm4639_vm3, %v10404_v59, -inf }
 0x3d4   :  { %4665 = vmax.xlane.f32.xlu1 %v4664_v36 }
 0x3d8   :  { %v4005_v37 = vpop.f32.mrb[44].mxu0 }
 0x3d9   :  { %v10409_v38 = vadd.f32 %v10401_v15, %v4005_v37  ;;  %v8143_v39 = vpop.f32.mrb[45].mxu0 }
 0x3da   :  { %v4008_v40 = vpop.f32.mrb[46].mxu0 }
 0x3db   :  { %v8144_v41 = vpop.f32.mrb[47].mxu0  ;;  %v4670_v42 = vsel %vm4639_vm3, %v10409_v38, -inf }
 0x3dc   :  { %4671 = vmax.xlane.f32.xlu0 %v4670_v42 }
 0x3e0   :  { %v4097_v43 = vpop.f32.mrb[48].mxu0 }
 0x3e1   :  { %v10414_v44 = vadd.f32 %v10401_v15, %v4097_v43  ;;  %v8155_v45 = vpop.f32.mrb[49].mxu0 }
 0x3e2   :  { %v4100_v60 = vpop.f32.mrb[50].mxu0 }
 0x3e3   :  { %v8156_v46 = vpop.f32.mrb[51].mxu0  ;;  %v4676_v47 = vsel %vm4639_vm3, %v10414_v44, -inf }
 0x3e4   :  { %4677 = vmax.xlane.f32.xlu0 %v4676_v47 }
 0x3e8   :  { %v4189_v48 = vpop.f32.mrb[52].mxu0 }
 0x3e9   :  { %v8167_v49 = vpop.f32.mrb[53].mxu0 }
 0x3ea   :  { %v4192_v51 = vpop.f32.mrb[54].mxu0 }
 0x3eb   :  { %v8168_v63 = vpop.f32.mrb[55].mxu0 }
 0x3f0   :  { %v10418_v54 = vpop.f32.mrb[56].mxu0 }
 0x3f1   :  { %v8179_v56 = vpop.f32.mrb[57].mxu0 }
 0x3f2   :  { %v4284_v57 = vpop.f32.mrb[58].mxu0  ;;  %v10445_v56 = vadd.f32 %v10401_v15, %v4189_v48 }
 0x3f3   :  { %v8180_v4 = vpop.f32.mrb[59].mxu0 }
 0x3f8   :  { %v10420_v17 = vpop.f32.mrb[60].mxu0 }
 0x3f9   :  { %v8191_v18 = vpop.f32.mrb[61].mxu0 }
 0x3fa   :  { %v4376_v20 = vpop.f32.mrb[62].mxu0  ;;  %v4682_v18 = vsel %vm4639_vm3, %v10445_v56, -inf }
 0x3fb   :  { %v8192_v22 = vpop.f32.mrb[63].mxu0 }
 0x400   :  { %v10422_v23 = vpop.f32.mrb[64].mxu0 }
 0x401   :  { %v8203_v25 = vpop.f32.mrb[65].mxu0 }
 0x402   :  { %v4468_v7 = vpop.f32.mrb[66].mxu0 }
 0x403   :  { %v8204_v27 = vpop.f32.mrb[67].mxu0 }
 0x408   :  { %v10424_v11 = vpop.f32.mrb[68].mxu0 }
 0x409   :  { %v8215_v9 = vpop.f32.mrb[69].mxu0 }
 0x40a   :  { %v4560_v8 = vpop.f32.mrb[70].mxu0 }
 0x40b   :  { %v8216_v13 = vpop.f32.mrb[71].mxu0 }
 0x423   :  { %v3591_v28 = vpop.f32.mrb[24].mxu1 }
 0x424   :  { %v10427_v30 = vadd.f32 %v10377_v50, %v3591_v28  ;;  %v8089_v26 = vpop.f32.mrb[25].mxu1 }
 0x425   :  { %v3594_v32 = vpop.f32.mrb[26].mxu1 }
 0x426   :  { %v8090_v33 = vpop.f32.mrb[27].mxu1  ;;  %v4643_v34 = vsel %vm4639_vm3, %v10427_v30, -inf }
 0x427   :  { %4644 = vmax.xlane.f32.xlu0 %v4643_v34  ;;  %v10458_v33 = vpack.c.bf16 %v10301_v61, %v10301_v61 }
 0x42b   :  { %v3683_v35 = vpop.f32.mrb[28].mxu1 }
 0x42c   :  { %v10432_v62 = vadd.f32 %v10377_v50, %v3683_v35  ;;  %v8101_v36 = vpop.f32.mrb[29].mxu1  ;;  %v10462_v35 = vpack.c.bf16 %v10293_v53, %v10293_v53 }
 0x42d   :  { %v3686_v37 = vpop.f32.mrb[30].mxu1 }
 0x42e   :  { %v8102_v39 = vpop.f32.mrb[31].mxu1  ;;  %v4649_v40 = vsel %vm4639_vm3, %v10432_v62, -inf }
 0x42f   :  { %4650 = vmax.xlane.f32.xlu1 %v4649_v40 }
 0x433   :  { %v3775_v41 = vpop.f32.mrb[32].mxu1 }
 0x434   :  { %v10437_v42 = vadd.f32 %v10377_v50, %v3775_v41  ;;  %v8113_v43 = vpop.f32.mrb[33].mxu1 }
 0x435   :  { %v3778_v45 = vpop.f32.mrb[34].mxu1 }
 0x436   :  { %v8114_v60 = vpop.f32.mrb[35].mxu1  ;;  %v4655_v46 = vsel %vm4639_vm3, %v10437_v42, -inf }
 0x437   :  { %4656 = vmax.xlane.f32.xlu0 %v4655_v46 }
 0x43b   :  { %v3867_v47 = vpop.f32.mrb[36].mxu1 }
 0x43c   :  { %v10442_v49 = vadd.f32 %v10377_v50, %v3867_v47  ;;  %v8125_v51 = vpop.f32.mrb[37].mxu1 }
 0x43d   :  { %v3870_v63 = vpop.f32.mrb[38].mxu1 }
 0x43e   :  { %v8126_v57 = vpop.f32.mrb[39].mxu1  ;;  %v4661_v4 = vsel %vm4639_vm3, %v10442_v49, -inf }
 0x43f   :  { %4662 = vmax.xlane.f32.xlu0 %v4661_v4  ;;  %v4611_v4 = vld [vmem:[#allocation8 + $0x8] sm:$0xf] }
 0x441   :  { %v4642_v41 = vpop.xlane.xlu1 %4641 }
 0x442   :  { %v4712_v60 = vsub.f32 %v10380_v52, %v4642_v41 }
 0x443   :  { %v3959_v20 = vpop.f32.mrb[40].mxu1  ;;  %4683 = vmax.xlane.f32.xlu0 %v4682_v18  ;;  %v10469_v18 = vunpack.c.l.bf16 %v4611_v4 }
 0x444   :  { %v10452_v22 = vadd.f32 %v10401_v15, %v3959_v20  ;;  %v8137_v50 = vpop.f32.mrb[41].mxu1  ;;  %v4736_v47 = vmul.f32 1.442695, %v4712_v60 }
 0x445   :  { %v3962_v25 = vpop.f32.mrb[42].mxu1  ;;  %v10476_v52 = vadd.f32 %v10469_v18, %v10418_v54 }
 0x446   :  { %v8138_v7 = vpop.f32.mrb[43].mxu1  ;;  %v4667_v48 = vsel %vm4639_vm3, %v10452_v22, -inf  ;;  %9309 = vpow2.f32 %v4736_v47  ;;  %v10516_v47 = vpop.permute.xlu0 %3492 }
 0x447   :  { %4668 = vmax.xlane.f32.xlu1 %v4667_v48  ;;  %v4688_v54 = vsel %vm4639_vm3, %v10476_v52, -inf }
 0x44b   :  { %v4051_v27 = vpop.f32.mrb[44].mxu1 }
 0x44c   :  { %v8149_v9 = vpop.f32.mrb[45].mxu1  ;;  %v10472_v20 = vadd.f32 %v10401_v15, %v4051_v27 }
 0x44d   :  { %v4054_v8 = vpop.f32.mrb[46].mxu1 }
 0x44e   :  { %v8150_v13 = vpop.f32.mrb[47].mxu1  ;;  %v4673_v9 = vsel %vm4639_vm3, %v10472_v20, -inf }
 0x450   :  { %v10480_v8 = vpop.eup %9309 }
 0x453   :  { %v4143_v28 = vpop.f32.mrb[48].mxu1 }
 0x454   :  { %v8161_v26 = vpop.f32.mrb[49].mxu1  ;;  %v10483_v13 = vadd.f32 %v10401_v15, %v4143_v28 }
 0x455   :  { %v4146_v32 = vpop.f32.mrb[50].mxu1 }
 0x456   :  { %v8162_v34 = vpop.f32.mrb[51].mxu1  ;;  %v4784_v32 = vsel %vm4639_vm3, %v10480_v8, 0.0  ;;  %v4679_v41 = vsel %vm4639_vm3, %v10483_v13, -inf }
 0x458   :  { %3498 = vrot.lane.b32.xlu1 %v10458_v33, %s9799_s1 }
 0x459   :  { %3482 = vrot.lane.b32.xlu0 %v10462_v35, %s9799_s1 }
 0x45b   :  { %v4235_v36 = vpop.f32.mrb[52].mxu1 }
 0x45c   :  { %v8173_v37 = vpop.f32.mrb[53].mxu1 }
 0x45d   :  { %v4238_v39 = vpop.f32.mrb[54].mxu1 }
 0x45e   :  { %v8174_v40 = vpop.f32.mrb[55].mxu1 }
 0x45f   :  { %v10493_v40 = vadd.f32 %v10401_v15, %v4235_v36 }
 0x463   :  { %v4327_v43 = vpop.f32.mrb[56].mxu1 }
 0x464   :  { %v8185_v45 = vpop.f32.mrb[57].mxu1 }
 0x465   :  { %v4330_v61 = vpop.f32.mrb[58].mxu1  ;;  %v10500_v45 = vadd.f32 %v10469_v18, %v4327_v43 }
 0x466   :  { %v8186_v46 = vpop.f32.mrb[59].mxu1  ;;  %v4685_v61 = vsel %vm4639_vm3, %v10493_v40, -inf }
 0x467   :  { %v4691_v15 = vsel %vm4639_vm3, %v10500_v45, -inf }
 0x46b   :  { %v4419_v53 = vpop.f32.mrb[60].mxu1 }
 0x46c   :  { %v8197_v51 = vpop.f32.mrb[61].mxu1  ;;  %v10486_v27 = vadd.f32 %v10469_v18, %v4419_v53  ;;  %v10518_v53 = vpop.permute.xlu0 %3486 }
 0x46d   :  { %v4422_v63 = vpop.f32.mrb[62].mxu1 }
 0x46e   :  { %v8198_v57 = vpop.f32.mrb[63].mxu1  ;;  %v4697_v28 = vsel %vm4639_vm3, %v10486_v27, -inf }
 0x470   :  { %v10520_v51 = vpop.xlane.xlu0 %4647 }
 0x473   :  { %v4511_v50 = vpop.f32.mrb[64].mxu1 }
 0x474   :  { %v8209_v25 = vpop.f32.mrb[65].mxu1  ;;  %v10505_v60 = vadd.f32 %v10469_v18, %v4511_v50  ;;  %v4654_v63 = vpop.xlane.xlu0 %4653 }
 0x475   :  { %v4514_v7 = vpop.f32.mrb[66].mxu1 }
 0x476   :  { %v8210_v48 = vpop.f32.mrb[67].mxu1  ;;  %v4703_v46 = vsel %vm4639_vm3, %v10505_v60, -inf }
 0x478   :  { %4674 = vmax.xlane.f32.xlu0 %v4673_v9  ;;  %v4660_v57 = vpop.xlane.xlu0 %4659  ;;  %v4666_v9 = vpop.xlane.xlu1 %4665 }
 0x47b   :  { %v4603_v26 = vpop.f32.mrb[68].mxu1 }
 0x47c   :  { %v8221_v34 = vpop.f32.mrb[69].mxu1  ;;  %4785 = vadd.xlane.f32.xlu0 %v4784_v32  ;;  %4689 = vmax.xlane.f32.xlu1 %v4688_v54  ;;  %v10510_v36 = vadd.f32 %v10469_v18, %v4603_v26  ;;  %v4672_v4 = vpop.xlane.xlu0 %4671  ;;  %v4716_v26 = vsub.f32 %v10390_v24, %v4654_v63 }
 0x47d   :  { %v4606_v37 = vpop.f32.mrb[70].mxu1 }
 0x47e   :  { %v8222_v39 = vpop.f32.mrb[71].mxu1  ;;  %v4709_v43 = vsel %vm4639_vm3, %v10510_v36, -inf  ;;  %v4744_v34 = vmul.f32 1.442695, %v4716_v26 }
 0x480   :  { %4698 = vmax.xlane.f32.xlu0 %v4697_v28  ;;  %4680 = vmax.xlane.f32.xlu1 %v4679_v41  ;;  %v10522_v50 = vpop.xlane.xlu0 %4677  ;;  %v4718_v28 = vsub.f32 %v10395_v14, %v4660_v57  ;;  %v10532_v41 = vadd.f32 %v10469_v18, %v10420_v17 }
 0x482   :  { %v4748_v24 = vmul.f32 1.442695, %v4718_v28 }
 0x484   :  { %4686 = vmax.xlane.f32.xlu1 %v4685_v61  ;;  %v4720_v61 = vsub.f32 %v10404_v59, %v4666_v9 }
 0x486   :  { %v4752_v17 = vmul.f32 1.442695, %v4720_v61 }
 0x488   :  { %4692 = vmax.xlane.f32.xlu1 %v4691_v15 }
 0x48c   :  { %4704 = vmax.xlane.f32.xlu1 %v4703_v46  ;;  %v4694_v46 = vsel %vm4639_vm3, %v10532_v41, -inf }
 0x490   :  { %4710 = vmax.xlane.f32.xlu1 %v4709_v43 }
 0x4b4   :  { %v4645_v25 = vpop.xlane.xlu0 %4644 }
 0x4b5   :  { %v4713_v7 = vsub.f32 %v10427_v30, %v4645_v25 }
 0x4b7   :  { %v4738_v48 = vmul.f32 1.442695, %v4713_v7 }
 0x4b9   :  { %9311 = vpow2.f32 %v4738_v48  ;;  %v10555_v48 = vadd.f32 %v10469_v18, %v10424_v11 }
 0x4bc   :  { %v4651_v32 = vpop.xlane.xlu1 %4650 }
 0x4bd   :  { %v4715_v54 = vsub.f32 %v10432_v62, %v4651_v32  ;;  %v10539_v62 = vadd.f32 %v10469_v18, %v10422_v23  ;;  %v4706_v32 = vsel %vm4639_vm3, %v10555_v48, -inf }
 0x4bf   :  { %v4742_v37 = vmul.f32 1.442695, %v4715_v54  ;;  %v4700_v59 = vsel %vm4639_vm3, %v10539_v62, -inf }
 0x4c1   :  { %9313 = vpow2.f32 %v4742_v37 }
 0x4c2   :  { %9315 = vpow2.f32 %v4744_v34 }
 0x4c3   :  { %v10527_v39 = vpop.eup %9311  ;;  %9317 = vpow2.f32 %v4748_v24 }
 0x4c4   :  { %v4787_v30 = vsel %vm4639_vm3, %v10527_v39, 0.0  ;;  %v4657_v15 = vpop.xlane.xlu0 %4656  ;;  %9319 = vpow2.f32 %v4752_v17  ;;  %v4714_v17 = vsub.f32 %v10385_v3, %v10520_v51  ;;  %v10611_v3 = vpack.c.bf16 %v10317_v21, %v10317_v21 }
 0x4c5   :  { %4788 = vadd.xlane.f32.xlu0 %v4787_v30  ;;  %v4717_v43 = vsub.f32 %v10437_v42, %v4657_v15  ;;  %v10571_v30 = vpack.c.bf16 %v10299_v1, %v10299_v1 }
 0x4c7   :  { %v4746_v25 = vmul.f32 1.442695, %v4717_v43 }
 0x4c9   :  { %4695 = vmax.xlane.f32.xlu0 %v4694_v46  ;;  %9321 = vpow2.f32 %v4746_v25  ;;  %v10601_v25 = vpack.c.bf16 %v10314_v2, %v10314_v2 }
 0x4cb   :  { %v10543_v14 = vpop.eup %9313 }
 0x4cc   :  { %v4663_v63 = vpop.xlane.xlu0 %4662  ;;  %v4793_v57 = vsel %vm4639_vm3, %v10543_v14, 0.0  ;;  %v10550_v23 = vpop.eup %9315 }
 0x4cd   :  { %4794 = vadd.xlane.f32.xlu1 %v4793_v57  ;;  %4701 = vmax.xlane.f32.xlu0 %v4700_v59  ;;  %v4719_v7 = vsub.f32 %v10442_v49, %v4663_v63  ;;  %v4796_v42 = vsel %vm4639_vm3, %v10550_v23, 0.0  ;;  %v10561_v54 = vpop.eup %9317  ;;  %v4722_v49 = vsub.f32 %v10409_v38, %v4672_v4  ;;  %v4740_v63 = vmul.f32 1.442695, %v4714_v17 }
 0x4ce   :  { %v4802_v18 = vsel %vm4639_vm3, %v10561_v54, 0.0  ;;  %v10567_v37 = vpop.eup %9319 }
 0x4cf   :  { %v4750_v9 = vmul.f32 1.442695, %v4719_v7  ;;  %v4756_v28 = vmul.f32 1.442695, %v4722_v49 }
 0x4d0   :  { %v10595_v57 = vpop.xlane.xlu0 %4683 }
 0x4d1   :  { %4797 = vadd.xlane.f32.xlu0 %v4796_v42  ;;  %9323 = vpow2.f32 %v4750_v9 }
 0x4d3   :  { %v10575_v24 = vpop.eup %9321 }
 0x4d4   :  { %v4669_v26 = vpop.xlane.xlu1 %4668  ;;  %v4799_v38 = vsel %vm4639_vm3, %v10575_v24, 0.0  ;;  %v10603_v7 = vpop.permute.xlu0 %3482 }
 0x4d5   :  { %v4721_v34 = vsub.f32 %v10452_v22, %v4669_v26  ;;  %4707 = vmax.xlane.f32.xlu0 %v4706_v32  ;;  %v4808_v22 = vsel %vm4639_vm3, %v10567_v37, 0.0  ;;  %v10620_v32 = vpack.c.bf16 %v10320_v5, %v10320_v5 }
 0x4d7   :  { %v4754_v11 = vmul.f32 1.442695, %v4721_v34 }
 0x4d8   :  { %v10613_v51 = vpop.permute.xlu1 %3498 }
 0x4d9   :  { %4803 = vadd.xlane.f32.xlu0 %v4802_v18  ;;  %9325 = vpow2.f32 %v4754_v11 }
 0x4da   :  { %9327 = vpow2.f32 %v4756_v28 }
 0x4db   :  { %v10581_v4 = vpop.eup %9323  ;;  %9329 = vpow2.f32 %v4740_v63 }
 0x4dc   :  { %v4805_v1 = vsel %vm4639_vm3, %v10581_v4, 0.0 }
 0x4dd   :  { %4809 = vadd.xlane.f32.xlu0 %v4808_v22 }
 0x4de   :  { %3488 = vrot.lane.b32.xlu1 %v10571_v30, %s9799_s1 }
 0x4e1   :  { %4800 = vadd.xlane.f32.xlu0 %v4799_v38 }
 0x4e3   :  { %v10585_v61 = vpop.eup %9325 }
 0x4e4   :  { %v4811_v15 = vsel %vm4639_vm3, %v10585_v61, 0.0  ;;  %v10589_v46 = vpop.eup %9327 }
 0x4e5   :  { %4806 = vadd.xlane.f32.xlu0 %v4805_v1  ;;  %v4814_v43 = vsel %vm4639_vm3, %v10589_v46, 0.0  ;;  %v10597_v59 = vpop.eup %9329 }
 0x4e6   :  { %v4790_v42 = vsel %vm4639_vm3, %v10597_v59, 0.0 }
 0x4e9   :  { %4812 = vadd.xlane.f32.xlu0 %v4811_v15 }
 0x4ed   :  { %4815 = vadd.xlane.f32.xlu0 %v4814_v43  ;;  %v5050_v43 = vsel %vm4956_vm2, %v10308_v19, 0 }
 0x502   :  { %4791 = vadd.xlane.f32.xlu1 %v4790_v42 }
 0x503   :  { %3500 = vrot.lane.b32.xlu0 %v10601_v25, %s9799_s1 }
 0x505   :  { %v4675_v9 = vpop.xlane.xlu0 %4674 }
 0x506   :  { %v4723_v26 = vsub.f32 %v10472_v20, %v4675_v9 }
 0x507   :  { %3484 = vrot.lane.b32.xlu0 %v10611_v3, %s9799_s1 }
 0x508   :  { %v4758_v2 = vmul.f32 1.442695, %v4723_v26 }
 0x509   :  { %v4786_v34 = vpop.xlane.xlu0 %4785  ;;  %v10622_v49 = vpop.xlane.xlu1 %4689 }
 0x50a   :  { %9331 = vpow2.f32 %v4758_v2  ;;  %v10645_v2 = vpack.c.bf16 %v10304_v16, %v10304_v16 }
 0x50b   :  { %9333 = vrcp.f32 %v4786_v34  ;;  %3490 = vrot.lane.b32.xlu0 %v10620_v32, %s9799_s1 }
 0x50d   :  { %v4681_v21 = vpop.xlane.xlu1 %4680 }
 0x50e   :  { %v4725_v20 = vsub.f32 %v10483_v13, %v4681_v21 }
 0x510   :  { %v4762_v38 = vmul.f32 1.442695, %v4725_v20 }
 0x511   :  { %v4687_v11 = vpop.xlane.xlu1 %4686 }
 0x512   :  { %v4727_v1 = vsub.f32 %v10493_v40, %v4687_v11  ;;  %9335 = vpow2.f32 %v4762_v38  ;;  %v4699_v40 = vpop.xlane.xlu0 %4698 }
 0x513   :  { %v4731_v63 = vsub.f32 %v10486_v27, %v4699_v40  ;;  %v4724_v40 = vsub.f32 %v10414_v44, %v10522_v50 }
 0x514   :  { %v10626_v18 = vpop.eup %9331 }
 0x515   :  { %v9334_v28 = vpop.eup %9333  ;;  %v4817_v22 = vsel %vm4639_vm3, %v10626_v18, 0.0  ;;  %v4693_v17 = vpop.xlane.xlu1 %4692  ;;  %v4774_v9 = vmul.f32 1.442695, %v4731_v63  ;;  %v10684_v63 = vpack.c.bf16 %v10337_v29, %v10337_v29 }
 0x516   :  { %v4880_v5 = vmul.f32 %v9334_v28, %v10480_v8  ;;  %4818 = vadd.xlane.f32.xlu1 %v4817_v22  ;;  %v4766_v8 = vmul.f32 1.442695, %v4727_v1  ;;  %v4729_v13 = vsub.f32 %v10500_v45, %v4693_v17 }
 0x518   :  { %v4904_v15 = vpack.c.bf16 %v4880_v5, %v4880_v5  ;;  %9337 = vpow2.f32 %v4766_v8  ;;  %v4770_v42 = vmul.f32 1.442695, %v4729_v13 }
 0x519   :  { %v4705_v19 = vpop.xlane.xlu1 %4704 }
 0x51a   :  { %4929 = vst.msk [vmem:[#allocation26] sm:$0xf] %vm4928_vm4, %v4904_v15  ;;  %8226 = vmatmul.mubr.msk.bf16.vlgmr.msra.gmra.mrb[72].mxu0 %vm4639_vm3, %v4904_v15  ;;  %9339 = vpow2.f32 %v4770_v42  ;;  %v4733_v26 = vsub.f32 %v10505_v60, %v4705_v19 }
 0x51b   :  { %8236 = vmatpush3.bf16.msra.mxu0 %v5050_v43  ;;  %8237 = vmatprep.mubr.msk.bf16.mxu0 %vm9816_vm0, %v9815_v55  ;;  %9341 = vpow2.f32 %v4774_v9  ;;  %v4760_v9 = vmul.f32 1.442695, %v4724_v40 }
 0x51c   :  { %8247 = vmatprep.subr.bf16.mxu0 %v9815_v55  ;;  %v10647_v34 = vpop.eup %9335  ;;  %v4778_v45 = vmul.f32 1.442695, %v4733_v26  ;;  %v4728_v26 = vsub.f32 %v10476_v52, %v10622_v49 }
 0x51d   :  { %v4823_v27 = vsel %vm4639_vm3, %v10647_v34, 0.0  ;;  %v4711_v28 = vpop.xlane.xlu1 %4710 }
 0x51e   :  { %9343 = vpow2.f32 %v4778_v45  ;;  %v4735_v22 = vsub.f32 %v10510_v36, %v4711_v28  ;;  %v10676_v36 = vpack.c.bf16 %v10335_v12, %v10335_v12  ;;  %v4768_v50 = vmul.f32 1.442695, %v4728_v26 }
 0x520   :  { %v4782_v1 = vmul.f32 1.442695, %v4735_v22 }
 0x522   :  { %v10653_v21 = vpop.eup %9337  ;;  %9345 = vpow2.f32 %v4782_v1 }
 0x523   :  { %v4829_v60 = vsel %vm4639_vm3, %v10653_v21, 0.0 }
 0x524   :  { %v10657_v11 = vpop.eup %9339 }
 0x525   :  { %v4835_v16 = vsel %vm4639_vm3, %v10657_v11, 0.0  ;;  %v10661_v20 = vpop.eup %9341 }
 0x526   :  { %v4841_v5 = vsel %vm4639_vm3, %v10661_v20, 0.0 }
 0x527   :  { %3494 = vrot.lane.b32.xlu1 %v10645_v2, %s9799_s1 }
 0x528   :  { %v10666_v38 = vpop.eup %9343 }
 0x529   :  { %v4847_v15 = vsel %vm4639_vm3, %v10666_v38, 0.0 }
 0x52a   :  { %4824 = vadd.xlane.f32.xlu0 %v4823_v27 }
 0x52c   :  { %v10670_v17 = vpop.eup %9345 }
 0x52d   :  { %v4853_v43 = vsel %vm4639_vm3, %v10670_v17, 0.0 }
 0x52e   :  { %4830 = vadd.xlane.f32.xlu0 %v4829_v60  ;;  %v5096_v60 = vsel %vm4956_vm2, %v10518_v53, 0 }
 0x532   :  { %4836 = vadd.xlane.f32.xlu0 %v4835_v16 }
 0x536   :  { %4842 = vadd.xlane.f32.xlu0 %v4841_v5 }
 0x53a   :  { %4848 = vadd.xlane.f32.xlu0 %v4847_v15  ;;  %v4726_v15 = vsub.f32 %v10445_v56, %v10595_v57 }
 0x54b   :  { %4854 = vadd.xlane.f32.xlu1 %v4853_v43 }
 0x550   :  { %3496 = vrot.lane.b32.xlu0 %v10676_v36, %s9799_s1 }
 0x552   :  { %v4789_v8 = vpop.xlane.xlu0 %4788 }
 0x553   :  { %9347 = vrcp.f32 %v4789_v8 }
 0x556   :  { %v4696_v13 = vpop.xlane.xlu0 %4695 }
 0x557   :  { %v4730_v29 = vsub.f32 %v10532_v41, %v4696_v13 }
 0x559   :  { %v4772_v52 = vmul.f32 1.442695, %v4730_v29 }
 0x55a   :  { %v4795_v42 = vpop.xlane.xlu1 %4794  ;;  %v4702_v19 = vpop.xlane.xlu0 %4701 }
 0x55b   :  { %9349 = vrcp.f32 %v4795_v42 }
 0x55c   :  { %3502 = vrot.lane.b32.xlu1 %v10684_v63, %s9799_s1 }
 0x55d   :  { %v9348_v12 = vpop.eup %9347 }
 0x55e   :  { %v4881_v45 = vmul.f32 %v9348_v12, %v10527_v39  ;;  %v4798_v27 = vpop.xlane.xlu0 %4797  ;;  %v4732_v39 = vsub.f32 %v10539_v62, %v4702_v19  ;;  %v5188_v62 = vsel %vm4956_vm2, %v10516_v47, 0 }
 0x55f   :  { %9351 = vrcp.f32 %v4798_v27 }
 0x560   :  { %v4905_v44 = vpack.c.bf16 %v4881_v45, %v4881_v45  ;;  %9353 = vpow2.f32 %v4760_v9  ;;  %v4776_v53 = vmul.f32 1.442695, %v4732_v39 }
 0x561   :  { %9355 = vpow2.f32 %v4768_v50 }
 0x562   :  { %4930 = vst.msk [vmem:[#allocation26 + $0x4] sm:$0xf] %vm4928_vm4, %v4905_v44  ;;  %8232 = vmatmul.mubr.msk.bf16.vlgmr.msra.gmra.mrb[72].mxu1 %vm4639_vm3, %v4905_v44  ;;  %v4708_v16 = vpop.xlane.xlu0 %4707 }
 0x563   :  { %8242 = vmatpush3.bf16.msra.mxu1 %v5096_v60  ;;  %8243 = vmatprep.mubr.msk.bf16.mxu1 %vm9816_vm0, %v9815_v55  ;;  %v4734_v22 = vsub.f32 %v10555_v48, %v4708_v16  ;;  %v4764_v48 = vmul.f32 1.442695, %v4726_v15 }
 0x564   :  { %8253 = vmatprep.subr.bf16.mxu1 %v9815_v55 }
 0x565   :  { %v9350_v49 = vpop.eup %9349 }
 0x566   :  { %v4804_v41 = vpop.xlane.xlu0 %4803  ;;  %v4883_v28 = vmul.f32 %v9350_v49, %v10543_v14  ;;  %v4780_v14 = vmul.f32 1.442695, %v4734_v22 }
 0x567   :  { %9357 = vrcp.f32 %v4804_v41 }
 0x568   :  { %9359 = vpow2.f32 %v4772_v52  ;;  %v4907_v5 = vpack.c.bf16 %v4883_v28, %v4883_v28 }
 0x569   :  { %v9352_v1 = vpop.eup %9351 }
 0x56a   :  { %v4810_v43 = vpop.xlane.xlu0 %4809  ;;  %v10704_v8 = vpop.eup %9353  ;;  %v4884_v13 = vmul.f32 %v9352_v1, %v10550_v23  ;;  %4932 = vst.msk [vmem:[#allocation26 + $0xc] sm:$0xf] %vm4928_vm4, %v4907_v5  ;;  %8244 = vmatmul.mubr.msk.bf16.vlgmr.msra.gmra.mrb[76].mxu1 %vm4639_vm3, %v4907_v5 }
 0x56b   :  { %9361 = vrcp.f32 %v4810_v43  ;;  %8254 = vmatpush3.bf16.msra.mxu1 %v5188_v62  ;;  %8255 = vmatprep.mubr.msk.bf16.mxu1 %vm9816_vm0, %v9815_v55  ;;  %v4820_v47 = vsel %vm4639_vm3, %v10704_v8, 0.0  ;;  %v10718_v23 = vpop.eup %9355  ;;  %v5372_v62 = vsel %vm4956_vm2, %v10603_v7, 0 }
 0x56c   :  { %9363 = vpow2.f32 %v4776_v53  ;;  %8265 = vmatprep.subr.bf16.mxu1 %v9815_v55  ;;  %v10714_v56 = vpack.c.bf16 %v4884_v13, %v4884_v13  ;;  %v4832_v19 = vsel %vm4639_vm3, %v10718_v23, 0.0  ;;  %v5280_v53 = vsel %vm4956_vm2, %v10613_v51, 0 }
 0x56e   :  { %v4801_v57 = vpop.xlane.xlu0 %4800  ;;  %4933 = vst.msk [vmem:[#allocation26 + $0x10] sm:$0xf] %vm4928_vm4, %v10714_v56 }
 0x56f   :  { %9365 = vrcp.f32 %v4801_v57  ;;  %4821 = vadd.xlane.f32.xlu0 %v4820_v47 }
 0x570   :  { %9367 = vpow2.f32 %v4780_v14  ;;  %v3489_v14 = vpop.permute.xlu1 %3488 }
 0x571   :  { %v9358_v40 = vpop.eup %9357  ;;  %9369 = vpow2.f32 %v4764_v48  ;;  %v5464_v48 = vsel %vm4956_vm2, %v3489_v14, 0 }
 0x572   :  { %v4807_v42 = vpop.xlane.xlu0 %4806  ;;  %v10724_v12 = vpop.eup %9359  ;;  %v4886_v9 = vmul.f32 %v9358_v40, %v10561_v54  ;;  %v5142_v40 = vsel %vm4956_vm2, %v10297_v58, 0 }
 0x573   :  { %9371 = vrcp.f32 %v4807_v42  ;;  %4833 = vadd.xlane.f32.xlu0 %v4832_v19  ;;  %v4838_v50 = vsel %vm4639_vm3, %v10724_v12, 0.0  ;;  %v5234_v19 = vsel %vm4956_vm2, %v10458_v33, 0 }
 0x574   :  { %v10727_v45 = vpack.c.bf16 %v4886_v9, %v4886_v9 }
 0x575   :  { %v9362_v26 = vpop.eup %9361 }
 0x576   :  { %v4888_v27 = vmul.f32 %v9362_v26, %v10567_v37  ;;  %v4813_v44 = vpop.xlane.xlu0 %4812  ;;  %v10732_v29 = vpop.eup %9363  ;;  %4935 = vst.msk [vmem:[#allocation26 + $0x18] sm:$0xf] %vm4928_vm4, %v10727_v45  ;;  %v5326_v26 = vsel %vm4956_vm2, %v10462_v35, 0  ;;  %v5418_v35 = vsel %vm4956_vm2, %v10571_v30, 0 }
 0x577   :  { %9373 = vrcp.f32 %v4813_v44  ;;  %4839 = vadd.xlane.f32.xlu0 %v4838_v50  ;;  %v4844_v37 = vsel %vm4639_vm3, %v10732_v29, 0.0 }
 0x578   :  { %v10736_v60 = vpack.c.bf16 %v4888_v27, %v4888_v27 }
 0x579   :  { %v9366_v54 = vpop.eup %9365 }
 0x57a   :  { %v4885_v16 = vmul.f32 %v9366_v54, %v10575_v24  ;;  %v4816_v52 = vpop.xlane.xlu0 %4815  ;;  %4937 = vst.msk [vmem:[#allocation26 + $0x20] sm:$0xf] %vm4928_vm4, %v10736_v60  ;;  %v10743_v39 = vpop.eup %9367  ;;  %v5510_v54 = vsel %vm4956_vm2, %v10645_v2, 0 }
 0x57b   :  { %9375 = vrcp.f32 %v4816_v52  ;;  %4845 = vadd.xlane.f32.xlu0 %v4844_v37  ;;  %v10745_v49 = vpop.eup %9369  ;;  %v4850_v22 = vsel %vm4639_vm3, %v10743_v39, 0.0 }
 0x57c   :  { %v4909_v41 = vpack.c.bf16 %v4885_v16, %v4885_v16  ;;  %v4826_v5 = vsel %vm4639_vm3, %v10745_v49, 0.0 }
 0x57d   :  { %v9372_v28 = vpop.eup %9371 }
 0x57e   :  { %v4887_v24 = vmul.f32 %v9372_v28, %v10581_v4  ;;  %4934 = vst.msk [vmem:[#allocation26 + $0x14] sm:$0xf] %vm4928_vm4, %v4909_v41  ;;  %8256 = vmatmul.mubr.msk.bf16.vlgmr.msra.gmra.mrb[80].mxu1 %vm4639_vm3, %v4909_v41 }
 0x57f   :  { %8266 = vmatpush3.bf16.msra.mxu1 %v5280_v53  ;;  %4851 = vadd.xlane.f32.xlu0 %v4850_v22 }
 0x580   :  { %4827 = vadd.xlane.f32.xlu1 %v4826_v5  ;;  %8267 = vmatprep.mubr.msk.bf16.mxu1 %vm9816_vm0, %v9815_v55  ;;  %v4911_v1 = vpack.c.bf16 %v4887_v24, %v4887_v24 }
 0x581   :  { %v9374_v51 = vpop.eup %9373  ;;  %8277 = vmatprep.subr.bf16.mxu1 %v9815_v55 }
 0x582   :  { %v4889_v4 = vmul.f32 %v9374_v51, %v10585_v61  ;;  %4936 = vst.msk [vmem:[#allocation26 + $0x1c] sm:$0xf] %vm4928_vm4, %v4911_v1 }
 0x584   :  { %v4913_v15 = vpack.c.bf16 %v4889_v4, %v4889_v4 }
 0x585   :  { %v9376_v43 = vpop.eup %9375 }
 0x586   :  { %v4890_v13 = vmul.f32 %v9376_v43, %v10589_v46  ;;  %8268 = vmatmul.mubr.msk.bf16.vlgmr.msra.gmra.mrb[84].mxu1 %vm4639_vm3, %v4911_v1  ;;  %4938 = vst.msk [vmem:[#allocation26 + $0x24] sm:$0xf] %vm4928_vm4, %v4913_v15 }
 0x587   :  { %8278 = vmatpush3.bf16.msra.mxu1 %v5372_v62  ;;  %8279 = vmatprep.mubr.msk.bf16.mxu1 %vm9816_vm0, %v9815_v55 }
 0x588   :  { %8289 = vmatprep.subr.bf16.mxu1 %v9815_v55  ;;  %v4914_v61 = vpack.c.bf16 %v4890_v13, %v4890_v13 }
 0x58a   :  { %4939 = vst.msk [vmem:[#allocation26 + $0x28] sm:$0xf] %vm4928_vm4, %v4914_v61 }
 0x58e   :  { %8280 = vmatmul.mubr.msk.bf16.vlgmr.msra.gmra.mrb[88].mxu1 %vm4639_vm3, %v4913_v15 }
 0x58f   :  { %8290 = vmatpush3.bf16.msra.mxu1 %v5464_v48  ;;  %v4792_v46 = vpop.xlane.xlu1 %4791  ;;  %8291 = vmatprep.mubr.msk.bf16.mxu1 %vm9816_vm0, %v9815_v55 }
 0x590   :  { %9377 = vrcp.f32 %v4792_v46  ;;  %8301 = vmatprep.subr.bf16.mxu1 %v9815_v55 }
 0x59a   :  { %v9378_v7 = vpop.eup %9377 }
 0x59b   :  { %v4882_v57 = vmul.f32 %v9378_v7, %v10597_v59  ;;  %v3501_v59 = vpop.permute.xlu0 %3500 }
 0x59c   :  { %v5648_v28 = vsel %vm4956_vm2, %v3501_v59, 0 }
 0x59d   :  { %v4906_v47 = vpack.c.bf16 %v4882_v57, %v4882_v57 }
 0x59f   :  { %4931 = vst.msk [vmem:[#allocation26 + $0x8] sm:$0xf] %vm4928_vm4, %v4906_v47  ;;  %8238 = vmatmul.mubr.msk.bf16.vlgmr.msra.gmra.mrb[76].mxu0 %vm4639_vm3, %v4906_v47  ;;  %v3485_v58 = vpop.permute.xlu0 %3484 }
 0x5a0   :  { %8248 = vmatpush3.bf16.msra.mxu0 %v5142_v40  ;;  %8249 = vmatprep.mubr.msk.bf16.mxu0 %vm9816_vm0, %v9815_v55  ;;  %v5740_v1 = vsel %vm4956_vm2, %v3485_v58, 0 }
 0x5a1   :  { %8259 = vmatprep.subr.bf16.mxu0 %v9815_v55 }
 0x5a3   :  { %v4819_v42 = vpop.xlane.xlu1 %4818  ;;  %v3491_v44 = vpop.permute.xlu0 %3490 }
 0x5a4   :  { %9379 = vrcp.f32 %v4819_v42  ;;  %v5832_v62 = vsel %vm4956_vm2, %v3491_v44, 0 }
 0x5a7   :  { %8250 = vmatmul.mubr.msk.bf16.vlgmr.msra.gmra.mrb[80].mxu0 %vm4639_vm3, %v10714_v56  ;;  %v3495_v33 = vpop.permute.xlu1 %3494 }
 0x5a8   :  { %8260 = vmatpush3.bf16.msra.mxu0 %v5234_v19  ;;  %8261 = vmatprep.mubr.msk.bf16.mxu0 %vm9816_vm0, %v9815_v55  ;;  %v5556_v50 = vsel %vm4956_vm2, %v3495_v33, 0 }
 0x5a9   :  { %8271 = vmatprep.subr.bf16.mxu0 %v9815_v55 }
 0x5ae   :  { %v9380_v9 = vpop.eup %9379 }
 0x5af   :  { %v4891_v27 = vmul.f32 %v9380_v9, %v10626_v18  ;;  %8262 = vmatmul.mubr.msk.bf16.vlgmr.msra.gmra.mrb[84].mxu0 %vm4639_vm3, %v10727_v45 }
 0x5b0   :  { %8272 = vmatpush3.bf16.msra.mxu0 %v5326_v26  ;;  %8273 = vmatprep.mubr.msk.bf16.mxu0 %vm9816_vm0, %v9815_v55 }
 0x5b1   :  { %v4915_v56 = vpack.c.bf16 %v4891_v27, %v4891_v27  ;;  %8283 = vmatprep.subr.bf16.mxu0 %v9815_v55 }
 0x5b3   :  { %4940 = vst.msk [vmem:[#allocation26 + $0x2c] sm:$0xf] %vm4928_vm4, %v4915_v56  ;;  %8292 = vmatmul.mubr.msk.bf16.vlgmr.msra.gmra.mrb[92].mxu1 %vm4639_vm3, %v4915_v56  ;;  %v5602_v56 = vsel %vm4956_vm2, %v10601_v25, 0 }
 0x5b4   :  { %8302 = vmatpush3.bf16.msra.mxu1 %v5556_v50  ;;  %8303 = vmatprep.mubr.msk.bf16.mxu1 %vm9816_vm0, %v9815_v55 }
 0x5b5   :  { %8313 = vmatprep.subr.bf16.mxu1 %v9815_v55 }
 0x5b7   :  { %8274 = vmatmul.mubr.msk.bf16.vlgmr.msra.gmra.mrb[88].mxu0 %vm4639_vm3, %v10736_v60  ;;  %v4825_v18 = vpop.xlane.xlu0 %4824 }
 0x5b8   :  { %8284 = vmatpush3.bf16.msra.mxu0 %v5418_v35  ;;  %9381 = vrcp.f32 %v4825_v18  ;;  %8285 = vmatprep.mubr.msk.bf16.mxu0 %vm9816_vm0, %v9815_v55 }
 0x5b9   :  { %8295 = vmatprep.subr.bf16.mxu0 %v9815_v55 }
 0x5bb   :  { %v4831_v45 = vpop.xlane.xlu0 %4830 }
 0x5bc   :  { %9383 = vrcp.f32 %v4831_v45 }
 0x5bf   :  { %8286 = vmatmul.mubr.msk.bf16.vlgmr.msra.gmra.mrb[92].mxu0 %vm4639_vm3, %v4914_v61  ;;  %v4837_v16 = vpop.xlane.xlu0 %4836 }
 0x5c0   :  { %8296 = vmatpush3.bf16.msra.mxu0 %v5510_v54  ;;  %9385 = vrcp.f32 %v4837_v16  ;;  %8297 = vmatprep.mubr.msk.bf16.mxu0 %vm9816_vm0, %v9815_v55 }
 0x5c1   :  { %8307 = vmatprep.subr.bf16.mxu0 %v9815_v55 }
 0x5c2   :  { %v9382_v30 = vpop.eup %9381 }
 0x5c3   :  { %v4893_v60 = vmul.f32 %v9382_v30, %v10647_v34  ;;  %v4843_v52 = vpop.xlane.xlu0 %4842 }
 0x5c4   :  { %9387 = vrcp.f32 %v4843_v52 }
 0x5c5   :  { %v4917_v37 = vpack.c.bf16 %v4893_v60, %v4893_v60 }
 0x5c6   :  { %v9384_v41 = vpop.eup %9383 }
 0x5c7   :  { %v4895_v2 = vmul.f32 %v9384_v41, %v10653_v21  ;;  %4942 = vst.msk [vmem:[#allocation26 + $0x34] sm:$0xf] %vm4928_vm4, %v4917_v37  ;;  %8304 = vmatmul.mubr.msk.bf16.vlgmr.msra.gmra.mrb[96].mxu1 %vm4639_vm3, %v4917_v37  ;;  %v4849_v53 = vpop.xlane.xlu0 %4848 }
 0x5c8   :  { %8314 = vmatpush3.bf16.msra.mxu1 %v5648_v28  ;;  %9389 = vrcp.f32 %v4849_v53  ;;  %8315 = vmatprep.mubr.msk.bf16.mxu1 %vm9816_vm0, %v9815_v55  ;;  %v9117_v53 = vld [vmem:[#allocation19] ss:$16 sps:$4 sm:$0xff]  }
 0x5c9   :  { %8325 = vmatprep.subr.bf16.mxu1 %v9815_v55  ;;  %v4919_v34 = vpack.c.bf16 %v4895_v2, %v4895_v2 }
 0x5ca   :  { %v9386_v24 = vpop.eup %9385 }
 0x5cb   :  { %v4897_v22 = vmul.f32 %v9386_v24, %v10657_v11  ;;  %4944 = vst.msk [vmem:[#allocation26 + $0x3c] sm:$0xf] %vm4928_vm4, %v4919_v34  ;;  %v3497_v13 = vpop.permute.xlu0 %3496  ;;  %v9120_v24 = vld [vmem:[#allocation19 + $0x8] ss:$16 sps:$4 sm:$0xff]  }
 0x5cd   :  { %v4921_v5 = vpack.c.bf16 %v4897_v22, %v4897_v22 }
 0x5ce   :  { %v9388_v21 = vpop.eup %9387 }
 0x5cf   :  { %v4899_v51 = vmul.f32 %v9388_v21, %v10661_v20  ;;  %8316 = vmatmul.mubr.msk.bf16.vlgmr.msra.gmra.mrb[100].mxu1 %vm4639_vm3, %v4919_v34  ;;  %4946 = vst.msk [vmem:[#allocation26 + $0x44] sm:$0xf] %vm4928_vm4, %v4921_v5  ;;  %v9119_v34 = vld [vmem:[#allocation19 + $0x4] ss:$16 sps:$4 sm:$0xff]  }
 0x5d0   :  { %8326 = vmatpush3.bf16.msra.mxu1 %v5740_v1  ;;  %8327 = vmatprep.mubr.msk.bf16.mxu1 %vm9816_vm0, %v9815_v55 }
 0x5d1   :  { %8337 = vmatprep.subr.bf16.mxu1 %v9815_v55  ;;  %v4923_v4 = vpack.c.bf16 %v4899_v51, %v4899_v51  ;;  %v9123_v51 = vld [vmem:[#allocation19 + $0x28] ss:$16 sps:$4 sm:$0xff]  }
 0x5d2   :  { %v9390_v11 = vpop.eup %9389 }
 0x5d3   :  { %v4901_v15 = vmul.f32 %v9390_v11, %v10666_v38  ;;  %4948 = vst.msk [vmem:[#allocation26 + $0x4c] sm:$0xf] %vm4928_vm4, %v4923_v4  ;;  %v5924_v38 = vsel %vm4956_vm2, %v3497_v13, 0  ;;  %v9128_v11 = vld [vmem:[#allocation19 + $0x24] ss:$16 sps:$4 sm:$0xff]  }
 0x5d4   :  { %v9140_v13 = vld [vmem:[#allocation19 + $0x6c] ss:$16 sps:$4 sm:$0xff]  }
 0x5d5   :  { %v4925_v43 = vpack.c.bf16 %v4901_v15, %v4901_v15  ;;  %v9131_v15 = vld [vmem:[#allocation19 + $0x44] ss:$16 sps:$4 sm:$0xff]  }
 0x5d7   :  { %8328 = vmatmul.mubr.msk.bf16.vlgmr.msra.gmra.mrb[104].mxu1 %vm4639_vm3, %v4921_v5  ;;  %4950 = vst.msk [vmem:[#allocation26 + $0x54] sm:$0xf] %vm4928_vm4, %v4925_v43  ;;  %v9122_v5 = vld [vmem:[#allocation19 + $0xc] ss:$16 sps:$4 sm:$0xff]  }
 0x5d8   :  { %8338 = vmatpush3.bf16.msra.mxu1 %v5832_v62  ;;  %v4855_v20 = vpop.xlane.xlu1 %4854  ;;  %8339 = vmatprep.mubr.msk.bf16.mxu1 %vm9816_vm0, %v9815_v55  ;;  %v9132_v62 = vld [vmem:[#allocation19 + $0x48] ss:$16 sps:$4 sm:$0xff]  }
 0x5d9   :  { %9391 = vrcp.f32 %v4855_v20  ;;  %8349 = vmatprep.subr.bf16.mxu1 %v9815_v55  ;;  %v9129_v20 = vld [vmem:[#allocation19 + $0x40] ss:$16 sps:$4 sm:$0xff]  }
 0x5dc   :  { %v3503_v48 = vpop.permute.xlu1 %3502 }
 0x5dd   :  { %v6016_v7 = vsel %vm4956_vm2, %v3503_v48, 0  ;;  %v9146_v48 = vld [vmem:[#allocation19 + $0x8c] ss:$16 sps:$4 sm:$0xff]  }
 0x5df   :  { %8340 = vmatmul.mubr.msk.bf16.vlgmr.msra.gmra.mrb[108].mxu1 %vm4639_vm3, %v4923_v4  ;;  %v9125_v4 = vld [vmem:[#allocation19 + $0x2c] ss:$16 sps:$4 sm:$0xff]  }
 0x5e0   :  { %8350 = vmatpush3.bf16.msra.mxu1 %v5924_v38  ;;  %8351 = vmatprep.mubr.msk.bf16.mxu1 %vm9816_vm0, %v9815_v55  ;;  %v9137_v38 = vld [vmem:[#allocation19 + $0x64] ss:$16 sps:$4 sm:$0xff]  }
 0x5e1   :  { %8361 = vmatprep.subr.bf16.mxu1 %v9815_v55 }
 0x5e3   :  { %v9392_v61 = vpop.eup %9391 }
 0x5e4   :  { %v4903_v14 = vmul.f32 %v9392_v61, %v10670_v17  ;;  %v9138_v61 = vld [vmem:[#allocation19 + $0x68] ss:$16 sps:$4 sm:$0xff]  }
 0x5e6   :  { %v4927_v46 = vpack.c.bf16 %v4903_v14, %v4903_v14  ;;  %v9135_v14 = vld [vmem:[#allocation19 + $0x60] ss:$16 sps:$4 sm:$0xff]  }
 0x5e7   :  { %8352 = vmatmul.mubr.msk.bf16.vlgmr.msra.gmra.mrb[112].mxu1 %vm4639_vm3, %v4925_v43  ;;  %v9134_v43 = vld [vmem:[#allocation19 + $0x4c] ss:$16 sps:$4 sm:$0xff]  }
 0x5e8   :  { %8362 = vmatpush3.bf16.msra.mxu1 %v6016_v7  ;;  %8363 = vmatprep.mubr.msk.bf16.mxu1 %vm9816_vm0, %v9815_v55  ;;  %4952 = vst.msk [vmem:[#allocation26 + $0x5c] sm:$0xf] %vm4928_vm4, %v4927_v46  ;;  %v9144_v7 = vld [vmem:[#allocation19 + $0x88] ss:$16 sps:$4 sm:$0xff]  }
 0x5e9   :  { %7018 = vmatprep.subr.bf16.mxu1 %v9122_v5  ;;  %v9188_v5 = vld [vmem:[#allocation19 + $0x16c] ss:$16 sps:$4 sm:$0xff]  }
 0x5ed   :  { %v10853_v57 = vpop.f32.mrb[72].mxu0 }
 0x5ee   :  { %v8227_v47 = vpop.f32.mrb[73].mxu0 }
 0x5ef   :  { %v4997_v40 = vpop.f32.mrb[74].mxu0  ;;  %8364 = vmatmul.mubr.msk.bf16.vlgmr.msra.gmra.mrb[116].mxu1 %vm4639_vm3, %v4927_v46  ;;  %v9143_v46 = vld [vmem:[#allocation19 + $0x84] ss:$16 sps:$4 sm:$0xff]   ;;  %v9141_v47 = vld [vmem:[#allocation19 + $0x80] ss:$16 sps:$4 sm:$0xff]  }
 0x5f0   :  { %v8228_v42 = vpop.f32.mrb[75].mxu0  ;;  %7019 = vmatpush1.bf16.msra.mxu1 %v9120_v24  ;;  %v9152_v40 = vld [vmem:[#allocation19 + $0xac] ss:$16 sps:$4 sm:$0xff]   ;;  %v9185_v24 = vld [vmem:[#allocation19 + $0x164] ss:$16 sps:$4 sm:$0xff]  }
 0x5f1   :  { %7020 = vmatprep.subr.bf16.mxu1 %v9125_v4  ;;  %v9192_v4 = vld [vmem:[#allocation19 + $0x188] ss:$16 sps:$4 sm:$0xff]  }
 0x5f4   :  { %7021 = vmatpush1.bf16.msra.mxu1 %v9123_v51  ;;  %v9191_v51 = vld [vmem:[#allocation19 + $0x184] ss:$16 sps:$4 sm:$0xff]  }
 0x5f5   :  { %7022 = vmatprep.subr.bf16.mxu1 %v9134_v43  ;;  %v9197_v43 = vld [vmem:[#allocation19 + $0x1a4] ss:$16 sps:$4 sm:$0xff]  }
 0x5f8   :  { %7023 = vmatpush1.bf16.msra.mxu1 %v9132_v62 }
 0x5f9   :  { %7024 = vmatprep.subr.bf16.mxu1 %v9140_v13 }
 0x5fc   :  { %v4822_v17 = vpop.xlane.xlu0 %4821  ;;  %7025 = vmatpush1.bf16.msra.mxu1 %v9138_v61  ;;  %v9198_v61 = vld [vmem:[#allocation19 + $0x1a8] ss:$16 sps:$4 sm:$0xff]  }
 0x5fd   :  { %9393 = vrcp.f32 %v4822_v17  ;;  %7026 = vmatprep.subr.bf16.mxu1 %v9146_v48  ;;  %v9149_v17 = vld [vmem:[#allocation19 + $0xa4] ss:$16 sps:$4 sm:$0xff]  }
 0x5fe   :  { %v9203_v48 = vld [vmem:[#allocation19 + $0x1c4] ss:$16 sps:$4 sm:$0xff]  }
 0x600   :  { %v4834_v19 = vpop.xlane.xlu0 %4833  ;;  %7027 = vmatpush1.bf16.msra.mxu1 %v9144_v7 }
 0x601   :  { %9395 = vrcp.f32 %v4834_v19  ;;  %7028 = vmatprep.subr.bf16.mxu1 %v9152_v40 }
 0x604   :  { %v4840_v59 = vpop.xlane.xlu0 %4839 }
 0x605   :  { %9397 = vrcp.f32 %v4840_v59 }
 0x607   :  { %v9394_v58 = vpop.eup %9393 }
 0x608   :  { %v4892_v9 = vmul.f32 %v9394_v58, %v10704_v8  ;;  %v4846_v26 = vpop.xlane.xlu0 %4845  ;;  %v9150_v58 = vld [vmem:[#allocation19 + $0xa8] ss:$16 sps:$4 sm:$0xff]  }
 0x609   :  { %9399 = vrcp.f32 %v4846_v26  ;;  %v9147_v26 = vld [vmem:[#allocation19 + $0xa0] ss:$16 sps:$4 sm:$0xff]   ;;  %7029 = vmatpush1.bf16.msra.mxu1 %v9150_v58 }
 0x60a   :  { %v4916_v27 = vpack.c.bf16 %v4892_v9, %v4892_v9 }
 0x60b   :  { %v9396_v33 = vpop.eup %9395 }
 0x60c   :  { %v4896_v44 = vmul.f32 %v9396_v33, %v10718_v23  ;;  %4941 = vst.msk [vmem:[#allocation26 + $0x30] sm:$0xf] %vm4928_vm4, %v4916_v27  ;;  %8298 = vmatmul.mubr.msk.bf16.vlgmr.msra.gmra.mrb[96].mxu0 %vm4639_vm3, %v4916_v27  ;;  %v4852_v50 = vpop.xlane.xlu0 %4851  ;;  %v9155_v33 = vld [vmem:[#allocation19 + $0xc4] ss:$16 sps:$4 sm:$0xff]  }
 0x60d   :  { %8308 = vmatpush3.bf16.msra.mxu0 %v5602_v56  ;;  %9401 = vrcp.f32 %v4852_v50  ;;  %v4828_v35 = vpop.xlane.xlu1 %4827  ;;  %8309 = vmatprep.mubr.msk.bf16.mxu0 %vm9816_vm0, %v9815_v55  ;;  %v9158_v56 = vld [vmem:[#allocation19 + $0xcc] ss:$16 sps:$4 sm:$0xff]   ;;  %v9153_v50 = vld [vmem:[#allocation19 + $0xc0] ss:$16 sps:$4 sm:$0xff]  }
 0x60e   :  { %9403 = vrcp.f32 %v4828_v35  ;;  %8319 = vmatprep.subr.bf16.mxu0 %v9815_v55  ;;  %v4920_v8 = vpack.c.bf16 %v4896_v44, %v4896_v44  ;;  %v9156_v35 = vld [vmem:[#allocation19 + $0xc8] ss:$16 sps:$4 sm:$0xff]   ;;  %7030 = vmatprep.subr.bf16.mxu1 %v9158_v56 }
 0x60f   :  { %v9398_v18 = vpop.eup %9397  ;;  %7031 = vmatpush1.bf16.msra.mxu1 %v9156_v35 }
 0x610   :  { %v4898_v25 = vmul.f32 %v9398_v18, %v10724_v12  ;;  %4945 = vst.msk [vmem:[#allocation26 + $0x40] sm:$0xf] %vm4928_vm4, %v4920_v8  ;;  %v5694_v12 = vsel %vm4956_vm2, %v10611_v3, 0  ;;  %v5878_v3 = vsel %vm4956_vm2, %v10676_v36, 0  ;;  %v9159_v18 = vld [vmem:[#allocation19 + $0xe0] ss:$16 sps:$4 sm:$0xff]  }
 0x612   :  { %v4922_v23 = vpack.c.bf16 %v4898_v25, %v4898_v25  ;;  %v9161_v25 = vld [vmem:[#allocation19 + $0xe4] ss:$16 sps:$4 sm:$0xff]  }
 0x613   :  { %v9400_v45 = vpop.eup %9399 }
 0x614   :  { %v4900_v54 = vmul.f32 %v9400_v45, %v10732_v29  ;;  %4947 = vst.msk [vmem:[#allocation26 + $0x48] sm:$0xf] %vm4928_vm4, %v4922_v23  ;;  %v5786_v29 = vsel %vm4956_vm2, %v10620_v32, 0  ;;  %v5970_v32 = vsel %vm4956_vm2, %v10684_v63, 0  ;;  %v9162_v45 = vld [vmem:[#allocation19 + $0xe8] ss:$16 sps:$4 sm:$0xff]  }
 0x616   :  { %v4924_v16 = vpack.c.bf16 %v4900_v54, %v4900_v54  ;;  %v9164_v54 = vld [vmem:[#allocation19 + $0xec] ss:$16 sps:$4 sm:$0xff]  }
 0x617   :  { %v9402_v30 = vpop.eup %9401  ;;  %7032 = vmatprep.subr.bf16.mxu1 %v9164_v54 }
 0x618   :  { %v9404_v60 = vpop.eup %9403  ;;  %v4902_v52 = vmul.f32 %v9402_v30, %v10743_v39  ;;  %4949 = vst.msk [vmem:[#allocation26 + $0x50] sm:$0xf] %vm4928_vm4, %v4924_v16  ;;  %7033 = vmatpush1.bf16.msra.mxu1 %v9162_v45  ;;  %v9165_v30 = vld [vmem:[#allocation19 + $0x100] ss:$16 sps:$4 sm:$0xff]  }
 0x619   :  { %v4894_v37 = vmul.f32 %v9404_v60, %v10745_v49  ;;  %v9167_v60 = vld [vmem:[#allocation19 + $0x104] ss:$16 sps:$4 sm:$0xff]  }
 0x61a   :  { %v4926_v41 = vpack.c.bf16 %v4902_v52, %v4902_v52 }
 0x61b   :  { %v4918_v28 = vpack.c.bf16 %v4894_v37, %v4894_v37 }
 0x61c   :  { %4951 = vst.msk [vmem:[#allocation26 + $0x58] sm:$0xf] %vm4928_vm4, %v4926_v41 }
 0x61d   :  { %4943 = vst.msk [vmem:[#allocation26 + $0x38] sm:$0xf] %vm4928_vm4, %v4918_v28  ;;  %8310 = vmatmul.mubr.msk.bf16.vlgmr.msra.gmra.mrb[100].mxu0 %vm4639_vm3, %v4918_v28  ;;  %v9170_v28 = vld [vmem:[#allocation19 + $0x10c] ss:$16 sps:$4 sm:$0xff]  }
 0x61e   :  { %8320 = vmatpush3.bf16.msra.mxu0 %v5694_v12  ;;  %8321 = vmatprep.mubr.msk.bf16.mxu0 %vm9816_vm0, %v9815_v55 }
 0x61f   :  { %8331 = vmatprep.subr.bf16.mxu0 %v9815_v55  ;;  %7034 = vmatprep.subr.bf16.mxu1 %v9170_v28 }
 0x625   :  { %8322 = vmatmul.mubr.msk.bf16.vlgmr.msra.gmra.mrb[104].mxu0 %vm4639_vm3, %v4920_v8 }
 0x626   :  { %8332 = vmatpush3.bf16.msra.mxu0 %v5786_v29  ;;  %8333 = vmatprep.mubr.msk.bf16.mxu0 %vm9816_vm0, %v9815_v55  ;;  %v9173_v29 = vld [vmem:[#allocation19 + $0x124] ss:$16 sps:$4 sm:$0xff]  }
 0x627   :  { %8343 = vmatprep.subr.bf16.mxu0 %v9815_v55 }
 0x62d   :  { %8334 = vmatmul.mubr.msk.bf16.vlgmr.msra.gmra.mrb[108].mxu0 %vm4639_vm3, %v4922_v23 }
 0x62e   :  { %8344 = vmatpush3.bf16.msra.mxu0 %v5878_v3  ;;  %8345 = vmatprep.mubr.msk.bf16.mxu0 %vm9816_vm0, %v9815_v55 }
 0x62f   :  { %8355 = vmatprep.subr.bf16.mxu0 %v9815_v55 }
 0x635   :  { %v10894_v39 = vpop.f32.mrb[72].mxu1  ;;  %8346 = vmatmul.mubr.msk.bf16.vlgmr.msra.gmra.mrb[112].mxu0 %vm4639_vm3, %v4924_v16 }
 0x636   :  { %8356 = vmatpush3.bf16.msra.mxu0 %v5970_v32  ;;  %v8233_v49 = vpop.f32.mrb[73].mxu1  ;;  %8357 = vmatprep.mubr.msk.bf16.mxu0 %vm9816_vm0, %v9815_v55  ;;  %v9126_v55 = vld [vmem:[#allocation19 + $0x20] ss:$16 sps:$4 sm:$0xff]   ;;  %v9176_v32 = vld [vmem:[#allocation19 + $0x12c] ss:$16 sps:$4 sm:$0xff]  }
 0x637   :  { %v5043_v36 = vpop.f32.mrb[74].mxu1  ;;  %6916 = vmatprep.subr.bf16.mxu0 %v9119_v34  ;;  %v9171_v49 = vld [vmem:[#allocation19 + $0x120] ss:$16 sps:$4 sm:$0xff]   ;;  %v9180_v34 = vld [vmem:[#allocation19 + $0x148] ss:$16 sps:$4 sm:$0xff]  }
 0x638   :  { %v8234_v2 = vpop.f32.mrb[75].mxu1  ;;  %v9174_v36 = vld [vmem:[#allocation19 + $0x128] ss:$16 sps:$4 sm:$0xff]  }
 0x639   :  { %v9179_v2 = vld [vmem:[#allocation19 + $0x144] ss:$16 sps:$4 sm:$0xff]  }
 0x63d   :  { %8358 = vmatmul.mubr.msk.bf16.vlgmr.msra.gmra.mrb[116].mxu0 %vm4639_vm3, %v4926_v41  ;;  %v10900_v22 = vpop.f32.mrb[76].mxu1  ;;  %v9168_v41 = vld [vmem:[#allocation19 + $0x108] ss:$16 sps:$4 sm:$0xff]  }
 0x63e   :  { %v8245_v63 = vpop.f32.mrb[77].mxu1  ;;  %6917 = vmatpush1.bf16.msra.mxu0 %v9117_v53  ;;  %7035 = vmatpush1.bf16.msra.mxu1 %v9168_v41  ;;  %v9182_v53 = vld [vmem:[#allocation19 + $0x14c] ss:$16 sps:$4 sm:$0xff]  }
 0x63f   :  { %v5135_v21 = vpop.f32.mrb[78].mxu1  ;;  %6918 = vmatprep.subr.bf16.mxu0 %v9128_v11  ;;  %7036 = vmatprep.subr.bf16.mxu1 %v9176_v32  ;;  %v9183_v63 = vld [vmem:[#allocation19 + $0x160] ss:$16 sps:$4 sm:$0xff]   ;;  %v9194_v11 = vld [vmem:[#allocation19 + $0x18c] ss:$16 sps:$4 sm:$0xff]  }
 0x640   :  { %v8246_v1 = vpop.f32.mrb[79].mxu1  ;;  %v9186_v21 = vld [vmem:[#allocation19 + $0x168] ss:$16 sps:$4 sm:$0xff]  }
 0x641   :  { %v9189_v1 = vld [vmem:[#allocation19 + $0x180] ss:$16 sps:$4 sm:$0xff]  }
 0x642   :  { %6919 = vmatpush1.bf16.msra.mxu0 %v9126_v55  ;;  %7037 = vmatpush1.bf16.msra.mxu1 %v9174_v36 }
 0x643   :  { %6920 = vmatprep.subr.bf16.mxu0 %v9131_v15  ;;  %7038 = vmatprep.subr.bf16.mxu1 %v9182_v53 }
 0x646   :  { %6921 = vmatpush1.bf16.msra.mxu0 %v9129_v20  ;;  %7039 = vmatpush1.bf16.msra.mxu1 %v9180_v34  ;;  %v9200_v20 = vld [vmem:[#allocation19 + $0x1ac] ss:$16 sps:$4 sm:$0xff]  }
 0x647   :  { %6922 = vmatprep.subr.bf16.mxu0 %v9137_v38  ;;  %7040 = vmatprep.subr.bf16.mxu1 %v9188_v5  ;;  %v9195_v38 = vld [vmem:[#allocation19 + $0x1a0] ss:$16 sps:$4 sm:$0xff]  }
 0x64a   :  { %6923 = vmatpush1.bf16.msra.mxu0 %v9135_v14  ;;  %7041 = vmatpush1.bf16.msra.mxu1 %v9186_v21  ;;  %v9201_v14 = vld [vmem:[#allocation19 + $0x1c0] ss:$16 sps:$4 sm:$0xff]  }
 0x64b   :  { %6924 = vmatprep.subr.bf16.mxu0 %v9143_v46  ;;  %7042 = vmatprep.subr.bf16.mxu1 %v9194_v11  ;;  %v9204_v46 = vld [vmem:[#allocation19 + $0x1c8] ss:$16 sps:$4 sm:$0xff]  }
 0x64e   :  { %6925 = vmatpush1.bf16.msra.mxu0 %v9141_v47  ;;  %7043 = vmatpush1.bf16.msra.mxu1 %v9192_v4  ;;  %v9206_v47 = vld [vmem:[#allocation19 + $0x1cc] ss:$16 sps:$4 sm:$0xff]  }
 0x64f   :  { %6926 = vmatprep.subr.bf16.mxu0 %v9149_v17  ;;  %7044 = vmatprep.subr.bf16.mxu1 %v9200_v20 }
 0x651   :  { %v10902_v42 = vpop.f32.mrb[80].mxu1 }
 0x652   :  { %v8257_v19 = vpop.f32.mrb[81].mxu1  ;;  %6927 = vmatpush1.bf16.msra.mxu0 %v9147_v26  ;;  %7045 = vmatpush1.bf16.msra.mxu1 %v9198_v61  ;;  %v9212_v26 = vld [vmem:[#allocation19 + $0x1ec] ss:$16 sps:$4 sm:$0xff]  }
 0x653   :  { %v5227_v59 = vpop.f32.mrb[82].mxu1  ;;  %6928 = vmatprep.subr.bf16.mxu0 %v9155_v33  ;;  %7046 = vmatprep.subr.bf16.mxu1 %v9206_v47  ;;  %v9207_v19 = vld [vmem:[#allocation19 + $0x1e0] ss:$16 sps:$4 sm:$0xff]   ;;  %v9215_v33 = vld [vmem:[#allocation19 + $0x204] ss:$16 sps:$4 sm:$0xff]  }
 0x654   :  { %v8258_v9 = vpop.f32.mrb[83].mxu1  ;;  %v9209_v59 = vld [vmem:[#allocation19 + $0x1e4] ss:$16 sps:$4 sm:$0xff]  }
 0x655   :  { %v9210_v9 = vld [vmem:[#allocation19 + $0x1e8] ss:$16 sps:$4 sm:$0xff]  }
 0x656   :  { %6929 = vmatpush1.bf16.msra.mxu0 %v9153_v50  ;;  %7047 = vmatpush1.bf16.msra.mxu1 %v9204_v46 }
 0x657   :  { %6930 = vmatprep.subr.bf16.mxu0 %v9161_v25  ;;  %7048 = vmatprep.subr.bf16.mxu1 %v9212_v26 }
 0x659   :  { %v10904_v27 = vpop.f32.mrb[84].mxu1 }
 0x65a   :  { %v8269_v44 = vpop.f32.mrb[85].mxu1  ;;  %6931 = vmatpush1.bf16.msra.mxu0 %v9159_v18  ;;  %7049 = vmatpush1.bf16.msra.mxu1 %v9210_v9 }
 0x65b   :  { %v5319_v8 = vpop.f32.mrb[86].mxu1  ;;  %6932 = vmatprep.subr.bf16.mxu0 %v9167_v60  ;;  %v9218_v44 = vld [vmem:[#allocation19 + $0x20c] ss:$16 sps:$4 sm:$0xff]  }
 0x65c   :  { %v8270_v23 = vpop.f32.mrb[87].mxu1  ;;  %7069 = vmatprep.subr.bf16.mxu1 %v9218_v44 }
 0x65e   :  { %6933 = vmatpush1.bf16.msra.mxu0 %v9165_v30 }
 0x65f   :  { %6934 = vmatprep.subr.bf16.mxu0 %v9173_v29 }
 0x661   :  { %v5408_v16 = vpop.f32.mrb[88].mxu1 }
 0x662   :  { %v8496_v52 = vpack.i.bf16 %v5408_v16, %v10894_v39  ;;  %v8281_v37 = vpop.f32.mrb[89].mxu1  ;;  %6935 = vmatpush1.bf16.msra.mxu0 %v9171_v49  ;;  %v9177_v39 = vld [vmem:[#allocation19 + $0x140] ss:$16 sps:$4 sm:$0xff]  }
 0x663   :  { %v5411_v12 = vpop.f32.mrb[90].mxu1  ;;  %6936 = vmatprep.subr.bf16.mxu0 %v9179_v2 }
 0x664   :  { %8497 = vrot.lane.b32.xlu1 %v8496_v52, %s9799_s1  ;;  %v8282_v3 = vpop.f32.mrb[91].mxu1 }
 0x666   :  { %6937 = vmatpush1.bf16.msra.mxu0 %v9177_v39 }
 0x667   :  { %6938 = vmatprep.subr.bf16.mxu0 %v9185_v24 }
 0x66a   :  { %6939 = vmatpush1.bf16.msra.mxu0 %v9183_v63 }
 0x66b   :  { %6940 = vmatprep.subr.bf16.mxu0 %v9191_v51 }
 0x66e   :  { %6941 = vmatpush1.bf16.msra.mxu0 %v9189_v1 }
 0x66f   :  { %6942 = vmatprep.subr.bf16.mxu0 %v9197_v43 }
 0x672   :  { %v10908_v55 = vpop.f32.mrb[76].mxu0  ;;  %6943 = vmatpush1.bf16.msra.mxu0 %v9195_v38 }
 0x673   :  { %v8239_v15 = vpop.f32.mrb[77].mxu0  ;;  %6944 = vmatprep.subr.bf16.mxu0 %v9203_v48 }
 0x674   :  { %v5089_v62 = vpop.f32.mrb[78].mxu0 }
 0x675   :  { %v8240_v13 = vpop.f32.mrb[79].mxu0 }
 0x676   :  { %6945 = vmatpush1.bf16.msra.mxu0 %v9201_v14 }
 0x677   :  { %6946 = vmatprep.subr.bf16.mxu0 %v9209_v59 }
 0x67a   :  { %v10910_v7 = vpop.f32.mrb[80].mxu0  ;;  %6947 = vmatpush1.bf16.msra.mxu0 %v9207_v19 }
 0x67b   :  { %v8251_v40 = vpop.f32.mrb[81].mxu0  ;;  %6967 = vmatprep.subr.bf16.mxu0 %v9215_v33 }
 0x67c   :  { %v5181_v17 = vpop.f32.mrb[82].mxu0 }
 0x67d   :  { %v8252_v58 = vpop.f32.mrb[83].mxu0 }
 0x682   :  { %v10912_v56 = vpop.f32.mrb[84].mxu0 }
 0x683   :  { %v8263_v50 = vpop.f32.mrb[85].mxu0 }
 0x684   :  { %v5273_v35 = vpop.f32.mrb[86].mxu0 }
 0x685   :  { %v8264_v8 = vpop.f32.mrb[87].mxu0 }
 0x686   :  { %v5500_v18 = vpop.f32.mrb[92].mxu1 }
 0x687   :  { %v8491_v25 = vpack.i.bf16 %v5500_v18, %v10900_v22  ;;  %v8293_v23 = vpop.f32.mrb[93].mxu1 }
 0x688   :  { %v5503_v45 = vpop.f32.mrb[94].mxu1 }
 0x689   :  { %8492 = vrot.lane.b32.xlu0 %v8491_v25, %s9799_s1  ;;  %v8294_v54 = vpop.f32.mrb[95].mxu1 }
 0x68a   :  { %v5362_v16 = vpop.f32.mrb[88].mxu0 }
 0x68b   :  { %v8275_v30 = vpop.f32.mrb[89].mxu0 }
 0x68c   :  { %v5365_v60 = vpop.f32.mrb[90].mxu0 }
 0x68d   :  { %v8276_v52 = vpop.f32.mrb[91].mxu0 }
 0x68e   :  { %v9213_v52 = vld [vmem:[#allocation19 + $0x200] ss:$16 sps:$4 sm:$0xff]  }
 0x692   :  { %v5454_v37 = vpop.f32.mrb[92].mxu0 }
 0x693   :  { %v8287_v41 = vpop.f32.mrb[93].mxu0 }
 0x694   :  { %v5457_v28 = vpop.f32.mrb[94].mxu0  ;;  %v9216_v41 = vld [vmem:[#allocation19 + $0x208] ss:$16 sps:$4 sm:$0xff]  }
 0x695   :  { %v8288_v12 = vpop.f32.mrb[95].mxu0 }
 0x696   :  { %v9221_v12 = vld [vmem:[#allocation19 + $0x224] ss:$16 sps:$4 sm:$0xff]  }
 0x69a   :  { %v5592_v29 = vpop.f32.mrb[96].mxu1 }
 0x69b   :  { %v8511_v3 = vpack.i.bf16 %v5592_v29, %v10902_v42  ;;  %v8305_v32 = vpop.f32.mrb[97].mxu1  ;;  %v9224_v29 = vld [vmem:[#allocation19 + $0x22c] ss:$16 sps:$4 sm:$0xff]  }
 0x69c   :  { %v5595_v49 = vpop.f32.mrb[98].mxu1 }
 0x69d   :  { %v8306_v36 = vpop.f32.mrb[99].mxu1 }
 0x69e   :  { %v9219_v36 = vld [vmem:[#allocation19 + $0x220] ss:$16 sps:$4 sm:$0xff]  }
 0x6a2   :  { %v5684_v22 = vpop.f32.mrb[100].mxu1 }
 0x6a3   :  { %v8506_v2 = vpack.i.bf16 %v5684_v22, %v10904_v27  ;;  %v8317_v53 = vpop.f32.mrb[101].mxu1  ;;  %v9230_v22 = vld [vmem:[#allocation19 + $0x24c] ss:$16 sps:$4 sm:$0xff]  }
 0x6a4   :  { %v5687_v39 = vpop.f32.mrb[102].mxu1  ;;  %v9228_v53 = vld [vmem:[#allocation19 + $0x248] ss:$16 sps:$4 sm:$0xff]  }
 0x6a5   :  { %v8318_v34 = vpop.f32.mrb[103].mxu1 }
 0x6a6   :  { %v9233_v34 = vld [vmem:[#allocation19 + $0x264] ss:$16 sps:$4 sm:$0xff]  }
 0x6aa   :  { %v5776_v24 = vpop.f32.mrb[104].mxu1 }
 0x6ab   :  { %v8329_v5 = vpop.f32.mrb[105].mxu1 }
 0x6ac   :  { %v5779_v63 = vpop.f32.mrb[106].mxu1 }
 0x6ad   :  { %v8330_v21 = vpop.f32.mrb[107].mxu1 }
 0x6b2   :  { %v5868_v1 = vpop.f32.mrb[108].mxu1 }
 0x6b3   :  { %v8501_v51 = vpack.i.bf16 %v5776_v24, %v5868_v1  ;;  %v8341_v4 = vpop.f32.mrb[109].mxu1  ;;  %v9236_v24 = vld [vmem:[#allocation19 + $0x26c] ss:$16 sps:$4 sm:$0xff]   ;;  %v9231_v1 = vld [vmem:[#allocation19 + $0x260] ss:$16 sps:$4 sm:$0xff]  }
 0x6b4   :  { %v5871_v11 = vpop.f32.mrb[110].mxu1  ;;  %v9239_v4 = vld [vmem:[#allocation19 + $0x284] ss:$16 sps:$4 sm:$0xff]  }
 0x6b5   :  { %8502 = vrot.lane.b32.xlu0 %v8501_v51, %s9799_s1  ;;  %v8342_v42 = vpop.f32.mrb[111].mxu1  ;;  %v9234_v51 = vld [vmem:[#allocation19 + $0x268] ss:$16 sps:$4 sm:$0xff]   ;;  %v9242_v11 = vld [vmem:[#allocation19 + $0x28c] ss:$16 sps:$4 sm:$0xff]  }
 0x6b6   :  { %v9237_v42 = vld [vmem:[#allocation19 + $0x280] ss:$16 sps:$4 sm:$0xff]  }
 0x6b9   :  { %8507 = vrot.lane.b32.xlu0 %v8506_v2, %s9799_s1  ;;  %v9225_v2 = vld [vmem:[#allocation19 + $0x240] ss:$16 sps:$4 sm:$0xff]  }
 0x6ba   :  { %v5960_v15 = vpop.f32.mrb[112].mxu1 }
 0x6bb   :  { %v8353_v43 = vpop.f32.mrb[113].mxu1 }
 0x6bc   :  { %v5963_v62 = vpop.f32.mrb[114].mxu1 }
 0x6bd   :  { %8512 = vrot.lane.b32.xlu0 %v8511_v3, %s9799_s1  ;;  %v8354_v27 = vpop.f32.mrb[115].mxu1  ;;  %v9245_v62 = vld [vmem:[#allocation19 + $0x2a4] ss:$16 sps:$4 sm:$0xff]  }
 0x6be   :  { %v9248_v27 = vld [vmem:[#allocation19 + $0x2ac] ss:$16 sps:$4 sm:$0xff]  }
 0x6c2   :  { %v6052_v20 = vpop.f32.mrb[116].mxu1 }
 0x6c3   :  { %v8516_v13 = vpack.i.bf16 %v5960_v15, %v6052_v20  ;;  %v8365_v38 = vpop.f32.mrb[117].mxu1  ;;  %v9240_v15 = vld [vmem:[#allocation19 + $0x288] ss:$16 sps:$4 sm:$0xff]  }
 0x6c4   :  { %v6055_v61 = vpop.f32.mrb[118].mxu1 }
 0x6c5   :  { %8517 = vrot.lane.b32.xlu1 %v8516_v13, %s9799_s1  ;;  %v8366_v14 = vpop.f32.mrb[119].mxu1  ;;  %v9243_v61 = vld [vmem:[#allocation19 + $0x2a0] ss:$16 sps:$4 sm:$0xff]  }
 0x6c6   :  { %v9246_v14 = vld [vmem:[#allocation19 + $0x2a8] ss:$16 sps:$4 sm:$0xff]  }
 0x6d6   :  { %v8498_v48 = vpop.permute.xlu1 %8497 }
 0x6d7   :  { %v8500_v46 = vunpack.i.h.bf16 %v8498_v48  ;;  %v8499_v47 = vunpack.i.l.bf16 %v8498_v48  ;;  %v9251_v48 = vld [vmem:[#allocation19 + $0x2c4] ss:$16 sps:$4 sm:$0xff]  }
 0x6d9   :  { %v6106_v40 = vsel %vm3504_vm1, %v10853_v57, %v8499_v47  ;;  %v6107_v17 = vsel %vm3504_vm1, %v5362_v16, %v8500_v46  ;;  %v9254_v46 = vld [vmem:[#allocation19 + $0x2cc] ss:$16 sps:$4 sm:$0xff]   ;;  %v9249_v47 = vld [vmem:[#allocation19 + $0x2c0] ss:$16 sps:$4 sm:$0xff]  }
 0x6da   :  { %v6118_v19 = vpack.c.bf16 %v6107_v17, %v6106_v40  ;;  %v9252_v40 = vld [vmem:[#allocation19 + $0x2c8] ss:$16 sps:$4 sm:$0xff]   ;;  %v9257_v17 = vld [vmem:[#allocation19 + $0x2e4] ss:$16 sps:$4 sm:$0xff]  }
 0x6df   :  { %v10925_v59 = vpop.f32.mrb[96].mxu0 }
 0x6e0   :  { %v8299_v58 = vpop.f32.mrb[97].mxu0 }
 0x6e1   :  { %v5549_v9 = vpop.f32.mrb[98].mxu0  ;;  %v9255_v58 = vld [vmem:[#allocation19 + $0x2e0] ss:$16 sps:$4 sm:$0xff]  }
 0x6e2   :  { %v8300_v26 = vpop.f32.mrb[99].mxu0  ;;  %v9258_v9 = vld [vmem:[#allocation19 + $0x2e8] ss:$16 sps:$4 sm:$0xff]  }
 0x6e3   :  { %v9263_v26 = vld [vmem:[#allocation19 + $0x304] ss:$16 sps:$4 sm:$0xff]  }
 0x6f0   :  { %v10927_v33 = vpop.f32.mrb[100].mxu0 }
 0x6f1   :  { %v8311_v44 = vpop.f32.mrb[101].mxu0 }
 0x6f2   :  { %v5641_v50 = vpop.f32.mrb[102].mxu0  ;;  %v9266_v44 = vld [vmem:[#allocation19 + $0x30c] ss:$16 sps:$4 sm:$0xff]  }
 0x6f3   :  { %v8312_v35 = vpop.f32.mrb[103].mxu0  ;;  %v9261_v50 = vld [vmem:[#allocation19 + $0x300] ss:$16 sps:$4 sm:$0xff]  }
 0x6f4   :  { %v9264_v35 = vld [vmem:[#allocation19 + $0x308] ss:$16 sps:$4 sm:$0xff]  }
 0x6f8   :  { %v10929_v8 = vpop.f32.mrb[104].mxu0 }
 0x6f9   :  { %v8323_v18 = vpop.f32.mrb[105].mxu0 }
 0x6fa   :  { %v5733_v25 = vpop.f32.mrb[106].mxu0  ;;  %v9269_v18 = vld [vmem:[#allocation19 + $0x324] ss:$16 sps:$4 sm:$0xff]  }
 0x6fb   :  { %v8493_v23 = vpop.permute.xlu0 %8492  ;;  %v8324_v45 = vpop.f32.mrb[107].mxu0  ;;  %v9272_v25 = vld [vmem:[#allocation19 + $0x32c] ss:$16 sps:$4 sm:$0xff]  }
 0x6fc   :  { %v8495_v57 = vunpack.i.h.bf16 %v8493_v23  ;;  %v8494_v54 = vunpack.i.l.bf16 %v8493_v23  ;;  %v9267_v23 = vld [vmem:[#allocation19 + $0x320] ss:$16 sps:$4 sm:$0xff]   ;;  %v9270_v45 = vld [vmem:[#allocation19 + $0x328] ss:$16 sps:$4 sm:$0xff]  }
 0x6fe   :  { %v6109_v16 = vsel %vm3504_vm1, %v10908_v55, %v8494_v54  ;;  %v6110_v30 = vsel %vm3504_vm1, %v5454_v37, %v8495_v57  ;;  %v9222_v55 = vld [vmem:[#allocation19 + $0x228] ss:$16 sps:$4 sm:$0xff]   ;;  %v9227_v37 = vld [vmem:[#allocation19 + $0x244] ss:$16 sps:$4 sm:$0xff]   ;;  %v9278_v54 = vld [vmem:[#allocation19 + $0x34c] ss:$16 sps:$4 sm:$0xff]  }
 0x6ff   :  { %v6119_v60 = vpack.c.bf16 %v6110_v30, %v6109_v16  ;;  %v9275_v57 = vld [vmem:[#allocation19 + $0x344] ss:$16 sps:$4 sm:$0xff]   ;;  %v9273_v30 = vld [vmem:[#allocation19 + $0x340] ss:$16 sps:$4 sm:$0xff]  }
 0x700   :  { %v10934_v28 = vpop.f32.mrb[108].mxu0 }
 0x701   :  { %v8335_v3 = vpop.f32.mrb[109].mxu0  ;;  %6948 = vmatprep.mubr.bf16.mxu0 %v6119_v60  ;;  %7050 = vmatprep.mubr.bf16.mxu1 %v6119_v60  ;;  %v9276_v60 = vld [vmem:[#allocation19 + $0x348] ss:$16 sps:$4 sm:$0xff]  }
 0x702   :  { %v5825_v32 = vpop.f32.mrb[110].mxu0  ;;  %6949 = vmatmul.mubr.bf16.vlgmr.msra.gmra.mrb[120].mxu0 %v6118_v19  ;;  %7051 = vmatmul.mubr.bf16.vlgmr.msra.gmra.mrb[120].mxu1 %v6118_v19  ;;  %v9260_v19 = vld [vmem:[#allocation19 + $0x2ec] ss:$16 sps:$4 sm:$0xff]  }
 0x703   :  { %6968 = vmatpush1.bf16.msra.mxu0 %v9213_v52  ;;  %7070 = vmatpush1.bf16.msra.mxu1 %v9216_v41  ;;  %v8336_v49 = vpop.f32.mrb[111].mxu0 }
 0x704   :  { %6969 = vmatprep.subr.bf16.mxu0 %v9221_v12  ;;  %7071 = vmatprep.subr.bf16.mxu1 %v9224_v29  ;;  %v9281_v12 = vld [vmem:[#allocation19 + $0x364] ss:$16 sps:$4 sm:$0xff]   ;;  %v9284_v29 = vld [vmem:[#allocation19 + $0x36c] ss:$16 sps:$4 sm:$0xff]  }
 0x707   :  { %6970 = vmatpush1.bf16.msra.mxu0 %v9219_v36  ;;  %7072 = vmatpush1.bf16.msra.mxu1 %v9222_v55  ;;  %v9279_v55 = vld [vmem:[#allocation19 + $0x360] ss:$16 sps:$4 sm:$0xff]  }
 0x708   :  { %v10936_v39 = vpop.f32.mrb[112].mxu0  ;;  %6971 = vmatprep.subr.bf16.mxu0 %v9227_v37  ;;  %7073 = vmatprep.subr.bf16.mxu1 %v9230_v22  ;;  %v9282_v37 = vld [vmem:[#allocation19 + $0x368] ss:$16 sps:$4 sm:$0xff]  }
 0x709   :  { %v8347_v5 = vpop.f32.mrb[113].mxu0 }
 0x70a   :  { %v5917_v63 = vpop.f32.mrb[114].mxu0 }
 0x70b   :  { %6972 = vmatpush1.bf16.msra.mxu0 %v9225_v2  ;;  %7074 = vmatpush1.bf16.msra.mxu1 %v9228_v53  ;;  %v8348_v21 = vpop.f32.mrb[115].mxu0  ;;  %v9285_v63 = vld [vmem:[#allocation19 + $0x380] ss:$16 sps:$4 sm:$0xff]  }
 0x70c   :  { %6973 = vmatprep.subr.bf16.mxu0 %v9233_v34  ;;  %7075 = vmatprep.subr.bf16.mxu1 %v9236_v24  ;;  %v9287_v34 = vld [vmem:[#allocation19 + $0x384] ss:$16 sps:$4 sm:$0xff]   ;;  %v9290_v24 = vld [vmem:[#allocation19 + $0x38c] ss:$16 sps:$4 sm:$0xff]  }
 0x70f   :  { %6974 = vmatpush1.bf16.msra.mxu0 %v9231_v1  ;;  %7076 = vmatpush1.bf16.msra.mxu1 %v9234_v51  ;;  %v9288_v1 = vld [vmem:[#allocation19 + $0x388] ss:$16 sps:$4 sm:$0xff]  }
 0x710   :  { %v10938_v43 = vpop.f32.mrb[116].mxu0  ;;  %6975 = vmatprep.subr.bf16.mxu0 %v9239_v4  ;;  %7077 = vmatprep.subr.bf16.mxu1 %v9242_v11  ;;  %v9293_v11 = vld [vmem:[#allocation19 + $0x3a4] ss:$16 sps:$4 sm:$0xff]  }
 0x711   :  { %v8359_v20 = vpop.f32.mrb[117].mxu0 }
 0x712   :  { %v6009_v13 = vpop.f32.mrb[118].mxu0  ;;  %v9299_v20 = vld [vmem:[#allocation19 + $0x3c4] ss:$16 sps:$4 sm:$0xff]  }
 0x713   :  { %6976 = vmatpush1.bf16.msra.mxu0 %v9237_v42  ;;  %7078 = vmatpush1.bf16.msra.mxu1 %v9240_v15  ;;  %v8360_v38 = vpop.f32.mrb[119].mxu0  ;;  %v9296_v42 = vld [vmem:[#allocation19 + $0x3ac] ss:$16 sps:$4 sm:$0xff]  }
 0x714   :  { %6977 = vmatprep.subr.bf16.mxu0 %v9245_v62  ;;  %7079 = vmatprep.subr.bf16.mxu1 %v9248_v27  ;;  %v9291_v62 = vld [vmem:[#allocation19 + $0x3a0] ss:$16 sps:$4 sm:$0xff]   ;;  %v9294_v27 = vld [vmem:[#allocation19 + $0x3a8] ss:$16 sps:$4 sm:$0xff]   ;;  %v9302_v13 = vld [vmem:[#allocation19 + $0x3cc] ss:$16 sps:$4 sm:$0xff]  }
 0x717   :  { %6978 = vmatpush1.bf16.msra.mxu0 %v9243_v61  ;;  %7080 = vmatpush1.bf16.msra.mxu1 %v9246_v14  ;;  %v9297_v61 = vld [vmem:[#allocation19 + $0x3c0] ss:$16 sps:$4 sm:$0xff]   ;;  %v9300_v14 = vld [vmem:[#allocation19 + $0x3c8] ss:$16 sps:$4 sm:$0xff]  }
 0x718   :  { %6979 = vmatprep.subr.bf16.mxu0 %v9251_v48  ;;  %7081 = vmatprep.subr.bf16.mxu1 %v9254_v46  ;;  %v9308_v48 = vld [vmem:[#allocation19 + $0x3ec] ss:$16 sps:$4 sm:$0xff]  }
 0x71b   :  { %6980 = vmatpush1.bf16.msra.mxu0 %v9249_v47  ;;  %7082 = vmatpush1.bf16.msra.mxu1 %v9252_v40  ;;  %v9306_v47 = vld [vmem:[#allocation19 + $0x3e8] ss:$16 sps:$4 sm:$0xff]  }
 0x71c   :  { %6981 = vmatprep.subr.bf16.mxu0 %v9257_v17  ;;  %7083 = vmatprep.subr.bf16.mxu1 %v9260_v19 }
 0x71f   :  { %6982 = vmatpush1.bf16.msra.mxu0 %v9255_v58  ;;  %7084 = vmatpush1.bf16.msra.mxu1 %v9258_v9 }
 0x720   :  { %6983 = vmatprep.subr.bf16.mxu0 %v9263_v26  ;;  %7085 = vmatprep.subr.bf16.mxu1 %v9266_v44 }
 0x723   :  { %6984 = vmatpush1.bf16.msra.mxu0 %v9261_v50  ;;  %7086 = vmatpush1.bf16.msra.mxu1 %v9264_v35 }
 0x724   :  { %6985 = vmatprep.subr.bf16.mxu0 %v9269_v18  ;;  %7087 = vmatprep.subr.bf16.mxu1 %v9272_v25 }
 0x727   :  { %6986 = vmatpush1.bf16.msra.mxu0 %v9267_v23  ;;  %7088 = vmatpush1.bf16.msra.mxu1 %v9270_v45  ;;  %v8503_v16 = vpop.permute.xlu0 %8502  ;;  %v6254_v45 = vld [vmem:[#allocation20] sm:$0xf] }
 0x728   :  { %v8505_v52 = vunpack.i.h.bf16 %v8503_v16  ;;  %v8504_v41 = vunpack.i.l.bf16 %v8503_v16  ;;  %6987 = vmatprep.subr.bf16.mxu0 %v9275_v57  ;;  %7089 = vmatprep.subr.bf16.mxu1 %v9278_v54  ;;  %v6259_v57 = vrot.slane %v6254_v45, %v10121_v0  ;;  %v6267_v54 = vrot.slane %v6254_v45, %v10134_v10 }
 0x729   :  { %v6263_v16 = vrot.slane %v6254_v45, %v10123_v6 }
 0x72a   :  { %v6111_v3 = vsel %vm3504_vm1, %v10934_v28, %v8504_v41  ;;  %v6108_v32 = vsel %vm3504_vm1, %v10929_v8, %v8505_v52 }
 0x72b   :  { %6988 = vmatpush1.bf16.msra.mxu0 %v9273_v30  ;;  %7090 = vmatpush1.bf16.msra.mxu1 %v9276_v60  ;;  %v8508_v49 = vpop.permute.xlu0 %8507  ;;  %v6123_v36 = vpack.c.bf16 %v6111_v3, %v6111_v3  ;;  %v6122_v22 = vpack.c.bf16 %v6108_v32, %v6108_v32 }
 0x72c   :  { %v8510_v2 = vunpack.i.h.bf16 %v8508_v49  ;;  %v8509_v53 = vunpack.i.l.bf16 %v8508_v49  ;;  %6989 = vmatprep.subr.bf16.mxu0 %v9281_v12  ;;  %7091 = vmatprep.subr.bf16.mxu1 %v9284_v29  ;;  %v6271_v12 = vrot.slane %v6254_v45, %v10151_v31  ;;  %v9420_v45 = vld [vmem:[#allocation2 + $0x48] sm:$0xff] }
 0x72d   :  { %6958 = vmatprep.mubr.bf16.mxu0 %v6123_v36  ;;  %7060 = vmatprep.mubr.bf16.mxu1 %v6123_v36  ;;  %v9411_v36 = vld [vmem:[#allocation2] sm:$0xff] }
 0x72e   :  { %6959 = vmatmul.mubr.bf16.gmra.mrb[124].mxu0 %v6122_v22  ;;  %7061 = vmatmul.mubr.bf16.gmra.mrb[124].mxu1 %v6122_v22  ;;  %v6115_v8 = vsel %vm3504_vm1, %v10912_v56, %v8509_v53  ;;  %v6116_v28 = vsel %vm3504_vm1, %v10927_v33, %v8510_v2  ;;  %v9412_v53 = vld [vmem:[#allocation2 + $0x8] sm:$0xff] }
 0x72f   :  { %6990 = vmatpush1.bf16.msra.mxu0 %v9279_v55  ;;  %7092 = vmatpush1.bf16.msra.mxu1 %v9282_v37  ;;  %v8513_v5 = vpop.permute.xlu0 %8512  ;;  %v6121_v21 = vpack.c.bf16 %v6116_v28, %v6115_v8 }
 0x730   :  { %v8515_v51 = vunpack.i.h.bf16 %v8513_v5  ;;  %v8514_v4 = vunpack.i.l.bf16 %v8513_v5  ;;  %6991 = vmatprep.subr.bf16.mxu0 %v9287_v34  ;;  %7093 = vmatprep.subr.bf16.mxu1 %v9290_v24  ;;  %v9413_v5 = vld [vmem:[#allocation2 + $0x20] sm:$0xff] }
 0x731   :  { %6999 = vmatprep.mubr.bf16.mxu0 %v6121_v21  ;;  %7101 = vmatprep.mubr.bf16.mxu1 %v6121_v21 }
 0x732   :  { %v6112_v56 = vsel %vm3504_vm1, %v10910_v7, %v8514_v4  ;;  %v6113_v33 = vsel %vm3504_vm1, %v10925_v59, %v8515_v51  ;;  %v9305_v7 = vld [vmem:[#allocation19 + $0x3e4] ss:$16 sps:$4 sm:$0xff]   ;;  %v9303_v59 = vld [vmem:[#allocation19 + $0x3e0] ss:$16 sps:$4 sm:$0xff]  }
 0x733   :  { %v6120_v15 = vpack.c.bf16 %v6113_v33, %v6112_v56  ;;  %6992 = vmatpush1.bf16.msra.mxu0 %v9285_v63  ;;  %7094 = vmatpush1.bf16.msra.mxu1 %v9288_v1  ;;  %v9414_v1 = vld [vmem:[#allocation2 + $0x10] sm:$0xff] }
 0x734   :  { %6993 = vmatprep.subr.bf16.mxu0 %v9293_v11  ;;  %7095 = vmatprep.subr.bf16.mxu1 %v9296_v42  ;;  %v9415_v11 = vld [vmem:[#allocation2 + $0x28] sm:$0xff] }
 0x737   :  { %6994 = vmatpush1.bf16.msra.mxu0 %v9291_v62  ;;  %7096 = vmatpush1.bf16.msra.mxu1 %v9294_v27  ;;  %v8518_v38 = vpop.permute.xlu1 %8517  ;;  %v9416_v27 = vld [vmem:[#allocation2 + $0x18] sm:$0xff] }
 0x738   :  { %6995 = vmatprep.subr.bf16.mxu0 %v9299_v20  ;;  %7097 = vmatprep.subr.bf16.mxu1 %v9302_v13  ;;  %v8519_v46 = vunpack.i.l.bf16 %v8518_v38  ;;  %v8520_v17 = vunpack.i.h.bf16 %v8518_v38  ;;  %v9417_v13 = vld [vmem:[#allocation2 + $0x30] sm:$0xff] }
 0x73a   :  { %v6117_v40 = vsel %vm3504_vm1, %v10938_v43, %v8519_v46  ;;  %v6114_v58 = vsel %vm3504_vm1, %v10936_v39, %v8520_v17  ;;  %v9418_v46 = vld [vmem:[#allocation2 + $0x38] sm:$0xff] }
 0x73b   :  { %6996 = vmatpush1.bf16.msra.mxu0 %v9297_v61  ;;  %7098 = vmatpush1.bf16.msra.mxu1 %v9300_v14  ;;  %v6125_v19 = vpack.c.bf16 %v6117_v40, %v6117_v40  ;;  %v6124_v9 = vpack.c.bf16 %v6114_v58, %v6114_v58 }
 0x73c   :  { %6997 = vmatprep.subr.bf16.mxu0 %v9305_v7  ;;  %7099 = vmatprep.subr.bf16.mxu1 %v9308_v48 }
 0x73f   :  { %6998 = vmatpush1.bf16.msra.mxu0 %v9303_v59  ;;  %7100 = vmatpush1.bf16.msra.mxu1 %v9306_v47 }
 0x742   :  { %7000 = vmatmul.mubr.bf16.vlgmr.msra.gmra.mrb[120].mxu0 %v6120_v15  ;;  %7102 = vmatmul.mubr.bf16.vlgmr.msra.gmra.mrb[120].mxu1 %v6120_v15 }
 0x743   :  { %7009 = vmatprep.mubr.bf16.mxu0 %v6125_v19  ;;  %7111 = vmatprep.mubr.bf16.mxu1 %v6125_v19 }
 0x74a   :  { %7010 = vmatmul.mubr.bf16.gmra.mrb[128].mxu0 %v6124_v9  ;;  %7112 = vmatmul.mubr.bf16.gmra.mrb[128].mxu1 %v6124_v9 }
 0x801   :  { %v6960_v26 = vpop.f32.mrb[124].mxu0  ;;  %v7062_v44 = vpop.f32.mrb[124].mxu1 }
 0x802   :  { %v6962_v50 = vpop.f32.mrb[125].mxu0  ;;  %v7064_v35 = vpop.f32.mrb[125].mxu1  ;;  %v6961_v56 = vadd.f32 %v6960_v26, %v6259_v57  ;;  %v7063_v33 = vadd.f32 %v7062_v44, %v6267_v54 }
 0x803   :  { %v6964_v18 = vpop.f32.mrb[126].mxu0  ;;  %v7066_v43 = vpop.f32.mrb[126].mxu1  ;;  %v6963_v15 = vadd.f32 %v6962_v50, %v6263_v16  ;;  %v7065_v62 = vadd.f32 %v7064_v35, %v6271_v12 }
 0x804   :  { %v6965_v25 = vpop.f32.mrb[127].mxu0  ;;  %v7067_v23 = vpop.f32.mrb[127].mxu1  ;;  %v9419_v18 = vld [vmem:[#allocation2 + $0x40] sm:$0xff] }
 0x815   :  { %v7001_v30 = vpop.f32.mrb[120].mxu0  ;;  %v7103_v39 = vpop.f32.mrb[120].mxu1 }
 0x816   :  { %v8403_v60 = vadd.f32 %v7001_v30, %v6259_v57  ;;  %v7003_v52 = vpop.f32.mrb[121].mxu0  ;;  %v7105_v41 = vpop.f32.mrb[121].mxu1  ;;  %v8407_v29 = vadd.f32 %v7103_v39, %v6267_v54 }
 0x817   :  { %v8404_v3 = vadd.f32 %v7003_v52, %v6263_v16  ;;  %v7005_v32 = vpop.f32.mrb[122].mxu0  ;;  %v7107_v49 = vpop.f32.mrb[122].mxu1  ;;  %v8408_v24 = vadd.f32 %v7105_v41, %v6271_v12 }
 0x818   :  { %v7120_v55 = vadd.f32 %v9411_v36, %v8403_v60  ;;  %v8405_v37 = vadd.f32 %v7005_v32, %v6259_v57  ;;  %v7007_v22 = vpop.f32.mrb[123].mxu0  ;;  %v7109_v2 = vpop.f32.mrb[123].mxu1  ;;  %v8409_v8 = vadd.f32 %v7107_v49, %v6267_v54  ;;  %v7122_v51 = vadd.f32 %v9414_v1, %v8407_v29  ;;  %v9422_v60 = vld [vmem:[#allocation2 + $0x58] sm:$0xff] }
 0x819   :  { %v7121_v34 = vadd.f32 %v9412_v53, %v8404_v3  ;;  %v8406_v28 = vadd.f32 %v7007_v22, %v6263_v16  ;;  %v8410_v21 = vadd.f32 %v7109_v2, %v6271_v12  ;;  %v7123_v20 = vadd.f32 %v9416_v27, %v8408_v24  ;;  %v9421_v16 = vld [vmem:[#allocation2 + $0x50] sm:$0xff] }
 0x81a   :  { %v7124_v63 = vadd.f32 %v9413_v5, %v8405_v37  ;;  %v7126_v38 = vadd.f32 %v9417_v13, %v8409_v8 }
 0x81b   :  { %v7132_v4 = vadd.f32 %v7121_v34, %v7120_v55  ;;  %v7125_v42 = vadd.f32 %v9415_v11, %v8406_v28  ;;  %v7127_v59 = vadd.f32 %v9418_v46, %v8410_v21 }
 0x81d   :  { %v7137_v61 = vadd.f32 %v7125_v42, %v7124_v63  ;;  %v7011_v14 = vpop.f32.mrb[128].mxu0  ;;  %v7113_v7 = vpop.f32.mrb[128].mxu1  ;;  %v7133_v48 = vadd.f32 %v7132_v4, %v7122_v51 }
 0x81e   :  { %v7012_v47 = vadd.f32 %v7011_v14, %v6961_v56  ;;  %v7114_v40 = vadd.f32 %v7113_v7, %v7063_v33  ;;  %v7013_v17 = vpop.f32.mrb[129].mxu0  ;;  %v7115_v19 = vpop.f32.mrb[129].mxu1 }
 0x81f   :  { %v7014_v58 = vadd.f32 %v7013_v17, %v6963_v15  ;;  %v7116_v9 = vadd.f32 %v7115_v19, %v7065_v62  ;;  %v7015_v26 = vpop.f32.mrb[130].mxu0  ;;  %v7117_v44 = vpop.f32.mrb[130].mxu1  ;;  %v7134_v50 = vadd.f32 %v7133_v48, %v7123_v20  ;;  %v7138_v35 = vadd.f32 %v7137_v61, %v7126_v38 }
 0x820   :  { %v7128_v43 = vadd.f32 %v9419_v18, %v7012_v47  ;;  %v7016_v25 = vpop.f32.mrb[131].mxu0  ;;  %v7118_v23 = vpop.f32.mrb[131].mxu1  ;;  %v7130_v30 = vadd.f32 %v9421_v16, %v7114_v40 }
 0x821   :  { %v7129_v57 = vadd.f32 %v9420_v45, %v7014_v58  ;;  %7135 = vadd.xlane.f32.xlu0 %v7134_v50  ;;  %v7139_v54 = vadd.f32 %v7138_v35, %v7127_v59  ;;  %v7131_v52 = vadd.f32 %v9422_v60, %v7116_v9 }
 0x823   :  { %v7142_v39 = vadd.f32 %v7129_v57, %v7128_v43  ;;  %7140 = vadd.xlane.f32.xlu1 %v7139_v54 }
 0x825   :  { %v7143_v41 = vadd.f32 %v7142_v39, %v7130_v30 }
 0x827   :  { %v7144_v12 = vadd.f32 %v7143_v41, %v7131_v52 }
 0x829   :  { %7145 = vadd.xlane.f32.xlu0 %v7144_v12 }
 0x8ae   :  { %v7136_v29 = vpop.xlane.xlu0 %7135 }
 0x8af   :  { %v7148_v3 = vmul.f32 0.001953125, %v7136_v29 }
 0x8b0   :  { %v7141_v32 = vpop.xlane.xlu1 %7140 }
 0x8b1   :  { %v10960_v49 = vsub.f32 %v7120_v55, %v7148_v3  ;;  %v10962_v36 = vsub.f32 %v7121_v34, %v7148_v3  ;;  %v10964_v37 = vsub.f32 %v7122_v51, %v7148_v3  ;;  %v7149_v22 = vmul.f32 0.001953125, %v7141_v32 }
 0x8b2   :  { %v10966_v2 = vsub.f32 %v7123_v20, %v7148_v3 }
 0x8b3   :  { %v10968_v53 = vsub.f32 %v7124_v63, %v7149_v22  ;;  %v10970_v24 = vsub.f32 %v7125_v42, %v7149_v22  ;;  %v7163_v8 = vmul.f32 %v10960_v49, %v10960_v49  ;;  %v7164_v28 = vmul.f32 %v10962_v36, %v10962_v36 }
 0x8b4   :  { %v10976_v5 = vsub.f32 %v7126_v38, %v7149_v22  ;;  %v7165_v55 = vmul.f32 %v10964_v37, %v10964_v37  ;;  %v10984_v51 = vsub.f32 %v7127_v59, %v7149_v22  ;;  %v7166_v11 = vmul.f32 %v10966_v2, %v10966_v2 }
 0x8b5   :  { %v7175_v34 = vadd.f32 %v7164_v28, %v7163_v8  ;;  %v7167_v21 = vmul.f32 %v10968_v53, %v10968_v53  ;;  %v7168_v63 = vmul.f32 %v10970_v24, %v10970_v24 }
 0x8b6   :  { %v7146_v1 = vpop.xlane.xlu0 %7145  ;;  %v7169_v33 = vmul.f32 %v10976_v5, %v10976_v5  ;;  %v7170_v13 = vmul.f32 %v10984_v51, %v10984_v51 }
 0x8b7   :  { %v7150_v4 = vmul.f32 0.001953125, %v7146_v1  ;;  %v7176_v42 = vadd.f32 %v7175_v34, %v7165_v55  ;;  %v7180_v56 = vadd.f32 %v7168_v63, %v7167_v21 }
 0x8b9   :  { %v10990_v15 = vsub.f32 %v7128_v43, %v7150_v4  ;;  %v10992_v62 = vsub.f32 %v7129_v57, %v7150_v4  ;;  %v10994_v27 = vsub.f32 %v7130_v30, %v7150_v4  ;;  %v7177_v20 = vadd.f32 %v7176_v42, %v7166_v11 }
 0x8ba   :  { %v7181_v38 = vadd.f32 %v7180_v56, %v7169_v33  ;;  %v10998_v61 = vsub.f32 %v7131_v52, %v7150_v4 }
 0x8bb   :  { %7178 = vadd.xlane.f32.xlu0 %v7177_v20  ;;  %v7171_v14 = vmul.f32 %v10990_v15, %v10990_v15  ;;  %v7172_v7 = vmul.f32 %v10992_v62, %v10992_v62  ;;  %v7173_v46 = vmul.f32 %v10994_v27, %v10994_v27 }
 0x8bc   :  { %v7182_v48 = vadd.f32 %v7181_v38, %v7170_v13  ;;  %v7174_v47 = vmul.f32 %v10998_v61, %v10998_v61 }
 0x8bd   :  { %v7185_v59 = vadd.f32 %v7172_v7, %v7171_v14 }
 0x8be   :  { %7183 = vadd.xlane.f32.xlu1 %v7182_v48 }
 0x8bf   :  { %v7186_v40 = vadd.f32 %v7185_v59, %v7173_v46 }
 0x8c1   :  { %v7187_v17 = vadd.f32 %v7186_v40, %v7174_v47 }
 0x8c3   :  { %7188 = vadd.xlane.f32.xlu0 %v7187_v17 }
 0x8c4   :  { %9742 = shalt.err (!%p9739_p4)
}
 0x8c5   :  { %s9743_s5 = scalar_lea.hbm %s11073_s15, 1536 }
 0x8c6   :  { %p9744_p5 = scmp.ne.s32.totalorder %s11073_s15, %s9743_s5  ;;  %p9747_p6 = scmp.lt.u32.totalorder %s9743_s5, %s11073_s15 }
 0x8c8   :  { %p9749_p7 = pnand %p9747_p6, %p9744_p5 }
 0x8ca   :  { %9752 = shalt.err (!%p9749_p7)
}
 0x8cb   :  { %7314 = dma.vmem_to_hbm [thread:$0]  %s7309_s0, 1536, %s11073_s15, [#allocation27], %s9799_s1, %s9799_s1, %s9800_s19   ;;  %v7211_v43 = vld [vmem:[#allocation22] sm:$0xf]  ;;  %v7245_v23 = vld [vmem:[#allocation23] sm:$0xf] }
 0x8cc   :  { %v7216_v45 = vrot.slane %v7211_v43, %v10121_v0  ;;  %v7224_v57 = vrot.slane %v7211_v43, %v10134_v10  ;;  %v7220_v54 = vrot.slane %v7211_v43, %v10123_v6  ;;  %v7228_v16 = vrot.slane %v7211_v43, %v10151_v31  ;;  %s9818_s15 = smov [#allocation25]  }
 0x8cd   :  { %v7250_v39 = vrot.slane %v7245_v23, %v10121_v0  ;;  %v7258_v60 = vrot.slane %v7245_v23, %v10134_v10  ;;  %v7254_v52 = vrot.slane %v7245_v23, %v10123_v6  ;;  %v7262_v41 = vrot.slane %v7245_v23, %v10151_v31  ;;  %s7296_s1 = sshll.u32 %s9818_s15, 4  ;;  %s7297_s1 = int_to_ptr.vmem [resolvable:$true] %s7296_s1 }
 0x8ce   :  { %s9753_s19 = scalar_lea.vmem %s7297_s1, 1536  ;;  %p9758_p9 = scmp.lt.s32.totalorder %s7297_s1, %s7297_s1 }
 0x8cf   :  { %p9754_p8 = scmp.ne.s32.totalorder %s7297_s1, %s9753_s19  ;;  %p9759_p10 = scmp.lt.s32.totalorder %s9753_s19, %s9753_s19 }
 0x8d1   :  { %p9760_p11 = por %p9759_p10, %p9758_p9 }
 0x8d3   :  { %p9761_p12 = pnand %p9760_p11, %p9754_p8 }
 0x948   :  { %v7179_v19 = vpop.xlane.xlu0 %7178 }
 0x949   :  { %v7190_v58 = vmul.f32 0.001953125, %v7179_v19 }
 0x94b   :  { %v7193_v9 = vadd.f32 1e-05, %v7190_v58  ;;  %v7184_v26 = vpop.xlane.xlu1 %7183 }
 0x94c   :  { %v7191_v44 = vmul.f32 0.001953125, %v7184_v26 }
 0x94d   :  { %9405 = vrsqrt.f32 %v7193_v9 }
 0x94e   :  { %v7194_v50 = vadd.f32 1e-05, %v7191_v44 }
 0x950   :  { %9407 = vrsqrt.f32 %v7194_v50  ;;  %v7189_v35 = vpop.xlane.xlu0 %7188 }
 0x951   :  { %v7192_v18 = vmul.f32 0.001953125, %v7189_v35 }
 0x953   :  { %v7195_v25 = vadd.f32 1e-05, %v7192_v18 }
 0x955   :  { %9409 = vrsqrt.f32 %v7195_v25 }
 0x957   :  { %v9406_v30 = vpop.eup %9405 }
 0x958   :  { %v7199_v12 = vmul.f32 %v9406_v30, %v10960_v49  ;;  %v7200_v29 = vmul.f32 %v9406_v30, %v10962_v36  ;;  %v7201_v3 = vmul.f32 %v9406_v30, %v10964_v37  ;;  %v7202_v32 = vmul.f32 %v9406_v30, %v10966_v2 }
 0x95a   :  { %v9408_v22 = vpop.eup %9407  ;;  %v7233_v8 = vmul.f32 %v7216_v45, %v7199_v12  ;;  %v7234_v28 = vmul.f32 %v7220_v54, %v7200_v29  ;;  %v7235_v55 = vmul.f32 %v7224_v57, %v7201_v3  ;;  %v7236_v34 = vmul.f32 %v7228_v16, %v7202_v32 }
 0x95b   :  { %v7203_v0 = vmul.f32 %v9408_v22, %v10968_v53  ;;  %v7204_v10 = vmul.f32 %v9408_v22, %v10970_v24  ;;  %v7205_v6 = vmul.f32 %v9408_v22, %v10976_v5  ;;  %v7206_v31 = vmul.f32 %v9408_v22, %v10984_v51 }
 0x95c   :  { %v7267_v49 = vadd.f32 %v7250_v39, %v7233_v8  ;;  %v7268_v21 = vadd.f32 %v7254_v52, %v7234_v28  ;;  %v7269_v36 = vadd.f32 %v7258_v60, %v7235_v55  ;;  %v7270_v63 = vadd.f32 %v7262_v41, %v7236_v34 }
 0x95d   :  { %v7237_v37 = vmul.f32 %v7216_v45, %v7203_v0  ;;  %v7238_v1 = vmul.f32 %v7220_v54, %v7204_v10  ;;  %v7239_v2 = vmul.f32 %v7224_v57, %v7205_v6  ;;  %v7240_v4 = vmul.f32 %v7228_v16, %v7206_v31 }
 0x95e   :  { %7279 = vst [vmem:[#allocation25] sm:$0xff] %v7267_v49  ;;  %7280 = vst [vmem:[#allocation25 + $0x8] sm:$0xff] %v7268_v21 }
 0x95f   :  { %7281 = vst [vmem:[#allocation25 + $0x10] sm:$0xff] %v7269_v36  ;;  %7282 = vst [vmem:[#allocation25 + $0x18] sm:$0xff] %v7270_v63  ;;  %v9410_v11 = vpop.eup %9409  ;;  %v7271_v53 = vadd.f32 %v7250_v39, %v7237_v37  ;;  %v7272_v42 = vadd.f32 %v7254_v52, %v7238_v1  ;;  %v7273_v24 = vadd.f32 %v7258_v60, %v7239_v2 }
 0x960   :  { %v7274_v56 = vadd.f32 %v7262_v41, %v7240_v4  ;;  %v7207_v5 = vmul.f32 %v9410_v11, %v10990_v15  ;;  %v7208_v51 = vmul.f32 %v9410_v11, %v10992_v62  ;;  %v7209_v33 = vmul.f32 %v9410_v11, %v10994_v27 }
 0x961   :  { %v7210_v20 = vmul.f32 %v9410_v11, %v10998_v61  ;;  %7283 = vst [vmem:[#allocation25 + $0x20] sm:$0xff] %v7271_v53  ;;  %7284 = vst [vmem:[#allocation25 + $0x28] sm:$0xff] %v7272_v42 }
 0x962   :  { %7285 = vst [vmem:[#allocation25 + $0x30] sm:$0xff] %v7273_v24  ;;  %7286 = vst [vmem:[#allocation25 + $0x38] sm:$0xff] %v7274_v56  ;;  %v7241_v13 = vmul.f32 %v7216_v45, %v7207_v5  ;;  %v7242_v38 = vmul.f32 %v7220_v54, %v7208_v51  ;;  %v7243_v14 = vmul.f32 %v7224_v57, %v7209_v33 }
 0x963   :  { %v7244_v7 = vmul.f32 %v7228_v16, %v7210_v20 }
 0x964   :  { %v7275_v48 = vadd.f32 %v7250_v39, %v7241_v13  ;;  %v7276_v46 = vadd.f32 %v7254_v52, %v7242_v38  ;;  %v7277_v59 = vadd.f32 %v7258_v60, %v7243_v14 }
 0x965   :  { %v7278_v15 = vadd.f32 %v7262_v41, %v7244_v7 }
 0x966   :  { %7287 = vst [vmem:[#allocation25 + $0x40] sm:$0xff] %v7275_v48  ;;  %7288 = vst [vmem:[#allocation25 + $0x48] sm:$0xff] %v7276_v46 }
 0x967   :  { %7289 = vst [vmem:[#allocation25 + $0x50] sm:$0xff] %v7277_v59  ;;  %7290 = vst [vmem:[#allocation25 + $0x58] sm:$0xff] %v7278_v15 }
 0x968   :  { %9764 = shalt.err (!%p9761_p12)
}
 0x969   :  { %s9765_s3 = scalar_lea.hbm %s11072_s14, 1536 }
 0x96a   :  { %p9766_p13 = scmp.ne.s32.totalorder %s11072_s14, %s9765_s3  ;;  %p9769_p0 = scmp.lt.u32.totalorder %s9765_s3, %s11072_s14 }
 0x96c   :  { %p9771_p1 = pnand %p9769_p0, %p9766_p13 }
 0x96e   :  { %9774 = shalt.err (!%p9771_p1)
}
 0x96f   :  { %7302 = dma.vmem_to_hbm [thread:$0]  %s7297_s1, 1536, %s11072_s14, [#allocation4], %s9806_s11, %s9806_s11, %s9807_s18  }
 0x970   :  { %9791 = dma.done.wait [#allocation4], 1536  }
 0x971   :  { %9792 = vsyncadd [#allocation4], 4294965760 }
 0x972   :  { %9793 = dma.done.wait [#allocation27], 1536  }
 0x973   :  { %9794 = vsyncadd [#allocation27], 4294965760 }
 0x974   :  { %7321 = vsyncpa [#allocation3], 1 }
 0x975   :  { %7322 = vsyncpa [#allocation6], 1 }
 0x976   :  { %7323 = vsyncpa [#allocation9], 1 }
 0x977   :  { %7324 = vsyncpa [#allocation12], 1 }
 0x978   :  { %7325 = vsyncpa [#allocation15], 1 }
 0x979   :  { %7326 = vsyncpa [#allocation18], 1 }
 0x97a   :  { %7327 = vsyncpa [#allocation21], 1 }
 0x97b   :  { %7328 = vsyncpa [#allocation24], 1 }
 0x97c   :  { %7329 = vsyncpa [#allocation4], 1 }
 0x97d   :  { %7330 = vsyncpa [#allocation27], 1 }

</bundles_post_ra>
